<compile_context>
chip_gen: v5e
topology: v5e:2x2
jax: 0.10.0
libtpu: 0.0.40
codegen_flags: <defaults>
</compile_context>

<pallas_src>
import functools

import jax
import jax.numpy as jnp
from jax.experimental import pallas as pl
from jax.experimental.pallas import tpu as pltpu

_LANE = 128
_SUBLANE = 8


def _round_up(x, m):
    return (x + m - 1) // m * m


# -----------------------------------------------------------------------------
# Fused kernel, small-bottleneck path (9 * Cb <= 128): conv2 is ONE matmul with
# the 9 spatial taps packed along the contraction dimension.
# -----------------------------------------------------------------------------
def _convblock_packed_kernel(x_ref, mnl_ref, mnr_ref, lm_ref, w1_ref, b1_ref,
                             w2_ref, b2_ref, w3_ref, b3_ref, o_ref, h1f_ref,
                             *, H, W, pad):
    # x_ref:   (HW, Cin)           bf16  one image, NHWC flattened
    # mnl_ref: (HW, 1)             bf16  0 where x==0   (mask for dx=-1 taps)
    # mnr_ref: (HW, 1)             bf16  0 where x==W-1 (mask for dx=+1 taps)
    # lm_ref:  (9, 1, 128)         bf16  lane mask selecting lanes [t*Cb,(t+1)*Cb)
    # w1_ref:  (Cin, 128)          bf16  1x1 weights, BN1 folded, Cb outputs replicated 9x
    # b1_ref:  (1, 128)            f32
    # w2_ref:  (128, Cbp)          bf16  3x3 weights packed along K (row t*Cb+ci)
    # b2_ref:  (1, Cbp)            f32
    # w3_ref:  (Cbp, Coutp)        bf16
    # b3_ref:  (1, Coutp)          f32
    # o_ref:   (HW, Coutp)         bf16  lane-dense output
    # h1f_ref: (HW + 2*pad, 128)   bf16  flat halo: `pad` zero rows above/below h1
    HW = H * W
    kp = h1f_ref.shape[1]

    # ---- conv1 (1x1) + bias + ReLU; bottleneck channels replicated along lanes ----
    h1 = jnp.dot(x_ref[...], w1_ref[...], preferred_element_type=jnp.float32)
    h1 = jnp.maximum(h1 + b1_ref[...], 0.0).astype(jnp.bfloat16)

    # ---- flat halo: zero only the border rows; 8-aligned interior store ----------
    zero_rows = jnp.zeros((pad, kp), jnp.bfloat16)
    h1f_ref[0:pad, :] = zero_rows
    h1f_ref[pad + HW:2 * pad + HW, :] = zero_rows
    h1f_ref[pad:pad + HW, :] = h1

    # ---- pack the 9 shifted taps into the contraction dimension ------------------
    packed = None
    t = 0
    for dy in (-1, 0, 1):
        for dx in (-1, 0, 1):
            tap = h1f_ref[pl.ds(pad + dy * W + dx, HW), :]   # contiguous slice
            tap = tap * lm_ref[t]                            # keep lane group t
            if dx == -1:
                tap = tap * mnl_ref[...]
            elif dx == 1:
                tap = tap * mnr_ref[...]
            packed = tap if packed is None else packed + tap
            t += 1

    # ---- conv2 (3x3) as a single matmul over packed K, + bias + ReLU -------------
    h2 = jnp.dot(packed, w2_ref[...], preferred_element_type=jnp.float32)
    h2 = jnp.maximum(h2 + b2_ref[...], 0.0).astype(jnp.bfloat16)

    # ---- conv3 (1x1) + bias + ReLU ------------------------------------------------
    out = jnp.dot(h2, w3_ref[...], preferred_element_type=jnp.float32)
    o_ref[...] = jnp.maximum(out + b3_ref[...], 0.0).astype(o_ref.dtype)


# -----------------------------------------------------------------------------
# Fused kernel, wide-bottleneck fallback (9 * Cb > 128): 9 shifted matmuls into
# a VMEM f32 accumulator.
# -----------------------------------------------------------------------------
def _convblock_wide_kernel(x_ref, mnl_ref, mnr_ref, w1_ref, b1_ref, w2_ref,
                           b2_ref, w3_ref, b3_ref, o_ref, h1f_ref, acc_ref,
                           *, H, W, pad):
    HW = H * W
    cbp = h1f_ref.shape[1]

    h1 = jnp.dot(x_ref[...], w1_ref[...], preferred_element_type=jnp.float32)
    h1 = jnp.maximum(h1 + b1_ref[...], 0.0).astype(jnp.bfloat16)

    zero_rows = jnp.zeros((pad, cbp), jnp.bfloat16)
    h1f_ref[0:pad, :] = zero_rows
    h1f_ref[pad + HW:2 * pad + HW, :] = zero_rows
    h1f_ref[pad:pad + HW, :] = h1

    t = 0
    for dy in (-1, 0, 1):
        for dx in (-1, 0, 1):
            tap = h1f_ref[pl.ds(pad + dy * W + dx, HW), :]
            if dx == -1:
                tap = tap * mnl_ref[...]
            elif dx == 1:
                tap = tap * mnr_ref[...]
            part = jnp.dot(tap, w2_ref[t], preferred_element_type=jnp.float32)
            if t == 0:
                acc_ref[...] = part
            else:
                acc_ref[...] += part
            t += 1

    h2 = jnp.maximum(acc_ref[...] + b2_ref[...], 0.0).astype(jnp.bfloat16)
    out = jnp.dot(h2, w3_ref[...], preferred_element_type=jnp.float32)
    o_ref[...] = jnp.maximum(out + b3_ref[...], 0.0).astype(o_ref.dtype)


# ------------------------- BN folding / weight padding ------------------------
def _fold_bn(params):
    w1 = params["w1"] * params["s1"][None, :]
    w2 = params["w2"] * params["s2"][None, None, None, :]
    w3 = params["w3"] * params["s3"][None, :]
    return w1, params["b1"], w2, params["b2"], w3, params["b3"]


def _prep_packed(params, cbp, coutp):
    w1f, b1f, w2f, b2f, w3f, b3f = _fold_bn(params)
    cin, cb = w1f.shape
    cout = w3f.shape[1]
    kp = _LANE  # packed contraction width (9*cb <= 128)

    # conv1: replicate the cb output channels 9x along lanes.
    w1rep = jnp.zeros((cin, kp), jnp.float32).at[:, :9 * cb].set(
        jnp.tile(w1f, (1, 9))).astype(jnp.bfloat16)
    b1rep = jnp.zeros((1, kp), jnp.float32).at[0, :9 * cb].set(jnp.tile(b1f, (9,)))

    # conv2 packed along K: row t*cb + ci  <-  w2[ky, kx, ci, :], t = ky*3+kx.
    w2pk = jnp.zeros((kp, cbp), jnp.float32).at[:9 * cb, :cb].set(
        w2f.reshape(9 * cb, cb)).astype(jnp.bfloat16)
    b2p = jnp.zeros((1, cbp), jnp.float32).at[0, :cb].set(b2f)

    w3p = jnp.zeros((cbp, coutp), jnp.float32).at[:cb, :cout].set(w3f).astype(jnp.bfloat16)
    b3p = jnp.zeros((1, coutp), jnp.float32).at[0, :cout].set(b3f)

    lane = jnp.arange(_LANE)
    tap = jnp.arange(9)
    lm = ((lane[None, :] >= (tap * cb)[:, None]) &
          (lane[None, :] < ((tap + 1) * cb)[:, None])).astype(jnp.bfloat16)
    lm = lm.reshape(9, 1, _LANE)
    return w1rep, b1rep, w2pk, b2p, w3p, b3p, lm


def _prep_wide(params, cbp, coutp):
    w1f, b1f, w2f, b2f, w3f, b3f = _fold_bn(params)
    cin, cb = w1f.shape
    cout = w3f.shape[1]

    w1p = jnp.zeros((cin, cbp), jnp.float32).at[:, :cb].set(w1f).astype(jnp.bfloat16)
    b1p = jnp.zeros((1, cbp), jnp.float32).at[0, :cb].set(b1f)
    w2p = jnp.zeros((3, 3, cbp, cbp), jnp.float32).at[:, :, :cb, :cb].set(w2f)
    w2p = w2p.reshape(9, cbp, cbp).astype(jnp.bfloat16)
    b2p = jnp.zeros((1, cbp), jnp.float32).at[0, :cb].set(b2f)
    w3p = jnp.zeros((cbp, coutp), jnp.float32).at[:cb, :cout].set(w3f).astype(jnp.bfloat16)
    b3p = jnp.zeros((1, coutp), jnp.float32).at[0, :cout].set(b3f)
    return w1p, b1p, w2p, b2p, w3p, b3p


# ------------------------------- public wrappers ------------------------------
@jax.jit
def conv_block_forward_nhwc(x_nhwc, params):
    """NHWC in / NHWC out. Prefer this entry point when the surrounding graph is
    already NHWC: it avoids the two full-array relayouts of the NCHW wrapper."""
    N, H, W, Cin = x_nhwc.shape
    Cb = params["w1"].shape[1]
    Cout = params["w3"].shape[1]
    HW = H * W
    cbp = _round_up(Cb, _LANE)
    coutp = _round_up(Cout, _LANE)
    pad = _round_up(W + 1, _SUBLANE)        # zero rows above/below the flat h1
    packed_path = (9 * Cb) <= _LANE         # tiny bottleneck: pack taps into K

    x = x_nhwc.reshape(N, HW, Cin).astype(jnp.bfloat16)

    # x-edge masks (multiplicative, broadcast over lanes inside the kernel).
    col = jnp.tile(jnp.arange(W, dtype=jnp.int32), (H,))
    mnl = (col != 0).astype(jnp.bfloat16).reshape(HW, 1)       # dx = -1 valid
    mnr = (col != W - 1).astype(jnp.bfloat16).reshape(HW, 1)   # dx = +1 valid

    mask_specs = [
        pl.BlockSpec((HW, 1), lambda n: (0, 0)),   # mnl
        pl.BlockSpec((HW, 1), lambda n: (0, 0)),   # mnr
    ]
    common_tail_specs = [
        pl.BlockSpec((1, cbp), lambda n: (0, 0)),          # b2
        pl.BlockSpec((cbp, coutp), lambda n: (0, 0)),      # w3
        pl.BlockSpec((1, coutp), lambda n: (0, 0)),        # b3
    ]

    if packed_path:
        w1p, b1p, w2p, b2p, w3p, b3p, lm = _prep_packed(params, cbp, coutp)
        kernel = functools.partial(_convblock_packed_kernel, H=H, W=W, pad=pad)
        in_specs = (
            [pl.BlockSpec((None, HW, Cin), lambda n: (n, 0, 0))]    # x
            + mask_specs
            + [pl.BlockSpec((9, 1, _LANE), lambda n: (0, 0, 0)),    # lane masks
               pl.BlockSpec((Cin, _LANE), lambda n: (0, 0)),        # w1 (replicated)
               pl.BlockSpec((1, _LANE), lambda n: (0, 0)),          # b1
               pl.BlockSpec((_LANE, cbp), lambda n: (0, 0))]        # w2 (packed K)
            + common_tail_specs
        )
        scratch = [pltpu.VMEM((HW + 2 * pad, _LANE), jnp.bfloat16)]
        operands = (x, mnl, mnr, lm, w1p, b1p, w2p, b2p, w3p, b3p)
    else:
        w1p, b1p, w2p, b2p, w3p, b3p = _prep_wide(params, cbp, coutp)
        kernel = functools.partial(_convblock_wide_kernel, H=H, W=W, pad=pad)
        in_specs = (
            [pl.BlockSpec((None, HW, Cin), lambda n: (n, 0, 0))]    # x
            + mask_specs
            + [pl.BlockSpec((Cin, cbp), lambda n: (0, 0)),          # w1
               pl.BlockSpec((1, cbp), lambda n: (0, 0)),            # b1
               pl.BlockSpec((9, cbp, cbp), lambda n: (0, 0, 0))]    # w2 taps
            + common_tail_specs
        )
        scratch = [pltpu.VMEM((HW + 2 * pad, cbp), jnp.bfloat16),
                   pltpu.VMEM((HW, cbp), jnp.float32)]
        operands = (x, mnl, mnr, w1p, b1p, w2p, b2p, w3p, b3p)

    out_p = pl.pallas_call(
        kernel,
        out_shape=jax.ShapeDtypeStruct((N, HW, coutp), jnp.bfloat16),
        grid_spec=pltpu.PrefetchScalarGridSpec(
            num_scalar_prefetch=0,
            grid=(N,),
            in_specs=in_specs,
            out_specs=pl.BlockSpec((None, HW, coutp), lambda n: (n, 0, 0)),
            scratch_shapes=scratch,
        ),
        compiler_params=pltpu.CompilerParams(
            dimension_semantics=("parallel",),
        ),
    )(*operands)

    return out_p[:, :, :Cout].astype(jnp.float32).reshape(N, H, W, Cout)


@jax.jit
def conv_block_forward(x_nchw, params):
    x = jnp.transpose(x_nchw, (0, 2, 3, 1))
    out = conv_block_forward_nhwc(x, params)
    return jnp.transpose(out, (0, 3, 1, 2))


# --------------------------- deterministic parameters -------------------------
def init_params(key, cin, cb, cout, eps=1e-5):
    keys = jax.random.split(key, 15)

    def bn(kg, kb, km, kv, c):
        gamma = jax.random.uniform(kg, (c,), jnp.float32, 0.5, 1.5)
        beta = 0.1 * jax.random.normal(kb, (c,), jnp.float32)
        mean = 0.1 * jax.random.normal(km, (c,), jnp.float32)
        var = jax.random.uniform(kv, (c,), jnp.float32, 0.5, 1.5)
        s = gamma / jnp.sqrt(var + eps)
        b = beta - mean * s
        return s, b

    w1 = 0.2 * jax.random.normal(keys[0], (cin, cb), jnp.float32)        # 1x1, (I,O)
    w2 = 0.2 * jax.random.normal(keys[1], (3, 3, cb, cb), jnp.float32)   # 3x3, HWIO
    w3 = 0.2 * jax.random.normal(keys[2], (cb, cout), jnp.float32)       # 1x1, (I,O)
    s1, b1 = bn(*keys[3:7], cb)
    s2, b2 = bn(*keys[7:11], cb)
    s3, b3 = bn(*keys[11:15], cout)
    return dict(w1=w1, w2=w2, w3=w3, s1=s1, b1=b1, s2=s2, b2=b2, s3=s3, b3=b3)


# ------------------------------ pure-JAX reference -----------------------------
def reference_forward(x_nchw, params):
    x = jnp.transpose(x_nchw, (0, 2, 3, 1))  # NHWC

    def conv(x, w):
        if w.ndim == 2:
            w = w.reshape(1, 1, *w.shape)
        padding = "SAME" if w.shape[0] == 3 else "VALID"
        return jax.lax.conv_general_dilated(
            x, w, window_strides=(1, 1), padding=padding,
            dimension_numbers=("NHWC", "HWIO", "NHWC"),
            precision=jax.lax.Precision.HIGHEST)

    def bnrelu(x, s, b):
        return jnp.maximum(x * s + b, 0.0)

    h = bnrelu(conv(x, params["w1"]), params["s1"], params["b1"])
    h = bnrelu(conv(h, params["w2"]), params["s2"], params["b2"])
    h = bnrelu(conv(h, params["w3"]), params["s3"], params["b3"])
    return jnp.transpose(h, (0, 3, 1, 2))


if __name__ == "__main__":
    key = jax.random.PRNGKey(0)
    kx, kparam = jax.random.split(key)

    N, Cin, Cb, Cout, H, W = 2, 4, 8, 16, 16, 16
    x = jax.random.normal(kx, (N, Cin, H, W), dtype=jnp.float32)
    params = init_params(kparam, Cin, Cb, Cout)

    out = jax.block_until_ready(conv_block_forward(x, params))
    assert out.shape == (N, Cout, H, W), out.shape

    ref = reference_forward(x, params)
    max_err = float(jnp.max(jnp.abs(out - ref)))
    scale = max(1.0, float(jnp.max(jnp.abs(ref))))
    # bf16 matmul operands + bf16 output store (f32 accumulation) -> loosened tolerance.
    assert max_err <= 5e-2 * scale, f"mismatch vs reference: {max_err} (ref scale {scale})"

    print("KERNEL_OK")
</pallas_src>

<mosaic_0001>
module attributes {stable_mosaic.version = 11 : i64} {
  func.func @_convblock_packed_kernel(%arg0: i32, %arg1: memref<1x256x4xbf16, #tpu.memory_space<vmem>>, %arg2: memref<256x1xbf16, #tpu.memory_space<vmem>>, %arg3: memref<256x1xbf16, #tpu.memory_space<vmem>>, %arg4: memref<9x1x128xbf16, #tpu.memory_space<vmem>>, %arg5: memref<4x128xbf16, #tpu.memory_space<vmem>>, %arg6: memref<1x128xf32, #tpu.memory_space<vmem>>, %arg7: memref<128x128xbf16, #tpu.memory_space<vmem>>, %arg8: memref<1x128xf32, #tpu.memory_space<vmem>>, %arg9: memref<128x128xbf16, #tpu.memory_space<vmem>>, %arg10: memref<1x128xf32, #tpu.memory_space<vmem>>, %arg11: memref<1x256x128xbf16, #tpu.memory_space<vmem>>, %arg12: memref<304x128xbf16, #tpu.memory_space<vmem>>) attributes {dimension_semantics = [#tpu.dimension_semantics<parallel>], iteration_bounds = array<i64: 2>, scalar_prefetch = 0 : i64, scratch_operands = 1 : i64, tpu.core_type = #tpu.core_type<tc>, window_params = [{transform_indices = @transform_0, window_bounds = array<i64: 1, 256, 4>}, {pipeline_mode = #tpu.pipeline_mode<synchronous>, transform_indices = @transform_1, window_bounds = array<i64: 256, 1>}, {pipeline_mode = #tpu.pipeline_mode<synchronous>, transform_indices = @transform_2, window_bounds = array<i64: 256, 1>}, {pipeline_mode = #tpu.pipeline_mode<synchronous>, transform_indices = @transform_3, window_bounds = array<i64: 9, 1, 128>}, {pipeline_mode = #tpu.pipeline_mode<synchronous>, transform_indices = @transform_4, window_bounds = array<i64: 4, 128>}, {pipeline_mode = #tpu.pipeline_mode<synchronous>, transform_indices = @transform_5, window_bounds = array<i64: 1, 128>}, {pipeline_mode = #tpu.pipeline_mode<synchronous>, transform_indices = @transform_6, window_bounds = array<i64: 128, 128>}, {pipeline_mode = #tpu.pipeline_mode<synchronous>, transform_indices = @transform_7, window_bounds = array<i64: 1, 128>}, {pipeline_mode = #tpu.pipeline_mode<synchronous>, transform_indices = @transform_8, window_bounds = array<i64: 128, 128>}, {pipeline_mode = #tpu.pipeline_mode<synchronous>, transform_indices = @transform_9, window_bounds = array<i64: 1, 128>}, {transform_indices = @transform_10, window_bounds = array<i64: 1, 256, 128>}]} {
    %c0 = arith.constant 0 : index
    %c0_0 = arith.constant 0 : index
    %c0_1 = arith.constant 0 : index
    %0 = vector.load %arg1[%c0, %c0_0, %c0_1] : memref<1x256x4xbf16, #tpu.memory_space<vmem>>, vector<1x256x4xbf16>
    %1 = vector.shape_cast %0 : vector<1x256x4xbf16> to vector<256x4xbf16>
    %c0_2 = arith.constant 0 : index
    %c0_3 = arith.constant 0 : index
    %2 = vector.load %arg5[%c0_2, %c0_3] : memref<4x128xbf16, #tpu.memory_space<vmem>>, vector<4x128xbf16>
    %cst = arith.constant dense<0.000000e+00> : vector<256x128xf32>
    %3 = tpu.matmul %1, %2, %cst {dimension_numbers = #tpu.dot_dimension_numbers<[1], [0], [0], [1], [0, 0, 1, 1], [], []>} : vector<256x4xbf16>, vector<4x128xbf16>, vector<256x128xf32> -> vector<256x128xf32>
    %c0_4 = arith.constant 0 : index
    %c0_5 = arith.constant 0 : index
    %4 = vector.load %arg6[%c0_4, %c0_5] : memref<1x128xf32, #tpu.memory_space<vmem>>, vector<1x128xf32>
    %5 = vector.broadcast %4 : vector<1x128xf32> to vector<256x128xf32>
    %6 = arith.addf %3, %5 : vector<256x128xf32>
    %cst_6 = arith.constant 0.000000e+00 : f32
    %7 = vector.broadcast %cst_6 : f32 to vector<256x128xf32>
    %8 = arith.maximumf %6, %7 : vector<256x128xf32>
    %9 = arith.truncf %8 : vector<256x128xf32> to vector<256x128xbf16>
    %cst_7 = arith.constant 0.000000e+00 : bf16
    %10 = vector.broadcast %cst_7 : bf16 to vector<24x128xbf16>
    %c0_8 = arith.constant 0 : index
    %c0_9 = arith.constant 0 : index
    %11 = vector.load %arg12[%c0_8, %c0_9] : memref<304x128xbf16, #tpu.memory_space<vmem>>, vector<24x128xbf16>
    tpu.vector_store %arg12[%c0_8, %c0_9], %10 {strides = array<i32>} : memref<304x128xbf16, #tpu.memory_space<vmem>>, vector<24x128xbf16>,
    %c280 = arith.constant 280 : index
    %c0_10 = arith.constant 0 : index
    %12 = vector.load %arg12[%c280, %c0_10] : memref<304x128xbf16, #tpu.memory_space<vmem>>, vector<24x128xbf16>
    tpu.vector_store %arg12[%c280, %c0_10], %10 {strides = array<i32>} : memref<304x128xbf16, #tpu.memory_space<vmem>>, vector<24x128xbf16>,
    %c24 = arith.constant 24 : index
    %c0_11 = arith.constant 0 : index
    %13 = vector.load %arg12[%c24, %c0_11] : memref<304x128xbf16, #tpu.memory_space<vmem>>, vector<256x128xbf16>
    tpu.vector_store %arg12[%c24, %c0_11], %9 {strides = array<i32>} : memref<304x128xbf16, #tpu.memory_space<vmem>>, vector<256x128xbf16>,
    %c7 = arith.constant 7 : index
    %c0_12 = arith.constant 0 : index
    %14 = vector.load %arg12[%c7, %c0_12] : memref<304x128xbf16, #tpu.memory_space<vmem>>, vector<256x128xbf16>
    %c0_13 = arith.constant 0 : index
    %c0_14 = arith.constant 0 : index
    %c0_15 = arith.constant 0 : index
    %15 = vector.load %arg4[%c0_13, %c0_14, %c0_15] : memref<9x1x128xbf16, #tpu.memory_space<vmem>>, vector<1x1x128xbf16>
    %16 = vector.shape_cast %15 : vector<1x1x128xbf16> to vector<1x128xbf16>
    %17 = vector.broadcast %16 : vector<1x128xbf16> to vector<256x128xbf16>
    %18 = arith.mulf %14, %17 : vector<256x128xbf16>
    %c0_16 = arith.constant 0 : index
    %c0_17 = arith.constant 0 : index
    %19 = vector.load %arg2[%c0_16, %c0_17] : memref<256x1xbf16, #tpu.memory_space<vmem>>, vector<256x1xbf16>
    %20 = vector.broadcast %19 : vector<256x1xbf16> to vector<256x128xbf16>
    %21 = arith.mulf %18, %20 : vector<256x128xbf16>
    %c8 = arith.constant 8 : index
    %c0_18 = arith.constant 0 : index
    %22 = vector.load %arg12[%c8, %c0_18] : memref<304x128xbf16, #tpu.memory_space<vmem>>, vector<256x128xbf16>
    %c1 = arith.constant 1 : index
    %c0_19 = arith.constant 0 : index
    %c0_20 = arith.constant 0 : index
    %23 = vector.load %arg4[%c1, %c0_19, %c0_20] : memref<9x1x128xbf16, #tpu.memory_space<vmem>>, vector<1x1x128xbf16>
    %24 = vector.shape_cast %23 : vector<1x1x128xbf16> to vector<1x128xbf16>
    %25 = vector.broadcast %24 : vector<1x128xbf16> to vector<256x128xbf16>
    %26 = arith.mulf %22, %25 : vector<256x128xbf16>
    %27 = arith.addf %21, %26 : vector<256x128xbf16>
    %c9 = arith.constant 9 : index
    %c0_21 = arith.constant 0 : index
    %28 = vector.load %arg12[%c9, %c0_21] : memref<304x128xbf16, #tpu.memory_space<vmem>>, vector<256x128xbf16>
    %c2 = arith.constant 2 : index
    %c0_22 = arith.constant 0 : index
    %c0_23 = arith.constant 0 : index
    %29 = vector.load %arg4[%c2, %c0_22, %c0_23] : memref<9x1x128xbf16, #tpu.memory_space<vmem>>, vector<1x1x128xbf16>
    %30 = vector.shape_cast %29 : vector<1x1x128xbf16> to vector<1x128xbf16>
    %31 = vector.broadcast %30 : vector<1x128xbf16> to vector<256x128xbf16>
    %32 = arith.mulf %28, %31 : vector<256x128xbf16>
    %c0_24 = arith.constant 0 : index
    %c0_25 = arith.constant 0 : index
    %33 = vector.load %arg3[%c0_24, %c0_25] : memref<256x1xbf16, #tpu.memory_space<vmem>>, vector<256x1xbf16>
    %34 = vector.broadcast %33 : vector<256x1xbf16> to vector<256x128xbf16>
    %35 = arith.mulf %32, %34 : vector<256x128xbf16>
    %36 = arith.addf %27, %35 : vector<256x128xbf16>
    %c23 = arith.constant 23 : index
    %c0_26 = arith.constant 0 : index
    %37 = vector.load %arg12[%c23, %c0_26] : memref<304x128xbf16, #tpu.memory_space<vmem>>, vector<256x128xbf16>
    %c3 = arith.constant 3 : index
    %c0_27 = arith.constant 0 : index
    %c0_28 = arith.constant 0 : index
    %38 = vector.load %arg4[%c3, %c0_27, %c0_28] : memref<9x1x128xbf16, #tpu.memory_space<vmem>>, vector<1x1x128xbf16>
    %39 = vector.shape_cast %38 : vector<1x1x128xbf16> to vector<1x128xbf16>
    %40 = vector.broadcast %39 : vector<1x128xbf16> to vector<256x128xbf16>
    %41 = arith.mulf %37, %40 : vector<256x128xbf16>
    %c0_29 = arith.constant 0 : index
    %c0_30 = arith.constant 0 : index
    %42 = vector.load %arg2[%c0_29, %c0_30] : memref<256x1xbf16, #tpu.memory_space<vmem>>, vector<256x1xbf16>
    %43 = vector.broadcast %42 : vector<256x1xbf16> to vector<256x128xbf16>
    %44 = arith.mulf %41, %43 : vector<256x128xbf16>
    %45 = arith.addf %36, %44 : vector<256x128xbf16>
    %c24_31 = arith.constant 24 : index
    %c0_32 = arith.constant 0 : index
    %46 = vector.load %arg12[%c24_31, %c0_32] : memref<304x128xbf16, #tpu.memory_space<vmem>>, vector<256x128xbf16>
    %c4 = arith.constant 4 : index
    %c0_33 = arith.constant 0 : index
    %c0_34 = arith.constant 0 : index
    %47 = vector.load %arg4[%c4, %c0_33, %c0_34] : memref<9x1x128xbf16, #tpu.memory_space<vmem>>, vector<1x1x128xbf16>
    %48 = vector.shape_cast %47 : vector<1x1x128xbf16> to vector<1x128xbf16>
    %49 = vector.broadcast %48 : vector<1x128xbf16> to vector<256x128xbf16>
    %50 = arith.mulf %46, %49 : vector<256x128xbf16>
    %51 = arith.addf %45, %50 : vector<256x128xbf16>
    %c25 = arith.constant 25 : index
    %c0_35 = arith.constant 0 : index
    %52 = vector.load %arg12[%c25, %c0_35] : memref<304x128xbf16, #tpu.memory_space<vmem>>, vector<256x128xbf16>
    %c5 = arith.constant 5 : index
    %c0_36 = arith.constant 0 : index
    %c0_37 = arith.constant 0 : index
    %53 = vector.load %arg4[%c5, %c0_36, %c0_37] : memref<9x1x128xbf16, #tpu.memory_space<vmem>>, vector<1x1x128xbf16>
    %54 = vector.shape_cast %53 : vector<1x1x128xbf16> to vector<1x128xbf16>
    %55 = vector.broadcast %54 : vector<1x128xbf16> to vector<256x128xbf16>
    %56 = arith.mulf %52, %55 : vector<256x128xbf16>
    %c0_38 = arith.constant 0 : index
    %c0_39 = arith.constant 0 : index
    %57 = vector.load %arg3[%c0_38, %c0_39] : memref<256x1xbf16, #tpu.memory_space<vmem>>, vector<256x1xbf16>
    %58 = vector.broadcast %57 : vector<256x1xbf16> to vector<256x128xbf16>
    %59 = arith.mulf %56, %58 : vector<256x128xbf16>
    %60 = arith.addf %51, %59 : vector<256x128xbf16>
    %c39 = arith.constant 39 : index
    %c0_40 = arith.constant 0 : index
    %61 = vector.load %arg12[%c39, %c0_40] : memref<304x128xbf16, #tpu.memory_space<vmem>>, vector<256x128xbf16>
    %c6 = arith.constant 6 : index
    %c0_41 = arith.constant 0 : index
    %c0_42 = arith.constant 0 : index
    %62 = vector.load %arg4[%c6, %c0_41, %c0_42] : memref<9x1x128xbf16, #tpu.memory_space<vmem>>, vector<1x1x128xbf16>
    %63 = vector.shape_cast %62 : vector<1x1x128xbf16> to vector<1x128xbf16>
    %64 = vector.broadcast %63 : vector<1x128xbf16> to vector<256x128xbf16>
    %65 = arith.mulf %61, %64 : vector<256x128xbf16>
    %c0_43 = arith.constant 0 : index
    %c0_44 = arith.constant 0 : index
    %66 = vector.load %arg2[%c0_43, %c0_44] : memref<256x1xbf16, #tpu.memory_space<vmem>>, vector<256x1xbf16>
    %67 = vector.broadcast %66 : vector<256x1xbf16> to vector<256x128xbf16>
    %68 = arith.mulf %65, %67 : vector<256x128xbf16>
    %69 = arith.addf %60, %68 : vector<256x128xbf16>
    %c40 = arith.constant 40 : index
    %c0_45 = arith.constant 0 : index
    %70 = vector.load %arg12[%c40, %c0_45] : memref<304x128xbf16, #tpu.memory_space<vmem>>, vector<256x128xbf16>
    %c7_46 = arith.constant 7 : index
    %c0_47 = arith.constant 0 : index
    %c0_48 = arith.constant 0 : index
    %71 = vector.load %arg4[%c7_46, %c0_47, %c0_48] : memref<9x1x128xbf16, #tpu.memory_space<vmem>>, vector<1x1x128xbf16>
    %72 = vector.shape_cast %71 : vector<1x1x128xbf16> to vector<1x128xbf16>
    %73 = vector.broadcast %72 : vector<1x128xbf16> to vector<256x128xbf16>
    %74 = arith.mulf %70, %73 : vector<256x128xbf16>
    %75 = arith.addf %69, %74 : vector<256x128xbf16>
    %c41 = arith.constant 41 : index
    %c0_49 = arith.constant 0 : index
    %76 = vector.load %arg12[%c41, %c0_49] : memref<304x128xbf16, #tpu.memory_space<vmem>>, vector<256x128xbf16>
    %c8_50 = arith.constant 8 : index
    %c0_51 = arith.constant 0 : index
    %c0_52 = arith.constant 0 : index
    %77 = vector.load %arg4[%c8_50, %c0_51, %c0_52] : memref<9x1x128xbf16, #tpu.memory_space<vmem>>, vector<1x1x128xbf16>
    %78 = vector.shape_cast %77 : vector<1x1x128xbf16> to vector<1x128xbf16>
    %79 = vector.broadcast %78 : vector<1x128xbf16> to vector<256x128xbf16>
    %80 = arith.mulf %76, %79 : vector<256x128xbf16>
    %c0_53 = arith.constant 0 : index
    %c0_54 = arith.constant 0 : index
    %81 = vector.load %arg3[%c0_53, %c0_54] : memref<256x1xbf16, #tpu.memory_space<vmem>>, vector<256x1xbf16>
    %82 = vector.broadcast %81 : vector<256x1xbf16> to vector<256x128xbf16>
    %83 = arith.mulf %80, %82 : vector<256x128xbf16>
    %84 = arith.addf %75, %83 : vector<256x128xbf16>
    %c0_55 = arith.constant 0 : index
    %c0_56 = arith.constant 0 : index
    %85 = vector.load %arg7[%c0_55, %c0_56] : memref<128x128xbf16, #tpu.memory_space<vmem>>, vector<128x128xbf16>
    %cst_57 = arith.constant dense<0.000000e+00> : vector<256x128xf32>
    %86 = tpu.matmul %84, %85, %cst_57 {dimension_numbers = #tpu.dot_dimension_numbers<[1], [0], [0], [1], [0, 0, 1, 1], [], []>} : vector<256x128xbf16>, vector<128x128xbf16>, vector<256x128xf32> -> vector<256x128xf32>
    %c0_58 = arith.constant 0 : index
    %c0_59 = arith.constant 0 : index
    %87 = vector.load %arg8[%c0_58, %c0_59] : memref<1x128xf32, #tpu.memory_space<vmem>>, vector<1x128xf32>
    %88 = vector.broadcast %87 : vector<1x128xf32> to vector<256x128xf32>
    %89 = arith.addf %86, %88 : vector<256x128xf32>
    %cst_60 = arith.constant 0.000000e+00 : f32
    %90 = vector.broadcast %cst_60 : f32 to vector<256x128xf32>
    %91 = arith.maximumf %89, %90 : vector<256x128xf32>
    %92 = arith.truncf %91 : vector<256x128xf32> to vector<256x128xbf16>
    %c0_61 = arith.constant 0 : index
    %c0_62 = arith.constant 0 : index
    %93 = vector.load %arg9[%c0_61, %c0_62] : memref<128x128xbf16, #tpu.memory_space<vmem>>, vector<128x128xbf16>
    %cst_63 = arith.constant dense<0.000000e+00> : vector<256x128xf32>
    %94 = tpu.matmul %92, %93, %cst_63 {dimension_numbers = #tpu.dot_dimension_numbers<[1], [0], [0], [1], [0, 0, 1, 1], [], []>} : vector<256x128xbf16>, vector<128x128xbf16>, vector<256x128xf32> -> vector<256x128xf32>
    %c0_64 = arith.constant 0 : index
    %c0_65 = arith.constant 0 : index
    %95 = vector.load %arg10[%c0_64, %c0_65] : memref<1x128xf32, #tpu.memory_space<vmem>>, vector<1x128xf32>
    %96 = vector.broadcast %95 : vector<1x128xf32> to vector<256x128xf32>
    %97 = arith.addf %94, %96 : vector<256x128xf32>
    %cst_66 = arith.constant 0.000000e+00 : f32
    %98 = vector.broadcast %cst_66 : f32 to vector<256x128xf32>
    %99 = arith.maximumf %97, %98 : vector<256x128xf32>
    %100 = arith.truncf %99 : vector<256x128xf32> to vector<256x128xbf16>
    %c0_67 = arith.constant 0 : index
    %c0_68 = arith.constant 0 : index
    %c0_69 = arith.constant 0 : index
    %101 = vector.load %arg11[%c0_67, %c0_68, %c0_69] : memref<1x256x128xbf16, #tpu.memory_space<vmem>>, vector<1x256x128xbf16>
    %102 = vector.shape_cast %101 : vector<1x256x128xbf16> to vector<256x128xbf16>
    %103 = vector.shape_cast %100 : vector<256x128xbf16> to vector<1x256x128xbf16>
    tpu.vector_store %arg11[%c0_67, %c0_68, %c0_69], %103 {strides = array<i32>} : memref<1x256x128xbf16, #tpu.memory_space<vmem>>, vector<1x256x128xbf16>,
    return
  }
  func.func @transform_0(%arg0: i32) -> (i32, i32, i32) {
    %c0_i32 = arith.constant 0 : i32
    %c0_i32_0 = arith.constant 0 : i32
    %c0_i32_1 = arith.constant 0 : i32
    return %arg0, %c0_i32, %c0_i32_0 : i32, i32, i32
  }
  func.func @transform_1(%arg0: i32) -> (i32, i32) {
    %c0_i32 = arith.constant 0 : i32
    %c0_i32_0 = arith.constant 0 : i32
    %c0_i32_1 = arith.constant 0 : i32
    return %c0_i32, %c0_i32_0 : i32, i32
  }
  func.func @transform_2(%arg0: i32) -> (i32, i32) {
    %c0_i32 = arith.constant 0 : i32
    %c0_i32_0 = arith.constant 0 : i32
    %c0_i32_1 = arith.constant 0 : i32
    return %c0_i32, %c0_i32_0 : i32, i32
  }
  func.func @transform_3(%arg0: i32) -> (i32, i32, i32) {
    %c0_i32 = arith.constant 0 : i32
    %c0_i32_0 = arith.constant 0 : i32
    %c0_i32_1 = arith.constant 0 : i32
    %c0_i32_2 = arith.constant 0 : i32
    return %c0_i32, %c0_i32_0, %c0_i32_1 : i32, i32, i32
  }
  func.func @transform_4(%arg0: i32) -> (i32, i32) {
    %c0_i32 = arith.constant 0 : i32
    %c0_i32_0 = arith.constant 0 : i32
    %c0_i32_1 = arith.constant 0 : i32
    return %c0_i32, %c0_i32_0 : i32, i32
  }
  func.func @transform_5(%arg0: i32) -> (i32, i32) {
    %c0_i32 = arith.constant 0 : i32
    %c0_i32_0 = arith.constant 0 : i32
    %c0_i32_1 = arith.constant 0 : i32
    return %c0_i32, %c0_i32_0 : i32, i32
  }
  func.func @transform_6(%arg0: i32) -> (i32, i32) {
    %c0_i32 = arith.constant 0 : i32
    %c0_i32_0 = arith.constant 0 : i32
    %c0_i32_1 = arith.constant 0 : i32
    return %c0_i32, %c0_i32_0 : i32, i32
  }
  func.func @transform_7(%arg0: i32) -> (i32, i32) {
    %c0_i32 = arith.constant 0 : i32
    %c0_i32_0 = arith.constant 0 : i32
    %c0_i32_1 = arith.constant 0 : i32
    return %c0_i32, %c0_i32_0 : i32, i32
  }
  func.func @transform_8(%arg0: i32) -> (i32, i32) {
    %c0_i32 = arith.constant 0 : i32
    %c0_i32_0 = arith.constant 0 : i32
    %c0_i32_1 = arith.constant 0 : i32
    return %c0_i32, %c0_i32_0 : i32, i32
  }
  func.func @transform_9(%arg0: i32) -> (i32, i32) {
    %c0_i32 = arith.constant 0 : i32
    %c0_i32_0 = arith.constant 0 : i32
    %c0_i32_1 = arith.constant 0 : i32
    return %c0_i32, %c0_i32_0 : i32, i32
  }
  func.func @transform_10(%arg0: i32) -> (i32, i32, i32) {
    %c0_i32 = arith.constant 0 : i32
    %c0_i32_0 = arith.constant 0 : i32
    %c0_i32_1 = arith.constant 0 : i32
    return %arg0, %c0_i32, %c0_i32_0 : i32, i32, i32
  }
}

</mosaic_0001>

<bundles_post_ra>
// kernel: conv_block_forward_nhwc.1
= control target key start
LH: loop header
LB: loop body
LE: loop exit
PB: predicated region body
PF: predicated region fallthrough
CT: control target
= control target key end

     0   :  { %s6487_s13 = smov 0   ;;  %s9980_s0 = inlined_call_operand.vmem [shape: bf16[2,256,4], index: 0, kind: input, shape index: {}]   ;;  %s9981_s1 = inlined_call_operand.vmem [shape: bf16[256,1], index: 1, kind: input, shape index: {}]   ;;  %s9982_s2 = inlined_call_operand.vmem [shape: bf16[256,1], index: 2, kind: input, shape index: {}]   ;;  %s9983_s3 = inlined_call_operand.vmem [shape: bf16[9,1,128], index: 3, kind: input, shape index: {}]   ;;  %s9984_s4 = inlined_call_operand.vmem [shape: bf16[4,128], index: 4, kind: input, shape index: {}]   ;;  %s9985_s5 = inlined_call_operand.vmem [shape: f32[1,128], index: 5, kind: input, shape index: {}]   ;;  %s9986_s6 = inlined_call_operand.vmem [shape: bf16[128,128], index: 6, kind: input, shape index: {}]   ;;  %s9987_s7 = inlined_call_operand.vmem [shape: f32[1,128], index: 7, kind: input, shape index: {}]   ;;  %s9988_s8 = inlined_call_operand.vmem [shape: bf16[128,128], index: 8, kind: input, shape index: {}]   ;;  %s9989_s9 = inlined_call_operand.vmem [shape: f32[1,128], index: 9, kind: input, shape index: {}]   ;;  %s9990_s10 = inlined_call_operand.vmem [shape: bf16[2,256,128], index: 10, kind: output, shape index: {}]  }
   0x1 LB: > { %s5697_s14 = sadd.s32 4294967295, %s6428_s13   ;;  %p5701_p0 = scmp.ge.s32.totalorder %s6428_s13, 1  ;;  %s6428_s13 = sphi %s6487_s13, %s20_s13  }
   0x2   : > { %p312_p1 = scmp.lt.s32.totalorder %s6428_s13, 3 }
   0x4   : > { %p313_p2 = pnand %p5701_p0, %p312_p1 }
   0x6   : > { %316 = sbr.rel (%p313_p2) target bundleno = 1308 (0x51c), region = 60 }
   0xb   : > { %v1909_v0 = vld [vmem:[%s9982_s2] sm:$0xf]  ;;  %v862_v1 = vld [vmem:[%s9981_s1 + $0x8] sm:$0xf]  ;;  %vm527_vm0 = vcmask 1041408   ;;  %v6430_v2 = vmov 0  }
   0xc   : > { %6408 = vset.pattern.permute.xlu2 %v6430_v2  ;;  %684 = vst [vmem:[#allocation2] sm:$0xf] %v6430_v2  ;;  %6407 = vset.pattern.permute.xlu1 %v6430_v2  ;;  %v860_v3 = vld [vmem:[%s9981_s1] sm:$0xf]  ;;  %p350_p3 = scmp.lt.s32.totalorder %s5697_s14, 1  ;;  %vm478_vm1 = vcmask 31744  }
   0xd   : > { %v393_v4 = vld [vmem:[%s9984_s4] sm:$0x3]  ;;  %685 = vst [vmem:[#allocation2 + $0x4] sm:$0xf] %v6430_v2  ;;  %6406 = vset.pattern.permute.xlu0 %v6430_v2  ;;  %1943 = vperm.xlu2 %6408, %v1909_v0   ;;  %v1910_v6 = vld [vmem:[%s9982_s2 + $0x4] sm:$0xf] }
   0xe   : > { %v529_v5 = vsel %vm527_vm0, %v393_v4, 0  ;;  %686 = vst [vmem:[#allocation2 + $0x8] sm:$0xf] %v6430_v2  ;;  %912 = vperm.xlu1 %6407, %v862_v1   ;;  %894 = vperm.xlu0 %6406, %v860_v3   ;;  %s10736_s14 = smov (!%p350_p3, %s5697_s14), 1  ;;  %v863_v8 = vld [vmem:[%s9981_s1 + $0xc] sm:$0xf] }
   0xf   : > { %687 = vst [vmem:[#allocation2 + $0x8c] sm:$0xf] %v6430_v2  ;;  %538 = vmatpush.bf16.msra.mxu0 %v529_v5  ;;  %6379 = vmatpush.bf16.msra.mxu3 %v529_v5  ;;  %s5860_s23 = sshll.u32 %s10736_s14, 7  ;;  %v861_v9 = vld [vmem:[%s9981_s1 + $0x4] sm:$0xf]  ;;  %vm1277_vm2 = vcmask 1046528  }
  0x10   : > { %688 = vst [vmem:[#allocation2 + $0x90] sm:$0xf] %v6430_v2  ;;  %s6515_s26 = scalar_lea.vmem %s9980_s0, %s5860_s23  ;;  %v864_v10 = vld [vmem:[%s9981_s1 + $0x10] sm:$0xf]  ;;  %v1912_v11 = vld [vmem:[%s9982_s2 + $0xc] sm:$0xf]  ;;  %s9913_s20 = scalar_lea.vmem %s9990_s10, %s5860_s23 }
  0x11   : > { %689 = vst [vmem:[#allocation2 + $0x94] sm:$0xf] %v6430_v2  ;;  %v5862_v7 = vld [vmem:[%s6515_s26] sm:$0xff]  ;;  %v1911_v12 = vld [vmem:[%s9982_s2 + $0x8] sm:$0xf]  ;;  %v5864_v21 = vld [vmem:[%s6515_s26 + $0x10] sm:$0xff] }
  0x12   : > { %5770 = vmatmul.msk.bf16.vlgmr.msra.gmra.mxu0 %vm478_vm1, %v5862_v7  ;;  %v5863_v13 = vld [vmem:[%s6515_s26 + $0x8] sm:$0xff]  ;;  %v1914_v14 = vld [vmem:[%s9982_s2 + $0x14] sm:$0xf]  ;;  %v1913_v15 = vld [vmem:[%s9982_s2 + $0x10] sm:$0xf]  ;;  %vm2326_vm3 = vcmask 1040384  }
  0x13   : > { %v865_v16 = vld [vmem:[%s9981_s1 + $0x14] sm:$0xf]  ;;  %v5875_v17 = vld [vmem:[%s6515_s26 + $0x68] sm:$0xff]  ;;  %v1915_v18 = vld [vmem:[%s9982_s2 + $0x18] sm:$0xf]  ;;  %vm2588_vm4 = vcmask 1045504  }
  0x14   : > { %5783 = vmatmul.msk.bf16.vlgmr.msra.gmra.mxu3 %vm478_vm1, %v5875_v17  ;;  %v867_v19 = vld [vmem:[%s9981_s1 + $0x1c] sm:$0xf]  ;;  %v866_v20 = vld [vmem:[%s9981_s1 + $0x18] sm:$0xf]  ;;  %v869_v22 = vld [vmem:[%s9981_s1 + $0x24] sm:$0xf] }
  0x15   : > { %1952 = vperm.xlu2 %6408, %v1910_v6   ;;  %v868_v23 = vld [vmem:[%s9981_s1 + $0x20] sm:$0xf]  ;;  %v1916_v24 = vld [vmem:[%s9982_s2 + $0x1c] sm:$0xf]  ;;  %v5876_v25 = vld [vmem:[%s6515_s26 + $0x70] sm:$0xff] }
  0x16   : > { %921 = vperm.xlu1 %6407, %v863_v8   ;;  %903 = vperm.xlu0 %6406, %v861_v9   ;;  %v870_v26 = vld [vmem:[%s9981_s1 + $0x28] sm:$0xf]  ;;  %v1918_v27 = vld [vmem:[%s9982_s2 + $0x24] sm:$0xf]  ;;  %v1917_v28 = vld [vmem:[%s9982_s2 + $0x20] sm:$0xf] }
  0x17   : > { %v5865_v29 = vld [vmem:[%s6515_s26 + $0x18] sm:$0xff]  ;;  %v1920_v30 = vld [vmem:[%s9982_s2 + $0x2c] sm:$0xf]  ;;  %v1919_v31 = vld [vmem:[%s9982_s2 + $0x28] sm:$0xf] }
  0x18   : > { %v871_v32 = vld [vmem:[%s9981_s1 + $0x2c] sm:$0xf]  ;;  %v5877_v33 = vld [vmem:[%s6515_s26 + $0x78] sm:$0xff]  ;;  %v1921_v34 = vld [vmem:[%s9982_s2 + $0x30] sm:$0xf] }
  0x19   : > { %v873_v35 = vld [vmem:[%s9981_s1 + $0x34] sm:$0xf]  ;;  %v872_v36 = vld [vmem:[%s9981_s1 + $0x30] sm:$0xf]  ;;  %v5866_v37 = vld [vmem:[%s6515_s26 + $0x20] sm:$0xff] }
  0x1a   : > { %v875_v38 = vld [vmem:[%s9981_s1 + $0x3c] sm:$0xf]  ;;  %v874_v39 = vld [vmem:[%s9981_s1 + $0x38] sm:$0xf]  ;;  %v1922_v40 = vld [vmem:[%s9982_s2 + $0x34] sm:$0xf] }
  0x1b   : > { %v876_v41 = vld [vmem:[%s9981_s1 + $0x40] sm:$0xf]  ;;  %v1924_v42 = vld [vmem:[%s9982_s2 + $0x3c] sm:$0xf]  ;;  %v1923_v43 = vld [vmem:[%s9982_s2 + $0x38] sm:$0xf] }
  0x1c   : > { %v5867_v44 = vld [vmem:[%s6515_s26 + $0x28] sm:$0xff]  ;;  %v1926_v45 = vld [vmem:[%s9982_s2 + $0x44] sm:$0xf]  ;;  %v1925_v46 = vld [vmem:[%s9982_s2 + $0x40] sm:$0xf] }
  0x1d   : > { %930 = vperm.xlu2 %6408, %v864_v10   ;;  %v877_v47 = vld [vmem:[%s9981_s1 + $0x44] sm:$0xf]  ;;  %v884_v50 = vld [vmem:[%s9981_s1 + $0x60] sm:$0xf]  ;;  %v883_v51 = vld [vmem:[%s9981_s1 + $0x5c] sm:$0xf] }
  0x1e   : > { %1970 = vperm.xlu1 %6407, %v1912_v11   ;;  %1961 = vperm.xlu0 %6406, %v1911_v12   ;;  %v885_v49 = vld [vmem:[%s9981_s1 + $0x64] sm:$0xf]  ;;  %v755_v52 = vld [vmem:[%s9983_s3] sm:$0x1]  ;;  %v5787_v53 = vld [vmem:[%s9983_s3 + $0x2] sm:$0x1] }
  0x1f   : > { %v757_v55 = vpack.i.b16 %v755_v52, %v755_v52  ;;  %v5786_v56 = vld [vmem:[%s9983_s3 + $0x1] sm:$0x1]  ;;  %v5868_v57 = vld [vmem:[%s6515_s26 + $0x30] sm:$0xff]  ;;  %v1806_v58 = vpack.i.b16 %v5787_v53, %v5787_v53  ;;  %v1931_v59 = vld [vmem:[%s9982_s2 + $0x58] sm:$0xf] }
  0x20   : > { %v887_v60 = vld [vmem:[%s9981_s1 + $0x6c] sm:$0xf]  ;;  %v886_v61 = vld [vmem:[%s9981_s1 + $0x68] sm:$0xf]  ;;  %v1443_v63 = vpack.i.b16 %v5786_v56, %v5786_v56  ;;  %v722_v0 = vld [vmem:[#allocation2] sm:$0x8] }
  0x21   : > { %v759_v62 = vperm.slane %v757_v55, 0  ;;  %v1808_v1 = vperm.slane %v1806_v58, 0  ;;  %v1770_v2 = vld [vmem:[#allocation2 + $0x4] sm:$0xf]  ;;  %v760_v6 = vunpack.c.l.bf16 %v722_v0  ;;  %v6431_v7 = vmov 839922192  }
  0x22   : > { %5771 = vmatmul.msk.bf16.gmra.mxu0 %vm478_vm1, %v5863_v13  ;;  %v1445_v5 = vperm.slane %v1443_v63, 0  ;;  %v898_v8 = vunpack.c.l.s4 %v6431_v7  ;;  %v6669_v9 = vld [vmem:[#allocation2 + $0x4] sm:$0xf]  ;;  %v1809_v11 = vunpack.c.l.bf16 %v1770_v2  ;;  %v1933_v13 = vld [vmem:[%s9982_s2 + $0x60] sm:$0xf] }
  0x23   : > { %v6667_v4 = vunpack.c.l.bf16 %v759_v62  ;;  %v6671_v10 = vunpack.c.l.bf16 %v1808_v1  ;;  %v1934_v12 = vld [vmem:[%s9982_s2 + $0x64] sm:$0xf]  ;;  %v1927_v56 = vld [vmem:[%s9982_s2 + $0x48] sm:$0xf]  ;;  %v6744_v62 = vld [vmem:[%s9985_s5] ss:$0 sm:$0xff] }
  0x24   : > { %5784 = vmatmul.msk.bf16.gmra.mxu3 %vm478_vm1, %v5876_v25  ;;  %v5788_v25 = vld [vmem:[%s9983_s3 + $0x3] sm:$0x1]  ;;  %vm5035_vm5 = vsmask.f32 4352 }
  0x25   : > { %1988 = vperm.xlu2 %6408, %v1914_v14   ;;  %10224 = vst [vmem:[#allocation3_spill] sm:$0xff] %v6667_v4  ;;  %v1932_v14 = vld [vmem:[%s9982_s2 + $0x5c] sm:$0xf]  ;;  %v794_v17 = vmul.f32 %v6667_v4, %v760_v6  ;;  %v5870_v1 = vld [vmem:[%s6515_s26 + $0x40] sm:$0xff]  ;;  %v1937_v6 = vld [vmem:[%s9982_s2 + $0x70] sm:$0xf] }
  0x26   : > { %1979 = vperm.xlu1 %6407, %v1913_v15   ;;  %939 = vperm.xlu0 %6406, %v865_v16   ;;  %10225 = vst [vmem:[#allocation4_spill] sm:$0xff] %v6671_v10  ;;  %v6682_v15 = vunpack.c.l.bf16 %v1445_v5  ;;  %v761_v16 = vunpack.c.l.bf16 %v6669_v9 }
  0x28   : > { %10226 = vst [vmem:[#allocation5_spill] sm:$0xff] %v6682_v15 }
  0x2d   : > { %1997 = vperm.xlu2 %6408, %v1915_v18   ;;  %v6686_v18 = vunpack.c.0.s8 %v898_v8 }
  0x2e   : > { %957 = vperm.xlu1 %6407, %v867_v19   ;;  %948 = vperm.xlu0 %6406, %v866_v20   ;;  %v1843_v19 = vmul.f32 %v6671_v10, %v1809_v11 }
  0x32   : > { %5772 = vmatmul.msk.bf16.gmra.mxu0 %vm478_vm1, %v5864_v21 }
  0x34   : > { %5785 = vmatmul.msk.bf16.gmra.mxu3 %vm478_vm1, %v5877_v33 }
  0x35   : > { %975 = vperm.xlu2 %6408, %v869_v22   ;;  %v827_v22 = vpack.c.bf16 %v794_v17, %v794_v17 }
  0x36   : > { %966 = vperm.xlu1 %6407, %v868_v23   ;;  %2006 = vperm.xlu0 %6406, %v1916_v24   ;;  %v1447_v23 = vmul.f32 %v6682_v15, %v761_v16 }
  0x37   : > { %v1180_v33 = vunpack.c.l.bf16 %v827_v22 }
  0x3d   : > { %984 = vperm.xlu2 %6408, %v870_v26  }
  0x3e   : > { %2024 = vperm.xlu1 %6407, %v1918_v27   ;;  %2015 = vperm.xlu0 %6406, %v1917_v28   ;;  %v5869_v28 = vld [vmem:[%s6515_s26 + $0x38] sm:$0xff] }
  0x42   : > { %5773 = vmatmul.msk.bf16.gmra.mxu0 %vm478_vm1, %v5865_v29  ;;  %v1876_v29 = vpack.c.bf16 %v1843_v19, %v1843_v19 }
  0x45   : > { %2042 = vperm.xlu2 %6408, %v1920_v30  }
  0x46   : > { %2033 = vperm.xlu1 %6407, %v1919_v31   ;;  %993 = vperm.xlu0 %6406, %v871_v32   ;;  %v878_v31 = vld [vmem:[%s9981_s1 + $0x48] sm:$0xf]  ;;  %v2789_v32 = vpack.i.b16 %v5788_v25, %v5788_v25  ;;  %v795_v25 = vmul.f32 %v6667_v4, %v761_v16 }
  0x4d   : > { %2051 = vperm.xlu2 %6408, %v1921_v34  }
  0x4e   : > { %1011 = vperm.xlu1 %6407, %v873_v35   ;;  %1002 = vperm.xlu0 %6406, %v872_v36   ;;  %v1479_v35 = vpack.c.bf16 %v1447_v23, %v1447_v23  ;;  %v1936_v36 = vld [vmem:[%s9982_s2 + $0x6c] sm:$0xf] }
  0x52   : > { %5774 = vmatmul.msk.bf16.gmra.mxu0 %vm478_vm1, %v5866_v37  ;;  %v1935_v37 = vld [vmem:[%s9982_s2 + $0x68] sm:$0xf] }
  0x55   : > { %1029 = vperm.xlu2 %6408, %v875_v38  }
  0x56   : > { %1020 = vperm.xlu1 %6407, %v874_v39   ;;  %2060 = vperm.xlu0 %6406, %v1922_v40   ;;  %v2229_v39 = vunpack.c.l.bf16 %v1876_v29 }
  0x5d   : > { %1038 = vperm.xlu2 %6408, %v876_v41   ;;  %v2791_v41 = vperm.slane %v2789_v32, 0 }
  0x5e   : > { %2078 = vperm.xlu1 %6407, %v1924_v42   ;;  %2069 = vperm.xlu0 %6406, %v1923_v43   ;;  %v6717_v43 = vunpack.c.l.bf16 %v1479_v35 }
  0x60   : > { %v9994_v53 = vrot.slane %v6717_v43, 1 }
  0x62   : > { %5775 = vmatmul.msk.bf16.gmra.mxu0 %vm478_vm1, %v5867_v44 }
  0x65   : > { %2096 = vperm.xlu2 %6408, %v1926_v45   ;;  %v2753_v45 = vld [vmem:[#allocation2 + $0x8] sm:$0x8] }
  0x66   : > { %2087 = vperm.xlu1 %6407, %v1925_v46   ;;  %1047 = vperm.xlu0 %6406, %v877_v47   ;;  %v2792_v55 = vunpack.c.l.bf16 %v2753_v45 }
  0x67   : > { %v1944_v48 = vpop.permute.xlu2 %1943 }
  0x68   : > { %v1949_v20 = vperm.slane %v1944_v48, %v6686_v18 }
  0x6a   : > { %v2262_v30 = vunpack.c.l.bf16 %v1949_v20 }
  0x6c   : > { %v6714_v40 = vrot.slane %v2262_v30, 7 }
  0x6d   : > { %1119 = vperm.xlu2 %6408, %v885_v49  }
  0x6e   : > { %1110 = vperm.xlu1 %6407, %v884_v50   ;;  %1101 = vperm.xlu0 %6406, %v883_v51   ;;  %v2423_v49 = vmul.f32 %v6714_v40, %v2229_v39  ;;  %v1928_v50 = vld [vmem:[%s9982_s2 + $0x4c] sm:$0xf]  ;;  %v6727_v51 = vunpack.c.l.bf16 %v2791_v41 }
  0x6f   : > { %v6649_v54 = vpop.permute.xlu2 %1952 }
  0x70   : > { %10227 = vst [vmem:[#allocation6_spill] sm:$0xff] %v6727_v51  ;;  %v2456_v58 = vpack.c.bf16 %v2423_v49, %v2423_v49  ;;  %v1958_v17 = vperm.slane %v6649_v54, %v6686_v18 }
  0x72   : > { %5776 = vmatmul.msk.bf16.gmra.mxu0 %vm478_vm1, %v5868_v57  ;;  %v879_v57 = vld [vmem:[%s9981_s1 + $0x4c] sm:$0xf]  ;;  %v6751_v2 = vunpack.c.l.bf16 %v2456_v58  ;;  %v6779_v30 = vunpack.c.l.bf16 %v1958_v17 }
  0x74   : > { %v9991_v20 = vrot.slane %v6751_v2, 2  ;;  %v2328_v41 = vrot.slane %v6779_v30, 7 }
  0x75   : > { %2141 = vperm.xlu2 %6408, %v1931_v59  }
  0x76   : > { %1137 = vperm.xlu1 %6407, %v887_v60   ;;  %1128 = vperm.xlu0 %6406, %v886_v61   ;;  %v2826_v60 = vmul.f32 %v6727_v51, %v2792_v55 }
  0x77   : > { %v6665_v3 = vpop.permute.xlu2 %930 }
  0x78   : > { %v2859_v8 = vpack.c.bf16 %v2826_v60, %v2826_v60 }
  0x7a   : > { %v2892_v23 = vunpack.c.l.bf16 %v2859_v8 }
  0x7d   : > { %2168 = vperm.xlu2 %6408, %v1934_v12   ;;  %v889_v12 = vld [vmem:[%s9981_s1 + $0x74] sm:$0xf] }
  0x7e   : > { %2159 = vperm.xlu1 %6407, %v1933_v13   ;;  %2150 = vperm.xlu0 %6406, %v1932_v14   ;;  %v888_v13 = vld [vmem:[%s9981_s1 + $0x70] sm:$0xf] }
  0x7f   : > { %v6690_v21 = vpop.permute.xlu2 %1988 }
  0x80   : > { %v6695_v24 = vpop.permute.xlu1 %912  ;;  %v895_v26 = vpop.permute.xlu0 %894  ;;  %v1994_v9 = vperm.slane %v6690_v21, %v6686_v18  ;;  %v1938_v21 = vld [vmem:[%s9982_s2 + $0x74] sm:$0xf] }
  0x81   : > { %v900_v27 = vperm.slane %v895_v26, %v6686_v18 }
  0x82   : > { %5777 = vmatmul.msk.bf16.gmra.mxu0 %vm478_vm1, %v5869_v28 }
  0x83   : > { %v1213_v34 = vunpack.c.l.bf16 %v900_v27 }
  0x85   : > { %v6711_v38 = vrot.slane %v1213_v34, 1  ;;  %1056 = vperm.xlu2 %6408, %v878_v31   ;;  %v936_v31 = vperm.slane %v6665_v3, %v6686_v18  ;;  %v880_v3 = vld [vmem:[%s9981_s1 + $0x50] sm:$0xf] }
  0x86   : > { %2186 = vperm.xlu1 %6407, %v1936_v36   ;;  %2177 = vperm.xlu0 %6406, %v1935_v37   ;;  %v828_v36 = vpack.c.bf16 %v795_v25, %v795_v25  ;;  %v918_v37 = vperm.slane %v6695_v24, %v6686_v18  ;;  %v5791_v24 = vld [vmem:[%s9983_s3 + $0x6] sm:$0x1]  ;;  %v1930_v25 = vld [vmem:[%s9982_s2 + $0x54] sm:$0xf] }
  0x87   : > { %v1374_v42 = vmul.f32 %v6711_v38, %v1180_v33  ;;  %v6719_v44 = vpop.permute.xlu2 %1997  ;;  %v881_v33 = vld [vmem:[%s9981_s1 + $0x54] sm:$0xf]  ;;  %v2925_v35 = vmul.f32 %v2892_v23, %v6711_v38  ;;  %v890_v23 = vld [vmem:[%s9981_s1 + $0x78] sm:$0xf] }
  0x88   : > { %v6721_v46 = vpop.permute.xlu1 %921  ;;  %v904_v47 = vpop.permute.xlu0 %903  ;;  %v2003_v16 = vperm.slane %v6719_v44, %v6686_v18  ;;  %v6805_v44 = vunpack.c.l.bf16 %v1994_v9  ;;  %v6816_v55 = vunpack.c.l.bf16 %v918_v37  ;;  %v1929_v9 = vld [vmem:[%s9982_s2 + $0x50] sm:$0xf] }
  0x89   : > { %v1407_v48 = vpack.c.bf16 %v1374_v42, %v1374_v42  ;;  %v909_v14 = vperm.slane %v904_v47, %v6686_v18  ;;  %v6803_v42 = vunpack.c.l.bf16 %v936_v31  ;;  %v927_v47 = vperm.slane %v6721_v46, %v6686_v18 }
  0x8a   : > { %v6807_v45 = vunpack.c.l.bf16 %v2003_v16  ;;  %v2958_v49 = vpack.c.bf16 %v2925_v35, %v2925_v35 }
  0x8b   : > { %v1511_v52 = vunpack.c.l.bf16 %v1407_v48  ;;  %v6773_v28 = vunpack.c.l.bf16 %v909_v14  ;;  %v1285_v60 = vrot.slane %v6803_v42, 1  ;;  %v1216_v8 = vunpack.c.l.bf16 %v927_v47 }
  0x8c   : > { %v3024_v14 = vunpack.c.l.bf16 %v2958_v49 }
  0x8d   : > { %2114 = vperm.xlu2 %6408, %v1928_v50   ;;  %v1704_v59 = vadd.f32 %v9994_v53, %v1511_v52  ;;  %v1279_v39 = vrot.slane %v6773_v28, 1  ;;  %v1181_v50 = vunpack.c.l.bf16 %v828_v36  ;;  %v1283_v36 = vrot.slane %v1216_v8, 1 }
  0x8e   : > { %2105 = vperm.xlu1 %6407, %v1927_v56   ;;  %1065 = vperm.xlu0 %6406, %v879_v57  }
  0x8f   : > { %v6739_v61 = vpop.permute.xlu2 %975  ;;  %v540_v5 = vpop.f32.mrf.mxu0  ;;  %v1737_v7 = vpack.c.bf16 %v1704_v59, %v1704_v59  ;;  %v6822_v56 = vsel %vm1277_vm2, %v6711_v38, %v1279_v39  ;;  %v6834_v59 = vsel %vm2326_vm3, %v6714_v40, %v2328_v41 }
  0x90   : > { %v6746_v63 = vpop.permute.xlu1 %1970  ;;  %v6748_v0 = vpop.permute.xlu0 %1961  ;;  %v541_v11 = vadd.f32 %v6744_v62, %v540_v5  ;;  %v3896_v5 = vpack.i.b16 %v5791_v24, %v5791_v24  ;;  %v1375_v17 = vmul.f32 %v6822_v56, %v1181_v50 }
  0x91   : > { %v2489_v22 = vunpack.c.l.bf16 %v1737_v7  ;;  %v1967_v46 = vperm.slane %v6748_v0, %v6686_v18  ;;  %v2336_v0 = vrot.slane %v6805_v44, 7  ;;  %v9993_v7 = vrot.slane %v6807_v45, 7 }
  0x92   : > { %v620_v19 = vmax.f32 %v541_v11, 0.0  ;;  %5778 = vmatmul.msk.bf16.gmra.mxu0 %vm478_vm1, %v5870_v1  ;;  %v5871_v1 = vld [vmem:[%s6515_s26 + $0x48] sm:$0xff]  ;;  %v1976_v11 = vperm.slane %v6746_v63, %v6686_v18  ;;  %v981_v63 = vperm.slane %v6739_v61, %v6686_v18  ;;  %v3898_v35 = vperm.slane %v3896_v5, 0 }
  0x93   : > { %v2687_v34 = vadd.f32 %v9991_v20, %v2489_v22  ;;  %v2264_v31 = vunpack.c.l.bf16 %v1967_v46  ;;  %v6871_v61 = vsel %vm2326_vm3, %v2336_v0, %v9993_v7  ;;  %v1408_v37 = vpack.c.bf16 %v1375_v17, %v1375_v17 }
  0x94   : > { %v652_v26 = vpack.c.bf16 %v620_v19, %v620_v19  ;;  %10228 = vst [vmem:[#allocation7_spill] sm:$0xff] %v6871_v61  ;;  %v6876_v24 = vunpack.c.l.bf16 %v981_v63  ;;  %v6890_v17 = vunpack.c.l.bf16 %v3898_v35  ;;  %v1940_v63 = vld [vmem:[%s9982_s2 + $0x7c] sm:$0xf] }
  0x95   : > { %2195 = vperm.xlu2 %6408, %v1937_v6   ;;  %v2720_v48 = vpack.c.bf16 %v2687_v34, %v2687_v34  ;;  %v5793_v6 = vld [vmem:[%s9983_s3 + $0x8] sm:$0x1]  ;;  %v5885_v35 = vld [vmem:[%s9986_s6 + $0x38] sm:$0xff] }
  0x96   : > { %1155 = vperm.xlu1 %6407, %v889_v12   ;;  %1146 = vperm.xlu0 %6406, %v888_v13   ;;  %690 = vst [vmem:[#allocation2 + $0xc] sm:$0xf] %v652_v26  ;;  %v1281_v26 = vrot.slane %v6816_v55, 1  ;;  %v4566_v16 = vpack.i.b16 %v5793_v6, %v5793_v6 }
  0x97   : > { %v6771_v27 = vpop.permute.xlu2 %984  ;;  %v542_v32 = vpop.f32.mrf.mxu0  ;;  %v2991_v13 = vunpack.c.l.bf16 %v2720_v48  ;;  %v2330_v48 = vrot.slane %v2264_v31, 7  ;;  %10229 = vst [vmem:[#allocation8_spill] sm:$0xff] %v6890_v17  ;;  %v1939_v31 = vld [vmem:[%s9982_s2 + $0x78] sm:$0xf]  ;;  %5252 = vmatpush.bf16.msra.mxu1 %v5885_v35  ;;  %6380 = vmatpush.bf16.msrb.mxu3 %v5885_v35 }
  0x98   : > { %v6775_v54 = vpop.permute.xlu1 %1979  ;;  %v6777_v29 = vpop.permute.xlu0 %939  ;;  %v543_v34 = vadd.f32 %v6744_v62, %v542_v32  ;;  %v4568_v46 = vperm.slane %v4566_v16, 0  ;;  %v6910_v16 = vunpack.c.l.bf16 %v1408_v37 }
  0x99   : > { %v1985_v22 = vperm.slane %v6775_v54, %v6686_v18  ;;  %v990_v54 = vperm.slane %v6771_v27, %v6686_v18  ;;  %v3057_v27 = vadd.f32 %v3024_v14, %v2991_v13  ;;  %v6923_v28 = vsel %vm2326_vm3, %v2328_v41, %v2330_v48  ;;  %v6980_v20 = vpop.f32.mrf.mxu3 }
  0x9a   : > { %v621_v6 = vmax.f32 %v543_v34, 0.0  ;;  %v891_v34 = vld [vmem:[%s9981_s1 + $0x7c] sm:$0xf] }
  0x9d   : > { %1083 = vperm.xlu2 %6408, %v881_v33   ;;  %v6304_v19 = vld [vmem:[#allocation2 + $0x8] sm:$0xff]   ;;  %v945_v33 = vperm.slane %v6777_v29, %v6686_v18  ;;  %v2266_v29 = vunpack.c.l.bf16 %v1985_v22  ;;  %v6895_v22 = vsel %vm1277_vm2, %v1283_v36, %v1285_v60 }
  0x9e   : > { %1074 = vperm.xlu1 %6407, %v880_v3   ;;  %2204 = vperm.xlu0 %6406, %v1938_v21   ;;  %v2265_v3 = vunpack.c.l.bf16 %v1976_v11  ;;  %v5971_v21 = vunpack.c.l.bf16 %v6304_v19  ;;  %v5972_v49 = vunpack.c.h.bf16 %v6304_v19  ;;  %v6887_v11 = vsel %vm1277_vm2, %v1281_v26, %v1283_v36  ;;  %10230 = vst [vmem:[#allocation9_spill] sm:$0xff] %v6895_v22 }
  0x9f   : > { %v6814_v52 = vpop.permute.xlu2 %2042  ;;  %v545_v12 = vpop.f32.mrf.mxu0  ;;  %v6884_v5 = vunpack.c.l.bf16 %v945_v33  ;;  %v3090_v19 = vpack.c.bf16 %v3057_v27, %v3057_v27  ;;  %v6928_v36 = vunpack.c.l.bf16 %v4568_v46 }
  0xa0   : > { %v6826_v57 = vpop.permute.xlu1 %957  ;;  %v6828_v58 = vpop.permute.xlu0 %948  ;;  %v546_v32 = vadd.f32 %v6744_v62, %v545_v12  ;;  %v2332_v12 = vrot.slane %v2265_v3, 7  ;;  %v796_v13 = vmul.f32 %v5971_v21, %v6667_v4  ;;  %v797_v33 = vmul.f32 %v5972_v49, %v6667_v4 }
  0xa1   : > { %v954_v37 = vperm.slane %v6828_v58, %v6686_v18  ;;  %v6938_v41 = vunpack.c.l.bf16 %v3090_v19  ;;  %v2048_v58 = vperm.slane %v6814_v52, %v6686_v18  ;;  %v5884_v52 = vld [vmem:[%s9986_s6 + $0x30] sm:$0xff] }
  0xa2   : > { %5779 = vmatmul.msk.bf16.gmra.mxu0 %vm478_vm1, %v5871_v1  ;;  %v6882_v1 = vunpack.c.l.bf16 %v990_v54  ;;  %v622_v8 = vmax.f32 %v546_v32, 0.0  ;;  %v9995_v54 = vrot.slane %v6876_v24, 1  ;;  %v6931_v3 = vsel %vm2326_vm3, %v2330_v48, %v2332_v12  ;;  %5253 = vmatpush.bf16.msra.mxu1 %v5884_v52 }
  0xa3   : > { %v829_v27 = vpack.c.bf16 %v796_v13, %v796_v13  ;;  %v830_v46 = vpack.c.bf16 %v797_v33, %v797_v33  ;;  %v963_v13 = vperm.slane %v6826_v57, %v6686_v18  ;;  %v6985_v7 = vunpack.c.l.bf16 %v2048_v58  ;;  %6381 = vmatpush.bf16.msrb.mxu3 %v5884_v52 }
  0xa5   : > { %1164 = vperm.xlu2 %6408, %v890_v23   ;;  %v2334_v23 = vrot.slane %v2266_v29, 7 }
  0xa6   : > { %2132 = vperm.xlu1 %6407, %v1930_v25   ;;  %2123 = vperm.xlu0 %6406, %v1929_v9   ;;  %v6897_v25 = vpack.c.bf16 %v622_v8, %v621_v6  ;;  %v6908_v9 = vsel %vm1277_vm2, %v1279_v39, %v1281_v26  ;;  %v9992_v39 = vrot.slane %v6882_v1, 1  ;;  %v9996_v26 = vrot.slane %v6884_v5, 1 }
  0xa7   : > { %v6874_v47 = vpop.permute.xlu2 %2051  ;;  %v547_v14 = vpop.f32.mrf.mxu0  ;;  %v6948_v32 = vsel %vm2326_vm3, %v2332_v12, %v2334_v23  ;;  %v1448_v6 = vmul.f32 %v5971_v21, %v6682_v15  ;;  %v1449_v8 = vmul.f32 %v5972_v49, %v6682_v15  ;;  %v1844_v12 = vmul.f32 %v5971_v21, %v6671_v10 }
  0xa8   : > { %v6878_v50 = vpop.permute.xlu1 %966  ;;  %v6880_v55 = vpop.permute.xlu0 %2006  ;;  %6289 = vst [vmem:[#allocation2 + $0x10] sm:$0xff] %v6897_v25   ;;  %v6936_v30 = vunpack.c.l.bf16 %v6897_v25  ;;  %v6945_v29 = vsel %vm1277_vm2, %v9995_v54, %v9992_v39  ;;  %v6976_v57 = vsel %vm1277_vm2, %v1285_v60, %v9996_v26  ;;  %v548_v33 = vadd.f32 %v6744_v62, %v547_v14 }
  0xa9   : > { %10232 = vst [vmem:[#allocation11_spill] sm:$0xff] %v6945_v29  ;;  %v1845_v21 = vmul.f32 %v5972_v49, %v6671_v10  ;;  %v1219_v39 = vunpack.c.l.bf16 %v954_v37  ;;  %v2057_v42 = vperm.slane %v6874_v47, %v6686_v18  ;;  %v972_v60 = vperm.slane %v6878_v50, %v6686_v18  ;;  %v882_v49 = vld [vmem:[%s9981_s1 + $0x58] sm:$0xf]  ;;  %v2754_v47 = vld [vmem:[#allocation2 + $0xc] sm:$0xf] }
  0xaa   : > { %10231 = vst [vmem:[#allocation10_spill] sm:$0xff] %v6936_v30  ;;  %v1450_v44 = vmul.f32 %v6936_v30, %v6682_v15  ;;  %v1480_v53 = vpack.c.bf16 %v1448_v6, %v1448_v6  ;;  %v1481_v35 = vpack.c.bf16 %v1449_v8, %v1449_v8  ;;  %v6992_v54 = vunpack.c.l.bf16 %v963_v13 }
  0xab   : > { %10233 = vst [vmem:[#allocation12_spill] sm:$0xff] %v6948_v32  ;;  %v1183_v37 = vunpack.c.l.bf16 %v830_v46  ;;  %v1877_v58 = vpack.c.bf16 %v1844_v12, %v1844_v12  ;;  %v2012_v50 = vperm.slane %v6880_v55, %v6686_v18  ;;  %v1878_v8 = vpack.c.bf16 %v1845_v21, %v1845_v21  ;;  %v5882_v21 = vld [vmem:[%s9986_s6 + $0x20] sm:$0xff] }
  0xac   : > { %10235 = vst [vmem:[#allocation14_spill] sm:$0xff] %v6976_v57  ;;  %v1289_v13 = vrot.slane %v1219_v39, 1  ;;  %v1482_v29 = vpack.c.bf16 %v1450_v44, %v1450_v44  ;;  %v7004_v61 = vunpack.c.l.bf16 %v2057_v42  ;;  %v7010_v12 = vunpack.c.l.bf16 %v2754_v47 }
  0xad   : > { %2222 = vperm.xlu2 %6408, %v1940_v63   ;;  %v7012_v55 = vunpack.c.l.bf16 %v1480_v53  ;;  %v1291_v52 = vrot.slane %v6992_v54, 1  ;;  %v1377_v44 = vmul.f32 %v6887_v11, %v1183_v37  ;;  %v7024_v42 = vunpack.c.l.bf16 %v1877_v58  ;;  %v607_v54 = vpop.f32.mrf.mxu3 }
  0xae   : > { %2213 = vperm.xlu1 %6407, %v1939_v31   ;;  %1173 = vperm.xlu0 %6406, %v891_v34   ;;  %v6969_v31 = vsel %vm2326_vm3, %v2334_v23, %v2336_v0  ;;  %v5872_v34 = vld [vmem:[%s6515_s26 + $0x50] sm:$0xff]  ;;  %v1182_v23 = vunpack.c.l.bf16 %v829_v27  ;;  %v5883_v27 = vld [vmem:[%s9986_s6 + $0x28] sm:$0xff]  ;;  %10236 = vst [vmem:[#allocation15_spill] sm:$0xff] %v7004_v61  ;;  %v1846_v53 = vmul.f32 %v6936_v30, %v6671_v10  ;;  %v7038_v58 = vunpack.c.l.bf16 %v1482_v29 }
  0xaf   : > { %v6952_v48 = vpop.permute.xlu2 %1029  ;;  %10234 = vst [vmem:[#allocation13_spill] sm:$0xff] %v6969_v31  ;;  %v550_v0 = vpop.f32.mrf.mxu0  ;;  %v1221_v31 = vunpack.c.l.bf16 %v972_v60  ;;  %5254 = vmatpush.bf16.msra.mxu1 %v5883_v27  ;;  %v7028_v60 = vunpack.c.l.bf16 %v2012_v50  ;;  %6382 = vmatpush.bf16.msrb.mxu3 %v5883_v27  ;;  %v10003_v50 = vrot.slane %v7004_v61, 7  ;;  %v1410_v29 = vpack.c.bf16 %v1377_v44, %v1377_v44 }
  0xb0   : > { %v6958_v19 = vpop.permute.xlu1 %2024  ;;  %v6960_v63 = vpop.permute.xlu0 %2015  ;;  %v551_v14 = vadd.f32 %v6744_v62, %v550_v0  ;;  %v623_v0 = vmax.f32 %v548_v33, 0.0  ;;  %v1376_v26 = vmul.f32 %v6908_v9, %v1182_v23  ;;  %v10004_v33 = vrot.slane %v6985_v7, 7  ;;  %10239 = vst [vmem:[#allocation17_spill] sm:$0xff] %v7038_v58 }
  0xb1   : > { %v1546_v23 = vunpack.c.l.bf16 %v1481_v35  ;;  %v2030_v27 = vperm.slane %v6958_v19, %v6686_v18 }
  0xb2   : > { %v624_v6 = vmax.f32 %v551_v14, 0.0  ;;  %5780 = vmatmul.msk.bf16.gmra.mxu0 %vm478_vm1, %v5872_v34  ;;  %v7031_v14 = vunpack.c.l.bf16 %v1878_v8  ;;  %v1409_v35 = vpack.c.bf16 %v1376_v26, %v1376_v26  ;;  %v7047_v8 = vsel %vm1277_vm2, %v1289_v13, %v1291_v52  ;;  %v5881_v26 = vld [vmem:[%s9986_s6 + $0x18] sm:$0xff] }
  0xb3   : > { %10240 = vst [vmem:[#allocation18_spill] sm:$0xff] %v7047_v8  ;;  %5255 = vmatpush.bf16.msra.mxu1 %v5882_v21  ;;  %v7060_v19 = vsel %vm2326_vm3, %v10004_v33, %v10003_v50  ;;  %6383 = vmatpush.bf16.msrb.mxu3 %v5882_v21  ;;  %v1611_v44 = vrot.slane %v1546_v23, 1  ;;  %v10245_v23 = vrot.slane %v6876_v24, 1 }
  0xb4   : > { %v7006_v32 = vpack.c.bf16 %v624_v6, %v623_v0  ;;  %v7041_v0 = vunpack.c.h.bf16 %v6897_v25  ;;  %v1293_v6 = vrot.slane %v1221_v31, 1  ;;  %v1609_v25 = vrot.slane %v7012_v55, 1  ;;  %10241 = vst [vmem:[#allocation19_spill] sm:$0xff] %v7060_v19 }
  0xb5   : > { %v1513_v8 = vunpack.c.l.bf16 %v1409_v35  ;;  %v1514_v55 = vunpack.c.l.bf16 %v1410_v29 }
  0xb6   : > { %1092 = vperm.xlu0 %6406, %v882_v49   ;;  %6290 = vst [vmem:[#allocation2 + $0x18] sm:$0xff] %v7006_v32   ;;  %v10237_v49 = vrot.slane %v6884_v5, 1  ;;  %v2021_v5 = vperm.slane %v6960_v63, %v6686_v18  ;;  %v1035_v63 = vperm.slane %v6952_v48, %v6686_v18  ;;  %v7073_v50 = vmul.f32 %v7041_v0, %v6671_v10 }
  0xb7   : > { %v7008_v46 = vpop.permute.xlu2 %1038  ;;  %v552_v37 = vpop.f32.mrf.mxu0  ;;  %v7076_v33 = vsel %vm1277_vm2, %v1291_v52, %v1293_v6  ;;  %v7078_v48 = vunpack.c.l.bf16 %v2030_v27  ;;  %5256 = vmatpush.bf16.msra.mxu1 %v5881_v26  ;;  %v5880_v52 = vld [vmem:[%s9986_s6 + $0x10] sm:$0xff]  ;;  %v10247_v27 = vrot.slane %v6717_v43, 1  ;;  %6384 = vmatpush.bf16.msrb.mxu3 %v5881_v26  ;;  %v1612_v43 = vsel %vm1277_vm2, %v1609_v25, %v1611_v44 }
  0xb8   : > { %v7016_v39 = vpop.permute.xlu1 %2033  ;;  %v7018_v34 = vpop.permute.xlu0 %993  ;;  %v7036_v47 = vsel %vm1277_vm2, %v10237_v49, %v1289_v13  ;;  %v1879_v13 = vpack.c.bf16 %v1846_v53, %v1846_v53  ;;  %v608_v49 = vadd.f32 %v6744_v62, %v607_v54  ;;  %10243 = vst [vmem:[#allocation21_spill] sm:$0xff] %v7073_v50  ;;  %v7085_v53 = vsel %vm1277_vm2, %v1293_v6, %v10245_v23  ;;  %v5873_v6 = vld [vmem:[%s6515_s26 + $0x58] sm:$0xff] }
  0xb9   : > { %10238 = vst [vmem:[#allocation16_spill] sm:$0xff] %v7036_v47  ;;  %v7069_v47 = vmul.f32 %v7041_v0, %v6682_v15  ;;  %v2270_v54 = vunpack.c.l.bf16 %v2021_v5  ;;  %v1610_v19 = vsel %vm1277_vm2, %v10247_v27, %v1609_v25  ;;  %v553_v24 = vadd.f32 %v6744_v62, %v552_v37  ;;  %v610_v23 = vpop.f32.mrf.mxu3  ;;  %v5879_v25 = vld [vmem:[%s9986_s6 + $0x8] sm:$0xff] }
  0xba   : > { %10244 = vst [vmem:[#allocation22_spill] sm:$0xff] %v7076_v33  ;;  %v7097_v33 = vunpack.c.l.bf16 %v1035_v63  ;;  %v7103_v5 = vadd.f32 %v6744_v62, %v6980_v20  ;;  %v647_v50 = vmax.f32 %v608_v49, 0.0  ;;  %v611_v29 = vadd.f32 %v6744_v62, %v610_v23 }
  0xbb   : > { %10242 = vst [vmem:[#allocation20_spill] sm:$0xff] %v7069_v47  ;;  %v10250_v27 = vrot.slane %v7038_v58, 1  ;;  %v10010_v37 = vrot.slane %v7078_v48, 7  ;;  %v1044_v22 = vperm.slane %v7008_v46, %v6686_v18  ;;  %v2342_v26 = vrot.slane %v2270_v54, 7  ;;  %5257 = vmatpush.bf16.msra.mxu1 %v5880_v52  ;;  %6385 = vmatpush.bf16.msrb.mxu3 %v5880_v52 }
  0xbc   : > { %10246 = vst [vmem:[#allocation23_spill] sm:$0xff] %v7085_v53  ;;  %v2232_v53 = vunpack.c.l.bf16 %v1879_v13  ;;  %v1705_v13 = vadd.f32 %v1610_v19, %v6910_v16  ;;  %v648_v47 = vmax.f32 %v611_v29, 0.0  ;;  %v1706_v49 = vadd.f32 %v1612_v43, %v1513_v8 }
  0xbd   : > { %10248 = vst [vmem:[#allocation24_spill] sm:$0xff] %v7097_v33  ;;  %v1614_v63 = vsel %vm1277_vm2, %v1611_v44, %v10250_v27  ;;  %v2424_v44 = vmul.f32 %v6834_v59, %v7024_v42  ;;  %v625_v23 = vmax.f32 %v553_v24, 0.0  ;;  %v7123_v16 = vunpack.c.l.bf16 %v7006_v32 }
  0xbe   : > { %10249 = vst [vmem:[#allocation25_spill] sm:$0xff] %v7103_v5  ;;  %v1707_v46 = vadd.f32 %v1614_v63, %v1514_v55  ;;  %v2039_v19 = vperm.slane %v7016_v39, %v6686_v18  ;;  %v999_v8 = vperm.slane %v7018_v34, %v6686_v18  ;;  %v7129_v54 = vpack.c.bf16 %v648_v47, %v647_v50 }
  0xbf   : > { %v7080_v21 = vpop.permute.xlu2 %2096  ;;  %v555_v57 = vpop.f32.mrf.mxu0  ;;  %v7132_v42 = vunpack.c.h.bf16 %v7006_v32  ;;  %v7134_v24 = vunpack.c.l.bf16 %v1044_v22  ;;  %v2425_v52 = vmul.f32 %v6923_v28, %v7031_v14  ;;  %v10253_v39 = vrot.slane %v6807_v45, 7  ;;  %5258 = vmatpush.bf16.msra.mxu1 %v5879_v25  ;;  %v5878_v14 = vld [vmem:[%s9986_s6] sm:$0xff]  ;;  %6386 = vmatpush.bf16.msrb.mxu3 %v5879_v25 }
  0xc0   : > { %v7087_v35 = vpop.permute.xlu1 %1011  ;;  %v7089_v31 = vpop.permute.xlu0 %1002  ;;  %v556_v20 = vadd.f32 %v6744_v62, %v555_v57  ;;  %v2426_v57 = vmul.f32 %v6931_v3, %v2232_v53  ;;  %v10016_v47 = vrot.slane %v7097_v33, 1  ;;  %6302 = vst [vmem:[#allocation2 + $0x78] sm:$0xff] %v7129_v54   ;;  %v1738_v50 = vpack.c.bf16 %v1705_v13, %v1705_v13 }
  0xc1   : > { %10251 = vst [vmem:[#allocation26_spill] sm:$0xff] %v7134_v24  ;;  %v2457_v29 = vpack.c.bf16 %v2424_v44, %v2424_v44  ;;  %v7166_v63 = vsel %vm2326_vm3, %v2342_v26, %v10010_v37  ;;  %v1739_v44 = vpack.c.bf16 %v1706_v49, %v1706_v49  ;;  %v612_v37 = vpop.f32.mrf.mxu3  ;;  %v7183_v25 = vmul.f32 %v7123_v16, %v6671_v10 }
  0xc2   : > { %v626_v27 = vmax.f32 %v556_v20, 0.0  ;;  %5781 = vmatmul.msk.bf16.gmra.mxu0 %vm478_vm1, %v5873_v6  ;;  %v10252_v6 = vrot.slane %v7028_v60, 7  ;;  %10257 = vst [vmem:[#allocation29_spill] sm:$0xff] %v7166_v63  ;;  %v1740_v60 = vpack.c.bf16 %v1707_v46, %v1707_v46  ;;  %v2458_v20 = vpack.c.bf16 %v2425_v52, %v2425_v52 }
  0xc3   : > { %10260 = vst [vmem:[#allocation32_spill] sm:$0xff] %v7183_v25  ;;  %v2102_v49 = vperm.slane %v7080_v21, %v6686_v18  ;;  %v1017_v46 = vperm.slane %v7087_v35, %v6686_v18  ;;  %5259 = vmatpush.bf16.msra.mxu1 %v5878_v14  ;;  %v1008_v52 = vperm.slane %v7089_v31, %v6686_v18  ;;  %v2490_v5 = vunpack.c.l.bf16 %v1738_v50 }
  0xc4   : > { %v7136_v55 = vpack.c.bf16 %v626_v27, %v625_v23  ;;  %v7147_v34 = vsel %vm2326_vm3, %v10253_v39, %v10252_v6  ;;  %v10255_v45 = vmov %v10252_v6  ;;  %v2459_v23 = vpack.c.bf16 %v2426_v57, %v2426_v57  ;;  %6387 = vmatpush.bf16.msrb.mxu3 %v5878_v14 }
  0xc5   : > { %10254 = vst [vmem:[#allocation27_spill] sm:$0xff] %v7147_v34  ;;  %v7161_v43 = vsel %vm2326_vm3, %v10255_v45, %v2342_v26  ;;  %v2272_v27 = vunpack.c.l.bf16 %v2039_v19  ;;  %v7170_v6 = vunpack.c.l.bf16 %v999_v8  ;;  %v7174_v39 = vmul.f32 %v7123_v16, %v6682_v15 }
  0xc6   : > { %10256 = vst [vmem:[#allocation28_spill] sm:$0xff] %v7161_v43  ;;  %v7178_v26 = vmul.f32 %v7132_v42, %v6682_v15  ;;  %v10015_v45 = vrot.slane %v7134_v24, 1  ;;  %v2523_v57 = vunpack.c.l.bf16 %v2457_v29  ;;  %v7191_v19 = vmul.f32 %v7132_v42, %v6671_v10 }
  0xc7   : > { %v7138_v53 = vpop.permute.xlu2 %1119  ;;  %6291 = vst [vmem:[#allocation2 + $0x20] sm:$0xff] %v7136_v55   ;;  %v557_v13 = vpop.f32.mrf.mxu0  ;;  %v7202_v21 = vunpack.c.l.bf16 %v2459_v23  ;;  %v2346_v35 = vrot.slane %v2272_v27, 7  ;;  %v2827_v63 = vmul.f32 %v6727_v51, %v7010_v12  ;;  %v2491_v34 = vunpack.c.l.bf16 %v1739_v44 }
  0xc8   : > { %v7150_v32 = vpop.permute.xlu1 %1020  ;;  %v7152_v22 = vpop.permute.xlu0 %2060  ;;  %10258 = vst [vmem:[#allocation30_spill] sm:$0xff] %v7174_v39  ;;  %v7198_v8 = vsel %vm1277_vm2, %v10016_v47, %v10015_v45  ;;  %v2524_v45 = vunpack.c.l.bf16 %v2458_v20  ;;  %v2828_v47 = vmul.f32 %v6936_v30, %v6727_v51  ;;  %v7211_v31 = vunpack.c.l.bf16 %v2102_v49 }
  0xc9   : > { %10259 = vst [vmem:[#allocation31_spill] sm:$0xff] %v7178_v26  ;;  %v7213_v23 = vunpack.c.l.bf16 %v1017_v46  ;;  %v2590_v50 = vrot.slane %v2523_v57, 2  ;;  %v2829_v29 = vmul.f32 %v7041_v0, %v6727_v51  ;;  %v558_v44 = vadd.f32 %v6744_v62, %v557_v13 }
  0xca   : > { %10261 = vst [vmem:[#allocation33_spill] sm:$0xff] %v7191_v19  ;;  %v2492_v19 = vunpack.c.l.bf16 %v1740_v60  ;;  %v5874_v60 = vld [vmem:[%s6515_s26 + $0x60] sm:$0xff]  ;;  %v10265_v49 = vrot.slane %v7078_v48, 7  ;;  %v10267_v26 = vrot.slane %v6985_v7, 7  ;;  %v613_v51 = vadd.f32 %v6744_v62, %v612_v37 }
  0xcb   : > { %10262 = vst [vmem:[#allocation34_spill] sm:$0xff] %v7198_v8  ;;  %v1225_v8 = vunpack.c.l.bf16 %v1008_v52  ;;  %v2860_v52 = vpack.c.bf16 %v2827_v63, %v2827_v63  ;;  %v10269_v13 = vrot.slane %v7170_v6, 1  ;;  %v10270_v25 = vrot.slane %v6882_v1, 1  ;;  %v615_v1 = vpop.f32.mrf.mxu3 }
  0xcc   : > { %10263 = vst [vmem:[#allocation35_spill] sm:$0xff] %v7202_v21  ;;  %v7227_v46 = vsel %vm2326_vm3, %v10265_v49, %v2346_v35  ;;  %v7232_v58 = vsel %vm2326_vm3, %v2346_v35, %v10267_v26  ;;  %v2592_v49 = vrot.slane %v2524_v45, 2  ;;  %v10272_v35 = vrot.slane %v6751_v2, 2 }
  0xcd   : > { %10264 = vst [vmem:[#allocation36_spill] sm:$0xff] %v7211_v31  ;;  %v7240_v20 = vsel %vm1277_vm2, %v10270_v25, %v10269_v13  ;;  %v2862_v63 = vpack.c.bf16 %v2829_v29, %v2829_v29  ;;  %v627_v39 = vmax.f32 %v558_v44, 0.0  ;;  %v10273_v25 = vrot.slane %v7202_v21, 2 }
  0xce   : > { %10266 = vst [vmem:[#allocation37_spill] sm:$0xff] %v7227_v46  ;;  %v2861_v46 = vpack.c.bf16 %v2828_v47, %v2828_v47  ;;  %v2591_v37 = vsel %vm2588_vm4, %v10272_v35, %v2590_v50  ;;  %v1125_v47 = vperm.slane %v7138_v53, %v6686_v18  ;;  %v616_v13 = vadd.f32 %v6744_v62, %v615_v1 }
  0xcf   : > { %v7207_v43 = vpop.permute.xlu2 %2141  ;;  %10268 = vst [vmem:[#allocation38_spill] sm:$0xff] %v7232_v58  ;;  %v560_v57 = vpop.f32.mrf.mxu0  ;;  %v1301_v58 = vrot.slane %v1225_v8, 1  ;;  %v2595_v45 = vsel %vm2588_vm4, %v2592_v49, %v10273_v25  ;;  %v2893_v2 = vunpack.c.l.bf16 %v2860_v52  ;;  %v2593_v8 = vsel %vm2588_vm4, %v2590_v50, %v2592_v49 }
  0xd0   : > { %v7215_v14 = vpop.permute.xlu1 %2078  ;;  %v7217_v27 = vpop.permute.xlu0 %2069  ;;  %10271 = vst [vmem:[#allocation39_spill] sm:$0xff] %v7240_v20  ;;  %v561_v48 = vadd.f32 %v6744_v62, %v560_v57  ;;  %v649_v57 = vmax.f32 %v613_v51, 0.0  ;;  %v2688_v44 = vadd.f32 %v2591_v37, %v2490_v5  ;;  %v650_v25 = vmax.f32 %v616_v13, 0.0 }
  0xd1   : > { %v2689_v26 = vadd.f32 %v2593_v8, %v2491_v34  ;;  %v2690_v20 = vadd.f32 %v2595_v45, %v2492_v19  ;;  %v2895_v53 = vunpack.c.l.bf16 %v2862_v63  ;;  %v7265_v51 = vunpack.c.l.bf16 %v7136_v55 }
  0xd2   : > { %v628_v24 = vmax.f32 %v561_v48, 0.0  ;;  %5782 = vmatmul.msk.bf16.gmra.mxu0 %vm478_vm1, %v5874_v60  ;;  %v2894_v60 = vunpack.c.l.bf16 %v2861_v46  ;;  %v7274_v5 = vunpack.c.l.bf16 %v7129_v54  ;;  %v7276_v50 = vunpack.c.l.bf16 %v1125_v47 }
  0xd3   : > { %10274 = vst [vmem:[#allocation40_spill] sm:$0xff] %v7265_v51  ;;  %v7279_v34 = vunpack.c.h.bf16 %v7129_v54  ;;  %v7281_v19 = vpack.c.bf16 %v650_v25, %v649_v57  ;;  %v2926_v52 = vmul.f32 %v2893_v2, %v6822_v56  ;;  %v2066_v63 = vperm.slane %v7152_v22, %v6686_v18  ;;  %v5789_v57 = vld [vmem:[%s9983_s3 + $0x4] sm:$0x1] }
  0xd4   : > { %v7255_v7 = vpack.c.bf16 %v628_v24, %v627_v39  ;;  %v7268_v24 = vunpack.c.h.bf16 %v7136_v55  ;;  %v1026_v39 = vperm.slane %v7150_v32, %v6686_v18  ;;  %10276 = vst [vmem:[#allocation42_spill] sm:$0xff] %v7274_v5  ;;  %v10279_v55 = vrot.slane %v7170_v6, 1 }
  0xd5   : > { %10277 = vst [vmem:[#allocation43_spill] sm:$0xff] %v7279_v34  ;;  %v10281_v32 = vrot.slane %v7213_v23, 1  ;;  %v2927_v54 = vmul.f32 %v2894_v60, %v6908_v9  ;;  %v2721_v1 = vpack.c.bf16 %v2688_v44, %v2688_v44  ;;  %v2722_v45 = vpack.c.bf16 %v2689_v26, %v2689_v26 }
  0xd6   : > { %10275 = vst [vmem:[#allocation41_spill] sm:$0xff] %v7268_v24  ;;  %v7287_v49 = vsel %vm1277_vm2, %v10279_v55, %v1301_v58  ;;  %v2723_v47 = vpack.c.bf16 %v2690_v20, %v2690_v20  ;;  %v2928_v6 = vmul.f32 %v2895_v53, %v6887_v11  ;;  %v7308_v22 = vmul.f32 %v7268_v24, %v6682_v15 }
  0xd7   : > { %v7257_v29 = vpop.permute.xlu2 %2168  ;;  %6292 = vst [vmem:[#allocation2 + $0x28] sm:$0xff] %v7255_v7   ;;  %v562_v46 = vpop.f32.mrf.mxu0  ;;  %v7292_v37 = vsel %vm1277_vm2, %v1301_v58, %v10281_v32  ;;  %v7304_v58 = vmul.f32 %v7265_v51, %v6682_v15  ;;  %v7312_v13 = vmul.f32 %v7265_v51, %v6671_v10  ;;  %v3929_v20 = vmul.f32 %v7274_v5, %v6890_v17 }
  0xd8   : > { %v7260_v48 = vpop.permute.xlu1 %2087  ;;  %v7262_v35 = vpop.permute.xlu0 %1047  ;;  %10278 = vst [vmem:[#allocation44_spill] sm:$0xff] %v7281_v19  ;;  %v7317_v2 = vunpack.c.l.bf16 %v1026_v39  ;;  %v3930_v8 = vmul.f32 %v7279_v34, %v6890_v17  ;;  %v2959_v44 = vpack.c.bf16 %v2926_v52, %v2926_v52  ;;  %v7321_v60 = vunpack.c.l.bf16 %v2066_v63 }
  0xd9   : > { %10280 = vst [vmem:[#allocation45_spill] sm:$0xff] %v7287_v49  ;;  %v2147_v25 = vperm.slane %v7207_v43, %v6686_v18  ;;  %v2960_v53 = vpack.c.bf16 %v2927_v54, %v2927_v54  ;;  %v3126_v55 = vpack.i.b16 %v5789_v57, %v5789_v57  ;;  %v2961_v39 = vpack.c.bf16 %v2928_v6, %v2928_v6 }
  0xda   : > { %10282 = vst [vmem:[#allocation46_spill] sm:$0xff] %v7292_v37  ;;  %v563_v37 = vadd.f32 %v6744_v62, %v562_v46  ;;  %v3962_v63 = vpack.c.bf16 %v3929_v20, %v3929_v20  ;;  %v3963_v54 = vpack.c.bf16 %v3930_v8, %v3930_v8  ;;  %v2994_v57 = vunpack.c.l.bf16 %v2723_v47  ;;  %v5790_v47 = vld [vmem:[%s9983_s3 + $0x5] sm:$0x1] }
  0xdb   : > { %6303 = vst [vmem:[#allocation2 + $0x80] sm:$0xff] %v7281_v19   ;;  %v3025_v21 = vunpack.c.l.bf16 %v2959_v44  ;;  %v3128_v31 = vperm.slane %v3126_v55, 0  ;;  %v3026_v6 = vunpack.c.l.bf16 %v2960_v53  ;;  %v3027_v15 = vunpack.c.l.bf16 %v2961_v39 }
  0xdc   : > { %10283 = vst [vmem:[#allocation47_spill] sm:$0xff] %v7304_v58  ;;  %v2993_v58 = vunpack.c.l.bf16 %v2722_v45  ;;  %v2174_v44 = vperm.slane %v7257_v29, %v6686_v18 }
  0xdd   : > { %10284 = vst [vmem:[#allocation48_spill] sm:$0xff] %v7308_v22  ;;  %v2992_v22 = vunpack.c.l.bf16 %v2721_v1  ;;  %v629_v1 = vmax.f32 %v563_v37, 0.0  ;;  %v7335_v61 = vunpack.c.l.bf16 %v3128_v31  ;;  %v10288_v31 = vrot.slane %v7276_v50, 1 }
  0xde   : > { %10285 = vst [vmem:[#allocation49_spill] sm:$0xff] %v7312_v13  ;;  %v3059_v33 = vadd.f32 %v3026_v6, %v2993_v58 }
  0xdf   : > { %v7330_v19 = vpop.permute.xlu2 %1056  ;;  %v565_v43 = vpop.f32.mrf.mxu0  ;;  %10287 = vst [vmem:[#allocation51_spill] sm:$0xff] %v7335_v61  ;;  %v3130_v8 = vmul.f32 %v7335_v61, %v7010_v12 }
  0xe0   : > { %v1111_v49 = vpop.permute.xlu1 %1110  ;;  %v1102_v26 = vpop.permute.xlu0 %1101  ;;  %v566_v46 = vadd.f32 %v6744_v62, %v565_v43  ;;  %v3131_v62 = vmul.f32 %v6936_v30, %v7335_v61 }
  0xe1   : > { %v1116_v13 = vperm.slane %v1111_v49, %v6686_v18  ;;  %v1107_v52 = vperm.slane %v1102_v26, %v6686_v18  ;;  %v3058_v49 = vadd.f32 %v3025_v21, %v2992_v22  ;;  %v3132_v21 = vmul.f32 %v7041_v0, %v7335_v61 }
  0xe2   : > { %v630_v26 = vmax.f32 %v566_v46, 0.0  ;;  %v3133_v22 = vmul.f32 %v7123_v16, %v7335_v61  ;;  %v3162_v39 = vpack.c.bf16 %v3130_v8, %v3130_v8  ;;  %v3163_v46 = vpack.c.bf16 %v3131_v62, %v3131_v62 }
  0xe3   : > { %v1237_v32 = vunpack.c.l.bf16 %v1116_v13  ;;  %v7332_v4 = vunpack.c.l.bf16 %v1107_v52  ;;  %v3060_v13 = vadd.f32 %v3027_v15, %v2994_v57  ;;  %v3457_v52 = vpack.i.b16 %v5790_v47, %v5790_v47 }
  0xe4   : > { %v7357_v15 = vpack.c.bf16 %v630_v26, %v629_v1  ;;  %v3164_v6 = vpack.c.bf16 %v3132_v21, %v3132_v21  ;;  %v7368_v1 = vunpack.c.l.bf16 %v2147_v25  ;;  %v3165_v26 = vpack.c.bf16 %v3133_v22, %v3133_v22 }
  0xe5   : > { %10286 = vst [vmem:[#allocation50_spill] sm:$0xff] %v7332_v4  ;;  %v1325_v20 = vrot.slane %v1237_v32, 1  ;;  %v10038_v45 = vrot.slane %v7332_v4, 1  ;;  %v4628_v32 = vmul.f32 %v7274_v5, %v6928_v36  ;;  %v3227_v29 = vunpack.c.l.bf16 %v3162_v39 }
  0xe6   : > { %6293 = vst [vmem:[#allocation2 + $0x30] sm:$0xff] %v7357_v15   ;;  %v7370_v4 = vunpack.c.l.bf16 %v2174_v44  ;;  %v3459_v61 = vperm.slane %v3457_v52, 0  ;;  %v3228_v62 = vunpack.c.l.bf16 %v3163_v46  ;;  %v3229_v21 = vunpack.c.l.bf16 %v3164_v6 }
  0xe7   : > { %v7350_v37 = vsel %vm1277_vm2, %v1325_v20, %v10288_v31  ;;  %v7355_v58 = vsel %vm1277_vm2, %v10038_v45, %v1325_v20  ;;  %10291 = vst [vmem:[#allocation54_spill] sm:$0xff] %v7368_v1  ;;  %v3091_v20 = vpack.c.bf16 %v3058_v49, %v3058_v49  ;;  %v3995_v31 = vunpack.c.l.bf16 %v3962_v63  ;;  %v7372_v47 = vpop.permute.xlu2 %2114 }
  0xe8   : > { %10289 = vst [vmem:[#allocation52_spill] sm:$0xff] %v7350_v37  ;;  %v1138_v53 = vpop.permute.xlu1 %1137  ;;  %v1129_v55 = vpop.permute.xlu0 %1128  ;;  %v3996_v45 = vunpack.c.l.bf16 %v3963_v54  ;;  %v3092_v37 = vpack.c.bf16 %v3059_v33, %v3059_v33  ;;  %v7376_v25 = vunpack.c.l.bf16 %v3165_v26  ;;  %v3291_v54 = vrot.slane %v3227_v29, 1 }
  0xe9   : > { %10290 = vst [vmem:[#allocation53_spill] sm:$0xff] %v7355_v58  ;;  %v1143_v43 = vperm.slane %v1138_v53, %v6686_v18  ;;  %v1134_v57 = vperm.slane %v1129_v55, %v6686_v18  ;;  %v3093_v58 = vpack.c.bf16 %v3060_v13, %v3060_v13  ;;  %v4661_v55 = vpack.c.bf16 %v4628_v32, %v4628_v32 }
  0xea   : > { %10292 = vst [vmem:[#allocation55_spill] sm:$0xff] %v7372_v47  ;;  %v3195_v63 = vunpack.c.l.bf16 %v3091_v20  ;;  %v3196_v33 = vunpack.c.l.bf16 %v3092_v37  ;;  %v3292_v44 = vrot.slane %v3228_v62, 1  ;;  %v3294_v39 = vrot.slane %v3229_v21, 1 }
  0xeb   : > { %v7374_v8 = vunpack.c.l.bf16 %v1143_v43  ;;  %v1239_v53 = vunpack.c.l.bf16 %v1134_v57  ;;  %10294 = vst [vmem:[#allocation57_spill] sm:$0xff] %v7376_v25  ;;  %v3197_v13 = vunpack.c.l.bf16 %v3093_v58  ;;  %v10295_v47 = vrot.slane %v7276_v50, 1 }
  0xec   : > { %v10045_v46 = vrot.slane %v7376_v25, 1  ;;  %v7390_v6 = vunpack.c.l.bf16 %v3459_v61  ;;  %v3295_v21 = vsel %vm1277_vm2, %v3292_v44, %v3294_v39 }
  0xed   : > { %10293 = vst [vmem:[#allocation56_spill] sm:$0xff] %v7374_v8  ;;  %v10044_v49 = vrot.slane %v7374_v8, 1  ;;  %v1329_v22 = vrot.slane %v1239_v53, 1  ;;  %v3387_v53 = vadd.f32 %v3291_v54, %v6938_v41 }
  0xef   : > { %v7382_v43 = vsel %vm1277_vm2, %v10295_v47, %v1329_v22  ;;  %v7387_v32 = vsel %vm1277_vm2, %v1329_v22, %v10044_v49  ;;  %v4694_v47 = vunpack.c.l.bf16 %v4661_v55  ;;  %v10046_v49 = vrot.slane %v7370_v4, 7 }
  0xf0   : > { %10296 = vst [vmem:[#allocation58_spill] sm:$0xff] %v7382_v43  ;;  %v2160_v52 = vpop.permute.xlu1 %2159  ;;  %v2151_v57 = vpop.permute.xlu0 %2150  ;;  %v7393_v37 = vmul.f32 %v3995_v31, %v7382_v43  ;;  %v7396_v58 = vmul.f32 %v3996_v45, %v7387_v32  ;;  %v3293_v31 = vsel %vm1277_vm2, %v3291_v54, %v3292_v44  ;;  %v3297_v45 = vsel %vm1277_vm2, %v3294_v39, %v10045_v46 }
  0xf1   : > { %10297 = vst [vmem:[#allocation59_spill] sm:$0xff] %v7387_v32  ;;  %v2165_v50 = vperm.slane %v2160_v52, %v6686_v18  ;;  %v2156_v20 = vperm.slane %v2151_v57, %v6686_v18  ;;  %v3388_v22 = vadd.f32 %v3293_v31, %v3195_v63  ;;  %v3389_v52 = vadd.f32 %v3295_v21, %v3196_v33  ;;  %v567_v44 = vpop.f32.mrf.mxu0 }
  0xf2   : > { %10298 = vst [vmem:[#allocation60_spill] sm:$0xff] %v7393_v37  ;;  %v3462_v57 = vmul.f32 %v7390_v6, %v7010_v12  ;;  %v3390_v41 = vadd.f32 %v3297_v45, %v3197_v13  ;;  %v3420_v26 = vpack.c.bf16 %v3387_v53, %v3387_v53  ;;  %v10302_v33 = vrot.slane %v7368_v1, 7  ;;  %v3890_v45 = vld [vmem:[#allocation2 + $0x10] sm:$0x8] }
  0xf3   : > { %10299 = vst [vmem:[#allocation61_spill] sm:$0xff] %v7396_v58  ;;  %v2286_v61 = vunpack.c.l.bf16 %v2165_v50  ;;  %v2285_v62 = vunpack.c.l.bf16 %v2156_v20  ;;  %v10300_v50 = vperm.slane %v7215_v14, %v6686_v18  ;;  %v7417_v20 = vpop.permute.xlu2 %2195  ;;  %v3421_v39 = vpack.c.bf16 %v3388_v22, %v3388_v22  ;;  %v7444_v22 = vld [vmem:[%s9985_s5] ss:$0 sm:$0xff] }
  0xf4   : > { %v3422_v63 = vpack.c.bf16 %v3389_v52, %v3389_v52  ;;  %v3465_v31 = vmul.f32 %v7123_v16, %v7390_v6  ;;  %v3495_v21 = vpack.c.bf16 %v3462_v57, %v3462_v57  ;;  %v3423_v52 = vpack.c.bf16 %v3390_v41, %v3390_v41 }
  0xf5   : > { %v2374_v55 = vrot.slane %v2286_v61, 7  ;;  %v2372_v29 = vrot.slane %v2285_v62, 7  ;;  %v7415_v54 = vunpack.c.l.bf16 %v10300_v50  ;;  %v3463_v61 = vmul.f32 %v6936_v30, %v7390_v6 }
  0xf6   : > { %v3464_v62 = vmul.f32 %v7041_v0, %v7390_v6  ;;  %v3528_v46 = vunpack.c.l.bf16 %v3495_v21  ;;  %v3628_v57 = vunpack.c.l.bf16 %v3421_v39  ;;  %v3899_v43 = vunpack.c.l.bf16 %v3890_v45 }
  0xf7   : > { %v7422_v12 = vsel %vm2326_vm3, %v2374_v55, %v10046_v49  ;;  %v7427_v13 = vsel %vm2326_vm3, %v10302_v33, %v2372_v29  ;;  %v7430_v14 = vsel %vm2326_vm3, %v2372_v29, %v2374_v55  ;;  %v7447_v29 = vadd.f32 %v7444_v22, %v567_v44 }
  0xf8   : > { %10301 = vst [vmem:[#allocation62_spill] sm:$0xff] %v7422_v12  ;;  %v7435_v53 = vmul.f32 %v4694_v47, %v7422_v12  ;;  %v3496_v55 = vpack.c.bf16 %v3463_v61, %v3463_v61  ;;  %v3497_v50 = vpack.c.bf16 %v3464_v62, %v3464_v62  ;;  %v3498_v33 = vpack.c.bf16 %v3465_v31, %v3465_v31 }
  0xf9   : > { %10303 = vst [vmem:[#allocation63_spill] sm:$0xff] %v7427_v13  ;;  %v3627_v49 = vunpack.c.l.bf16 %v3420_v26  ;;  %v3904_v12 = vmul.f32 %v7041_v0, %v6890_v17  ;;  %v3561_v44 = vmul.f32 %v3528_v46, %v6714_v40  ;;  %v3629_v1 = vunpack.c.l.bf16 %v3422_v63 }
  0xfa   : > { %10304 = vst [vmem:[#allocation64_spill] sm:$0xff] %v7430_v14  ;;  %v3529_v32 = vunpack.c.l.bf16 %v3496_v55  ;;  %v3530_v14 = vunpack.c.l.bf16 %v3497_v50  ;;  %v3531_v13 = vunpack.c.l.bf16 %v3498_v33  ;;  %v3903_v41 = vmul.f32 %v6890_v17, %v3899_v43 }
  0xfb   : > { %10305 = vst [vmem:[#allocation65_spill] sm:$0xff] %v7435_v53  ;;  %v3905_v61 = vmul.f32 %v7123_v16, %v6890_v17  ;;  %v3906_v26 = vmul.f32 %v7132_v42, %v6890_v17  ;;  %v3594_v31 = vpack.c.bf16 %v3561_v44, %v3561_v44  ;;  %v3630_v21 = vunpack.c.l.bf16 %v3423_v52 }
  0xfc   : > { %v3562_v8 = vmul.f32 %v3529_v32, %v6834_v59  ;;  %v3563_v39 = vmul.f32 %v3530_v14, %v6923_v28  ;;  %v3564_v62 = vmul.f32 %v3531_v13, %v6931_v3  ;;  %v3936_v55 = vpack.c.bf16 %v3903_v41, %v3903_v41 }
  0xfd   : > { %v3937_v46 = vpack.c.bf16 %v3904_v12, %v3904_v12  ;;  %v3938_v63 = vpack.c.bf16 %v3905_v61, %v3905_v61  ;;  %v3660_v33 = vunpack.c.l.bf16 %v3594_v31  ;;  %v3939_v43 = vpack.c.bf16 %v3906_v26, %v3906_v26 }
  0xfe   : > { %v3595_v45 = vpack.c.bf16 %v3562_v8, %v3562_v8  ;;  %v3596_v50 = vpack.c.bf16 %v3563_v39, %v3563_v39  ;;  %v3597_v32 = vpack.c.bf16 %v3564_v62, %v3564_v62  ;;  %v3969_v25 = vunpack.c.l.bf16 %v3936_v55 }
  0xff   : > { %v3970_v53 = vunpack.c.l.bf16 %v3937_v46  ;;  %v3971_v58 = vunpack.c.l.bf16 %v3938_v63  ;;  %v3726_v14 = vrot.slane %v3660_v33, 2  ;;  %v3972_v30 = vunpack.c.l.bf16 %v3939_v43 }
 0x100   : > { %v3661_v47 = vunpack.c.l.bf16 %v3595_v45  ;;  %v3662_v37 = vunpack.c.l.bf16 %v3596_v50  ;;  %v7462_v17 = vunpack.c.l.bf16 %v3597_v32  ;;  %v4002_v52 = vmul.f32 %v3969_v25, %v6711_v38  ;;  %v4530_v50 = vld [vmem:[#allocation2 + $0x14] sm:$0xf] }
 0x101   : > { %v4003_v8 = vmul.f32 %v3970_v53, %v6822_v56  ;;  %v4004_v12 = vmul.f32 %v3971_v58, %v6908_v9  ;;  %v3824_v61 = vadd.f32 %v3726_v14, %v3627_v49  ;;  %v4005_v26 = vmul.f32 %v3972_v30, %v6887_v11  ;;  %v5792_v9 = vld [vmem:[%s9983_s3 + $0x7] sm:$0x1]  ;;  %v6349_v58 = vld [vmem:[#allocation2 + $0x18] sm:$0xff]  }
 0x102   : > { %v3727_v13 = vrot.slane %v3661_v47, 2  ;;  %v3729_v44 = vrot.slane %v3662_v37, 2  ;;  %v10065_v41 = vrot.slane %v7462_v17, 2  ;;  %v4035_v62 = vpack.c.bf16 %v4002_v52, %v4002_v52 }
 0x103   : > { %v4036_v31 = vpack.c.bf16 %v4003_v8, %v4003_v8  ;;  %v4037_v45 = vpack.c.bf16 %v4004_v12, %v4004_v12  ;;  %v3857_v25 = vpack.c.bf16 %v3824_v61, %v3824_v61  ;;  %v4038_v11 = vpack.c.bf16 %v4005_v26, %v4005_v26 }
 0x104   : > { %v3728_v39 = vsel %vm2588_vm4, %v3726_v14, %v3727_v13  ;;  %v3730_v55 = vsel %vm2588_vm4, %v3727_v13, %v3729_v44  ;;  %v3732_v38 = vsel %vm2588_vm4, %v3729_v44, %v10065_v41  ;;  %v4101_v30 = vunpack.c.l.bf16 %v4035_v62 }
 0x105   : > { %v3825_v56 = vadd.f32 %v3728_v39, %v3628_v57  ;;  %v3826_v49 = vadd.f32 %v3730_v55, %v3629_v1  ;;  %v3827_v37 = vadd.f32 %v3732_v38, %v3630_v21  ;;  %v4068_v47 = vunpack.c.l.bf16 %v3857_v25 }
 0x106   : > { %v4102_v46 = vunpack.c.l.bf16 %v4036_v31  ;;  %v4103_v63 = vunpack.c.l.bf16 %v4037_v45  ;;  %v4104_v43 = vunpack.c.l.bf16 %v4038_v11  ;;  %v4203_v14 = vpack.i.b16 %v5792_v9, %v5792_v9 }
 0x107   : > { %v3858_v53 = vpack.c.bf16 %v3825_v56, %v3825_v56  ;;  %v3859_v32 = vpack.c.bf16 %v3826_v49, %v3826_v49  ;;  %v3860_v33 = vpack.c.bf16 %v3827_v37, %v3827_v37  ;;  %v4134_v13 = vadd.f32 %v4101_v30, %v4068_v47 }
 0x108   : > { %v6151_v52 = vunpack.c.l.bf16 %v6349_v58  ;;  %v6152_v8 = vunpack.c.h.bf16 %v6349_v58  ;;  %v4205_v1 = vperm.slane %v4203_v14, 0  ;;  %v4569_v21 = vunpack.c.l.bf16 %v4530_v50 }
 0x109   : > { %v4069_v57 = vunpack.c.l.bf16 %v3858_v53  ;;  %v4070_v12 = vunpack.c.l.bf16 %v3859_v32  ;;  %v4071_v44 = vunpack.c.l.bf16 %v3860_v33  ;;  %v4167_v26 = vpack.c.bf16 %v4134_v13, %v4134_v13 }
 0x10a   : > { %v4604_v39 = vmul.f32 %v6151_v52, %v6928_v36  ;;  %v4605_v62 = vmul.f32 %v6152_v8, %v6928_v36  ;;  %v7479_v55 = vunpack.c.l.bf16 %v4205_v1  ;;  %v4603_v38 = vmul.f32 %v6928_v36, %v4569_v21 }
 0x10b   : > { %v4135_v61 = vadd.f32 %v4102_v46, %v4069_v57  ;;  %v4136_v31 = vadd.f32 %v4103_v63, %v4070_v12  ;;  %v4137_v45 = vadd.f32 %v4104_v43, %v4071_v44  ;;  %v4271_v25 = vunpack.c.l.bf16 %v4167_v26 }
 0x10c   : > { %10306 = vst [vmem:[#allocation66_spill] sm:$0xff] %v7479_v55  ;;  %v4606_v9 = vmul.f32 %v7265_v51, %v6928_v36  ;;  %v4637_v49 = vpack.c.bf16 %v4604_v39, %v4604_v39  ;;  %v4207_v30 = vmul.f32 %v7041_v0, %v7479_v55  ;;  %v4208_v58 = vmul.f32 %v7123_v16, %v7479_v55 }
 0x10d   : > { %v4168_v56 = vpack.c.bf16 %v4135_v61, %v4135_v61  ;;  %v4169_v37 = vpack.c.bf16 %v4136_v31, %v4136_v31  ;;  %v4170_v11 = vpack.c.bf16 %v4137_v45, %v4137_v45  ;;  %v4209_v53 = vmul.f32 %v7132_v42, %v7479_v55 }
 0x10e   : > { %v4210_v47 = vmul.f32 %v7265_v51, %v7479_v55  ;;  %v4636_v63 = vpack.c.bf16 %v4603_v38, %v4603_v38  ;;  %v4239_v50 = vpack.c.bf16 %v4207_v30, %v4207_v30  ;;  %v4240_v32 = vpack.c.bf16 %v4208_v58, %v4208_v58 }
 0x10f   : > { %v4272_v46 = vunpack.c.l.bf16 %v4168_v56  ;;  %v4273_v33 = vunpack.c.l.bf16 %v4169_v37  ;;  %v4274_v43 = vunpack.c.l.bf16 %v4170_v11  ;;  %v4241_v14 = vpack.c.bf16 %v4209_v53, %v4209_v53 }
 0x110   : > { %v4242_v57 = vpack.c.bf16 %v4210_v47, %v4210_v47  ;;  %v4638_v13 = vpack.c.bf16 %v4605_v62, %v4605_v62  ;;  %v4639_v52 = vpack.c.bf16 %v4606_v9, %v4606_v9  ;;  %v4304_v8 = vunpack.c.l.bf16 %v4239_v50 }
 0x111   : > { %v4305_v12 = vunpack.c.l.bf16 %v4240_v32  ;;  %v4669_v44 = vunpack.c.l.bf16 %v4636_v63  ;;  %v4670_v1 = vunpack.c.l.bf16 %v4637_v49  ;;  %v4306_v21 = vunpack.c.l.bf16 %v4241_v14 }
 0x112   : > { %v7492_v61 = vunpack.c.l.bf16 %v4242_v57  ;;  %v4671_v26 = vunpack.c.l.bf16 %v4638_v13  ;;  %v4672_v39 = vunpack.c.l.bf16 %v4639_v52  ;;  %v4368_v31 = vrot.slane %v4304_v8, 1 }
 0x113   : > { %v4369_v45 = vrot.slane %v4305_v12, 1  ;;  %v4702_v38 = vmul.f32 %v4669_v44, %v6714_v40  ;;  %v4703_v56 = vmul.f32 %v4670_v1, %v6834_v59  ;;  %v4371_v37 = vrot.slane %v4306_v21, 1  ;;  %v570_v1 = vpop.f32.mrf.mxu0 }
 0x114   : > { %v10064_v11 = vrot.slane %v7492_v61, 1  ;;  %v4704_v62 = vmul.f32 %v4671_v26, %v6923_v28  ;;  %v4705_v9 = vmul.f32 %v4672_v39, %v6931_v3  ;;  %v4464_v30 = vadd.f32 %v4368_v31, %v4271_v25 }
 0x115   : > { %v4370_v49 = vsel %vm1277_vm2, %v4368_v31, %v4369_v45  ;;  %v4735_v58 = vpack.c.bf16 %v4702_v38, %v4702_v38  ;;  %v4736_v53 = vpack.c.bf16 %v4703_v56, %v4703_v56  ;;  %v4372_v47 = vsel %vm1277_vm2, %v4369_v45, %v4371_v37  ;;  %v2187_v38 = vpop.permute.xlu1 %2186 }
 0x116   : > { %v4374_v40 = vsel %vm1277_vm2, %v4371_v37, %v10064_v11  ;;  %v4465_v63 = vadd.f32 %v4370_v49, %v4272_v46  ;;  %v4737_v59 = vpack.c.bf16 %v4704_v62, %v4704_v62  ;;  %v4466_v50 = vadd.f32 %v4372_v47, %v4273_v33 }
 0x117   : > { %v4467_v32 = vadd.f32 %v4374_v40, %v4274_v43  ;;  %v4497_v14 = vpack.c.bf16 %v4464_v30, %v4464_v30  ;;  %v4738_v57 = vpack.c.bf16 %v4705_v9, %v4705_v9  ;;  %v4801_v13 = vunpack.c.l.bf16 %v4735_v58 }
 0x118   : > { %v4498_v28 = vpack.c.bf16 %v4465_v63, %v4465_v63  ;;  %v4802_v3 = vunpack.c.l.bf16 %v4736_v53  ;;  %v4803_v52 = vunpack.c.l.bf16 %v4737_v59  ;;  %v4499_v8 = vpack.c.bf16 %v4466_v50, %v4466_v50 }
 0x119   : > { %v4500_v25 = vpack.c.bf16 %v4467_v32, %v4467_v32  ;;  %v4768_v12 = vunpack.c.l.bf16 %v4497_v14  ;;  %v7504_v44 = vunpack.c.l.bf16 %v4738_v57  ;;  %v4867_v26 = vrot.slane %v4801_v13, 2  ;;  %v2178_v57 = vpop.permute.xlu0 %2177 }
 0x11a   : > { %v4769_v21 = vunpack.c.l.bf16 %v4498_v28  ;;  %v4868_v39 = vrot.slane %v4802_v3, 2  ;;  %v4870_v31 = vrot.slane %v4803_v52, 2  ;;  %v631_v46 = vmax.f32 %v7447_v29, 0.0 }
 0x11b   : > { %v4770_v33 = vunpack.c.l.bf16 %v4499_v8  ;;  %v4771_v43 = vunpack.c.l.bf16 %v4500_v25  ;;  %v10063_v45 = vrot.slane %v7504_v44, 2  ;;  %v10307_v56 = vperm.slane %v7417_v20, %v6686_v18 }
 0x11c   : > { %v4869_v62 = vsel %vm2588_vm4, %v4867_v26, %v4868_v39  ;;  %v4871_v9 = vsel %vm2588_vm4, %v4868_v39, %v4870_v31  ;;  %v571_v49 = vadd.f32 %v7444_v22, %v570_v1  ;;  %v4965_v30 = vadd.f32 %v4867_v26, %v4768_v12 }
 0x11d   : > { %v7511_v37 = vunpack.c.l.bf16 %v10307_v56  ;;  %v4873_v29 = vsel %vm2588_vm4, %v4870_v31, %v10063_v45  ;;  %v4966_v58 = vadd.f32 %v4869_v62, %v4769_v21  ;;  %v4967_v53 = vadd.f32 %v4871_v9, %v4770_v33  ;;  %v617_v9 = vpop.f32.mrf.mxu3  ;;  %v10353_v45 = vld [vmem:[#allocation30_spill] sm:$0xff] }
 0x11e   : > { %v4968_v47 = vadd.f32 %v4873_v29, %v4771_v43  ;;  %v632_v40 = vmax.f32 %v571_v49, 0.0  ;;  %v2192_v63 = vperm.slane %v2187_v38, %v6686_v18  ;;  %v3490_v20 = vmul.f32 %v7279_v34, %v7390_v6 }
 0x11f   : > { %v7524_v59 = vmul.f32 %v7268_v24, %v6671_v10  ;;  %v1305_v50 = vrot.slane %v7317_v2, 1  ;;  %v2352_v32 = vrot.slane %v7321_v60, 7  ;;  %v4998_v14 = vpack.c.bf16 %v4966_v58, %v4965_v30 }
 0x120   : > { %v4999_v28 = vpack.c.bf16 %v4968_v47, %v4967_v53  ;;  %v7528_v13 = vpack.c.bf16 %v632_v40, %v631_v46  ;;  %v2289_v3 = vunpack.c.l.bf16 %v2192_v63  ;;  %v3523_v52 = vpack.c.bf16 %v3490_v20, %v3490_v20 }
 0x121   : > { %10308 = vst [vmem:[#allocation67_spill] sm:$0xff] %v7524_v59  ;;  %v2356_v8 = vrot.slane %v7415_v54, 7  ;;  %v10309_v25 = vperm.slane %v7217_v27, %v6686_v18  ;;  %v5037_v1 = vshrl.u32 %v4998_v14, 16  ;;  %v5040_v21 = vshll.u32 %v4998_v14, 16 }
 0x122   : > { %v10061_v26 = vrot.slane %v7511_v37, 7  ;;  %v5045_v2 = vshrl.u32 %v4999_v28, 16  ;;  %v5048_v39 = vshll.u32 %v4999_v28, 16  ;;  %6294 = vst [vmem:[#allocation2 + $0x38] sm:$0xff] %v7528_v13   ;;  %v2183_v60 = vperm.slane %v2178_v57, %v6686_v18 }
 0x123   : > { %v2276_v12 = vunpack.c.l.bf16 %v10309_v25  ;;  %v5039_v31 = vrot.slane %v5037_v1, 3  ;;  %v5042_v46 = vrot.slane %v5040_v21, 4  ;;  %v2380_v33 = vrot.slane %v2289_v3, 7 }
 0x124   : > { %v3556_v43 = vunpack.c.l.bf16 %v3523_v52  ;;  %v2093_v38 = vperm.slane %v7260_v48, %v6686_v18  ;;  %v1053_v27 = vperm.slane %v7262_v35, %v6686_v18  ;;  %v5047_v56 = vrot.slane %v5045_v2, 3 }
 0x125   : > { %v5050_v62 = vrot.slane %v5048_v39, 4  ;;  %v2354_v49 = vrot.slane %v2276_v12, 7  ;;  %v1062_v29 = vperm.slane %v7330_v19, %v6686_v18  ;;  %v7546_v30 = vsel %vm2326_vm3, %v2380_v33, %v10061_v26  ;;  %v10351_v26 = vld [vmem:[#allocation60_spill] sm:$0xff] }
 0x126   : > { %10310 = vst [vmem:[#allocation68_spill] sm:$0xff] %v7546_v30  ;;  %v5043_v58 = vor.u32 %v5042_v46, %v5039_v31  ;;  %v3589_v48 = vmul.f32 %v3556_v43, %v7546_v30  ;;  %v2288_v47 = vunpack.c.l.bf16 %v2183_v60  ;;  %v7552_v35 = vunpack.c.l.bf16 %v7255_v7 }
 0x127   : > { %v7548_v53 = vor.u32 %v5050_v62, %v5047_v56  ;;  %v3489_v40 = vmul.f32 %v7274_v5, %v7390_v6  ;;  %v4629_v19 = vmul.f32 %v7279_v34, %v6928_v36  ;;  %v618_v63 = vadd.f32 %v7444_v22, %v617_v9 }
 0x128   : > { %10311 = vst [vmem:[#allocation69_spill] sm:$0xff] %v7552_v35  ;;  %v2278_v20 = vunpack.c.l.bf16 %v2093_v38  ;;  %v1230_v14 = vunpack.c.l.bf16 %v1053_v27  ;;  %v2378_v28 = vrot.slane %v2288_v47, 7  ;;  %v3622_v3 = vpack.c.bf16 %v3589_v48, %v3589_v48 }
 0x129   : > { %v5052_v57 = vsel %vm5035_vm5, %v5043_v58, %v7548_v53  ;;  %v3522_v52 = vpack.c.bf16 %v3489_v40, %v3489_v40  ;;  %v4662_v25 = vpack.c.bf16 %v4629_v19, %v4629_v19  ;;  %v651_v12 = vmax.f32 %v618_v63, 0.0  ;;  %v10326_v19 = vld [vmem:[#allocation5_spill] sm:$0xff] }
 0x12a   : > { %5260 = vmatmul.bf16.vlgmr.msra.gmra.mxu1 %v5052_v57  ;;  %v7562_v1 = vunpack.c.h.bf16 %v7255_v7  ;;  %v7564_v21 = vunpack.c.l.bf16 %v1062_v29  ;;  %v10313_v2 = vrot.slane %v7370_v4, 7  ;;  %v7572_v60 = vsel %vm2326_vm3, %v2378_v28, %v2380_v33  ;;  %v10318_v7 = vld [vmem:[#allocation24_spill] sm:$0xff]  ;;  %v10321_v4 = vld [vmem:[#allocation15_spill] sm:$0xff] }
 0x12b   : > { %10315 = vst [vmem:[#allocation72_spill] sm:$0xff] %v7572_v60  ;;  %v10316_v31 = vrot.slane %v7213_v23, 1  ;;  %v3555_v43 = vunpack.c.l.bf16 %v3522_v52  ;;  %v4695_v38 = vunpack.c.l.bf16 %v4662_v25  ;;  %v683_v27 = vpack.c.bf16 %v651_v12, %v651_v12 }
 0x12c   : > { %10312 = vst [vmem:[#allocation70_spill] sm:$0xff] %v7562_v1  ;;  %v7569_v39 = vsel %vm2326_vm3, %v10313_v2, %v2378_v28  ;;  %v10319_v56 = vrot.slane %v10318_v7, 1  ;;  %v10322_v9 = vrot.slane %v10321_v4, 7  ;;  %v7590_v33 = vsel %vm2326_vm3, %v2352_v32, %v2354_v49  ;;  %v10331_v28 = vld [vmem:[#allocation55_spill] sm:$0xff]  ;;  %v10340_v7 = vld [vmem:[#allocation26_spill] sm:$0xff] }
 0x12d   : > { %10314 = vst [vmem:[#allocation71_spill] sm:$0xff] %v7569_v39  ;;  %v7577_v46 = vsel %vm1277_vm2, %v10316_v31, %v1305_v50  ;;  %v2358_v23 = vrot.slane %v2278_v20, 7  ;;  %v1311_v58 = vrot.slane %v1230_v14, 1  ;;  %v7592_v48 = vunpack.c.l.bf16 %v3622_v3  ;;  %v10335_v2 = vld [vmem:[#allocation3_spill] sm:$0xff] }
 0x12e   : > { %10317 = vst [vmem:[#allocation73_spill] sm:$0xff] %v7577_v46  ;;  %v7582_v62 = vsel %vm1277_vm2, %v1305_v50, %v10319_v56  ;;  %v7587_v29 = vsel %vm2326_vm3, %v10322_v9, %v2352_v32  ;;  %v3588_v47 = vmul.f32 %v3555_v43, %v7572_v60  ;;  %v7596_v40 = vmul.f32 %v4695_v38, %v7569_v39  ;;  %v10337_v43 = vld [vmem:[#allocation36_spill] sm:$0xff] }
 0x12f   : > { %10320 = vst [vmem:[#allocation24_spill] sm:$0xff] %v7582_v62  ;;  %v7601_v50 = vsel %vm2326_vm3, %v2354_v49, %v2356_v8  ;;  %v7605_v63 = vmul.f32 %v7552_v35, %v10326_v19  ;;  %v7609_v32 = vmul.f32 %v7562_v1, %v10326_v19  ;;  %v10062_v20 = vrot.slane %v7564_v21, 1  ;;  %v10360_v62 = vld [vmem:[#allocation6_spill] sm:$0xff] }
 0x130   : > { %10323 = vst [vmem:[#allocation15_spill] sm:$0xff] %v7587_v29  ;;  %v7613_v14 = vunpack.c.l.bf16 %v7357_v15  ;;  %v7616_v57 = vunpack.c.h.bf16 %v7357_v15  ;;  %v2120_v49 = vperm.slane %v10331_v28, %v6686_v18  ;;  %v3621_v3 = vpack.c.bf16 %v3588_v47, %v3588_v47  ;;  %v10336_v15 = vld [vmem:[#allocation10_spill] sm:$0xff] }
 0x131   : > { %10324 = vst [vmem:[#allocation74_spill] sm:$0xff] %v7590_v33  ;;  %v7622_v52 = vmul.f32 %v7552_v35, %v6671_v10  ;;  %v7626_v25 = vmul.f32 %v7562_v1, %v6671_v10  ;;  %v7631_v12 = vsel %vm2326_vm3, %v2356_v8, %v2358_v23  ;;  %v798_v31 = vmul.f32 %v10336_v15, %v10335_v2 }
 0x132   : > { %721 = vst [vmem:[#allocation2 + $0x88] sm:$0xf] %v683_v27  ;;  %v10338_v38 = vrot.slane %v10337_v43, 7  ;;  %v10341_v56 = vrot.slane %v10340_v7, 1  ;;  %v10075_v9 = vrot.slane %v7592_v48, 2  ;;  %v7646_v47 = vunpack.c.l.bf16 %v3621_v3 }
 0x133   : > { %10325 = vst [vmem:[#allocation75_spill] sm:$0xff] %v7601_v50  ;;  %v7651_v54 = vsel %vm1277_vm2, %v1311_v58, %v10062_v20  ;;  %v799_v8 = vmul.f32 %v7041_v0, %v10335_v2  ;;  %v831_v28 = vpack.c.bf16 %v798_v31, %v798_v31  ;;  %v7663_v3 = vmul.f32 %v7616_v57, %v10326_v19  ;;  %v10357_v50 = vld [vmem:[#allocation61_spill] sm:$0xff] }
 0x134   : > { %10327 = vst [vmem:[#allocation76_spill] sm:$0xff] %v7605_v63  ;;  %v7638_v27 = vsel %vm2326_vm3, %v2358_v23, %v10338_v38  ;;  %v7643_v4 = vsel %vm1277_vm2, %v10341_v56, %v1311_v58  ;;  %v10345_v23 = vld [vmem:[#allocation20_spill] sm:$0xff]  ;;  %v7659_v38 = vmul.f32 %v7613_v14, %v10326_v19  ;;  %v7665_v7 = vunpack.c.l.bf16 %v2120_v49 }
 0x135   : > { %10328 = vst [vmem:[#allocation77_spill] sm:$0xff] %v7609_v32  ;;  %v1483_v15 = vpack.c.bf16 %v10345_v23, %v10345_v23  ;;  %v10074_v58 = vrot.slane %v7646_v47, 2  ;;  %v7670_v56 = vmul.f32 %v7613_v14, %v6671_v10  ;;  %v7674_v0 = vmul.f32 %v7616_v57, %v6671_v10 }
 0x136   : > { %10329 = vst [vmem:[#allocation78_spill] sm:$0xff] %v7613_v14  ;;  %v832_v31 = vpack.c.bf16 %v799_v8, %v799_v8  ;;  %v1184_v23 = vunpack.c.l.bf16 %v831_v28  ;;  %v4061_v20 = vpack.c.bf16 %v10351_v26, %v10351_v26  ;;  %v1484_v11 = vpack.c.bf16 %v10353_v45, %v10353_v45  ;;  %v10356_v28 = vld [vmem:[#allocation32_spill] sm:$0xff] }
 0x137   : > { %10330 = vst [vmem:[#allocation79_spill] sm:$0xff] %v7616_v57  ;;  %v7683_v49 = vsel %vm2588_vm4, %v10074_v58, %v10075_v9  ;;  %v1548_v41 = vunpack.c.l.bf16 %v1483_v15  ;;  %v1881_v26 = vpack.c.bf16 %v10356_v28, %v10356_v28  ;;  %v2830_v28 = vmul.f32 %v7123_v16, %v10360_v62 }
 0x138   : > { %10332 = vst [vmem:[#allocation55_spill] sm:$0xff] %v7622_v52  ;;  %v1185_v39 = vunpack.c.l.bf16 %v832_v31  ;;  %v7695_v58 = vunpack.c.l.bf16 %v1484_v11  ;;  %v10361_v11 = vld [vmem:[#allocation12_spill] sm:$0xff] }
 0x139   : > { %10333 = vst [vmem:[#allocation80_spill] sm:$0xff] %v7626_v25  ;;  %v1615_v9 = vrot.slane %v1548_v41, 1  ;;  %v2234_v33 = vunpack.c.l.bf16 %v1881_v26  ;;  %v10362_v41 = vld [vmem:[#allocation13_spill] sm:$0xff]  ;;  %v2863_v26 = vpack.c.bf16 %v2830_v28, %v2830_v28  ;;  %v10373_v52 = vld [vmem:[#allocation8_spill] sm:$0xff] }
 0x13a   : > { %10334 = vst [vmem:[#allocation81_spill] sm:$0xff] %v7631_v12  ;;  %v10355_v12 = vld [vmem:[#allocation21_spill] sm:$0xff] }
 0x13b   : > { %10339 = vst [vmem:[#allocation3_spill] sm:$0xff] %v7638_v27  ;;  %v1880_v8 = vpack.c.bf16 %v10355_v12, %v10355_v12  ;;  %v10083_v12 = vrot.slane %v7695_v58, 1 }
 0x13c   : > { %10342 = vst [vmem:[#allocation10_spill] sm:$0xff] %v7643_v4  ;;  %v2831_v4 = vmul.f32 %v7132_v42, %v10360_v62 }
 0x13d   : > { %10343 = vst [vmem:[#allocation36_spill] sm:$0xff] %v7646_v47  ;;  %v4062_v47 = vpack.c.bf16 %v10357_v50, %v10357_v50  ;;  %v2233_v31 = vunpack.c.l.bf16 %v1880_v8 }
 0x13e   : > { %10344 = vst [vmem:[#allocation26_spill] sm:$0xff] %v7651_v54  ;;  %v10354_v54 = vld [vmem:[#allocation9_spill] sm:$0xff] }
 0x13f   : > { %10346 = vst [vmem:[#allocation20_spill] sm:$0xff] %v7659_v38  ;;  %v1378_v27 = vmul.f32 %v10354_v54, %v1184_v23  ;;  %v7698_v23 = vunpack.c.l.bf16 %v4061_v20  ;;  %v2427_v29 = vmul.f32 %v10361_v11, %v2233_v31  ;;  %v1618_v20 = vsel %vm1277_vm2, %v1615_v9, %v10083_v12 }
 0x140   : > { %10347 = vst [vmem:[#allocation82_spill] sm:$0xff] %v7663_v3  ;;  %v2896_v31 = vunpack.c.l.bf16 %v2863_v26  ;;  %v10370_v26 = vld [vmem:[#allocation35_spill] sm:$0xff] }
 0x141   : > { %10348 = vst [vmem:[#allocation83_spill] sm:$0xff] %v7665_v7  ;;  %v1411_v15 = vpack.c.bf16 %v1378_v27, %v1378_v27  ;;  %v2460_v14 = vpack.c.bf16 %v2427_v29, %v2427_v29 }
 0x142   : > { %10349 = vst [vmem:[#allocation84_spill] sm:$0xff] %v7670_v56 }
 0x143   : > { %10350 = vst [vmem:[#allocation85_spill] sm:$0xff] %v7674_v0  ;;  %v1515_v50 = vunpack.c.l.bf16 %v1411_v15  ;;  %v2428_v0 = vmul.f32 %v10362_v41, %v2234_v33  ;;  %v10366_v33 = vld [vmem:[#allocation51_spill] sm:$0xff]  ;;  %v2526_v32 = vunpack.c.l.bf16 %v2460_v14  ;;  %v6413_v14 = vld [vmem:[#allocation2 + $0x20] sm:$0xff] }
 0x144   : > { %10352 = vst [vmem:[#allocation60_spill] sm:$0xff] %v7683_v49  ;;  %v10358_v49 = vld [vmem:[#allocation14_spill] sm:$0xff] }
 0x145   : > { %v1379_v45 = vmul.f32 %v10358_v49, %v1185_v39  ;;  %10359 = vst [vmem:[#allocation30_spill] sm:$0xff] %v7698_v23  ;;  %v10363_v39 = vld [vmem:[#allocation17_spill] sm:$0xff]  ;;  %v2864_v23 = vpack.c.bf16 %v2831_v4, %v2831_v4  ;;  %v2461_v56 = vpack.c.bf16 %v2428_v0, %v2428_v0  ;;  %v3135_v4 = vmul.f32 %v7265_v51, %v10366_v33  ;;  %v1084_v0 = vpop.permute.xlu2 %1083 }
 0x146   : > { %v10364_v27 = vrot.slane %v10363_v39, 1  ;;  %v3134_v39 = vmul.f32 %v7132_v42, %v10366_v33 }
 0x147   : > { %v1412_v46 = vpack.c.bf16 %v1379_v45, %v1379_v45  ;;  %v10365_v45 = vld [vmem:[#allocation65_spill] sm:$0xff]  ;;  %v2897_v25 = vunpack.c.l.bf16 %v2864_v23  ;;  %v7717_v1 = vunpack.c.l.bf16 %v2461_v56  ;;  %v3167_v12 = vpack.c.bf16 %v3135_v4, %v3135_v4 }
 0x148   : > { %v1616_v8 = vsel %vm1277_vm2, %v10364_v27, %v1615_v9  ;;  %v4760_v15 = vpack.c.bf16 %v10365_v45, %v10365_v45  ;;  %v7719_v9 = vunpack.c.l.bf16 %v4062_v47  ;;  %v3166_v56 = vpack.c.bf16 %v3134_v39, %v3134_v39 }
 0x149   : > { %v1516_v3 = vunpack.c.l.bf16 %v1412_v46  ;;  %v1708_v57 = vadd.f32 %v1616_v8, %v1515_v50  ;;  %10367 = vst [vmem:[#allocation9_spill] sm:$0xff] %v7717_v1  ;;  %v2929_v46 = vmul.f32 %v2896_v31, %v10354_v54  ;;  %v2930_v29 = vmul.f32 %v2897_v25, %v10358_v49  ;;  %v10372_v31 = vld [vmem:[#allocation44_spill] sm:$0xff] }
 0x14a   : > { %10368 = vst [vmem:[#allocation21_spill] sm:$0xff] %v7719_v9  ;;  %v2596_v50 = vrot.slane %v2526_v32, 2  ;;  %v10085_v8 = vrot.slane %v7717_v1, 2  ;;  %v10371_v45 = vrot.slane %v10370_v26, 2  ;;  %v3466_v32 = vmul.f32 %v7132_v42, %v7390_v6 }
 0x14b   : > { %v1709_v38 = vadd.f32 %v1618_v20, %v1516_v3  ;;  %v1741_v27 = vpack.c.bf16 %v1708_v57, %v1708_v57  ;;  %v7726_v3 = vunpack.c.l.bf16 %v4760_v15  ;;  %v7728_v57 = vunpack.c.h.bf16 %v6413_v14 }
 0x14c   : > { %v2962_v47 = vpack.c.bf16 %v2929_v46, %v2929_v46  ;;  %v2597_v25 = vsel %vm2588_vm4, %v10371_v45, %v2596_v50  ;;  %v1089_v15 = vperm.slane %v1084_v0, %v6686_v18  ;;  %v2963_v39 = vpack.c.bf16 %v2930_v29, %v2930_v29 }
 0x14d   : > { %v1742_v28 = vpack.c.bf16 %v1709_v38, %v1709_v38  ;;  %v2493_v23 = vunpack.c.l.bf16 %v1741_v27  ;;  %10369 = vst [vmem:[#allocation32_spill] sm:$0xff] %v7726_v3  ;;  %v2599_v38 = vsel %vm2588_vm4, %v2596_v50, %v10085_v8  ;;  %v6204_v27 = vunpack.c.h.bf16 %v10372_v31 }
 0x14e   : > { %v3499_v26 = vpack.c.bf16 %v3466_v32, %v3466_v32  ;;  %v3028_v9 = vunpack.c.l.bf16 %v2962_v47  ;;  %v3231_v35 = vunpack.c.l.bf16 %v3166_v56  ;;  %v3907_v50 = vmul.f32 %v7265_v51, %v10373_v52 }
 0x14f   : > { %v2494_v20 = vunpack.c.l.bf16 %v1742_v28  ;;  %v2691_v14 = vadd.f32 %v2597_v25, %v2493_v23  ;;  %v3467_v28 = vmul.f32 %v7265_v51, %v7390_v6  ;;  %v3908_v0 = vmul.f32 %v7728_v57, %v10373_v52  ;;  %v7751_v25 = vld [vmem:[#allocation2 + $0x28] sm:$0xff]  }
 0x150   : > { %v3532_v63 = vunpack.c.l.bf16 %v3499_v26  ;;  %v7747_v23 = vunpack.c.l.bf16 %v1089_v15  ;;  %10375 = vst [vmem:[#allocation14_spill] sm:$0xff] %v7751_v25  ;;  %v3029_v56 = vunpack.c.l.bf16 %v2963_v39  ;;  %v3298_v26 = vrot.slane %v3231_v35, 1 }
 0x151   : > { %v2692_v46 = vadd.f32 %v2599_v38, %v2494_v20  ;;  %v2724_v45 = vpack.c.bf16 %v2691_v14, %v2691_v14  ;;  %v3500_v59 = vpack.c.bf16 %v3467_v28, %v3467_v28  ;;  %v7749_v20 = vunpack.c.l.bf16 %v3167_v12 }
 0x152   : > { %v3565_v32 = vmul.f32 %v3532_v63, %v10361_v11  ;;  %v4631_v14 = vmul.f32 %v6204_v27, %v6928_v36  ;;  %v3940_v24 = vpack.c.bf16 %v3907_v50, %v3907_v50  ;;  %v7757_v12 = vunpack.c.l.bf16 %v7528_v13 }
 0x153   : > { %v2725_v8 = vpack.c.bf16 %v2692_v46, %v2692_v46  ;;  %v2995_v29 = vunpack.c.l.bf16 %v2724_v45  ;;  %10374 = vst [vmem:[#allocation61_spill] sm:$0xff] %v7749_v20  ;;  %v3533_v38 = vunpack.c.l.bf16 %v3500_v59  ;;  %v572_v46 = vpop.f32.mrf.mxu0  ;;  %v3941_v45 = vpack.c.bf16 %v3908_v0, %v3908_v0 }
 0x154   : > { %v3598_v4 = vpack.c.bf16 %v3565_v32, %v3565_v32  ;;  %10376 = vst [vmem:[#allocation12_spill] sm:$0xff] %v7757_v12  ;;  %v10091_v63 = vrot.slane %v7749_v20, 1  ;;  %v6203_v27 = vunpack.c.l.bf16 %v10372_v31  ;;  %v4664_v50 = vpack.c.bf16 %v4631_v14, %v4631_v14 }
 0x155   : > { %v2996_v47 = vunpack.c.l.bf16 %v2725_v8  ;;  %v3061_v28 = vadd.f32 %v3028_v9, %v2995_v29  ;;  %v3566_v15 = vmul.f32 %v3533_v38, %v10362_v41  ;;  %v7760_v8 = vunpack.c.l.bf16 %v7751_v25  ;;  %v10378_v38 = vld [vmem:[#allocation57_spill] sm:$0xff] }
 0x156   : > { %v3664_v35 = vunpack.c.l.bf16 %v3598_v4  ;;  %v573_v29 = vadd.f32 %v7444_v22, %v572_v46  ;;  %v10379_v32 = vrot.slane %v10378_v38, 1  ;;  %v3301_v31 = vsel %vm1277_vm2, %v3298_v26, %v10091_v63 }
 0x157   : > { %v3062_v1 = vadd.f32 %v3029_v56, %v2996_v47  ;;  %10377 = vst [vmem:[#allocation13_spill] sm:$0xff] %v7760_v8  ;;  %v3094_v59 = vpack.c.bf16 %v3061_v28, %v3061_v28  ;;  %v3599_v9 = vpack.c.bf16 %v3566_v15, %v3566_v15  ;;  %v3973_v56 = vunpack.c.l.bf16 %v3940_v24 }
 0x158   : > { %v3299_v3 = vsel %vm1277_vm2, %v10379_v32, %v3298_v26  ;;  %v3974_v28 = vunpack.c.l.bf16 %v3941_v45  ;;  %v4211_v4 = vmul.f32 %v7728_v57, %v7479_v55  ;;  %v4212_v14 = vmul.f32 %v7760_v8, %v7479_v55  ;;  %v7787_v55 = vpop.permute.xlu2 %1164 }
 0x159   : > { %v3095_v39 = vpack.c.bf16 %v3062_v1, %v3062_v1  ;;  %v3198_v47 = vunpack.c.l.bf16 %v3094_v59  ;;  %v7768_v25 = vunpack.c.l.bf16 %v3599_v9  ;;  %v7778_v24 = vmul.f32 %v6203_v27, %v6928_v36 }
 0x15a   : > { %v3733_v15 = vrot.slane %v3664_v35, 2  ;;  %v4607_v59 = vmul.f32 %v7728_v57, %v6928_v36  ;;  %v4006_v26 = vmul.f32 %v3973_v56, %v10354_v54  ;;  %v633_v9 = vmax.f32 %v573_v29, 0.0 }
 0x15b   : > { %v3199_v0 = vunpack.c.l.bf16 %v3095_v39  ;;  %v3391_v1 = vadd.f32 %v3299_v3, %v3198_v47  ;;  %v4608_v3 = vmul.f32 %v7760_v8, %v6928_v36  ;;  %v4007_v38 = vmul.f32 %v3974_v28, %v10358_v49 }
 0x15c   : > { %v4640_v32 = vpack.c.bf16 %v4607_v59, %v4607_v59  ;;  %v4243_v63 = vpack.c.bf16 %v4211_v4, %v4211_v4  ;;  %v10380_v39 = vrot.slane %v7462_v17, 2  ;;  %v10381_v29 = vrot.slane %v7768_v25, 2 }
 0x15d   : > { %v3392_v46 = vadd.f32 %v3301_v31, %v3199_v0  ;;  %v3424_v45 = vpack.c.bf16 %v3391_v1, %v3391_v1  ;;  %v4244_v0 = vpack.c.bf16 %v4212_v14, %v4212_v14  ;;  %v4641_v35 = vpack.c.bf16 %v4608_v3, %v4608_v3  ;;  %v575_v31 = vpop.f32.mrf.mxu0  ;;  %v7796_v14 = vpop.permute.xlu1 %2105 }
 0x15e   : > { %v3734_v54 = vsel %vm2588_vm4, %v10380_v39, %v3733_v15  ;;  %v4673_v56 = vunpack.c.l.bf16 %v4640_v32  ;;  %v576_v20 = vadd.f32 %v7444_v22, %v575_v31  ;;  %v3736_v49 = vsel %vm2588_vm4, %v3733_v15, %v10381_v29  ;;  %v1066_v29 = vpop.permute.xlu0 %1065 }
 0x15f   : > { %v3425_v47 = vpack.c.bf16 %v3392_v46, %v3392_v46  ;;  %v3631_v27 = vunpack.c.l.bf16 %v3424_v45  ;;  %v4039_v46 = vpack.c.bf16 %v4006_v26, %v4006_v26  ;;  %v4674_v4 = vunpack.c.l.bf16 %v4641_v35 }
 0x160   : > { %v4040_v45 = vpack.c.bf16 %v4007_v38, %v4007_v38  ;;  %v4706_v3 = vmul.f32 %v4673_v56, %v10361_v11  ;;  %v4697_v17 = vunpack.c.l.bf16 %v4664_v50  ;;  %v7799_v39 = vunpack.c.l.bf16 %v4244_v0 }
 0x161   : > { %v3632_v1 = vunpack.c.l.bf16 %v3425_v47  ;;  %v3828_v28 = vadd.f32 %v3734_v54, %v3631_v27  ;;  %v634_v47 = vmax.f32 %v576_v20, 0.0  ;;  %v4707_v22 = vmul.f32 %v4674_v4, %v10362_v41  ;;  %v1802_v41 = vld [vmem:[#allocation2 + $0x84] sm:$0x1]  ;;  %v3453_v54 = vld [vmem:[#allocation2 + $0x8c] sm:$0x1] }
 0x162   : > { %v7803_v32 = vunpack.c.h.bf16 %v7528_v13  ;;  %v4308_v27 = vunpack.c.l.bf16 %v4243_v63  ;;  %v4105_v38 = vunpack.c.l.bf16 %v4039_v46  ;;  %v4663_v11 = vpack.c.bf16 %v7778_v24, %v7778_v24 }
 0x163   : > { %v3829_v59 = vadd.f32 %v3736_v49, %v3632_v1  ;;  %v3861_v8 = vpack.c.bf16 %v3828_v28, %v3828_v28  ;;  %v7805_v26 = vpack.c.bf16 %v634_v47, %v633_v9  ;;  %v4740_v1 = vpack.c.bf16 %v4707_v22, %v4707_v22  ;;  %v2223_v22 = vpop.permute.xlu2 %2222 }
 0x164   : > { %10382 = vst [vmem:[#allocation17_spill] sm:$0xff] %v7803_v32  ;;  %v4106_v50 = vunpack.c.l.bf16 %v4040_v45  ;;  %v4739_v0 = vpack.c.bf16 %v4706_v3, %v4706_v3  ;;  %v7813_v13 = vmul.f32 %v7757_v12, %v10326_v19  ;;  %v4730_v63 = vmul.f32 %v4697_v17, %v7546_v30 }
 0x165   : > { %v3862_v15 = vpack.c.bf16 %v3829_v59, %v3829_v59  ;;  %v4072_v31 = vunpack.c.l.bf16 %v3861_v8  ;;  %6295 = vst [vmem:[#allocation2 + $0x40] sm:$0xff] %v7805_v26   ;;  %v10097_v8 = vrot.slane %v7799_v39, 1  ;;  %v7819_v56 = vmul.f32 %v7803_v32, %v10326_v19 }
 0x166   : > { %10383 = vst [vmem:[#allocation65_spill] sm:$0xff] %v7813_v13  ;;  %v7823_v24 = vmul.f32 %v7757_v12, %v6671_v10  ;;  %v4375_v28 = vrot.slane %v4308_v27, 1  ;;  %v7827_v46 = vmul.f32 %v7803_v32, %v6671_v10  ;;  %v7829_v59 = vunpack.c.l.bf16 %v4740_v1 }
 0x167   : > { %v4073_v20 = vunpack.c.l.bf16 %v3862_v15  ;;  %v4138_v9 = vadd.f32 %v4105_v38, %v4072_v31  ;;  %10384 = vst [vmem:[#allocation51_spill] sm:$0xff] %v7819_v56  ;;  %v1841_v45 = vunpack.c.l.bf16 %v1802_v41  ;;  %v4696_v3 = vunpack.c.l.bf16 %v4663_v11  ;;  %v1156_v41 = vpop.permute.xlu1 %1155  ;;  %v10427_v56 = vld [vmem:[#allocation18_spill] sm:$0xff] }
 0x168   : > { %10385 = vst [vmem:[#allocation35_spill] sm:$0xff] %v7823_v24  ;;  %v4805_v17 = vunpack.c.l.bf16 %v4739_v0  ;;  %v3460_v15 = vunpack.c.l.bf16 %v3453_v54  ;;  %v4763_v31 = vpack.c.bf16 %v4730_v63, %v4730_v63  ;;  %v1170_v38 = vperm.slane %v7787_v55, %v6686_v18 }
 0x169   : > { %v4139_v49 = vadd.f32 %v4106_v50, %v4073_v20  ;;  %10386 = vst [vmem:[#allocation44_spill] sm:$0xff] %v7827_v46  ;;  %v4171_v4 = vpack.c.bf16 %v4138_v9, %v4138_v9  ;;  %v4378_v27 = vsel %vm1277_vm2, %v4375_v28, %v10097_v8  ;;  %v2111_v20 = vperm.slane %v7796_v14, %v6686_v18 }
 0x16a   : > { %v1071_v1 = vperm.slane %v1066_v29, %v6686_v18  ;;  %v10387_v11 = vrot.slane %v7492_v61, 1  ;;  %v10100_v9 = vrot.slane %v7829_v59, 2  ;;  %v1875_v55 = vmul.f32 %v6671_v10, %v1841_v45 }
 0x16b   : > { %v4172_v47 = vpack.c.bf16 %v4139_v49, %v4139_v49  ;;  %v4275_v35 = vunpack.c.l.bf16 %v4171_v4  ;;  %v2228_v54 = vperm.slane %v2223_v22, %v6686_v18  ;;  %v4729_v49 = vmul.f32 %v4696_v3, %v7572_v60 }
 0x16c   : > { %v4376_v0 = vsel %vm1277_vm2, %v10387_v11, %v4375_v28  ;;  %v4874_v8 = vrot.slane %v4805_v17, 2  ;;  %v3494_v14 = vmul.f32 %v7390_v6, %v3460_v15  ;;  %v7847_v29 = vunpack.c.l.bf16 %v4763_v31 }
 0x16d   : > { %v4276_v50 = vunpack.c.l.bf16 %v4172_v47  ;;  %v4468_v63 = vadd.f32 %v4376_v0, %v4275_v35  ;;  %v7849_v47 = vunpack.c.l.bf16 %v1170_v38  ;;  %v1161_v28 = vperm.slane %v1156_v41, %v6686_v18  ;;  %v6318_v0 = vld [vmem:[#allocation2 + $0x78] sm:$0xff]  }
 0x16e   : > { %10388 = vst [vmem:[#allocation57_spill] sm:$0xff] %v7847_v29  ;;  %v4761_v35 = vpack.c.bf16 %v7596_v40, %v7596_v40  ;;  %v2280_v11 = vunpack.c.l.bf16 %v2111_v20  ;;  %v7854_v45 = vunpack.c.l.bf16 %v1071_v1  ;;  %v4877_v17 = vsel %vm2588_vm4, %v4874_v8, %v10100_v9  ;;  %v1147_v40 = vpop.permute.xlu0 %1146 }
 0x16f   : > { %v4469_v4 = vadd.f32 %v4378_v27, %v4276_v50  ;;  %10389 = vst [vmem:[#allocation86_spill] sm:$0xff] %v7849_v47  ;;  %v4501_v61 = vpack.c.bf16 %v4468_v63, %v4468_v63  ;;  %v1908_v15 = vpack.c.bf16 %v1875_v55, %v1875_v55  ;;  %v2293_v31 = vunpack.c.l.bf16 %v2228_v54 }
 0x170   : > { %v4762_v38 = vpack.c.bf16 %v4729_v49, %v4729_v49  ;;  %v10390_v50 = vrot.slane %v7504_v44, 2  ;;  %v3527_v63 = vpack.c.bf16 %v3494_v14, %v3494_v14  ;;  %v7863_v30 = vunpack.c.l.bf16 %v6318_v0 }
 0x171   : > { %v4502_v22 = vpack.c.bf16 %v4469_v4, %v4469_v4  ;;  %v4772_v3 = vunpack.c.l.bf16 %v4501_v61  ;;  %v4562_v4 = vld [vmem:[#allocation2 + $0x94] sm:$0x1]  ;;  %v1242_v61 = vunpack.c.l.bf16 %v1161_v28  ;;  %v7865_v60 = vunpack.c.l.bf16 %v4761_v35 }
 0x172   : > { %v4875_v41 = vsel %vm2588_vm4, %v10390_v50, %v4874_v8  ;;  %v2362_v54 = vrot.slane %v2280_v11, 7  ;;  %v2261_v44 = vunpack.c.l.bf16 %v1908_v15  ;;  %v7869_v9 = vrot.slane %v2293_v31, 7 }
 0x173   : > { %v4773_v27 = vunpack.c.l.bf16 %v4502_v22  ;;  %v4969_v1 = vadd.f32 %v4875_v41, %v4772_v3  ;;  %10391 = vst [vmem:[#allocation87_spill] sm:$0xff] %v7865_v60  ;;  %v1152_v8 = vperm.slane %v1147_v40, %v6686_v18  ;;  %v7872_v14 = vunpack.c.l.bf16 %v4762_v38  ;;  %v10395_v22 = vld [vmem:[#allocation56_spill] sm:$0xff] }
 0x174   : > { %v3560_v50 = vunpack.c.l.bf16 %v3527_v63  ;;  %v4601_v41 = vunpack.c.l.bf16 %v4562_v4  ;;  %v824_v28 = vmul.f32 %v7863_v30, %v10335_v2  ;;  %v1335_v35 = vrot.slane %v1242_v61, 1 }
 0x175   : > { %v4970_v49 = vadd.f32 %v4877_v17, %v4773_v27  ;;  %10392 = vst [vmem:[#allocation88_spill] sm:$0xff] %v7872_v14  ;;  %v1241_v20 = vunpack.c.l.bf16 %v1152_v8  ;;  %v2854_v11 = vmul.f32 %v7274_v5, %v10360_v62  ;;  %v7878_v15 = vunpack.c.h.bf16 %v6318_v0 }
 0x176   : > { %v2855_v31 = vmul.f32 %v7279_v34, %v10360_v62  ;;  %v10393_v63 = vrot.slane %v10337_v43, 7  ;;  %v3593_v8 = vmul.f32 %v3560_v50, %v7869_v9  ;;  %v4635_v0 = vmul.f32 %v6928_v36, %v4601_v41  ;;  %v2785_v34 = vld [vmem:[#allocation2 + $0x88] sm:$0xf] }
 0x177   : > { %v5000_v3 = vpack.c.bf16 %v4970_v49, %v4969_v1  ;;  %v2455_v1 = vmul.f32 %v7869_v9, %v2261_v44  ;;  %v1333_v4 = vrot.slane %v1241_v20, 1  ;;  %v1476_v55 = vmul.f32 %v7863_v30, %v10326_v19 }
 0x178   : > { %v7886_v40 = vsel %vm2326_vm3, %v10393_v63, %v2362_v54  ;;  %v10396_v38 = vrot.slane %v10395_v22, 1  ;;  %v1477_v20 = vmul.f32 %v7878_v15, %v10326_v19  ;;  %v2887_v50 = vpack.c.bf16 %v2854_v11, %v2854_v11 }
 0x179   : > { %v5054_v17 = vshrl.u32 %v5000_v3, 16  ;;  %v5057_v27 = vshll.u32 %v5000_v3, 16  ;;  %10394 = vst [vmem:[#allocation89_spill] sm:$0xff] %v7886_v40  ;;  %v857_v3 = vpack.c.bf16 %v824_v28, %v824_v28  ;;  %v7899_v63 = vsel %vm1277_vm2, %v1333_v4, %v1335_v35 }
 0x17a   : > { %v7896_v43 = vsel %vm1277_vm2, %v10396_v38, %v1333_v4  ;;  %10398 = vst [vmem:[#allocation90_spill] sm:$0xff] %v7899_v63  ;;  %v10399_v41 = vrot.slane %v7665_v7, 7  ;;  %v10401_v22 = vrot.slane %v7854_v45, 1  ;;  %v7918_v4 = vunpack.c.l.bf16 %v7805_v26 }
 0x17b   : > { %v5056_v61 = vrot.slane %v5054_v17, 3  ;;  %v5059_v49 = vrot.slane %v5057_v27, 4  ;;  %10397 = vst [vmem:[#allocation56_spill] sm:$0xff] %v7896_v43  ;;  %v2888_v17 = vpack.c.bf16 %v2855_v31, %v2855_v31  ;;  %v10402_v27 = vrot.slane %v7564_v21, 1 }
 0x17c   : > { %v7908_v28 = vsel %vm2326_vm3, %v2362_v54, %v10399_v41  ;;  %10404 = vst [vmem:[#allocation93_spill] sm:$0xff] %v7918_v4  ;;  %v3626_v31 = vpack.c.bf16 %v3593_v8, %v3593_v8  ;;  %v2205_v54 = vpop.permute.xlu0 %2204  ;;  %v7924_v41 = vunpack.c.h.bf16 %v7805_v26  ;;  %v4668_v21 = vpack.c.bf16 %v4635_v0, %v4635_v0 }
 0x17d   : > { %v7901_v44 = vor.u32 %v5059_v49, %v5056_v61  ;;  %10400 = vst [vmem:[#allocation91_spill] sm:$0xff] %v7908_v28  ;;  %v7915_v38 = vsel %vm1277_vm2, %v10402_v27, %v10401_v22  ;;  %v2488_v61 = vpack.c.bf16 %v2455_v1, %v2455_v1  ;;  %v2920_v49 = vunpack.c.l.bf16 %v2887_v50  ;;  %v7926_v27 = vld [vmem:[#allocation2 + $0x80] sm:$0xff]  }
 0x17e   : > { %10403 = vst [vmem:[#allocation92_spill] sm:$0xff] %v7915_v38  ;;  %v2921_v29 = vunpack.c.l.bf16 %v2888_v17  ;;  %v1210_v60 = vunpack.c.l.bf16 %v857_v3  ;;  %v1508_v22 = vpack.c.bf16 %v1476_v55, %v1476_v55  ;;  %v10406_v1 = vrot.slane %v7849_v47, 1 }
 0x17f   : > { %v5061_v11 = vsel %vm5035_vm5, %v7548_v53, %v7901_v44  ;;  %10405 = vst [vmem:[#allocation94_spill] sm:$0xff] %v7924_v41  ;;  %v1509_v53 = vpack.c.bf16 %v1477_v20, %v1477_v20  ;;  %v7934_v8 = vmul.f32 %v2920_v49, %v7896_v43  ;;  %v7940_v0 = vunpack.c.l.bf16 %v2488_v61 }
 0x180   : > { %5265 = vmatmul.bf16.gmra.mxu1 %v5061_v11  ;;  %v7931_v5 = vsel %vm1277_vm2, %v1335_v35, %v10406_v1  ;;  %v7937_v50 = vmul.f32 %v2921_v29, %v7899_v63  ;;  %v2210_v55 = vperm.slane %v2205_v54, %v6686_v18  ;;  %v800_v3 = vmul.f32 %v7123_v16, %v10335_v2 }
 0x181   : > { %10407 = vst [vmem:[#allocation95_spill] sm:$0xff] %v7934_v8  ;;  %v7945_v17 = vunpack.c.l.bf16 %v3626_v31  ;;  %v7948_v35 = vunpack.c.l.bf16 %v7926_v27  ;;  %v7950_v20 = vunpack.c.l.bf16 %v2785_v34  ;;  %v801_v29 = vmul.f32 %v7132_v42, %v10335_v2  ;;  %v10503_v8 = vld [vmem:[#allocation55_spill] sm:$0xff] }
 0x182   : > { %10408 = vst [vmem:[#allocation96_spill] sm:$0xff] %v7937_v50  ;;  %v7956_v11 = vmul.f32 %v7918_v4, %v10326_v19  ;;  %v4701_v61 = vunpack.c.l.bf16 %v4668_v21  ;;  %v1404_v49 = vmul.f32 %v7931_v5, %v1210_v60  ;;  %v7959_v54 = vunpack.c.l.bf16 %v2210_v55 }
 0x183   : > { %10409 = vst [vmem:[#allocation97_spill] sm:$0xff] %v7940_v0  ;;  %v7963_v16 = vmul.f32 %v7924_v41, %v10326_v19  ;;  %v7965_v31 = vunpack.c.l.bf16 %v1508_v22  ;;  %v7967_v34 = vunpack.c.l.bf16 %v1509_v53  ;;  %v3491_v42 = vmul.f32 %v7948_v35, %v7390_v6  ;;  %v10424_v22 = vld [vmem:[#allocation16_spill] sm:$0xff] }
 0x184   : > { %10410 = vst [vmem:[#allocation98_spill] sm:$0xff] %v7945_v17  ;;  %v7973_v1 = vmul.f32 %v7918_v4, %v6671_v10  ;;  %v7977_v60 = vmul.f32 %v7924_v41, %v6671_v10  ;;  %v10121_v55 = vrot.slane %v7959_v54, 7  ;;  %v2856_v53 = vmul.f32 %v7948_v35, %v10360_v62  ;;  %v10422_v41 = vld [vmem:[#allocation47_spill] sm:$0xff]  ;;  %v10423_v4 = vld [vmem:[#allocation33_spill] sm:$0xff] }
 0x185   : > { %10411 = vst [vmem:[#allocation99_spill] sm:$0xff] %v7948_v35  ;;  %v3933_v26 = vmul.f32 %v10373_v52, %v7950_v20  ;;  %v3524_v63 = vpack.c.bf16 %v3491_v42, %v3491_v42  ;;  %v7987_v43 = vmul.f32 %v4701_v61, %v7869_v9  ;;  %v1437_v14 = vpack.c.bf16 %v1404_v49, %v1404_v49  ;;  %v10421_v42 = vld [vmem:[#allocation31_spill] sm:$0xff] }
 0x186   : > { %10412 = vst [vmem:[#allocation100_spill] sm:$0xff] %v7950_v20  ;;  %v10420_v28 = vrot.slane %v7511_v37, 7  ;;  %v833_v40 = vpack.c.bf16 %v800_v3, %v800_v3  ;;  %v1485_v61 = vpack.c.bf16 %v10421_v42, %v10421_v42  ;;  %v1486_v49 = vpack.c.bf16 %v10422_v41, %v10422_v41 }
 0x187   : > { %10413 = vst [vmem:[#allocation101_spill] sm:$0xff] %v7956_v11  ;;  %v3557_v38 = vunpack.c.l.bf16 %v3524_v63  ;;  %v1882_v37 = vpack.c.bf16 %v10423_v4, %v10423_v4  ;;  %v1541_v41 = vunpack.c.l.bf16 %v1437_v14 }
 0x188   : > { %10414 = vst [vmem:[#allocation102_spill] sm:$0xff] %v7963_v16  ;;  %v7994_v21 = vsel %vm2326_vm3, %v10420_v28, %v10121_v55  ;;  %v1186_v16 = vunpack.c.l.bf16 %v833_v40  ;;  %v3966_v28 = vpack.c.bf16 %v3933_v26, %v3933_v26  ;;  %v1550_v17 = vunpack.c.l.bf16 %v1485_v61  ;;  %v10426_v40 = vld [vmem:[#allocation49_spill] sm:$0xff] }
 0x189   : > { %10415 = vst [vmem:[#allocation103_spill] sm:$0xff] %v7965_v31  ;;  %v3590_v3 = vmul.f32 %v3557_v38, %v7994_v21  ;;  %v8006_v63 = vunpack.c.l.bf16 %v1486_v49  ;;  %v10429_v61 = vrot.slane %v7965_v31, 1  ;;  %v10431_v31 = vld [vmem:[#allocation7_spill] sm:$0xff] }
 0x18a   : > { %10416 = vst [vmem:[#allocation104_spill] sm:$0xff] %v7967_v34  ;;  %v1380_v46 = vmul.f32 %v10424_v22, %v1186_v16  ;;  %v1619_v26 = vrot.slane %v1550_v17, 1  ;;  %v10428_v16 = vrot.slane %v7967_v34, 1  ;;  %v3999_v42 = vunpack.c.l.bf16 %v3966_v28 }
 0x18b   : > { %10417 = vst [vmem:[#allocation105_spill] sm:$0xff] %v7973_v1  ;;  %v2889_v1 = vpack.c.bf16 %v2856_v53, %v2856_v53  ;;  %v3623_v11 = vpack.c.bf16 %v3590_v3, %v3590_v3  ;;  %v10127_v38 = vrot.slane %v8006_v63, 1  ;;  %v10430_v3 = vrot.slane %v7695_v58, 1 }
 0x18c   : > { %10418 = vst [vmem:[#allocation106_spill] sm:$0xff] %v7977_v60  ;;  %v834_v60 = vpack.c.bf16 %v801_v29, %v801_v29  ;;  %v1883_v29 = vpack.c.bf16 %v10426_v40, %v10426_v40  ;;  %v1413_v53 = vpack.c.bf16 %v1380_v46, %v1380_v46  ;;  %v1668_v49 = vsel %vm1277_vm2, %v10429_v61, %v10428_v16 }
 0x18d   : > { %10419 = vst [vmem:[#allocation107_spill] sm:$0xff] %v7987_v43  ;;  %v2922_v32 = vunpack.c.l.bf16 %v2889_v1  ;;  %v8019_v40 = vunpack.c.l.bf16 %v3623_v11  ;;  %v1622_v46 = vsel %vm1277_vm2, %v1619_v26, %v10127_v38  ;;  %v1620_v43 = vsel %vm1277_vm2, %v10430_v3, %v1619_v26 }
 0x18e   : > { %v1187_v55 = vunpack.c.l.bf16 %v834_v60  ;;  %10425 = vst [vmem:[#allocation31_spill] sm:$0xff] %v8006_v63  ;;  %v2235_v60 = vunpack.c.l.bf16 %v1882_v37  ;;  %v1517_v14 = vunpack.c.l.bf16 %v1413_v53  ;;  %v2236_v17 = vunpack.c.l.bf16 %v1883_v29 }
 0x18f   : > { %v8029_v1 = vadd.f32 %v1668_v49, %v1541_v41  ;;  %v8032_v11 = vunpack.c.h.bf16 %v7926_v27  ;;  %v8036_v61 = vmul.f32 %v2922_v32, %v7931_v5  ;;  %v2832_v27 = vmul.f32 %v7265_v51, %v10360_v62 }
 0x190   : > { %v1381_v4 = vmul.f32 %v10427_v56, %v1187_v55  ;;  %v10128_v55 = vrot.slane %v8019_v40, 2  ;;  %v2429_v16 = vmul.f32 %v10431_v31, %v2235_v60  ;;  %v1710_v28 = vadd.f32 %v1620_v43, %v1517_v14 }
 0x191   : > { %10432 = vst [vmem:[#allocation47_spill] sm:$0xff] %v8032_v11  ;;  %v2833_v43 = vmul.f32 %v7728_v57, %v10360_v62  ;;  %v8050_v32 = vmul.f32 %v3999_v42, %v7931_v5 }
 0x192   : > { %v1414_v12 = vpack.c.bf16 %v1381_v4, %v1381_v4  ;;  %v10433_v4 = vld [vmem:[#allocation27_spill] sm:$0xff]  ;;  %v2462_v26 = vpack.c.bf16 %v2429_v16, %v2429_v16  ;;  %v1743_v41 = vpack.c.bf16 %v1710_v28, %v1710_v28 }
 0x193   : > { %v2430_v53 = vmul.f32 %v10433_v4, %v2236_v17 }
 0x194   : > { %v1518_v37 = vunpack.c.l.bf16 %v1414_v12  ;;  %v10434_v12 = vrot.slane %v7592_v48, 2  ;;  %v2528_v14 = vunpack.c.l.bf16 %v2462_v26  ;;  %v3136_v48 = vmul.f32 %v7728_v57, %v10366_v33 }
 0x195   : > { %v2463_v60 = vpack.c.bf16 %v2430_v53, %v2430_v53  ;;  %v2495_v17 = vunpack.c.l.bf16 %v1743_v41  ;;  %v3468_v26 = vmul.f32 %v7728_v57, %v7390_v6  ;;  %v10438_v41 = vld [vmem:[#allocation9_spill] sm:$0xff]  ;;  %v10440_v57 = vld [vmem:[#allocation14_spill] sm:$0xff] }
 0x196   : > { %v8043_v58 = vsel %vm2588_vm4, %v10434_v12, %v10128_v55  ;;  %v1711_v29 = vadd.f32 %v1622_v46, %v1518_v37  ;;  %v2865_v46 = vpack.c.bf16 %v2832_v27, %v2832_v27  ;;  %v2866_v37 = vpack.c.bf16 %v2833_v43, %v2833_v43  ;;  %v10437_v12 = vld [vmem:[#allocation13_spill] sm:$0xff] }
 0x197   : > { %10435 = vst [vmem:[#allocation33_spill] sm:$0xff] %v8043_v58  ;;  %v8054_v3 = vunpack.c.l.bf16 %v2463_v60  ;;  %v2600_v53 = vrot.slane %v2528_v14, 2  ;;  %v3137_v38 = vmul.f32 %v10437_v12, %v10366_v33  ;;  %v10439_v60 = vrot.slane %v10438_v41, 2 }
 0x198   : > { %v1744_v49 = vpack.c.bf16 %v1711_v29, %v1711_v29  ;;  %v2898_v42 = vunpack.c.l.bf16 %v2865_v46  ;;  %v2899_v29 = vunpack.c.l.bf16 %v2866_v37  ;;  %v3168_v43 = vpack.c.bf16 %v3136_v48, %v3136_v48 }
 0x199   : > { %10436 = vst [vmem:[#allocation16_spill] sm:$0xff] %v8054_v3  ;;  %v10131_v5 = vrot.slane %v8054_v3, 2  ;;  %v2601_v27 = vsel %vm2588_vm4, %v10439_v60, %v2600_v53  ;;  %v3169_v55 = vpack.c.bf16 %v3137_v38, %v3137_v38  ;;  %v8074_v24 = vunpack.c.h.bf16 %v10440_v57  ;;  %v577_v57 = vpop.f32.mrf.mxu0 }
 0x19a   : > { %v2496_v28 = vunpack.c.l.bf16 %v1744_v49  ;;  %v3469_v49 = vmul.f32 %v10437_v12, %v7390_v6  ;;  %v2693_v16 = vadd.f32 %v2601_v27, %v2495_v17  ;;  %v2931_v46 = vmul.f32 %v2898_v42, %v10424_v22 }
 0x19b   : > { %v2603_v14 = vsel %vm2588_vm4, %v2600_v53, %v10131_v5  ;;  %v2932_v37 = vmul.f32 %v2899_v29, %v10427_v56  ;;  %10441 = vst [vmem:[#allocation49_spill] sm:$0xff] %v8074_v24  ;;  %v8076_v41 = vunpack.c.l.bf16 %v3169_v55  ;;  %v3501_v48 = vpack.c.bf16 %v3468_v26, %v3468_v26 }
 0x19c   : > { %v2694_v58 = vadd.f32 %v2603_v14, %v2496_v28  ;;  %v2726_v38 = vpack.c.bf16 %v2693_v16, %v2693_v16  ;;  %v2964_v60 = vpack.c.bf16 %v2931_v46, %v2931_v46  ;;  %v3502_v63 = vpack.c.bf16 %v3469_v49, %v3469_v49  ;;  %v8085_v49 = vpop.permute.xlu1 %1074 }
 0x19d   : > { %10442 = vst [vmem:[#allocation18_spill] sm:$0xff] %v8076_v41  ;;  %v2965_v13 = vpack.c.bf16 %v2932_v37, %v2932_v37  ;;  %v3233_v17 = vunpack.c.l.bf16 %v3168_v43  ;;  %v3534_v27 = vunpack.c.l.bf16 %v3501_v48  ;;  %v3909_v26 = vmul.f32 %v10437_v12, %v10373_v52  ;;  %v8091_v48 = vld [vmem:[#allocation2 + $0x30] sm:$0xff]  }
 0x19e   : > { %v2727_v53 = vpack.c.bf16 %v2694_v58, %v2694_v58  ;;  %v2997_v28 = vunpack.c.l.bf16 %v2726_v38  ;;  %v3030_v29 = vunpack.c.l.bf16 %v2964_v60  ;;  %v3535_v14 = vunpack.c.l.bf16 %v3502_v63  ;;  %10443 = vst [vmem:[#allocation7_spill] sm:$0xff] %v8091_v48 }
 0x19f   : > { %v3031_v5 = vunpack.c.l.bf16 %v2965_v13  ;;  %v3567_v16 = vmul.f32 %v3534_v27, %v10431_v31  ;;  %v3910_v37 = vmul.f32 %v8074_v24, %v10373_v52  ;;  %v3302_v38 = vrot.slane %v3233_v17, 1 }
 0x1a0   : > { %v2998_v55 = vunpack.c.l.bf16 %v2727_v53  ;;  %v3063_v46 = vadd.f32 %v3030_v29, %v2997_v28  ;;  %v3568_v43 = vmul.f32 %v3535_v14, %v10433_v4  ;;  %v3942_v60 = vpack.c.bf16 %v3909_v26, %v3909_v26  ;;  %v8096_v53 = vld [vmem:[%s9985_s5] ss:$0 sm:$0xff] }
 0x1a1   : > { %v3600_v13 = vpack.c.bf16 %v3567_v16, %v3567_v16  ;;  %v578_v27 = vadd.f32 %v8096_v53, %v577_v57  ;;  %v3943_v42 = vpack.c.bf16 %v3910_v37, %v3910_v37  ;;  %v1872_v14 = vmul.f32 %v7863_v30, %v6671_v10  ;;  %v8109_v57 = vld [vmem:[#allocation2 + $0x88] sm:$0xff]  }
 0x1a2   : > { %v3064_v63 = vadd.f32 %v3031_v5, %v2998_v55  ;;  %v3096_v28 = vpack.c.bf16 %v3063_v46, %v3063_v46  ;;  %v3601_v29 = vpack.c.bf16 %v3568_v43, %v3568_v43  ;;  %v3975_v12 = vunpack.c.l.bf16 %v3942_v60  ;;  %10447 = vst [vmem:[#allocation14_spill] sm:$0xff] %v8109_v57  ;;  %v10448_v43 = vld [vmem:[#allocation61_spill] sm:$0xff] }
 0x1a3   : > { %v3666_v58 = vunpack.c.l.bf16 %v3600_v13  ;;  %v8102_v5 = vunpack.c.l.bf16 %v8091_v48  ;;  %v10445_v55 = vrot.slane %v8076_v41, 1  ;;  %v10449_v37 = vrot.slane %v10448_v43, 1  ;;  %v10450_v13 = vld [vmem:[#allocation66_spill] sm:$0xff] }
 0x1a4   : > { %v3097_v3 = vpack.c.bf16 %v3064_v63, %v3064_v63  ;;  %v3200_v17 = vunpack.c.l.bf16 %v3096_v28  ;;  %v8107_v26 = vunpack.c.l.bf16 %v3601_v29  ;;  %v3976_v63 = vunpack.c.l.bf16 %v3943_v42 }
 0x1a5   : > { %10444 = vst [vmem:[#allocation27_spill] sm:$0xff] %v8102_v5  ;;  %v3305_v16 = vsel %vm1277_vm2, %v3302_v38, %v10445_v55  ;;  %v3303_v30 = vsel %vm1277_vm2, %v10449_v37, %v3302_v38  ;;  %v4213_v60 = vmul.f32 %v8074_v24, %v10450_v13  ;;  %v8118_v28 = vmul.f32 %v7948_v35, %v10373_v52 }
 0x1a6   : > { %10446 = vst [vmem:[#allocation9_spill] sm:$0xff] %v8107_v26  ;;  %v3201_v46 = vunpack.c.l.bf16 %v3097_v3  ;;  %v3393_v41 = vadd.f32 %v3303_v30, %v3200_v17  ;;  %v10142_v55 = vrot.slane %v8107_v26, 2  ;;  %v4008_v29 = vmul.f32 %v3975_v12, %v10424_v22 }
 0x1a7   : > { %v8124_v3 = vmul.f32 %v8032_v11, %v10373_v52  ;;  %v635_v43 = vmax.f32 %v578_v27, 0.0  ;;  %v3737_v38 = vrot.slane %v3666_v58, 2  ;;  %v1905_v42 = vpack.c.bf16 %v1872_v14, %v1872_v14 }
 0x1a8   : > { %v3394_v48 = vadd.f32 %v3305_v16, %v3201_v46  ;;  %v6207_v37 = vunpack.c.l.bf16 %v8109_v57  ;;  %v3426_v0 = vpack.c.bf16 %v3393_v41, %v3393_v41  ;;  %v4214_v51 = vmul.f32 %v8102_v5, %v10450_v13  ;;  %v580_v41 = vpop.f32.mrf.mxu0  ;;  %v8137_v16 = vpop.permute.xlu1 %2132 }
 0x1a9   : > { %v4009_v17 = vmul.f32 %v3976_v63, %v10427_v56  ;;  %v4245_v30 = vpack.c.bf16 %v4213_v60, %v4213_v60  ;;  %v4609_v22 = vmul.f32 %v8074_v24, %v6928_v36  ;;  %v3740_v27 = vsel %vm2588_vm4, %v3737_v38, %v10142_v55 }
 0x1aa   : > { %v3427_v34 = vpack.c.bf16 %v3394_v48, %v3394_v48  ;;  %v3633_v12 = vunpack.c.l.bf16 %v3426_v0  ;;  %v4041_v58 = vpack.c.bf16 %v4008_v29, %v4008_v29  ;;  %v4610_v14 = vmul.f32 %v8102_v5, %v6928_v36 }
 0x1ab   : > { %v10451_v48 = vrot.slane %v7768_v25, 2  ;;  %v4642_v63 = vpack.c.bf16 %v4609_v22, %v4609_v22  ;;  %v581_v60 = vadd.f32 %v8096_v53, %v580_v41  ;;  %v2258_v0 = vunpack.c.l.bf16 %v1905_v42 }
 0x1ac   : > { %v3634_v46 = vunpack.c.l.bf16 %v3427_v34  ;;  %v4246_v26 = vpack.c.bf16 %v4214_v51, %v4214_v51  ;;  %v4643_v24 = vpack.c.bf16 %v4610_v14, %v4610_v14  ;;  %v4042_v29 = vpack.c.bf16 %v4009_v17, %v4009_v17 }
 0x1ad   : > { %v3738_v56 = vsel %vm2588_vm4, %v10451_v48, %v3737_v38  ;;  %v4675_v52 = vunpack.c.l.bf16 %v4642_v63  ;;  %v636_v7 = vmax.f32 %v581_v60, 0.0  ;;  %v4632_v5 = vmul.f32 %v6207_v37, %v6928_v36 }
 0x1ae   : > { %v3830_v13 = vadd.f32 %v3738_v56, %v3633_v12  ;;  %v3831_v55 = vadd.f32 %v3740_v27, %v3634_v46  ;;  %v4107_v57 = vunpack.c.l.bf16 %v4041_v58  ;;  %v4676_v34 = vunpack.c.l.bf16 %v4643_v24 }
 0x1af   : > { %v4310_v25 = vunpack.c.l.bf16 %v4245_v30  ;;  %v4708_v38 = vmul.f32 %v4675_v52, %v10431_v31  ;;  %v8145_v22 = vpack.c.bf16 %v636_v7, %v635_v43  ;;  %v10452_v42 = vpack.c.bf16 %v8029_v1, %v8029_v1 }
 0x1b0   : > { %v3863_v47 = vpack.c.bf16 %v3830_v13, %v3830_v13  ;;  %v3864_v62 = vpack.c.bf16 %v3831_v55, %v3831_v55  ;;  %v8152_v17 = vunpack.c.l.bf16 %v4246_v26  ;;  %v4709_v27 = vmul.f32 %v4676_v34, %v10433_v4  ;;  %v2214_v43 = vpop.permute.xlu1 %2213 }
 0x1b1   : > { %v8150_v51 = vunpack.c.l.bf16 %v10452_v42  ;;  %v4108_v13 = vunpack.c.l.bf16 %v4042_v29  ;;  %v4741_v58 = vpack.c.bf16 %v4708_v38, %v4708_v38  ;;  %6296 = vst [vmem:[#allocation2 + $0x48] sm:$0xff] %v8145_v22   ;;  %v1873_v52 = vmul.f32 %v7878_v15, %v6671_v10 }
 0x1b2   : > { %v4074_v12 = vunpack.c.l.bf16 %v3863_v47  ;;  %v4075_v37 = vunpack.c.l.bf16 %v3864_v62  ;;  %v10453_v7 = vpack.c.bf16 %v8036_v61, %v8036_v61  ;;  %v1080_v47 = vperm.slane %v8085_v49, %v6686_v18 }
 0x1b3   : > { %v4742_v1 = vpack.c.bf16 %v4709_v27, %v4709_v27  ;;  %v2452_v4 = vmul.f32 %v7994_v21, %v2258_v0  ;;  %v4665_v62 = vpack.c.bf16 %v4632_v5, %v4632_v5  ;;  %v4379_v55 = vrot.slane %v4310_v25, 1  ;;  %v1801_v5 = vld [vmem:[#allocation2 + $0x80] sm:$0xf] }
 0x1b4   : > { %v8161_v24 = vunpack.c.l.bf16 %v10453_v7  ;;  %v4140_v31 = vadd.f32 %v4107_v57, %v4074_v12  ;;  %v4141_v26 = vadd.f32 %v4108_v13, %v4075_v37  ;;  %v10454_v30 = vpack.c.bf16 %v8050_v32, %v8050_v32 }
 0x1b5   : > { %v3964_v61 = vpack.c.bf16 %v8118_v28, %v8118_v28  ;;  %v10153_v46 = vrot.slane %v8152_v17, 1  ;;  %v3965_v49 = vpack.c.bf16 %v8124_v3, %v8124_v3  ;;  %v4807_v48 = vunpack.c.l.bf16 %v4741_v58 }
 0x1b6   : > { %v8169_v14 = vunpack.c.l.bf16 %v10454_v30  ;;  %v4173_v41 = vpack.c.bf16 %v4140_v31, %v4140_v31  ;;  %v4174_v57 = vpack.c.bf16 %v4141_v26, %v4141_v26  ;;  %v1906_v56 = vpack.c.bf16 %v1873_v52, %v1873_v52 }
 0x1b7   : > { %v1233_v63 = vunpack.c.l.bf16 %v1080_v47  ;;  %v8176_v0 = vunpack.c.l.bf16 %v4742_v1  ;;  %v2219_v32 = vperm.slane %v2214_v43, %v6686_v18  ;;  %v2485_v29 = vpack.c.bf16 %v2452_v4, %v2452_v4 }
 0x1b8   : > { %10455 = vst [vmem:[#allocation61_spill] sm:$0xff] %v8169_v14  ;;  %v4277_v60 = vunpack.c.l.bf16 %v4173_v41  ;;  %v4698_v34 = vunpack.c.l.bf16 %v4665_v62  ;;  %v4278_v25 = vunpack.c.l.bf16 %v4174_v57  ;;  %v10456_v28 = vrot.slane %v7799_v39, 1 }
 0x1b9   : > { %v4382_v3 = vsel %vm1277_vm2, %v4379_v55, %v10153_v46  ;;  %v1840_v12 = vunpack.c.l.bf16 %v1801_v5  ;;  %v2292_v27 = vunpack.c.l.bf16 %v2219_v32  ;;  %v4878_v13 = vrot.slane %v4807_v48, 2 }
 0x1ba   : > { %v4380_v38 = vsel %vm1277_vm2, %v10456_v28, %v4379_v55  ;;  %v4471_v37 = vadd.f32 %v4382_v3, %v4278_v25  ;;  %v2259_v58 = vunpack.c.l.bf16 %v1906_v56  ;;  %v3492_v52 = vmul.f32 %v8032_v11, %v7390_v6  ;;  %v2124_v56 = vpop.permute.xlu0 %2123 }
 0x1bb   : > { %v4470_v42 = vadd.f32 %v4380_v38, %v4277_v60  ;;  %v8187_v7 = vunpack.c.l.bf16 %v3964_v61  ;;  %v10152_v39 = vrot.slane %v8176_v0, 2  ;;  %v2386_v31 = vrot.slane %v2292_v27, 7 }
 0x1bc   : > { %v8190_v1 = vunpack.c.l.bf16 %v3965_v49  ;;  %v1317_v4 = vrot.slane %v1233_v63, 1  ;;  %v4504_v62 = vpack.c.bf16 %v4471_v37, %v4471_v37  ;;  %v3525_v26 = vpack.c.bf16 %v3492_v52, %v3492_v52 }
 0x1bd   : > { %10457 = vst [vmem:[#allocation108_spill] sm:$0xff] %v8187_v7  ;;  %v4503_v47 = vpack.c.bf16 %v4470_v42, %v4470_v42  ;;  %v8192_v55 = vunpack.c.l.bf16 %v2485_v29  ;;  %v1874_v30 = vmul.f32 %v6671_v10, %v1840_v12  ;;  %v10460_v41 = vrot.slane %v7959_v54, 7 }
 0x1be   : > { %10458 = vst [vmem:[#allocation109_spill] sm:$0xff] %v8190_v1  ;;  %v4731_v61 = vmul.f32 %v4698_v34, %v7994_v21  ;;  %v4775_v48 = vunpack.c.l.bf16 %v4504_v62  ;;  %v10461_v5 = vrot.slane %v7829_v59, 2  ;;  %v4881_v60 = vsel %vm2588_vm4, %v4878_v13, %v10152_v39 }
 0x1bf   : > { %10459 = vst [vmem:[#allocation110_spill] sm:$0xff] %v8192_v55  ;;  %v4774_v43 = vunpack.c.l.bf16 %v4503_v47  ;;  %v8198_v57 = vsel %vm2326_vm3, %v10460_v41, %v2386_v31  ;;  %v3159_v54 = vmul.f32 %v7948_v35, %v10366_v33  ;;  %v3558_v29 = vunpack.c.l.bf16 %v3525_v26  ;;  %v8481_v35 = vld [vmem:[#allocation2 + $0x90] sm:$0xf] }
 0x1c0   : > { %v4879_v49 = vsel %vm2588_vm4, %v10461_v5, %v4878_v13  ;;  %v2453_v63 = vmul.f32 %v8198_v57, %v2259_v58  ;;  %v4972_v34 = vadd.f32 %v4881_v60, %v4775_v48  ;;  %v3160_v59 = vmul.f32 %v8032_v11, %v10366_v33  ;;  %v754_v60 = vld [vmem:[#allocation2 + $0x80] sm:$0xf] }
 0x1c1   : > { %v4971_v32 = vadd.f32 %v4879_v49, %v4774_v43  ;;  %v10462_v38 = vrot.slane %v7854_v45, 1  ;;  %v1907_v42 = vpack.c.bf16 %v1874_v30, %v1874_v30  ;;  %v3591_v12 = vmul.f32 %v3558_v29, %v8198_v57 }
 0x1c2   : > { %v2486_v25 = vpack.c.bf16 %v2453_v63, %v2453_v63  ;;  %v10464_v27 = vrot.slane %v7747_v23, 1  ;;  %v3493_v52 = vmul.f32 %v7390_v6, %v7950_v20  ;;  %v10150_v47 = vrot.slane %v8192_v55, 2  ;;  %v10504_v55 = vld [vmem:[#allocation28_spill] sm:$0xff] }
 0x1c3   : > { %v8219_v3 = vsel %vm1277_vm2, %v10462_v38, %v1317_v4  ;;  %v5001_v13 = vpack.c.bf16 %v4972_v34, %v4971_v32  ;;  %v4764_v45 = vpack.c.bf16 %v4731_v61, %v4731_v61  ;;  %v3191_v62 = vpack.c.bf16 %v3159_v54, %v3159_v54 }
 0x1c4   : > { %10463 = vst [vmem:[#allocation111_spill] sm:$0xff] %v8219_v3  ;;  %v8225_v37 = vsel %vm1277_vm2, %v1317_v4, %v10464_v27  ;;  %v8227_v58 = vunpack.c.l.bf16 %v2486_v25  ;;  %v3624_v26 = vpack.c.bf16 %v3591_v12, %v3591_v12  ;;  %v3192_v48 = vpack.c.bf16 %v3160_v59, %v3160_v59  ;;  %v1174_v12 = vpop.permute.xlu0 %1173 }
 0x1c5   : > { %10465 = vst [vmem:[#allocation112_spill] sm:$0xff] %v8225_v37  ;;  %v5063_v43 = vshrl.u32 %v5001_v13, 16  ;;  %v5066_v30 = vshll.u32 %v5001_v13, 16  ;;  %v2138_v4 = vperm.slane %v8137_v16, %v6686_v18  ;;  %v2129_v5 = vperm.slane %v2124_v56, %v6686_v18 }
 0x1c6   : > { %v10156_v41 = vrot.slane %v8227_v58, 2  ;;  %v2260_v49 = vunpack.c.l.bf16 %v1907_v42  ;;  %v8236_v63 = vunpack.c.l.bf16 %v3624_v26  ;;  %v3526_v54 = vpack.c.bf16 %v3493_v52, %v3493_v52 }
 0x1c7   : > { %v5065_v32 = vrot.slane %v5063_v43, 3  ;;  %v5068_v29 = vrot.slane %v5066_v30, 4  ;;  %v8243_v34 = vunpack.c.l.bf16 %v4764_v45  ;;  %v8247_v16 = vsel %vm2326_vm3, %v2386_v31, %v7869_v9 }
 0x1c8   : > { %v2649_v61 = vsel %vm2588_vm4, %v10150_v47, %v10156_v41  ;;  %10467 = vst [vmem:[#allocation114_spill] sm:$0xff] %v8247_v16  ;;  %v10155_v25 = vrot.slane %v8236_v63, 2  ;;  %v8253_v38 = vunpack.c.l.bf16 %v3191_v62  ;;  %v8255_v42 = vunpack.c.l.bf16 %v3192_v48 }
 0x1c9   : > { %10466 = vst [vmem:[#allocation113_spill] sm:$0xff] %v8243_v34  ;;  %v2717_v56 = vadd.f32 %v2649_v61, %v8150_v51  ;;  %v8251_v59 = vor.u32 %v5068_v29, %v5065_v32  ;;  %v792_v27 = vunpack.c.l.bf16 %v754_v60  ;;  %v8257_v13 = vunpack.c.l.bf16 %v2138_v4 }
 0x1ca   : > { %10468 = vst [vmem:[#allocation115_spill] sm:$0xff] %v8253_v38  ;;  %v8259_v52 = vunpack.c.l.bf16 %v2129_v5  ;;  %v10469_v9 = vrot.slane %v8019_v40, 2  ;;  %v2454_v62 = vmul.f32 %v8247_v16, %v2260_v49  ;;  %v3559_v26 = vunpack.c.l.bf16 %v3526_v54 }
 0x1cb   : > { %v2750_v45 = vpack.c.bf16 %v2717_v56, %v2717_v56  ;;  %v5070_v31 = vsel %vm5035_vm5, %v7901_v44, %v8251_v59  ;;  %v825_v43 = vmul.f32 %v7878_v15, %v10335_v2  ;;  %v826_v48 = vmul.f32 %v10335_v2, %v792_v27  ;;  %v10470_v44 = vld [vmem:[#allocation6_spill] sm:$0xff] }
 0x1cc   : > { %v8266_v51 = vsel %vm2588_vm4, %v10469_v9, %v10155_v25  ;;  %5270 = vmatmul.bf16.gmra.mxu1 %v5070_v31  ;;  %v1179_v4 = vperm.slane %v1174_v12, %v6686_v18  ;;  %v1478_v40 = vmul.f32 %v10326_v19, %v792_v27  ;;  %v10151_v5 = vrot.slane %v8253_v38, 1  ;;  %v10471_v31 = vld [vmem:[#allocation14_spill] sm:$0xff] }
 0x1cd   : > { %v3021_v30 = vunpack.c.l.bf16 %v2750_v45  ;;  %v10154_v60 = vrot.slane %v8255_v42, 1  ;;  %v858_v32 = vpack.c.bf16 %v825_v43, %v825_v43  ;;  %v2857_v49 = vmul.f32 %v8032_v11, %v10470_v44 }
 0x1ce   : > { %v859_v61 = vpack.c.bf16 %v826_v48, %v826_v48  ;;  %v1244_v15 = vunpack.c.l.bf16 %v1179_v4  ;;  %v1510_v54 = vpack.c.bf16 %v1478_v40, %v1478_v40  ;;  %v2368_v56 = vrot.slane %v8257_v13, 7 }
 0x1cf   : > { %v3087_v29 = vadd.f32 %v8161_v24, %v3021_v30  ;;  %v2366_v45 = vrot.slane %v8259_v52, 7  ;;  %v3592_v12 = vmul.f32 %v3559_v26, %v8247_v16  ;;  %v1211_v27 = vunpack.c.l.bf16 %v858_v32  ;;  %v10473_v30 = vld [vmem:[#allocation86_spill] sm:$0xff] }
 0x1d0   : > { %v6208_v28 = vunpack.c.h.bf16 %v10471_v31  ;;  %v8286_v21 = vrot.slane %v1244_v15, 1  ;;  %v8288_v43 = vunpack.c.l.bf16 %v1510_v54  ;;  %v8291_v47 = vunpack.c.l.bf16 %v8145_v22  ;;  %v10475_v31 = vld [vmem:[#allocation54_spill] sm:$0xff] }
 0x1d1   : > { %v3120_v9 = vpack.c.bf16 %v3087_v29, %v3087_v29  ;;  %v2487_v24 = vpack.c.bf16 %v2454_v62, %v2454_v62  ;;  %v3351_v13 = vsel %vm1277_vm2, %v10151_v5, %v10154_v60  ;;  %v1212_v52 = vunpack.c.l.bf16 %v859_v61 }
 0x1d2   : > { %10472 = vst [vmem:[#allocation6_spill] sm:$0xff] %v8286_v21  ;;  %v10474_v48 = vrot.slane %v10473_v30, 1  ;;  %v1669_v40 = vrot.slane %v8288_v43, 1  ;;  %v2890_v32 = vpack.c.bf16 %v2857_v49, %v2857_v49  ;;  %v8307_v62 = vunpack.c.h.bf16 %v8145_v22  ;;  %v10478_v30 = vld [vmem:[#allocation83_spill] sm:$0xff]  ;;  %v8320_v49 = vld [vmem:[#allocation2 + $0x8c] sm:$0xff]  }
 0x1d3   : > { %v3224_v26 = vunpack.c.l.bf16 %v3120_v9  ;;  %v3625_v15 = vpack.c.bf16 %v3592_v12, %v3592_v12  ;;  %v10476_v61 = vrot.slane %v10475_v31, 7  ;;  %v10479_v5 = vrot.slane %v10478_v30, 7  ;;  %10481 = vst [vmem:[#allocation54_spill] sm:$0xff] %v8320_v49 }
 0x1d4   : > { %v8302_v4 = vsel %vm1277_vm2, %v10474_v48, %v8286_v21  ;;  %v4633_v29 = vmul.f32 %v6208_v28, %v6928_v36  ;;  %v8325_v22 = vmul.f32 %v8291_v47, %v10326_v19  ;;  %v1406_v12 = vmul.f32 %v8286_v21, %v1212_v52 }
 0x1d5   : > { %v1405_v54 = vmul.f32 %v8302_v4, %v1211_v27  ;;  %v8313_v9 = vsel %vm2326_vm3, %v2368_v56, %v10476_v61  ;;  %v8318_v48 = vsel %vm2326_vm3, %v10479_v5, %v2366_v45  ;;  %v3417_v43 = vadd.f32 %v3351_v13, %v3224_v26  ;;  %v582_v61 = vpop.f32.mrf.mxu0  ;;  %v10482_v5 = vld [vmem:[#allocation104_spill] sm:$0xff] }
 0x1d6   : > { %10477 = vst [vmem:[#allocation14_spill] sm:$0xff] %v8313_v9  ;;  %v2858_v31 = vmul.f32 %v10470_v44, %v7950_v20  ;;  %v2553_v30 = vunpack.c.l.bf16 %v2487_v24  ;;  %v10483_v46 = vrot.slane %v10482_v5, 1  ;;  %v2923_v26 = vunpack.c.l.bf16 %v2890_v32 }
 0x1d7   : > { %10480 = vst [vmem:[#allocation86_spill] sm:$0xff] %v8318_v48  ;;  %v1438_v27 = vpack.c.bf16 %v1405_v54, %v1405_v54  ;;  %v3450_v39 = vpack.c.bf16 %v3417_v43, %v3417_v43  ;;  %v8335_v28 = vmul.f32 %v8307_v62, %v10326_v19  ;;  %v8337_v60 = vunpack.c.l.bf16 %v3625_v15 }
 0x1d8   : > { %v1670_v13 = vsel %vm1277_vm2, %v10483_v46, %v1669_v40  ;;  %v4600_v52 = vunpack.c.h.bf16 %v8320_v49  ;;  %v8342_v25 = vmul.f32 %v8291_v47, %v6671_v10  ;;  %v4666_v43 = vpack.c.bf16 %v4633_v29, %v4633_v29 }
 0x1d9   : > { %10484 = vst [vmem:[#allocation83_spill] sm:$0xff] %v8337_v60  ;;  %v1542_v54 = vunpack.c.l.bf16 %v1438_v27  ;;  %v3657_v24 = vunpack.c.l.bf16 %v3450_v39  ;;  %v3161_v5 = vmul.f32 %v10366_v33, %v7950_v20  ;;  %v8347_v46 = vadd.f32 %v8096_v53, %v582_v61 }
 0x1da   : > { %v1439_v32 = vpack.c.bf16 %v1406_v12, %v1406_v12  ;;  %v2891_v1 = vpack.c.bf16 %v2858_v31, %v2858_v31  ;;  %v2650_v15 = vrot.slane %v2553_v30, 2  ;;  %v2956_v27 = vmul.f32 %v2923_v26, %v8302_v4 }
 0x1db   : > { %v1735_v41 = vadd.f32 %v1670_v13, %v1542_v54  ;;  %v8350_v38 = vadd.f32 %v8266_v51, %v3657_v24  ;;  %v8356_v39 = vmul.f32 %v8307_v62, %v6671_v10  ;;  %v8360_v61 = vmul.f32 %v6928_v36, %v4600_v52  ;;  %v10488_v13 = vld [vmem:[#allocation40_spill] sm:$0xff] }
 0x1dc   : > { %v8363_v31 = vsel %vm2326_vm3, %v2366_v45, %v2368_v56  ;;  %v4699_v30 = vunpack.c.l.bf16 %v4666_v43  ;;  %v3193_v51 = vpack.c.bf16 %v3161_v5, %v3161_v5  ;;  %v802_v26 = vmul.f32 %v10488_v13, %v10335_v2  ;;  %v10492_v45 = vld [vmem:[#allocation41_spill] sm:$0xff] }
 0x1dd   : > { %10485 = vst [vmem:[#allocation104_spill] sm:$0xff] %v8350_v38  ;;  %v1768_v12 = vpack.c.bf16 %v1735_v41, %v1735_v41  ;;  %v1543_v24 = vunpack.c.l.bf16 %v1439_v32  ;;  %v2924_v11 = vunpack.c.l.bf16 %v2891_v1  ;;  %v10489_v50 = vrot.slane %v8227_v58, 2  ;;  %v10491_v38 = vld [vmem:[#allocation8_spill] sm:$0xff]  ;;  %v10493_v5 = vld [vmem:[#allocation97_spill] sm:$0xff] }
 0x1de   : > { %10486 = vst [vmem:[#allocation116_spill] sm:$0xff] %v8360_v61  ;;  %v2989_v52 = vpack.c.bf16 %v2956_v27, %v2956_v27  ;;  %v10490_v41 = vunpack.c.l.bf16 %v8320_v49  ;;  %v803_v43 = vmul.f32 %v10492_v45, %v10335_v2  ;;  %v10494_v16 = vrot.slane %v10493_v5, 2 }
 0x1df   : > { %10487 = vst [vmem:[#allocation117_spill] sm:$0xff] %v8363_v31  ;;  %v2520_v14 = vunpack.c.l.bf16 %v1768_v12  ;;  %v2651_v29 = vsel %vm2588_vm4, %v10489_v50, %v2650_v15  ;;  %v10495_v32 = vrot.slane %v8337_v60, 2  ;;  %v10496_v1 = vrot.slane %v8236_v63, 2  ;;  %v10498_v63 = vld [vmem:[#allocation48_spill] sm:$0xff] }
 0x1e0   : > { %v3934_v56 = vmul.f32 %v10491_v38, %v10490_v41  ;;  %v2653_v13 = vsel %vm2588_vm4, %v2650_v15, %v10494_v16  ;;  %v8389_v12 = vmul.f32 %v4699_v30, %v8198_v57  ;;  %v8391_v41 = vunpack.c.l.bf16 %v3193_v51  ;;  %v10500_v51 = vld [vmem:[#allocation67_spill] sm:$0xff]  ;;  %10520 = vst [vmem:[#allocation41_spill] sm:$0xff] %v8481_v35 }
 0x1e1   : > { %v8384_v58 = vsel %vm2588_vm4, %v10496_v1, %v10495_v32  ;;  %v2718_v27 = vadd.f32 %v2651_v29, %v2520_v14  ;;  %v835_v45 = vpack.c.bf16 %v802_v26, %v802_v26  ;;  %v836_v5 = vpack.c.bf16 %v803_v43, %v803_v43  ;;  %v10499_v29 = vld [vmem:[#allocation76_spill] sm:$0xff]  ;;  %v10502_v43 = vld [vmem:[#allocation23_spill] sm:$0xff] }
 0x1e2   : > { %10497 = vst [vmem:[#allocation40_spill] sm:$0xff] %v8391_v41  ;;  %v1736_v54 = vadd.f32 %v1669_v40, %v1543_v24  ;;  %v8394_v15 = vmul.f32 %v2924_v11, %v8286_v21  ;;  %v1487_v32 = vpack.c.bf16 %v10498_v63, %v10498_v63  ;;  %v3055_v1 = vunpack.c.l.bf16 %v2989_v52  ;;  %v10501_v24 = vld [vmem:[#allocation22_spill] sm:$0xff] }
 0x1e3   : > { %v2751_v16 = vpack.c.bf16 %v2718_v27, %v2718_v27  ;;  %v3967_v20 = vpack.c.bf16 %v3934_v56, %v3934_v56  ;;  %v1188_v49 = vunpack.c.l.bf16 %v835_v45  ;;  %v1189_v50 = vunpack.c.l.bf16 %v836_v5 }
 0x1e4   : > { %v1488_v57 = vpack.c.bf16 %v10499_v29, %v10499_v29  ;;  %v1552_v30 = vunpack.c.l.bf16 %v1487_v32  ;;  %v1884_v26 = vpack.c.bf16 %v10500_v51, %v10500_v51  ;;  %v1885_v52 = vpack.c.bf16 %v10503_v8, %v10503_v8 }
 0x1e5   : > { %v3022_v14 = vunpack.c.l.bf16 %v2751_v16  ;;  %v1382_v11 = vmul.f32 %v10501_v24, %v1188_v49  ;;  %v1383_v27 = vmul.f32 %v10502_v43, %v1189_v50  ;;  %v1769_v63 = vpack.c.bf16 %v1736_v54, %v1736_v54 }
 0x1e6   : > { %v8407_v45 = vunpack.c.l.bf16 %v1488_v57  ;;  %v1623_v5 = vrot.slane %v1552_v30, 1  ;;  %v2237_v16 = vunpack.c.l.bf16 %v1884_v26  ;;  %v2238_v61 = vunpack.c.l.bf16 %v1885_v52  ;;  %v10507_v57 = vld [vmem:[#allocation29_spill] sm:$0xff]  ;;  %v10508_v26 = vld [vmem:[#allocation31_spill] sm:$0xff] }
 0x1e7   : > { %v3088_v56 = vadd.f32 %v3055_v1, %v3022_v14  ;;  %v1415_v29 = vpack.c.bf16 %v1382_v11, %v1382_v11  ;;  %v1416_v32 = vpack.c.bf16 %v1383_v27, %v1383_v27  ;;  %v4000_v51 = vunpack.c.l.bf16 %v3967_v20 }
 0x1e8   : > { %v10174_v40 = vrot.slane %v8407_v45, 1  ;;  %v2431_v49 = vmul.f32 %v10504_v55, %v2237_v16  ;;  %v10505_v50 = vrot.slane %v8391_v41, 1  ;;  %v10506_v21 = vrot.slane %v8255_v42, 1 }
 0x1e9   : > { %v3121_v7 = vpack.c.bf16 %v3088_v56, %v3088_v56  ;;  %v1519_v1 = vunpack.c.l.bf16 %v1415_v29  ;;  %v1520_v14 = vunpack.c.l.bf16 %v1416_v32  ;;  %v2432_v30 = vmul.f32 %v10507_v57, %v2238_v61 }
 0x1ea   : > { %v3353_v8 = vsel %vm1277_vm2, %v10506_v21, %v10505_v50  ;;  %v10509_v11 = vrot.slane %v10508_v26, 1  ;;  %v1626_v20 = vsel %vm1277_vm2, %v1623_v5, %v10174_v40  ;;  %v2464_v52 = vpack.c.bf16 %v2431_v49, %v2431_v49 }
 0x1eb   : > { %v3225_v54 = vunpack.c.l.bf16 %v3121_v7  ;;  %v2521_v56 = vunpack.c.l.bf16 %v1769_v63  ;;  %v1713_v60 = vadd.f32 %v1626_v20, %v1520_v14  ;;  %v2465_v42 = vpack.c.bf16 %v2432_v30, %v2432_v30  ;;  %v10510_v7 = vld [vmem:[#allocation13_spill] sm:$0xff]  ;;  %v10512_v20 = vld [vmem:[#allocation16_spill] sm:$0xff] }
 0x1ec   : > { %v1624_v27 = vsel %vm1277_vm2, %v10509_v11, %v1623_v5  ;;  %v2990_v21 = vpack.c.bf16 %v8394_v15, %v8394_v15  ;;  %v2530_v32 = vunpack.c.l.bf16 %v2464_v52  ;;  %v2834_v61 = vmul.f32 %v10510_v7, %v10470_v44  ;;  %v10511_v63 = vld [vmem:[#allocation49_spill] sm:$0xff] }
 0x1ed   : > { %v1712_v16 = vadd.f32 %v1624_v27, %v1519_v1  ;;  %v3418_v29 = vadd.f32 %v3353_v8, %v3225_v54  ;;  %v4033_v50 = vmul.f32 %v4000_v51, %v8302_v4  ;;  %v1746_v11 = vpack.c.bf16 %v1713_v60, %v1713_v60 }
 0x1ee   : > { %v8428_v34 = vunpack.c.l.bf16 %v2465_v42  ;;  %v2604_v49 = vrot.slane %v2530_v32, 2  ;;  %v2835_v1 = vmul.f32 %v10511_v63, %v10470_v44  ;;  %v2867_v14 = vpack.c.bf16 %v2834_v61, %v2834_v61 }
 0x1ef   : > { %v1745_v26 = vpack.c.bf16 %v1712_v16, %v1712_v16  ;;  %v3451_v5 = vpack.c.bf16 %v3418_v29, %v3418_v29  ;;  %v2719_v30 = vadd.f32 %v2653_v13, %v2521_v56  ;;  %v2498_v15 = vunpack.c.l.bf16 %v1746_v11 }
 0x1f0   : > { %v10173_v8 = vrot.slane %v8428_v34, 2  ;;  %v10513_v52 = vrot.slane %v10512_v20, 2  ;;  %v2868_v51 = vpack.c.bf16 %v2835_v1, %v2835_v1  ;;  %v2900_v60 = vunpack.c.l.bf16 %v2867_v14 }
 0x1f1   : > { %v2497_v27 = vunpack.c.l.bf16 %v1745_v26  ;;  %v3658_v54 = vunpack.c.l.bf16 %v3451_v5  ;;  %v4066_v16 = vpack.c.bf16 %v4033_v50, %v4033_v50  ;;  %v3138_v13 = vmul.f32 %v10511_v63, %v10366_v33  ;;  %v10514_v5 = vld [vmem:[#allocation27_spill] sm:$0xff] }
 0x1f2   : > { %v2605_v4 = vsel %vm2588_vm4, %v10513_v52, %v2604_v49  ;;  %v2607_v42 = vsel %vm2588_vm4, %v2604_v49, %v10173_v8  ;;  %v2901_v7 = vunpack.c.l.bf16 %v2868_v51  ;;  %v2933_v61 = vmul.f32 %v2900_v60, %v10501_v24 }
 0x1f3   : > { %v2695_v29 = vadd.f32 %v2605_v4, %v2497_v27  ;;  %v3855_v56 = vadd.f32 %v8384_v58, %v3658_v54  ;;  %v2696_v32 = vadd.f32 %v2607_v42, %v2498_v15  ;;  %v2752_v26 = vpack.c.bf16 %v2719_v30, %v2719_v30  ;;  %v8446_v30 = vld [vmem:[#allocation2 + $0x38] sm:$0xff]  }
 0x1f4   : > { %v3139_v1 = vmul.f32 %v10514_v5, %v10366_v33  ;;  %v3170_v50 = vpack.c.bf16 %v3138_v13, %v3138_v13  ;;  %v2934_v49 = vmul.f32 %v2901_v7, %v10502_v43  ;;  %v2966_v27 = vpack.c.bf16 %v2933_v61, %v2933_v61 }
 0x1f5   : > { %v2728_v11 = vpack.c.bf16 %v2695_v29, %v2695_v29  ;;  %v3888_v14 = vpack.c.bf16 %v3855_v56, %v3855_v56  ;;  %v2729_v20 = vpack.c.bf16 %v2696_v32, %v2696_v32  ;;  %v4132_v52 = vunpack.c.l.bf16 %v4066_v16 }
 0x1f6   : > { %v3171_v8 = vpack.c.bf16 %v3139_v1, %v3139_v1  ;;  %v3235_v40 = vunpack.c.l.bf16 %v3170_v50  ;;  %v2967_v15 = vpack.c.bf16 %v2934_v49, %v2934_v49  ;;  %v3032_v51 = vunpack.c.l.bf16 %v2966_v27  ;;  %v10517_v49 = vld [vmem:[#allocation18_spill] sm:$0xff] }
 0x1f7   : > { %v2999_v4 = vunpack.c.l.bf16 %v2728_v11  ;;  %v4099_v58 = vunpack.c.l.bf16 %v3888_v14  ;;  %v3000_v54 = vunpack.c.l.bf16 %v2729_v20  ;;  %v3023_v60 = vunpack.c.l.bf16 %v2752_v26  ;;  %v10516_v11 = vld [vmem:[#allocation7_spill] sm:$0xff] }
 0x1f8   : > { %v8448_v42 = vunpack.c.l.bf16 %v3171_v8  ;;  %v3306_v29 = vrot.slane %v3235_v40, 1  ;;  %v3470_v13 = vmul.f32 %v10511_v63, %v7390_v6  ;;  %v3033_v32 = vunpack.c.l.bf16 %v2967_v15 }
 0x1f9   : > { %v8452_v56 = vadd.f32 %v4132_v52, %v4099_v58  ;;  %v3065_v16 = vadd.f32 %v3032_v51, %v2999_v4  ;;  %v3471_v7 = vmul.f32 %v10514_v5, %v7390_v6  ;;  %v3056_v61 = vunpack.c.l.bf16 %v2990_v21 }
 0x1fa   : > { %v8457_v1 = vunpack.c.h.bf16 %v10516_v11  ;;  %v10175_v26 = vrot.slane %v8448_v42, 1  ;;  %v3503_v50 = vpack.c.bf16 %v3470_v13, %v3470_v13  ;;  %v8461_v8 = vunpack.c.l.bf16 %v8446_v30 }
 0x1fb   : > { %10515 = vst [vmem:[#allocation8_spill] sm:$0xff] %v8452_v56  ;;  %v3066_v40 = vadd.f32 %v3033_v32, %v3000_v54  ;;  %v3098_v14 = vpack.c.bf16 %v3065_v16, %v3065_v16  ;;  %v3504_v63 = vpack.c.bf16 %v3471_v7, %v3471_v7  ;;  %v8463_v20 = vadd.f32 %v3056_v61, %v3023_v60  ;;  %v10519_v16 = vld [vmem:[#allocation66_spill] sm:$0xff] }
 0x1fc   : > { %v10518_v27 = vrot.slane %v10517_v49, 1  ;;  %v3536_v4 = vunpack.c.l.bf16 %v3503_v50  ;;  %v3911_v21 = vmul.f32 %v10514_v5, %v10491_v38  ;;  %v3309_v51 = vsel %vm1277_vm2, %v3306_v29, %v10175_v26 }
 0x1fd   : > { %v3099_v58 = vpack.c.bf16 %v3066_v40, %v3066_v40  ;;  %v3202_v15 = vunpack.c.l.bf16 %v3098_v14  ;;  %v3537_v13 = vunpack.c.l.bf16 %v3504_v63  ;;  %v3912_v60 = vmul.f32 %v8457_v1, %v10491_v38 }
 0x1fe   : > { %v3307_v52 = vsel %vm1277_vm2, %v10518_v27, %v3306_v29  ;;  %v3569_v54 = vmul.f32 %v3536_v4, %v10504_v55  ;;  %v3944_v32 = vpack.c.bf16 %v3911_v21, %v3911_v21  ;;  %v4215_v7 = vmul.f32 %v8457_v1, %v10519_v16 }
 0x1ff   : > { %v3203_v61 = vunpack.c.l.bf16 %v3099_v58  ;;  %v3395_v11 = vadd.f32 %v3307_v52, %v3202_v15  ;;  %v3570_v50 = vmul.f32 %v3537_v13, %v10507_v57  ;;  %v4216_v40 = vmul.f32 %v8461_v8, %v10519_v16 }
 0x200   : > { %v3602_v14 = vpack.c.bf16 %v3569_v54, %v3569_v54  ;;  %v3945_v49 = vpack.c.bf16 %v3912_v60, %v3912_v60  ;;  %v3977_v29 = vunpack.c.l.bf16 %v3944_v32  ;;  %v4247_v63 = vpack.c.bf16 %v4215_v7, %v4215_v7 }
 0x201   : > { %v3396_v27 = vadd.f32 %v3309_v51, %v3203_v61  ;;  %v3428_v4 = vpack.c.bf16 %v3395_v11, %v3395_v11  ;;  %v3603_v26 = vpack.c.bf16 %v3570_v50, %v3570_v50  ;;  %v4248_v56 = vpack.c.bf16 %v4216_v40, %v4216_v40  ;;  %v585_v50 = vpop.f32.mrf.mxu0 }
 0x202   : > { %v3668_v21 = vunpack.c.l.bf16 %v3602_v14  ;;  %v3978_v41 = vunpack.c.l.bf16 %v3945_v49  ;;  %v4010_v58 = vmul.f32 %v3977_v29, %v10501_v24  ;;  %v4312_v52 = vunpack.c.l.bf16 %v4247_v63 }
 0x203   : > { %v3429_v15 = vpack.c.bf16 %v3396_v27, %v3396_v27  ;;  %v3635_v13 = vunpack.c.l.bf16 %v3428_v4  ;;  %v8484_v9 = vunpack.c.l.bf16 %v3603_v26  ;;  %v8486_v31 = vunpack.c.l.bf16 %v4248_v56  ;;  %v10521_v26 = vld [vmem:[#allocation9_spill] sm:$0xff] }
 0x204   : > { %v4765_v54 = vpack.c.bf16 %v8389_v12, %v8389_v12  ;;  %v3741_v51 = vrot.slane %v3668_v21, 2  ;;  %v4011_v60 = vmul.f32 %v3978_v41, %v10502_v43  ;;  %v4043_v32 = vpack.c.bf16 %v4010_v58, %v4010_v58  ;;  %v1093_v43 = vpop.permute.xlu0 %1092 }
 0x205   : > { %v3636_v61 = vunpack.c.l.bf16 %v3429_v15  ;;  %v10181_v11 = vrot.slane %v8484_v9, 2  ;;  %v4611_v24 = vmul.f32 %v8457_v1, %v6928_v36  ;;  %v3122_v56 = vpack.c.bf16 %v8463_v20, %v8463_v20 }
 0x206   : > { %v10522_v40 = vrot.slane %v10521_v26, 2  ;;  %v4383_v14 = vrot.slane %v4312_v52, 1  ;;  %v4044_v63 = vpack.c.bf16 %v4011_v60, %v4011_v60  ;;  %v4612_v27 = vmul.f32 %v8461_v8, %v6928_v36 }
 0x207   : > { %v3744_v49 = vsel %vm2588_vm4, %v3741_v51, %v10181_v11  ;;  %v4109_v21 = vunpack.c.l.bf16 %v4043_v32  ;;  %v4644_v20 = vpack.c.bf16 %v4611_v24, %v4611_v24  ;;  %v586_v58 = vadd.f32 %v8096_v53, %v585_v50 }
 0x208   : > { %v3742_v12 = vsel %vm2588_vm4, %v10522_v40, %v3741_v51  ;;  %v3833_v4 = vadd.f32 %v3744_v49, %v3636_v61  ;;  %v4645_v26 = vpack.c.bf16 %v4612_v27, %v4612_v27  ;;  %v1098_v52 = vperm.slane %v1093_v43, %v6686_v18  ;;  %v10523_v40 = vld [vmem:[#allocation69_spill] sm:$0xff] }
 0x209   : > { %v3832_v29 = vadd.f32 %v3742_v12, %v3635_v13  ;;  %v804_v41 = vmul.f32 %v10523_v40, %v10335_v2  ;;  %v4677_v48 = vunpack.c.l.bf16 %v4644_v20  ;;  %v638_v51 = vmax.f32 %v586_v58, 0.0  ;;  %v10524_v13 = vld [vmem:[#allocation70_spill] sm:$0xff] }
 0x20a   : > { %v3866_v7 = vpack.c.bf16 %v3833_v4, %v3833_v4  ;;  %v805_v60 = vmul.f32 %v10524_v13, %v10335_v2  ;;  %v4678_v11 = vunpack.c.l.bf16 %v4645_v26  ;;  %v1235_v61 = vunpack.c.l.bf16 %v1098_v52 }
 0x20b   : > { %v3865_v15 = vpack.c.bf16 %v3832_v29, %v3832_v29  ;;  %v837_v32 = vpack.c.bf16 %v804_v41, %v804_v41  ;;  %v4110_v49 = vunpack.c.l.bf16 %v4044_v63  ;;  %v4710_v50 = vmul.f32 %v4677_v48, %v10504_v55 }
 0x20c   : > { %v4077_v24 = vunpack.c.l.bf16 %v3866_v7  ;;  %v10525_v29 = vmax.f32 %v8347_v46, 0.0  ;;  %v8515_v43 = vunpack.c.l.bf16 %v4765_v54  ;;  %v10527_v27 = vunpack.c.l.bf16 %v8481_v35 }
 0x20d   : > { %v4076_v12 = vunpack.c.l.bf16 %v3865_v15  ;;  %v4711_v58 = vmul.f32 %v4678_v11, %v10507_v57  ;;  %v4743_v26 = vpack.c.bf16 %v4710_v50, %v4710_v50  ;;  %v1321_v7 = vrot.slane %v1235_v61, 1 }
 0x20e   : > { %v5937_v18 = vpack.c.bf16 %v638_v51, %v10525_v29  ;;  %10526 = vst [vmem:[#allocation97_spill] sm:$0xff] %v8515_v43  ;;  %v8520_v4 = vmul.f32 %v10491_v38, %v10527_v27  ;;  %v4143_v15 = vadd.f32 %v4110_v49, %v4077_v24  ;;  %v838_v41 = vpack.c.bf16 %v805_v60, %v805_v60  ;;  %v587_v60 = vpop.f32.mrf.mxu0  ;;  %v10535_v29 = vld [vmem:[#allocation50_spill] sm:$0xff] }
 0x20f   : > { %v4142_v20 = vadd.f32 %v4109_v21, %v4076_v12  ;;  %v8523_v63 = vunpack.c.l.bf16 %v3122_v56  ;;  %v4744_v48 = vpack.c.bf16 %v4711_v58, %v4711_v58  ;;  %v1190_v46 = vunpack.c.l.bf16 %v837_v32 }
 0x210   : > { %10528 = vst [vmem:[#allocation48_spill] sm:$0xff] %v8520_v4  ;;  %v4176_v54 = vpack.c.bf16 %v4143_v15, %v4143_v15  ;;  %v10530_v52 = vrot.slane %v8152_v17, 1  ;;  %v10531_v51 = vrot.slane %v8486_v31, 1  ;;  %v4809_v57 = vunpack.c.l.bf16 %v4743_v26  ;;  %v10539_v15 = vld [vmem:[#allocation77_spill] sm:$0xff] }
 0x211   : > { %6297 = vst [vmem:[#allocation2 + $0x50] sm:$0xff] %v5937_v18   ;;  %v4175_v55 = vpack.c.bf16 %v4142_v20, %v4142_v20  ;;  %v8531_v13 = vunpack.c.l.bf16 %v4744_v48  ;;  %v8533_v12 = vunpack.c.l.bf16 %v5937_v18  ;;  %v8535_v56 = vunpack.c.h.bf16 %v5937_v18  ;;  %v10538_v20 = vld [vmem:[#allocation11_spill] sm:$0xff] }
 0x212   : > { %10529 = vst [vmem:[#allocation76_spill] sm:$0xff] %v8523_v63  ;;  %v4384_v40 = vsel %vm1277_vm2, %v10530_v52, %v4383_v14  ;;  %v4386_v21 = vsel %vm1277_vm2, %v4383_v14, %v10531_v51  ;;  %v4280_v61 = vunpack.c.l.bf16 %v4176_v54  ;;  %v4882_v32 = vrot.slane %v4809_v57, 2  ;;  %v10540_v48 = vld [vmem:[#allocation39_spill] sm:$0xff]  ;;  %v10542_v51 = vld [vmem:[#allocation20_spill] sm:$0xff] }
 0x213   : > { %v4279_v11 = vunpack.c.l.bf16 %v4175_v55  ;;  %10532 = vst [vmem:[#allocation67_spill] sm:$0xff] %v8535_v56  ;;  %v10533_v24 = vrot.slane %v7747_v23, 1  ;;  %v1191_v49 = vunpack.c.l.bf16 %v838_v41  ;;  %v10536_v14 = vrot.slane %v10535_v29, 1 }
 0x214   : > { %v1384_v58 = vmul.f32 %v10538_v20, %v1190_v46  ;;  %v1489_v18 = vpack.c.bf16 %v10539_v15, %v10539_v15  ;;  %v4473_v26 = vadd.f32 %v4386_v21, %v4280_v61  ;;  %v10183_v55 = vrot.slane %v8531_v13, 2  ;;  %v10543_v21 = vld [vmem:[#allocation80_spill] sm:$0xff] }
 0x215   : > { %v8540_v17 = vsel %vm1277_vm2, %v10533_v24, %v1321_v7  ;;  %v4472_v50 = vadd.f32 %v4384_v40, %v4279_v11  ;;  %v8545_v27 = vsel %vm1277_vm2, %v1321_v7, %v10536_v14  ;;  %v8552_v23 = vadd.f32 %v8096_v53, %v587_v60 }
 0x216   : > { %10534 = vst [vmem:[#allocation22_spill] sm:$0xff] %v8540_v17  ;;  %v1385_v54 = vmul.f32 %v10540_v48, %v1191_v49  ;;  %v10541_v52 = vrot.slane %v8176_v0, 2  ;;  %v1417_v7 = vpack.c.bf16 %v1384_v58, %v1384_v58  ;;  %v1490_v46 = vpack.c.bf16 %v10542_v51, %v10542_v51  ;;  %v10544_v49 = vld [vmem:[#allocation84_spill] sm:$0xff] }
 0x217   : > { %10537 = vst [vmem:[#allocation23_spill] sm:$0xff] %v8545_v27  ;;  %v4505_v41 = vpack.c.bf16 %v4472_v50, %v4472_v50  ;;  %v4506_v57 = vpack.c.bf16 %v4473_v26, %v4473_v26  ;;  %v1554_v24 = vunpack.c.l.bf16 %v1489_v18  ;;  %v1886_v61 = vpack.c.bf16 %v10543_v21, %v10543_v21 }
 0x218   : > { %v4883_v40 = vsel %vm2588_vm4, %v10541_v52, %v4882_v32  ;;  %v1418_v11 = vpack.c.bf16 %v1385_v54, %v1385_v54  ;;  %v1521_v53 = vunpack.c.l.bf16 %v1417_v7  ;;  %v8562_v60 = vunpack.c.l.bf16 %v1490_v46  ;;  %v10546_v46 = vld [vmem:[#allocation37_spill] sm:$0xff] }
 0x219   : > { %v4776_v29 = vunpack.c.l.bf16 %v4505_v41  ;;  %v1887_v50 = vpack.c.bf16 %v10544_v49, %v10544_v49  ;;  %v4777_v0 = vunpack.c.l.bf16 %v4506_v57  ;;  %v4885_v14 = vsel %vm2588_vm4, %v4882_v32, %v10183_v55 }
 0x21a   : > { %v1627_v58 = vrot.slane %v1554_v24, 1  ;;  %v2239_v15 = vunpack.c.l.bf16 %v1886_v61  ;;  %v1522_v54 = vunpack.c.l.bf16 %v1418_v11  ;;  %v10182_v18 = vrot.slane %v8562_v60, 1 }
 0x21b   : > { %v4973_v26 = vadd.f32 %v4883_v40, %v4776_v29  ;;  %v2240_v52 = vunpack.c.l.bf16 %v1887_v50  ;;  %v4974_v51 = vadd.f32 %v4885_v14, %v4777_v0  ;;  %v10545_v41 = vrot.slane %v8407_v45, 1  ;;  %v10547_v40 = vld [vmem:[#allocation38_spill] sm:$0xff] }
 0x21c   : > { %v2433_v21 = vmul.f32 %v10546_v46, %v2239_v15  ;;  %v8575_v57 = vunpack.c.h.bf16 %v8446_v30  ;;  %v1630_v32 = vsel %vm1277_vm2, %v1627_v58, %v10182_v18  ;;  %v2836_v61 = vmul.f32 %v10514_v5, %v10470_v44 }
 0x21d   : > { %v1628_v7 = vsel %vm1277_vm2, %v10545_v41, %v1627_v58  ;;  %v2434_v11 = vmul.f32 %v10547_v40, %v2240_v52  ;;  %v5002_v29 = vpack.c.bf16 %v4974_v51, %v4973_v26  ;;  %v1715_v49 = vadd.f32 %v1630_v32, %v1522_v54 }
 0x21e   : > { %v1714_v24 = vadd.f32 %v1628_v7, %v1521_v53  ;;  %v2466_v45 = vpack.c.bf16 %v2433_v21, %v2433_v21  ;;  %v2837_v50 = vmul.f32 %v8457_v1, %v10470_v44  ;;  %v2869_v30 = vpack.c.bf16 %v2836_v61, %v2836_v61 }
 0x21f   : > { %v2467_v14 = vpack.c.bf16 %v2434_v11, %v2434_v11  ;;  %v3140_v15 = vmul.f32 %v8457_v1, %v10366_v33  ;;  %v5072_v41 = vshrl.u32 %v5002_v29, 16  ;;  %v5075_v58 = vshll.u32 %v5002_v29, 16 }
 0x220   : > { %v1747_v0 = vpack.c.bf16 %v1714_v24, %v1714_v24  ;;  %v1748_v53 = vpack.c.bf16 %v1715_v49, %v1715_v49  ;;  %v2532_v7 = vunpack.c.l.bf16 %v2466_v45  ;;  %v2870_v5 = vpack.c.bf16 %v2837_v50, %v2837_v50 }
 0x221   : > { %v8587_v18 = vunpack.c.l.bf16 %v2467_v14  ;;  %v2902_v26 = vunpack.c.l.bf16 %v2869_v30  ;;  %v5074_v54 = vrot.slane %v5072_v41, 3  ;;  %v5077_v51 = vrot.slane %v5075_v58, 4 }
 0x222   : > { %v2499_v52 = vunpack.c.l.bf16 %v1747_v0  ;;  %v2500_v21 = vunpack.c.l.bf16 %v1748_v53  ;;  %v2608_v32 = vrot.slane %v2532_v7, 2  ;;  %v2903_v11 = vunpack.c.l.bf16 %v2870_v5 }
 0x223   : > { %v10184_v24 = vrot.slane %v8587_v18, 2  ;;  %v2935_v61 = vmul.f32 %v2902_v26, %v10538_v20  ;;  %v3141_v55 = vmul.f32 %v8461_v8, %v10366_v33  ;;  %v8593_v29 = vor.u32 %v5077_v51, %v5074_v54  ;;  %v8607_v26 = vld [vmem:[#allocation2 + $0x40] sm:$0xff]  }
 0x224   : > { %v10548_v49 = vrot.slane %v8428_v34, 2  ;;  %v3172_v50 = vpack.c.bf16 %v3140_v15, %v3140_v15  ;;  %v3472_v0 = vmul.f32 %v8457_v1, %v7390_v6  ;;  %v2936_v41 = vmul.f32 %v2903_v11, %v10540_v48 }
 0x225   : > { %v2611_v14 = vsel %vm2588_vm4, %v2608_v32, %v10184_v24  ;;  %v2968_v58 = vpack.c.bf16 %v2935_v61, %v2935_v61  ;;  %v5079_v53 = vsel %vm5035_vm5, %v8251_v59, %v8593_v29  ;;  %v3173_v34 = vpack.c.bf16 %v3141_v55, %v3141_v55 }
 0x226   : > { %v2609_v45 = vsel %vm2588_vm4, %v10548_v49, %v2608_v32  ;;  %v2698_v7 = vadd.f32 %v2611_v14, %v2500_v21  ;;  %v3237_v5 = vunpack.c.l.bf16 %v3172_v50  ;;  %5275 = vmatmul.bf16.gmra.mxu1 %v5079_v53  ;;  %v2969_v1 = vpack.c.bf16 %v2936_v41, %v2936_v41 }
 0x227   : > { %v2697_v30 = vadd.f32 %v2609_v45, %v2499_v52  ;;  %v3034_v54 = vunpack.c.l.bf16 %v2968_v58  ;;  %v3473_v51 = vmul.f32 %v8461_v8, %v7390_v6  ;;  %v8611_v32 = vunpack.c.l.bf16 %v3173_v34 }
 0x228   : > { %v2731_v52 = vpack.c.bf16 %v2698_v7, %v2698_v7  ;;  %v3310_v11 = vrot.slane %v3237_v5, 1  ;;  %v3505_v61 = vpack.c.bf16 %v3472_v0, %v3472_v0  ;;  %v3035_v45 = vunpack.c.l.bf16 %v2969_v1 }
 0x229   : > { %v2730_v15 = vpack.c.bf16 %v2697_v30, %v2697_v30  ;;  %v3506_v59 = vpack.c.bf16 %v3473_v51, %v3473_v51  ;;  %v3913_v55 = vmul.f32 %v8461_v8, %v10491_v38  ;;  %v8616_v21 = vunpack.c.l.bf16 %v8607_v26 }
 0x22a   : > { %v3002_v50 = vunpack.c.l.bf16 %v2731_v52  ;;  %v10187_v14 = vrot.slane %v8611_v32, 1  ;;  %v3538_v30 = vunpack.c.l.bf16 %v3505_v61  ;;  %v3914_v53 = vmul.f32 %v8575_v57, %v10491_v38 }
 0x22b   : > { %v3001_v49 = vunpack.c.l.bf16 %v2730_v15  ;;  %v3539_v58 = vunpack.c.l.bf16 %v3506_v59  ;;  %v3946_v7 = vpack.c.bf16 %v3913_v55, %v3913_v55  ;;  %v10549_v34 = vrot.slane %v8448_v42, 1 }
 0x22c   : > { %v3068_v0 = vadd.f32 %v3035_v45, %v3002_v50  ;;  %v3571_v15 = vmul.f32 %v3538_v30, %v10546_v46  ;;  %v4217_v1 = vmul.f32 %v8575_v57, %v10519_v16  ;;  %v3947_v61 = vpack.c.bf16 %v3914_v53, %v3914_v53 }
 0x22d   : > { %v3067_v41 = vadd.f32 %v3034_v54, %v3001_v49  ;;  %v3311_v5 = vsel %vm1277_vm2, %v10549_v34, %v3310_v11  ;;  %v3572_v52 = vmul.f32 %v3539_v58, %v10547_v40  ;;  %v3979_v54 = vunpack.c.l.bf16 %v3946_v7 }
 0x22e   : > { %v3101_v49 = vpack.c.bf16 %v3068_v0, %v3068_v0  ;;  %v3604_v59 = vpack.c.bf16 %v3571_v15, %v3571_v15  ;;  %v4218_v55 = vmul.f32 %v8616_v21, %v10519_v16  ;;  %v4249_v45 = vpack.c.bf16 %v4217_v1, %v4217_v1 }
 0x22f   : > { %v3100_v51 = vpack.c.bf16 %v3067_v41, %v3067_v41  ;;  %v3313_v42 = vsel %vm1277_vm2, %v3310_v11, %v10187_v14  ;;  %v3605_v30 = vpack.c.bf16 %v3572_v52, %v3572_v52  ;;  %v3980_v34 = vunpack.c.l.bf16 %v3947_v61 }
 0x230   : > { %v3205_v24 = vunpack.c.l.bf16 %v3101_v49  ;;  %v3670_v35 = vunpack.c.l.bf16 %v3604_v59  ;;  %v4012_v41 = vmul.f32 %v3979_v54, %v10538_v20  ;;  %v4250_v58 = vpack.c.bf16 %v4218_v55, %v4218_v55 }
 0x231   : > { %v3204_v50 = vunpack.c.l.bf16 %v3100_v51  ;;  %v8636_v53 = vmul.f32 %v8533_v12, %v10326_v19  ;;  %v8638_v0 = vunpack.c.l.bf16 %v3605_v30  ;;  %v8640_v15 = vunpack.c.l.bf16 %v4249_v45 }
 0x232   : > { %v8644_v1 = vmul.f32 %v8535_v56, %v10326_v19  ;;  %v8648_v11 = vmul.f32 %v8533_v12, %v6671_v10  ;;  %v3398_v51 = vadd.f32 %v3313_v42, %v3205_v24  ;;  %v3745_v20 = vrot.slane %v3670_v35, 2 }
 0x233   : > { %v3397_v7 = vadd.f32 %v3311_v5, %v3204_v50  ;;  %v8652_v52 = vmul.f32 %v8535_v56, %v6671_v10  ;;  %v639_v5 = vmax.f32 %v8552_v23, 0.0  ;;  %v10186_v54 = vrot.slane %v8638_v0, 2  ;;  %v590_v23 = vpop.f32.mrf.mxu0 }
 0x234   : > { %10550 = vst [vmem:[#allocation55_spill] sm:$0xff] %v8644_v1  ;;  %v3431_v49 = vpack.c.bf16 %v3398_v51, %v3398_v51  ;;  %v4013_v59 = vmul.f32 %v3980_v34, %v10540_v48  ;;  %v4045_v55 = vpack.c.bf16 %v4012_v41, %v4012_v41  ;;  %v8657_v45 = vunpack.c.l.bf16 %v4250_v58  ;;  %v8673_v34 = vld [vmem:[%s9985_s5] ss:$0 sm:$0xff] }
 0x235   : > { %10551 = vst [vmem:[#allocation28_spill] sm:$0xff] %v8648_v11  ;;  %v3430_v61 = vpack.c.bf16 %v3397_v7, %v3397_v7  ;;  %v3748_v35 = vsel %vm2588_vm4, %v3745_v20, %v10186_v54  ;;  %v4387_v24 = vrot.slane %v8640_v15, 1  ;;  %v4613_v42 = vmul.f32 %v8575_v57, %v6928_v36 }
 0x236   : > { %10552 = vst [vmem:[#allocation29_spill] sm:$0xff] %v8652_v52  ;;  %v3638_v30 = vunpack.c.l.bf16 %v3431_v49  ;;  %v10553_v7 = vrot.slane %v8484_v9, 2  ;;  %v4614_v48 = vmul.f32 %v8616_v21, %v6928_v36  ;;  %v591_v41 = vadd.f32 %v8673_v34, %v590_v23  ;;  %v10555_v49 = vld [vmem:[#allocation79_spill] sm:$0xff] }
 0x237   : > { %v3637_v50 = vunpack.c.l.bf16 %v3430_v61  ;;  %v4646_v15 = vpack.c.bf16 %v4613_v42, %v4613_v42  ;;  %v10554_v61 = vld [vmem:[#allocation78_spill] sm:$0xff]  ;;  %v807_v9 = vmul.f32 %v10555_v49, %v10335_v2  ;;  %v4111_v37 = vunpack.c.l.bf16 %v4045_v55 }
 0x238   : > { %v3746_v51 = vsel %vm2588_vm4, %v10553_v7, %v3745_v20  ;;  %v806_v54 = vmul.f32 %v10554_v61, %v10335_v2  ;;  %v3835_v14 = vadd.f32 %v3748_v35, %v3638_v30  ;;  %v4046_v20 = vpack.c.bf16 %v4013_v59, %v4013_v59  ;;  %v10556_v59 = vld [vmem:[#allocation82_spill] sm:$0xff] }
 0x239   : > { %v3834_v58 = vadd.f32 %v3746_v51, %v3637_v50  ;;  %v4647_v7 = vpack.c.bf16 %v4614_v48, %v4614_v48  ;;  %v640_v4 = vmax.f32 %v591_v41, 0.0  ;;  %v4679_v63 = vunpack.c.l.bf16 %v4646_v15  ;;  %v10557_v41 = vld [vmem:[#allocation45_spill] sm:$0xff]  ;;  %v10558_v55 = vld [vmem:[#allocation46_spill] sm:$0xff] }
 0x23a   : > { %v839_v27 = vpack.c.bf16 %v806_v54, %v806_v54  ;;  %v840_v17 = vpack.c.bf16 %v807_v9, %v807_v9  ;;  %v3868_v52 = vpack.c.bf16 %v3835_v14, %v3835_v14  ;;  %v4112_v56 = vunpack.c.l.bf16 %v4046_v20 }
 0x23b   : > { %v3867_v43 = vpack.c.bf16 %v3834_v58, %v3834_v58  ;;  %v4680_v3 = vunpack.c.l.bf16 %v4647_v7  ;;  %v5942_v23 = vpack.c.bf16 %v640_v4, %v639_v5  ;;  %v4712_v42 = vmul.f32 %v4679_v63, %v10546_v46 }
 0x23c   : > { %v1192_v51 = vunpack.c.l.bf16 %v839_v27  ;;  %v1193_v61 = vunpack.c.l.bf16 %v840_v17  ;;  %v4079_v1 = vunpack.c.l.bf16 %v3868_v52  ;;  %v1491_v30 = vpack.c.bf16 %v10556_v59, %v10556_v59 }
 0x23d   : > { %v4078_v50 = vunpack.c.l.bf16 %v3867_v43  ;;  %v4713_v35 = vmul.f32 %v4680_v3, %v10547_v40  ;;  %6298 = vst [vmem:[#allocation2 + $0x58] sm:$0xff] %v5942_v23   ;;  %v4745_v54 = vpack.c.bf16 %v4712_v42, %v4712_v42  ;;  %v10197_v43 = vrot.slane %v8657_v45, 1  ;;  %v10560_v3 = vld [vmem:[#allocation65_spill] sm:$0xff] }
 0x23e   : > { %v1386_v14 = vmul.f32 %v10557_v41, %v1192_v51  ;;  %v1387_v58 = vmul.f32 %v10558_v55, %v1193_v61  ;;  %v4145_v4 = vadd.f32 %v4112_v56, %v4079_v1  ;;  %v8687_v27 = vunpack.c.l.bf16 %v5942_v23 }
 0x23f   : > { %v4144_v48 = vadd.f32 %v4111_v37, %v4078_v50  ;;  %v4746_v63 = vpack.c.bf16 %v4713_v35, %v4713_v35  ;;  %v4811_v46 = vunpack.c.l.bf16 %v4745_v54  ;;  %v8689_v52 = vunpack.c.h.bf16 %v5942_v23 }
 0x240   : > { %v1492_v40 = vpack.c.bf16 %v10560_v3, %v10560_v3  ;;  %v4178_v5 = vpack.c.bf16 %v4145_v4, %v4145_v4  ;;  %v10561_v37 = vrot.slane %v8486_v31, 1  ;;  %v1419_v56 = vpack.c.bf16 %v1386_v14, %v1386_v14  ;;  %v10565_v14 = vld [vmem:[#allocation85_spill] sm:$0xff] }
 0x241   : > { %v4177_v17 = vpack.c.bf16 %v4144_v48, %v4144_v48  ;;  %10559 = vst [vmem:[#allocation31_spill] sm:$0xff] %v8689_v52  ;;  %v8696_v49 = vunpack.c.l.bf16 %v4746_v63  ;;  %v4886_v9 = vrot.slane %v4811_v46, 2  ;;  %v1420_v20 = vpack.c.bf16 %v1387_v58, %v1387_v58  ;;  %v10566_v46 = vld [vmem:[#allocation35_spill] sm:$0xff] }
 0x242   : > { %v4388_v15 = vsel %vm1277_vm2, %v10561_v37, %v4387_v24  ;;  %v1556_v7 = vunpack.c.l.bf16 %v1491_v30  ;;  %v4282_v50 = vunpack.c.l.bf16 %v4178_v5  ;;  %v4390_v23 = vsel %vm1277_vm2, %v4387_v24, %v10197_v43 }
 0x243   : > { %v4281_v1 = vunpack.c.l.bf16 %v4177_v17  ;;  %v10194_v42 = vrot.slane %v8696_v49, 2  ;;  %v8704_v51 = vmul.f32 %v8687_v27, %v10326_v19  ;;  %v8708_v61 = vmul.f32 %v8689_v52, %v10326_v19 }
 0x244   : > { %v1523_v35 = vunpack.c.l.bf16 %v1419_v56  ;;  %v8710_v59 = vunpack.c.l.bf16 %v1492_v40  ;;  %v4475_v30 = vadd.f32 %v4390_v23, %v4282_v50  ;;  %v10564_v48 = vrot.slane %v8531_v13, 2 }
 0x245   : > { %10562 = vst [vmem:[#allocation13_spill] sm:$0xff] %v8704_v51  ;;  %v4474_v31 = vadd.f32 %v4388_v15, %v4281_v1  ;;  %v1631_v24 = vrot.slane %v1556_v7, 1  ;;  %v1888_v58 = vpack.c.bf16 %v10565_v14, %v10565_v14  ;;  %v1524_v63 = vunpack.c.l.bf16 %v1420_v20 }
 0x246   : > { %10563 = vst [vmem:[#allocation49_spill] sm:$0xff] %v8708_v61  ;;  %v4887_v54 = vsel %vm2588_vm4, %v10564_v48, %v4886_v9  ;;  %v10196_v17 = vrot.slane %v8710_v59, 1  ;;  %v1889_v3 = vpack.c.bf16 %v10566_v46, %v10566_v46  ;;  %v4508_v5 = vpack.c.bf16 %v4475_v30, %v4475_v30 }
 0x247   : > { %v4507_v4 = vpack.c.bf16 %v4474_v31, %v4474_v31  ;;  %v4889_v40 = vsel %vm2588_vm4, %v4886_v9, %v10194_v42  ;;  %v10567_v13 = vrot.slane %v8562_v60, 1  ;;  %v2241_v15 = vunpack.c.l.bf16 %v1888_v58  ;;  %v10568_v31 = vld [vmem:[#allocation19_spill] sm:$0xff] }
 0x248   : > { %v1634_v1 = vsel %vm1277_vm2, %v1631_v24, %v10196_v17  ;;  %v2242_v7 = vunpack.c.l.bf16 %v1889_v3  ;;  %v4779_v50 = vunpack.c.l.bf16 %v4508_v5  ;;  %v2838_v48 = vmul.f32 %v8461_v8, %v10470_v44  ;;  %v10569_v60 = vld [vmem:[#allocation15_spill] sm:$0xff] }
 0x249   : > { %v1632_v37 = vsel %vm1277_vm2, %v10567_v13, %v1631_v24  ;;  %v4778_v56 = vunpack.c.l.bf16 %v4507_v4  ;;  %v1717_v23 = vadd.f32 %v1634_v1, %v1524_v63  ;;  %v2435_v30 = vmul.f32 %v10568_v31, %v2241_v15 }
 0x24a   : > { %v1716_v20 = vadd.f32 %v1632_v37, %v1523_v35  ;;  %v2436_v46 = vmul.f32 %v10569_v60, %v2242_v7  ;;  %v2839_v58 = vmul.f32 %v8575_v57, %v10470_v44  ;;  %v4976_v4 = vadd.f32 %v4889_v40, %v4779_v50 }
 0x24b   : > { %v4975_v9 = vadd.f32 %v4887_v54, %v4778_v56  ;;  %v1750_v13 = vpack.c.bf16 %v1717_v23, %v1717_v23  ;;  %v2468_v42 = vpack.c.bf16 %v2435_v30, %v2435_v30  ;;  %v2871_v24 = vpack.c.bf16 %v2838_v48, %v2838_v48 }
 0x24c   : > { %v1749_v14 = vpack.c.bf16 %v1716_v20, %v1716_v20  ;;  %v2469_v35 = vpack.c.bf16 %v2436_v46, %v2436_v46  ;;  %v2872_v5 = vpack.c.bf16 %v2839_v58, %v2839_v58  ;;  %v3142_v63 = vmul.f32 %v8575_v57, %v10366_v33 }
 0x24d   : > { %v5003_v37 = vpack.c.bf16 %v4976_v4, %v4975_v9  ;;  %v2502_v15 = vunpack.c.l.bf16 %v1750_v13  ;;  %v2534_v8 = vunpack.c.l.bf16 %v2468_v42  ;;  %v2904_v54 = vunpack.c.l.bf16 %v2871_v24 }
 0x24e   : > { %v2501_v3 = vunpack.c.l.bf16 %v1749_v14  ;;  %v8737_v56 = vunpack.c.l.bf16 %v2469_v35  ;;  %v2905_v1 = vunpack.c.l.bf16 %v2872_v5  ;;  %v3143_v20 = vmul.f32 %v8616_v21, %v10366_v33  ;;  %v8743_v14 = vld [vmem:[#allocation2 + $0x48] sm:$0xff]  }
 0x24f   : > { %v3174_v40 = vpack.c.bf16 %v3142_v63, %v3142_v63  ;;  %v5081_v7 = vshrl.u32 %v5003_v37, 16  ;;  %v5084_v50 = vshll.u32 %v5003_v37, 16  ;;  %v2612_v23 = vrot.slane %v2534_v8, 2 }
 0x250   : > { %v2937_v30 = vmul.f32 %v2904_v54, %v10557_v41  ;;  %v10195_v48 = vrot.slane %v8737_v56, 2  ;;  %v2938_v9 = vmul.f32 %v2905_v1, %v10558_v55  ;;  %v3175_v42 = vpack.c.bf16 %v3143_v20, %v3143_v20 }
 0x251   : > { %v3239_v46 = vunpack.c.l.bf16 %v3174_v40  ;;  %v5083_v58 = vrot.slane %v5081_v7, 3  ;;  %v5086_v4 = vrot.slane %v5084_v50, 4  ;;  %v10570_v13 = vrot.slane %v8587_v18, 2 }
 0x252   : > { %v2970_v35 = vpack.c.bf16 %v2937_v30, %v2937_v30  ;;  %v2615_v5 = vsel %vm2588_vm4, %v2612_v23, %v10195_v48  ;;  %v2971_v37 = vpack.c.bf16 %v2938_v9, %v2938_v9  ;;  %v8752_v8 = vunpack.c.l.bf16 %v3175_v42 }
 0x253   : > { %v2613_v24 = vsel %vm2588_vm4, %v10570_v13, %v2612_v23  ;;  %v8754_v54 = vor.u32 %v5086_v4, %v5083_v58  ;;  %v2700_v1 = vadd.f32 %v2615_v5, %v2502_v15  ;;  %v8757_v20 = vunpack.c.h.bf16 %v8607_v26  ;;  %v592_v4 = vpop.f32.mrf.mxu0 }
 0x254   : > { %v2699_v63 = vadd.f32 %v2613_v24, %v2501_v3  ;;  %v8760_v40 = vunpack.c.l.bf16 %v8743_v14  ;;  %v3036_v7 = vunpack.c.l.bf16 %v2970_v35  ;;  %v3314_v50 = vrot.slane %v3239_v46, 1 }
 0x255   : > { %v3474_v30 = vmul.f32 %v8575_v57, %v7390_v6  ;;  %v5088_v3 = vsel %vm5035_vm5, %v8593_v29, %v8754_v54  ;;  %v2733_v23 = vpack.c.bf16 %v2700_v1, %v2700_v1  ;;  %v3037_v9 = vunpack.c.l.bf16 %v2971_v37 }
 0x256   : > { %v2732_v18 = vpack.c.bf16 %v2699_v63, %v2699_v63  ;;  %v3475_v15 = vmul.f32 %v8616_v21, %v7390_v6  ;;  %5280 = vmatmul.bf16.gmra.mxu1 %v5088_v3  ;;  %v10198_v42 = vrot.slane %v8752_v8, 1  ;;  %v3915_v46 = vmul.f32 %v8616_v21, %v10491_v38 }
 0x257   : > { %v3507_v58 = vpack.c.bf16 %v3474_v30, %v3474_v30  ;;  %v3004_v13 = vunpack.c.l.bf16 %v2733_v23  ;;  %v3916_v24 = vmul.f32 %v8757_v20, %v10491_v38  ;;  %v4219_v29 = vmul.f32 %v8757_v20, %v10519_v16 }
 0x258   : > { %v3003_v26 = vunpack.c.l.bf16 %v2732_v18  ;;  %v3508_v57 = vpack.c.bf16 %v3475_v15, %v3475_v15  ;;  %v3948_v63 = vpack.c.bf16 %v3915_v46, %v3915_v46  ;;  %v4220_v37 = vmul.f32 %v8760_v40, %v10519_v16 }
 0x259   : > { %v3540_v5 = vunpack.c.l.bf16 %v3507_v58  ;;  %v3070_v1 = vadd.f32 %v3037_v9, %v3004_v13  ;;  %v3949_v30 = vpack.c.bf16 %v3916_v24, %v3916_v24  ;;  %v4251_v3 = vpack.c.bf16 %v4219_v29, %v4219_v29 }
 0x25a   : > { %v3069_v35 = vadd.f32 %v3036_v7, %v3003_v26  ;;  %v3541_v18 = vunpack.c.l.bf16 %v3508_v57  ;;  %v593_v48 = vadd.f32 %v8673_v34, %v592_v4  ;;  %v3981_v17 = vunpack.c.l.bf16 %v3948_v63 }
 0x25b   : > { %v3573_v15 = vmul.f32 %v3540_v5, %v10568_v31  ;;  %v3103_v43 = vpack.c.bf16 %v3070_v1, %v3070_v1  ;;  %v3317_v7 = vsel %vm1277_vm2, %v3314_v50, %v10198_v42  ;;  %v4252_v58 = vpack.c.bf16 %v4220_v37, %v4220_v37 }
 0x25c   : > { %v3102_v23 = vpack.c.bf16 %v3069_v35, %v3069_v35  ;;  %v3574_v26 = vmul.f32 %v3541_v18, %v10569_v60  ;;  %v3982_v9 = vunpack.c.l.bf16 %v3949_v30  ;;  %v8784_v13 = vunpack.c.l.bf16 %v4251_v3 }
 0x25d   : > { %v3606_v61 = vpack.c.bf16 %v3573_v15, %v3573_v15  ;;  %v3207_v57 = vunpack.c.l.bf16 %v3103_v43  ;;  %v10571_v4 = vrot.slane %v8611_v32, 1  ;;  %v4014_v35 = vmul.f32 %v3981_v17, %v10557_v41 }
 0x25e   : > { %v3206_v46 = vunpack.c.l.bf16 %v3102_v23  ;;  %v3607_v29 = vpack.c.bf16 %v3574_v26, %v3574_v26  ;;  %v8792_v5 = vmul.f32 %v8687_v27, %v6671_v10  ;;  %v8796_v63 = vmul.f32 %v8689_v52, %v6671_v10 }
 0x25f   : > { %v3315_v24 = vsel %vm1277_vm2, %v10571_v4, %v3314_v50  ;;  %v3672_v1 = vunpack.c.l.bf16 %v3606_v61  ;;  %v641_v18 = vmax.f32 %v593_v48, 0.0  ;;  %v3400_v30 = vadd.f32 %v3317_v7, %v3207_v57  ;;  %v595_v57 = vpop.f32.mrf.mxu0 }
 0x260   : > { %10572 = vst [vmem:[#allocation16_spill] sm:$0xff] %v8792_v5  ;;  %v3399_v37 = vadd.f32 %v3315_v24, %v3206_v46  ;;  %v8798_v43 = vunpack.c.l.bf16 %v3607_v29  ;;  %v8800_v32 = vunpack.c.l.bf16 %v4252_v58  ;;  %v4015_v41 = vmul.f32 %v3982_v9, %v10558_v55  ;;  %v10575_v55 = vld [vmem:[#allocation12_spill] sm:$0xff] }
 0x261   : > { %10573 = vst [vmem:[#allocation27_spill] sm:$0xff] %v8796_v63  ;;  %v3749_v3 = vrot.slane %v3672_v1, 2  ;;  %v4391_v17 = vrot.slane %v8784_v13, 1  ;;  %v3433_v23 = vpack.c.bf16 %v3400_v30, %v3400_v30  ;;  %v4047_v26 = vpack.c.bf16 %v4014_v35, %v4014_v35 }
 0x262   : > { %v3432_v50 = vpack.c.bf16 %v3399_v37, %v3399_v37  ;;  %v10204_v15 = vrot.slane %v8798_v43, 2  ;;  %v4615_v46 = vmul.f32 %v8757_v20, %v6928_v36  ;;  %v10574_v48 = vrot.slane %v8638_v0, 2  ;;  %v10576_v0 = vld [vmem:[#allocation17_spill] sm:$0xff] }
 0x263   : > { %v4616_v58 = vmul.f32 %v8760_v40, %v6928_v36  ;;  %v808_v9 = vmul.f32 %v10575_v55, %v10335_v2  ;;  %v3640_v13 = vunpack.c.l.bf16 %v3433_v23  ;;  %v596_v29 = vadd.f32 %v8673_v34, %v595_v57 }
 0x264   : > { %v3639_v61 = vunpack.c.l.bf16 %v3432_v50  ;;  %v3750_v7 = vsel %vm2588_vm4, %v10574_v48, %v3749_v3  ;;  %v3752_v4 = vsel %vm2588_vm4, %v3749_v3, %v10204_v15  ;;  %v4648_v24 = vpack.c.bf16 %v4615_v46, %v4615_v46 }
 0x265   : > { %v4649_v37 = vpack.c.bf16 %v4616_v58, %v4616_v58  ;;  %v809_v1 = vmul.f32 %v10576_v0, %v10335_v2  ;;  %v841_v30 = vpack.c.bf16 %v808_v9, %v808_v9  ;;  %v3837_v50 = vadd.f32 %v3752_v4, %v3640_v13  ;;  %v10577_v58 = vld [vmem:[#allocation73_spill] sm:$0xff] }
 0x266   : > { %v3836_v35 = vadd.f32 %v3750_v7, %v3639_v61  ;;  %v4048_v48 = vpack.c.bf16 %v4015_v41, %v4015_v41  ;;  %v4681_v42 = vunpack.c.l.bf16 %v4648_v24  ;;  %v642_v63 = vmax.f32 %v596_v29, 0.0 }
 0x267   : > { %v4682_v55 = vunpack.c.l.bf16 %v4649_v37  ;;  %v842_v23 = vpack.c.bf16 %v809_v1, %v809_v1  ;;  %v1194_v5 = vunpack.c.l.bf16 %v841_v30  ;;  %v3870_v51 = vpack.c.bf16 %v3837_v50, %v3837_v50  ;;  %v10581_v30 = vld [vmem:[#allocation101_spill] sm:$0xff] }
 0x268   : > { %v3869_v52 = vpack.c.bf16 %v3836_v35, %v3836_v35  ;;  %v4113_v11 = vunpack.c.l.bf16 %v4047_v26  ;;  %v4714_v3 = vmul.f32 %v4681_v42, %v10568_v31  ;;  %v5947_v46 = vpack.c.bf16 %v642_v63, %v641_v18  ;;  %v10578_v35 = vld [vmem:[#allocation24_spill] sm:$0xff]  ;;  %v10579_v26 = vld [vmem:[#allocation51_spill] sm:$0xff] }
 0x269   : > { %v4715_v61 = vmul.f32 %v4682_v55, %v10569_v60  ;;  %v1195_v7 = vunpack.c.l.bf16 %v842_v23  ;;  %v1388_v0 = vmul.f32 %v10577_v58, %v1194_v5  ;;  %v4081_v9 = vunpack.c.l.bf16 %v3870_v51 }
 0x26a   : > { %v4080_v57 = vunpack.c.l.bf16 %v3869_v52  ;;  %v4114_v13 = vunpack.c.l.bf16 %v4048_v48  ;;  %v10201_v41 = vrot.slane %v8800_v32, 1  ;;  %v4747_v4 = vpack.c.bf16 %v4714_v3, %v4714_v3  ;;  %6299 = vst [vmem:[#allocation2 + $0x60] sm:$0xff] %v5947_v46  }
 0x26b   : > { %v4748_v29 = vpack.c.bf16 %v4715_v61, %v4715_v61  ;;  %v1389_v37 = vmul.f32 %v10578_v35, %v1195_v7  ;;  %v1493_v31 = vpack.c.bf16 %v10579_v26, %v10579_v26  ;;  %v8827_v63 = vunpack.c.l.bf16 %v5947_v46 }
 0x26c   : > { %v4146_v24 = vadd.f32 %v4113_v11, %v4080_v57  ;;  %v4147_v42 = vadd.f32 %v4114_v13, %v4081_v9  ;;  %v4813_v52 = vunpack.c.l.bf16 %v4747_v4  ;;  %v1421_v60 = vpack.c.bf16 %v1388_v0, %v1388_v0 }
 0x26d   : > { %v10580_v51 = vrot.slane %v8657_v45, 1  ;;  %v8832_v1 = vunpack.c.l.bf16 %v4748_v29  ;;  %v1494_v11 = vpack.c.bf16 %v10581_v30, %v10581_v30  ;;  %v4394_v48 = vsel %vm1277_vm2, %v4391_v17, %v10201_v41 }
 0x26e   : > { %v4179_v18 = vpack.c.bf16 %v4146_v24, %v4146_v24  ;;  %v4180_v50 = vpack.c.bf16 %v4147_v42, %v4147_v42  ;;  %v4890_v55 = vrot.slane %v4813_v52, 2  ;;  %v1422_v23 = vpack.c.bf16 %v1389_v37, %v1389_v37  ;;  %v10585_v42 = vld [vmem:[#allocation105_spill] sm:$0xff] }
 0x26f   : > { %v4392_v5 = vsel %vm1277_vm2, %v10580_v51, %v4391_v17  ;;  %v10200_v57 = vrot.slane %v8832_v1, 2  ;;  %v8840_v61 = vunpack.c.h.bf16 %v5947_v46  ;;  %v1558_v45 = vunpack.c.l.bf16 %v1493_v31  ;;  %v10584_v31 = vld [vmem:[#allocation44_spill] sm:$0xff] }
 0x270   : > { %v4283_v3 = vunpack.c.l.bf16 %v4179_v18  ;;  %v4284_v7 = vunpack.c.l.bf16 %v4180_v50  ;;  %v10583_v0 = vrot.slane %v8696_v49, 2  ;;  %v8847_v13 = vmul.f32 %v8827_v63, %v10326_v19 }
 0x271   : > { %10582 = vst [vmem:[#allocation7_spill] sm:$0xff] %v8840_v61  ;;  %v1525_v4 = vunpack.c.l.bf16 %v1421_v60  ;;  %v1526_v17 = vunpack.c.l.bf16 %v1422_v23  ;;  %v8849_v29 = vunpack.c.l.bf16 %v1494_v11  ;;  %v1635_v37 = vrot.slane %v1558_v45, 1 }
 0x272   : > { %v4891_v9 = vsel %vm2588_vm4, %v10583_v0, %v4890_v55  ;;  %v4476_v24 = vadd.f32 %v4392_v5, %v4283_v3  ;;  %v4477_v26 = vadd.f32 %v4394_v48, %v4284_v7  ;;  %v4893_v46 = vsel %vm2588_vm4, %v4890_v55, %v10200_v57 }
 0x273   : > { %v1890_v49 = vpack.c.bf16 %v10584_v31, %v10584_v31  ;;  %v1891_v52 = vpack.c.bf16 %v10585_v42, %v10585_v42  ;;  %v10586_v51 = vrot.slane %v8710_v59, 1  ;;  %v10202_v5 = vrot.slane %v8849_v29, 1  ;;  %v10587_v31 = vld [vmem:[#allocation74_spill] sm:$0xff] }
 0x274   : > { %v4509_v18 = vpack.c.bf16 %v4476_v24, %v4476_v24  ;;  %v2840_v30 = vmul.f32 %v8616_v21, %v10470_v44  ;;  %v4510_v11 = vpack.c.bf16 %v4477_v26, %v4477_v26  ;;  %v2841_v45 = vmul.f32 %v8757_v20, %v10470_v44  ;;  %v10588_v21 = vld [vmem:[#allocation75_spill] sm:$0xff] }
 0x275   : > { %v1636_v60 = vsel %vm1277_vm2, %v10586_v51, %v1635_v37  ;;  %v2243_v48 = vunpack.c.l.bf16 %v1890_v49  ;;  %v2244_v55 = vunpack.c.l.bf16 %v1891_v52  ;;  %v1638_v3 = vsel %vm1277_vm2, %v1635_v37, %v10202_v5 }
 0x276   : > { %v1718_v50 = vadd.f32 %v1636_v60, %v1525_v4  ;;  %v4780_v23 = vunpack.c.l.bf16 %v4509_v18  ;;  %v2873_v59 = vpack.c.bf16 %v2840_v30, %v2840_v30  ;;  %v4781_v7 = vunpack.c.l.bf16 %v4510_v11 }
 0x277   : > { %v1719_v0 = vadd.f32 %v1638_v3, %v1526_v17  ;;  %v2437_v42 = vmul.f32 %v10587_v31, %v2243_v48  ;;  %v2438_v26 = vmul.f32 %v10588_v21, %v2244_v55  ;;  %v2874_v4 = vpack.c.bf16 %v2841_v45, %v2841_v45 }
 0x278   : > { %v1751_v24 = vpack.c.bf16 %v1718_v50, %v1718_v50  ;;  %v4977_v51 = vadd.f32 %v4891_v9, %v4780_v23  ;;  %v2906_v49 = vunpack.c.l.bf16 %v2873_v59  ;;  %v4978_v52 = vadd.f32 %v4893_v46, %v4781_v7 }
 0x279   : > { %v1752_v18 = vpack.c.bf16 %v1719_v0, %v1719_v0  ;;  %v2470_v60 = vpack.c.bf16 %v2437_v42, %v2437_v42  ;;  %v2471_v41 = vpack.c.bf16 %v2438_v26, %v2438_v26  ;;  %v2907_v37 = vunpack.c.l.bf16 %v2874_v4 }
 0x27a   : > { %v2503_v57 = vunpack.c.l.bf16 %v1751_v24  ;;  %v2939_v5 = vmul.f32 %v2906_v49, %v10577_v58  ;;  %v3144_v30 = vmul.f32 %v8757_v20, %v10366_v33  ;;  %v5004_v17 = vpack.c.bf16 %v4978_v52, %v4977_v51 }
 0x27b   : > { %v2504_v11 = vunpack.c.l.bf16 %v1752_v18  ;;  %v2536_v50 = vunpack.c.l.bf16 %v2470_v60  ;;  %v3145_v9 = vmul.f32 %v8760_v40, %v10366_v33  ;;  %v8876_v48 = vunpack.c.l.bf16 %v2471_v41 }
 0x27c   : > { %v2940_v46 = vmul.f32 %v2907_v37, %v10578_v35  ;;  %v2972_v55 = vpack.c.bf16 %v2939_v5, %v2939_v5  ;;  %v3176_v23 = vpack.c.bf16 %v3144_v30, %v3144_v30  ;;  %v5090_v3 = vshrl.u32 %v5004_v17, 16 }
 0x27d   : > { %v5093_v45 = vshll.u32 %v5004_v17, 16  ;;  %v2616_v59 = vrot.slane %v2536_v50, 2  ;;  %v3177_v7 = vpack.c.bf16 %v3145_v9, %v3145_v9  ;;  %v8881_v0 = vmul.f32 %v8840_v61, %v10326_v19 }
 0x27e   : > { %v8885_v24 = vmul.f32 %v8827_v63, %v6671_v10  ;;  %v10203_v42 = vrot.slane %v8876_v48, 2  ;;  %v2973_v41 = vpack.c.bf16 %v2940_v46, %v2940_v46  ;;  %v5092_v51 = vrot.slane %v5090_v3, 3 }
 0x27f   : > { %10589 = vst [vmem:[#allocation18_spill] sm:$0xff] %v8881_v0  ;;  %v5095_v26 = vrot.slane %v5093_v45, 4  ;;  %v10591_v5 = vrot.slane %v8737_v56, 2  ;;  %v8891_v49 = vunpack.c.l.bf16 %v3177_v7  ;;  %v8897_v60 = vunpack.c.h.bf16 %v8743_v14 }
 0x280   : > { %10590 = vst [vmem:[#allocation66_spill] sm:$0xff] %v8885_v24  ;;  %v2619_v52 = vsel %vm2588_vm4, %v2616_v59, %v10203_v42  ;;  %v3038_v37 = vunpack.c.l.bf16 %v2972_v55  ;;  %v3241_v50 = vunpack.c.l.bf16 %v3176_v23  ;;  %v3476_v56 = vmul.f32 %v8757_v20, %v7390_v6 }
 0x281   : > { %v2617_v4 = vsel %vm2588_vm4, %v10591_v5, %v2616_v59  ;;  %v8899_v30 = vor.u32 %v5095_v26, %v5092_v51  ;;  %v2702_v17 = vadd.f32 %v2619_v52, %v2504_v11  ;;  %v3039_v46 = vunpack.c.l.bf16 %v2973_v41  ;;  %v597_v41 = vpop.f32.mrf.mxu0 }
 0x282   : > { %v2701_v18 = vadd.f32 %v2617_v4, %v2503_v57  ;;  %v3477_v3 = vmul.f32 %v8760_v40, %v7390_v6  ;;  %v3917_v45 = vmul.f32 %v8760_v40, %v10491_v38  ;;  %v3509_v11 = vpack.c.bf16 %v3476_v56, %v3476_v56 }
 0x283   : > { %v5097_v14 = vsel %vm5035_vm5, %v8754_v54, %v8899_v30  ;;  %v2735_v57 = vpack.c.bf16 %v2702_v17, %v2702_v17  ;;  %v3918_v20 = vmul.f32 %v8897_v60, %v10491_v38  ;;  %v4221_v5 = vmul.f32 %v8897_v60, %v10519_v16 }
 0x284   : > { %v2734_v9 = vpack.c.bf16 %v2701_v18, %v2701_v18  ;;  %5285 = vmatmul.bf16.gmra.mxu1 %v5097_v14  ;;  %v3510_v59 = vpack.c.bf16 %v3477_v3, %v3477_v3  ;;  %v3950_v7 = vpack.c.bf16 %v3917_v45, %v3917_v45  ;;  %v3542_v26 = vunpack.c.l.bf16 %v3509_v11 }
 0x285   : > { %v3006_v51 = vunpack.c.l.bf16 %v2735_v57  ;;  %v4222_v54 = vmul.f32 %v8533_v12, %v10519_v16  ;;  %v3951_v18 = vpack.c.bf16 %v3918_v20, %v3918_v20  ;;  %v4253_v14 = vpack.c.bf16 %v4221_v5, %v4221_v5  ;;  %v8933_v5 = vld [vmem:[#allocation2 + $0x50] sm:$0xff]  }
 0x286   : > { %v3005_v23 = vunpack.c.l.bf16 %v2734_v9  ;;  %v3543_v52 = vunpack.c.l.bf16 %v3510_v59  ;;  %v3983_v17 = vunpack.c.l.bf16 %v3950_v7  ;;  %v3318_v9 = vrot.slane %v3241_v50, 1 }
 0x287   : > { %v3072_v56 = vadd.f32 %v3039_v46, %v3006_v51  ;;  %v3575_v3 = vmul.f32 %v3542_v26, %v10587_v31  ;;  %v598_v45 = vadd.f32 %v8673_v34, %v597_v41  ;;  %v4254_v11 = vpack.c.bf16 %v4222_v54, %v4222_v54 }
 0x288   : > { %v3071_v4 = vadd.f32 %v3038_v37, %v3005_v23  ;;  %v3576_v57 = vmul.f32 %v3543_v52, %v10588_v21  ;;  %v3984_v0 = vunpack.c.l.bf16 %v3951_v18  ;;  %v4016_v24 = vmul.f32 %v3983_v17, %v10577_v58 }
 0x289   : > { %v3105_v15 = vpack.c.bf16 %v3072_v56, %v3072_v56  ;;  %v3608_v55 = vpack.c.bf16 %v3575_v3, %v3575_v3  ;;  %v10592_v23 = vrot.slane %v8891_v49, 1  ;;  %v8924_v59 = vunpack.c.l.bf16 %v4253_v14 }
 0x28a   : > { %v3104_v42 = vpack.c.bf16 %v3071_v4, %v3071_v4  ;;  %v3609_v50 = vpack.c.bf16 %v3576_v57, %v3576_v57  ;;  %v8928_v20 = vmul.f32 %v8840_v61, %v6671_v10  ;;  %v10594_v41 = vrot.slane %v8752_v8, 1 }
 0x28b   : > { %v3321_v46 = vsel %vm1277_vm2, %v3318_v9, %v10592_v23  ;;  %v3209_v7 = vunpack.c.l.bf16 %v3105_v15  ;;  %v3674_v26 = vunpack.c.l.bf16 %v3608_v55  ;;  %v643_v58 = vmax.f32 %v598_v45, 0.0  ;;  %v600_v23 = vpop.f32.mrf.mxu0 }
 0x28c   : > { %v3208_v37 = vunpack.c.l.bf16 %v3104_v42  ;;  %10593 = vst [vmem:[#allocation9_spill] sm:$0xff] %v8928_v20  ;;  %v3319_v51 = vsel %vm1277_vm2, %v10594_v41, %v3318_v9  ;;  %v8935_v54 = vunpack.c.l.bf16 %v3609_v50  ;;  %v8937_v4 = vunpack.c.l.bf16 %v4254_v11  ;;  %v10596_v11 = vld [vmem:[#allocation93_spill] sm:$0xff] }
 0x28d   : > { %v3402_v52 = vadd.f32 %v3321_v46, %v3209_v7  ;;  %v3753_v18 = vrot.slane %v3674_v26, 2  ;;  %v4017_v17 = vmul.f32 %v3984_v0, %v10578_v35  ;;  %v4049_v56 = vpack.c.bf16 %v4016_v24, %v4016_v24  ;;  %v10597_v46 = vld [vmem:[#allocation94_spill] sm:$0xff] }
 0x28e   : > { %v3401_v42 = vadd.f32 %v3319_v51, %v3208_v37  ;;  %v10205_v15 = vrot.slane %v8935_v54, 2  ;;  %v4395_v8 = vrot.slane %v8924_v59, 1  ;;  %v6179_v55 = vunpack.c.l.bf16 %v8933_v5 }
 0x28f   : > { %v3435_v9 = vpack.c.bf16 %v3402_v52, %v3402_v52  ;;  %v10595_v14 = vrot.slane %v8798_v43, 2  ;;  %v4617_v57 = vmul.f32 %v8897_v60, %v6928_v36  ;;  %v810_v37 = vmul.f32 %v10596_v11, %v10335_v2  ;;  %v5893_v43 = vld [vmem:[%s9988_s8 + $0x38] sm:$0xff] }
 0x290   : > { %v3434_v3 = vpack.c.bf16 %v3401_v42, %v3401_v42  ;;  %v3756_v0 = vsel %vm2588_vm4, %v3753_v18, %v10205_v15  ;;  %v4618_v24 = vmul.f32 %v6179_v55, %v6928_v36  ;;  %v811_v50 = vmul.f32 %v10597_v46, %v10335_v2  ;;  %5457 = vmatpush.bf16.msra.mxu2 %v5893_v43 }
 0x291   : > { %v3754_v45 = vsel %vm2588_vm4, %v10595_v14, %v3753_v18  ;;  %v3642_v59 = vunpack.c.l.bf16 %v3435_v9  ;;  %v4650_v7 = vpack.c.bf16 %v4617_v57, %v4617_v57  ;;  %v601_v41 = vadd.f32 %v8673_v34, %v600_v23  ;;  %6388 = vmatpush.bf16.msra.mxu3 %v5893_v43 }
 0x292   : > { %v3641_v35 = vunpack.c.l.bf16 %v3434_v3  ;;  %v843_v51 = vpack.c.bf16 %v810_v37, %v810_v37  ;;  %v4050_v42 = vpack.c.bf16 %v4017_v17, %v4017_v17  ;;  %v4651_v52 = vpack.c.bf16 %v4618_v24, %v4618_v24  ;;  %v10598_v24 = vld [vmem:[#allocation34_spill] sm:$0xff] }
 0x293   : > { %v844_v18 = vpack.c.bf16 %v811_v50, %v811_v50  ;;  %v3839_v3 = vadd.f32 %v3756_v0, %v3642_v59  ;;  %v4683_v55 = vunpack.c.l.bf16 %v4650_v7  ;;  %v644_v14 = vmax.f32 %v601_v41, 0.0 }
 0x294   : > { %v3838_v26 = vadd.f32 %v3754_v45, %v3641_v35  ;;  %v1196_v11 = vunpack.c.l.bf16 %v843_v51  ;;  %v10207_v20 = vrot.slane %v8937_v4, 1  ;;  %v4684_v61 = vunpack.c.l.bf16 %v4651_v52 }
 0x295   : > { %v1197_v46 = vunpack.c.l.bf16 %v844_v18  ;;  %v3872_v9 = vpack.c.bf16 %v3839_v3, %v3839_v3  ;;  %v4115_v57 = vunpack.c.l.bf16 %v4049_v56  ;;  %v4716_v23 = vmul.f32 %v4683_v55, %v10587_v31  ;;  %v10600_v56 = vld [vmem:[#allocation102_spill] sm:$0xff] }
 0x296   : > { %v3871_v15 = vpack.c.bf16 %v3838_v26, %v3838_v26  ;;  %v5952_v37 = vpack.c.bf16 %v644_v14, %v643_v58  ;;  %v4116_v17 = vunpack.c.l.bf16 %v4050_v42  ;;  %v4717_v35 = vmul.f32 %v4684_v61, %v10588_v21  ;;  %v10599_v26 = vld [vmem:[#allocation10_spill] sm:$0xff] }
 0x297   : > { %v1390_v0 = vmul.f32 %v10598_v24, %v1196_v11  ;;  %v4083_v50 = vunpack.c.l.bf16 %v3872_v9  ;;  %v4749_v59 = vpack.c.bf16 %v4716_v23, %v4716_v23  ;;  %v1391_v52 = vmul.f32 %v10599_v26, %v1197_v46  ;;  %v602_v11 = vpop.f32.mrf.mxu0 }
 0x298   : > { %v4082_v45 = vunpack.c.l.bf16 %v3871_v15  ;;  %6300 = vst [vmem:[#allocation2 + $0x68] sm:$0xff] %v5952_v37   ;;  %v8964_v43 = vunpack.c.l.bf16 %v5952_v37  ;;  %v6020_v7 = vunpack.c.h.bf16 %v5952_v37  ;;  %v4750_v51 = vpack.c.bf16 %v4717_v35, %v4717_v35 }
 0x299   : > { %v1495_v31 = vpack.c.bf16 %v10600_v56, %v10600_v56  ;;  %v4149_v58 = vadd.f32 %v4116_v17, %v4083_v50  ;;  %v10601_v15 = vrot.slane %v8800_v32, 1  ;;  %v4398_v21 = vsel %vm1277_vm2, %v4395_v8, %v10207_v20  ;;  %v10604_v20 = vld [vmem:[#allocation106_spill] sm:$0xff] }
 0x29a   : > { %v4148_v41 = vadd.f32 %v4115_v57, %v4082_v45  ;;  %v4815_v42 = vunpack.c.l.bf16 %v4749_v59  ;;  %v8975_v3 = vunpack.c.l.bf16 %v4750_v51  ;;  %v8979_v55 = vmul.f32 %v8964_v43, %v10335_v2 }
 0x29b   : > { %v4396_v61 = vsel %vm1277_vm2, %v10601_v15, %v4395_v8  ;;  %v1473_v14 = vmul.f32 %v6020_v7, %v10326_v19  ;;  %v4182_v46 = vpack.c.bf16 %v4149_v58, %v4149_v58  ;;  %v1423_v32 = vpack.c.bf16 %v1390_v0, %v1390_v0 }
 0x29c   : > { %v4181_v18 = vpack.c.bf16 %v4148_v41, %v4148_v41  ;;  %v4894_v9 = vrot.slane %v4815_v42, 2  ;;  %v1496_v57 = vpack.c.bf16 %v8325_v22, %v8325_v22  ;;  %v8985_v8 = vmul.f32 %v6020_v7, %v10335_v2 }
 0x29d   : > { %v1424_v37 = vpack.c.bf16 %v1391_v52, %v1391_v52  ;;  %v1560_v45 = vunpack.c.l.bf16 %v1495_v31  ;;  %v4286_v17 = vunpack.c.l.bf16 %v4182_v46  ;;  %v10208_v35 = vrot.slane %v8975_v3, 2 }
 0x29e   : > { %v4285_v23 = vunpack.c.l.bf16 %v4181_v18  ;;  %10602 = vst [vmem:[#allocation69_spill] sm:$0xff] %v8985_v8  ;;  %v8990_v50 = vmul.f32 %v8964_v43, %v10326_v19  ;;  %v603_v59 = vadd.f32 %v8673_v34, %v602_v11  ;;  %v10603_v0 = vrot.slane %v8832_v1, 2  ;;  %v10605_v11 = vld [vmem:[#allocation25_spill] sm:$0xff] }
 0x29f   : > { %v1505_v56 = vpack.c.bf16 %v1473_v14, %v1473_v14  ;;  %v4479_v52 = vadd.f32 %v4398_v21, %v4286_v17  ;;  %v1869_v31 = vmul.f32 %v6020_v7, %v6671_v10  ;;  %v1527_v15 = vunpack.c.l.bf16 %v1423_v32 }
 0x2a0   : > { %v4478_v41 = vadd.f32 %v4396_v61, %v4285_v23  ;;  %v4895_v22 = vsel %vm2588_vm4, %v10603_v0, %v4894_v9  ;;  %v645_v58 = vmax.f32 %v603_v59, 0.0  ;;  %v8999_v18 = vunpack.c.l.bf16 %v1496_v57 }
 0x2a1   : > { %v1639_v46 = vrot.slane %v1560_v45, 1  ;;  %v1892_v34 = vpack.c.bf16 %v10604_v20, %v10604_v20  ;;  %v4512_v61 = vpack.c.bf16 %v4479_v52, %v4479_v52  ;;  %v4897_v1 = vsel %vm2588_vm4, %v4894_v9, %v10208_v35 }
 0x2a2   : > { %v4511_v42 = vpack.c.bf16 %v4478_v41, %v4478_v41  ;;  %v10606_v23 = vmax.f32 %v10605_v11, 0.0  ;;  %v1893_v7 = vpack.c.bf16 %v8342_v25, %v8342_v25  ;;  %v10607_v32 = vrot.slane %v8849_v29, 1 }
 0x2a3   : > { %v10209_v45 = vrot.slane %v8999_v18, 1  ;;  %v2245_v17 = vunpack.c.l.bf16 %v1892_v34  ;;  %v4783_v20 = vunpack.c.l.bf16 %v4512_v61  ;;  %v1902_v59 = vpack.c.bf16 %v1869_v31, %v1869_v31  ;;  %v10611_v61 = vld [vmem:[#allocation3_spill] sm:$0xff] }
 0x2a4   : > { %v5957_v14 = vpack.c.bf16 %v10606_v23, %v645_v58  ;;  %v4782_v21 = vunpack.c.l.bf16 %v4511_v42  ;;  %v1640_v57 = vsel %vm1277_vm2, %v10607_v32, %v1639_v46  ;;  %v1528_v41 = vunpack.c.l.bf16 %v1424_v37  ;;  %v10609_v58 = vld [vmem:[#allocation81_spill] sm:$0xff] }
 0x2a5   : > { %v1720_v0 = vadd.f32 %v1640_v57, %v1527_v15  ;;  %v1642_v52 = vsel %vm1277_vm2, %v1639_v46, %v10209_v45  ;;  %v2246_v25 = vunpack.c.l.bf16 %v1893_v7  ;;  %v2439_v42 = vmul.f32 %v10609_v58, %v2245_v17 }
 0x2a6   : > { %6301 = vst [vmem:[#allocation2 + $0x70] sm:$0xff] %v5957_v14   ;;  %v9014_v9 = vunpack.c.l.bf16 %v5957_v14  ;;  %v4979_v29 = vadd.f32 %v4895_v22, %v4782_v21  ;;  %v4980_v11 = vadd.f32 %v4897_v1, %v4783_v20  ;;  %v9024_v31 = vmul.f32 %v8964_v43, %v6671_v10 }
 0x2a7   : > { %v9026_v37 = vunpack.c.l.bf16 %v1505_v56  ;;  %v1721_v15 = vadd.f32 %v1642_v52, %v1528_v41  ;;  %v1753_v34 = vpack.c.bf16 %v1720_v0, %v1720_v0  ;;  %v2440_v32 = vmul.f32 %v10611_v61, %v2246_v25  ;;  %v6416_v52 = vld [vmem:[#allocation2 + $0x50] sm:$0xff] }
 0x2a8   : > { %10608 = vst [vmem:[#allocation70_spill] sm:$0xff] %v9014_v9  ;;  %v5005_v57 = vpack.c.bf16 %v4980_v11, %v4979_v29  ;;  %v9029_v46 = vunpack.c.l.bf16 %v1902_v59  ;;  %v9031_v7 = vunpack.c.h.bf16 %v5957_v14  ;;  %v2472_v22 = vpack.c.bf16 %v2439_v42, %v2439_v42 }
 0x2a9   : > { %10610 = vst [vmem:[#allocation50_spill] sm:$0xff] %v9026_v37  ;;  %v9035_v1 = vmul.f32 %v9014_v9, %v10326_v19  ;;  %v9039_v21 = vmul.f32 %v9014_v9, %v6671_v10  ;;  %v1754_v56 = vpack.c.bf16 %v1721_v15, %v1721_v15  ;;  %v2473_v17 = vpack.c.bf16 %v2440_v32, %v2440_v32 }
 0x2aa   : > { %10612 = vst [vmem:[#allocation11_spill] sm:$0xff] %v9029_v46  ;;  %v5099_v20 = vshrl.u32 %v5005_v57, 16  ;;  %v5102_v41 = vshll.u32 %v5005_v57, 16  ;;  %v2505_v0 = vunpack.c.l.bf16 %v1753_v34  ;;  %v9041_v25 = vunpack.c.h.bf16 %v6416_v52 }
 0x2ab   : > { %10613 = vst [vmem:[#allocation77_spill] sm:$0xff] %v9031_v7  ;;  %v2506_v59 = vunpack.c.l.bf16 %v1754_v56  ;;  %v2538_v14 = vunpack.c.l.bf16 %v2472_v22  ;;  %v9043_v29 = vunpack.c.l.bf16 %v2473_v17  ;;  %v2842_v42 = vmul.f32 %v8760_v40, %v10470_v44 }
 0x2ac   : > { %v5101_v11 = vrot.slane %v5099_v20, 3  ;;  %v5104_v23 = vrot.slane %v5102_v41, 4  ;;  %v2843_v51 = vmul.f32 %v8897_v60, %v10470_v44  ;;  %v3146_v15 = vmul.f32 %v8897_v60, %v10366_v33 }
 0x2ad   : > { %v2620_v32 = vrot.slane %v2538_v14, 2  ;;  %v10211_v34 = vrot.slane %v9043_v29, 2  ;;  %v2875_v57 = vpack.c.bf16 %v2842_v42, %v2842_v42  ;;  %v3147_v22 = vmul.f32 %v8533_v12, %v10366_v33 }
 0x2ae   : > { %v9054_v56 = vor.u32 %v5104_v23, %v5101_v11  ;;  %v2876_v17 = vpack.c.bf16 %v2843_v51, %v2843_v51  ;;  %v3178_v52 = vpack.c.bf16 %v3146_v15, %v3146_v15  ;;  %v3478_v40 = vmul.f32 %v8897_v60, %v7390_v6 }
 0x2af   : > { %v10614_v20 = vrot.slane %v8876_v48, 2  ;;  %v2623_v14 = vsel %vm2588_vm4, %v2620_v32, %v10211_v34  ;;  %v2908_v35 = vunpack.c.l.bf16 %v2875_v57  ;;  %v3179_v42 = vpack.c.bf16 %v3147_v22, %v3147_v22 }
 0x2b0   : > { %v5106_v23 = vsel %vm5035_vm5, %v8899_v30, %v9054_v56  ;;  %v2704_v51 = vadd.f32 %v2623_v14, %v2506_v59  ;;  %v2909_v15 = vunpack.c.l.bf16 %v2876_v17  ;;  %v3243_v45 = vunpack.c.l.bf16 %v3178_v52 }
 0x2b1   : > { %v2621_v41 = vsel %vm2588_vm4, %v10614_v20, %v2620_v32  ;;  %5290 = vmatmul.bf16.gmra.mxu1 %v5106_v23  ;;  %v2941_v60 = vmul.f32 %v2908_v35, %v10598_v24  ;;  %v9068_v48 = vunpack.c.l.bf16 %v3179_v42  ;;  %v3479_v20 = vmul.f32 %v8533_v12, %v7390_v6 }
 0x2b2   : > { %v2703_v11 = vadd.f32 %v2621_v41, %v2505_v0  ;;  %v2737_v32 = vpack.c.bf16 %v2704_v51, %v2704_v51  ;;  %v2942_v57 = vmul.f32 %v2909_v15, %v10599_v26  ;;  %v3511_v22 = vpack.c.bf16 %v3478_v40, %v3478_v40 }
 0x2b3   : > { %v2974_v34 = vpack.c.bf16 %v2941_v60, %v2941_v60  ;;  %v3322_v10 = vrot.slane %v3243_v45, 1  ;;  %v10213_v30 = vrot.slane %v9068_v48, 1  ;;  %v3512_v0 = vpack.c.bf16 %v3479_v20, %v3479_v20 }
 0x2b4   : > { %v2736_v9 = vpack.c.bf16 %v2703_v11, %v2703_v11  ;;  %v2975_v59 = vpack.c.bf16 %v2942_v57, %v2942_v57  ;;  %v3008_v41 = vunpack.c.l.bf16 %v2737_v32  ;;  %v3544_v35 = vunpack.c.l.bf16 %v3511_v22 }
 0x2b5   : > { %v3040_v52 = vunpack.c.l.bf16 %v2974_v34  ;;  %v10615_v14 = vrot.slane %v8891_v49, 1  ;;  %v3325_v23 = vsel %vm1277_vm2, %v3322_v10, %v10213_v30  ;;  %v3545_v11 = vunpack.c.l.bf16 %v3512_v0 }
 0x2b6   : > { %v3007_v17 = vunpack.c.l.bf16 %v2736_v9  ;;  %v3041_v40 = vunpack.c.l.bf16 %v2975_v59  ;;  %v3577_v45 = vmul.f32 %v3544_v35, %v10609_v58  ;;  %v3919_v51 = vmul.f32 %v8533_v12, %v10491_v38 }
 0x2b7   : > { %v3323_v42 = vsel %vm1277_vm2, %v10615_v14, %v3322_v10  ;;  %v3920_v9 = vmul.f32 %v9041_v25, %v10491_v38  ;;  %v3578_v34 = vmul.f32 %v3545_v11, %v10611_v61  ;;  %v4223_v49 = vmul.f32 %v9041_v25, %v10519_v16 }
 0x2b8   : > { %v3073_v15 = vadd.f32 %v3040_v52, %v3007_v17  ;;  %v4224_v60 = vmul.f32 %v8687_v27, %v10519_v16  ;;  %v3074_v10 = vadd.f32 %v3041_v40, %v3008_v41  ;;  %v3610_v20 = vpack.c.bf16 %v3577_v45, %v3577_v45 }
 0x2b9   : > { %v3952_v32 = vpack.c.bf16 %v3919_v51, %v3919_v51  ;;  %v3953_v57 = vpack.c.bf16 %v3920_v9, %v3920_v9  ;;  %v3611_v0 = vpack.c.bf16 %v3578_v34, %v3578_v34  ;;  %v4255_v59 = vpack.c.bf16 %v4223_v49, %v4223_v49 }
 0x2ba   : > { %v3106_v22 = vpack.c.bf16 %v3073_v15, %v3073_v15  ;;  %v4256_v35 = vpack.c.bf16 %v4224_v60, %v4224_v60  ;;  %v3107_v14 = vpack.c.bf16 %v3074_v10, %v3074_v10  ;;  %v3676_v30 = vunpack.c.l.bf16 %v3610_v20 }
 0x2bb   : > { %v3985_v7 = vunpack.c.l.bf16 %v3952_v32  ;;  %v3986_v17 = vunpack.c.l.bf16 %v3953_v57  ;;  %v9090_v11 = vunpack.c.l.bf16 %v3611_v0  ;;  %v4320_v19 = vunpack.c.l.bf16 %v4255_v59 }
 0x2bc   : > { %v3210_v52 = vunpack.c.l.bf16 %v3106_v22  ;;  %v9092_v46 = vunpack.c.l.bf16 %v4256_v35  ;;  %v3211_v37 = vunpack.c.l.bf16 %v3107_v14  ;;  %v3757_v8 = vrot.slane %v3676_v30, 2  ;;  %v9103_v30 = vld [vmem:[#allocation2 + $0x58] sm:$0xff]  }
 0x2bd   : > { %v4018_v41 = vmul.f32 %v3985_v7, %v10598_v24  ;;  %v4019_v40 = vmul.f32 %v3986_v17, %v10599_v26  ;;  %v3759_v51 = vrot.slane %v9090_v11, 2  ;;  %v4399_v9 = vrot.slane %v4320_v19, 1  ;;  %v10627_v11 = vld [vmem:[#allocation67_spill] sm:$0xff] }
 0x2be   : > { %v3403_v45 = vadd.f32 %v3323_v42, %v3210_v52  ;;  %v4401_v15 = vrot.slane %v9092_v46, 1  ;;  %v3404_v49 = vadd.f32 %v3325_v23, %v3211_v37  ;;  %v10616_v60 = vrot.slane %v8935_v54, 2 }
 0x2bf   : > { %v4051_v20 = vpack.c.bf16 %v4018_v41, %v4018_v41  ;;  %v3760_v26 = vsel %vm2588_vm4, %v3757_v8, %v3759_v51  ;;  %v4052_v7 = vpack.c.bf16 %v4019_v40, %v4019_v40  ;;  %v10617_v19 = vrot.slane %v8937_v4, 1  ;;  %v5261_v41 = vpop.f32.mrf.mxu1 }
 0x2c0   : > { %v3758_v10 = vsel %vm2588_vm4, %v10616_v60, %v3757_v8  ;;  %v3436_v24 = vpack.c.bf16 %v3403_v45, %v3403_v45  ;;  %v3437_v32 = vpack.c.bf16 %v3404_v49, %v3404_v49  ;;  %v9116_v54 = vsel %vm1277_vm2, %v4399_v9, %v4401_v15  ;;  %v5892_v8 = vld [vmem:[%s9988_s8 + $0x30] sm:$0xff] }
 0x2c1   : > { %v9111_v42 = vsel %vm1277_vm2, %v10617_v19, %v4399_v9  ;;  %v4117_v37 = vunpack.c.l.bf16 %v4051_v20  ;;  %v6180_v23 = vunpack.c.h.bf16 %v8933_v5  ;;  %v6183_v22 = vunpack.c.l.bf16 %v9103_v30  ;;  %v9131_v5 = vld [vmem:[%s9987_s7] ss:$0 sm:$0xff]  ;;  %5458 = vmatpush.bf16.msra.mxu2 %v5892_v8  ;;  %6389 = vmatpush.bf16.msra.mxu3 %v5892_v8 }
 0x2c2   : > { %v3643_v57 = vunpack.c.l.bf16 %v3436_v24  ;;  %v812_v4 = vmul.f32 %v8291_v47, %v10335_v2  ;;  %v813_v0 = vmul.f32 %v8307_v62, %v10335_v2  ;;  %v3644_v59 = vunpack.c.l.bf16 %v3437_v32  ;;  %v5891_v62 = vld [vmem:[%s9988_s8 + $0x28] sm:$0xff] }
 0x2c3   : > { %v4619_v35 = vmul.f32 %v6180_v23, %v6928_v36  ;;  %v1497_v14 = vpack.c.bf16 %v8335_v28, %v8335_v28  ;;  %v1498_v17 = vpack.c.bf16 %v8636_v53, %v8636_v53  ;;  %v4620_v47 = vmul.f32 %v6183_v22, %v6928_v36 }
 0x2c4   : > { %v3840_v52 = vadd.f32 %v3758_v10, %v3643_v57  ;;  %v845_v40 = vpack.c.bf16 %v812_v4, %v812_v4  ;;  %v846_v45 = vpack.c.bf16 %v813_v0, %v813_v0  ;;  %v3841_v9 = vadd.f32 %v3760_v26, %v3644_v59  ;;  %v5890_v26 = vld [vmem:[%s9988_s8 + $0x20] sm:$0xff] }
 0x2c5   : > { %v4118_v49 = vunpack.c.l.bf16 %v4052_v7  ;;  %v4652_v60 = vpack.c.bf16 %v4619_v35, %v4619_v35  ;;  %v1562_v20 = vunpack.c.l.bf16 %v1497_v14  ;;  %v4653_v24 = vpack.c.bf16 %v4620_v47, %v4620_v47  ;;  %5459 = vmatpush.bf16.msra.mxu2 %v5891_v62  ;;  %v10618_v7 = vld [vmem:[#allocation26_spill] sm:$0xff]  ;;  %v10619_v4 = vld [vmem:[#allocation92_spill] sm:$0xff]  ;;  %6390 = vmatpush.bf16.msra.mxu3 %v5891_v62 }
 0x2c6   : > { %v3873_v28 = vpack.c.bf16 %v3840_v52, %v3840_v52  ;;  %v1198_v19 = vunpack.c.l.bf16 %v845_v40  ;;  %v1199_v53 = vunpack.c.l.bf16 %v846_v45  ;;  %v3874_v10 = vpack.c.bf16 %v3841_v9, %v3841_v9 }
 0x2c7   : > { %v4685_v32 = vunpack.c.l.bf16 %v4652_v60  ;;  %v9142_v23 = vadd.f32 %v9131_v5, %v5261_v41  ;;  %v9144_v57 = vunpack.c.l.bf16 %v1498_v17  ;;  %v4686_v34 = vunpack.c.l.bf16 %v4653_v24 }
 0x2c8   : > { %v4084_v22 = vunpack.c.l.bf16 %v3873_v28  ;;  %v1392_v8 = vmul.f32 %v10618_v7, %v1198_v19  ;;  %v1393_v0 = vmul.f32 %v10619_v4, %v1199_v53  ;;  %v4085_v59 = vunpack.c.l.bf16 %v3874_v10  ;;  %v10621_v19 = vld [vmem:[#allocation28_spill] sm:$0xff] }
 0x2c9   : > { %v4718_v35 = vmul.f32 %v4685_v32, %v10609_v58  ;;  %v1643_v14 = vrot.slane %v1562_v20, 1  ;;  %v1645_v52 = vrot.slane %v9144_v57, 1  ;;  %v4719_v47 = vmul.f32 %v4686_v34, %v10611_v61  ;;  %5460 = vmatpush.bf16.msra.mxu2 %v5890_v26  ;;  %6391 = vmatpush.bf16.msra.mxu3 %v5890_v26 }
 0x2ca   : > { %v4150_v17 = vadd.f32 %v4117_v37, %v4084_v22  ;;  %v1425_v41 = vpack.c.bf16 %v1392_v8, %v1392_v8  ;;  %v1426_v40 = vpack.c.bf16 %v1393_v0, %v1393_v0  ;;  %v4151_v45 = vadd.f32 %v4118_v49, %v4085_v59  ;;  %v5889_v37 = vld [vmem:[%s9988_s8 + $0x18] sm:$0xff] }
 0x2cb   : > { %v4751_v9 = vpack.c.bf16 %v4718_v35, %v4718_v35  ;;  %v10620_v60 = vrot.slane %v8999_v18, 1  ;;  %v1646_v24 = vsel %vm1277_vm2, %v1643_v14, %v1645_v52  ;;  %v4752_v20 = vpack.c.bf16 %v4719_v47, %v4719_v47 }
 0x2cc   : > { %v4183_v58 = vpack.c.bf16 %v4150_v17, %v4150_v17  ;;  %v1529_v61 = vunpack.c.l.bf16 %v1425_v41  ;;  %v1530_v34 = vunpack.c.l.bf16 %v1426_v40  ;;  %v4184_v62 = vpack.c.bf16 %v4151_v45, %v4151_v45 }
 0x2cd   : > { %v1644_v28 = vsel %vm1277_vm2, %v10620_v60, %v1643_v14  ;;  %v4817_v49 = vunpack.c.l.bf16 %v4751_v9  ;;  %v1894_v18 = vpack.c.bf16 %v8356_v39, %v8356_v39  ;;  %v1895_v53 = vpack.c.bf16 %v10621_v19, %v10621_v19  ;;  %5461 = vmatpush.bf16.msra.mxu2 %v5889_v37  ;;  %v10623_v9 = vld [vmem:[#allocation89_spill] sm:$0xff]  ;;  %6392 = vmatpush.bf16.msra.mxu3 %v5889_v37 }
 0x2ce   : > { %v4287_v10 = vunpack.c.l.bf16 %v4183_v58  ;;  %v9167_v32 = vunpack.c.l.bf16 %v4752_v20  ;;  %v1722_v22 = vadd.f32 %v1644_v28, %v1529_v61  ;;  %v1723_v8 = vadd.f32 %v1646_v24, %v1530_v34  ;;  %v10624_v28 = vld [vmem:[#allocation91_spill] sm:$0xff] }
 0x2cf   : > { %v4288_v0 = vunpack.c.l.bf16 %v4184_v62  ;;  %v4898_v59 = vrot.slane %v4817_v49, 2  ;;  %v2247_v35 = vunpack.c.l.bf16 %v1894_v18  ;;  %v2248_v14 = vunpack.c.l.bf16 %v1895_v53 }
 0x2d0   : > { %v4480_v17 = vadd.f32 %v9111_v42, %v4287_v10  ;;  %v4900_v47 = vrot.slane %v9167_v32, 2  ;;  %v1755_v41 = vpack.c.bf16 %v1722_v22, %v1722_v22  ;;  %v1756_v39 = vpack.c.bf16 %v1723_v8, %v1723_v8 }
 0x2d1   : > { %v4481_v40 = vadd.f32 %v9116_v54, %v4288_v0  ;;  %v10622_v26 = vrot.slane %v8975_v3, 2  ;;  %v2441_v60 = vmul.f32 %v10623_v9, %v2247_v35  ;;  %v2442_v24 = vmul.f32 %v10624_v28, %v2248_v14  ;;  %v6417_v54 = vld [vmem:[#allocation2 + $0x58] sm:$0xff] }
 0x2d2   : > { %v4513_v58 = vpack.c.bf16 %v4480_v17, %v4480_v17  ;;  %v4901_v42 = vsel %vm2588_vm4, %v4898_v59, %v4900_v47  ;;  %v2507_v20 = vunpack.c.l.bf16 %v1755_v41  ;;  %v2508_v61 = vunpack.c.l.bf16 %v1756_v39 }
 0x2d3   : > { %v4899_v45 = vsel %vm2588_vm4, %v10622_v26, %v4898_v59  ;;  %v4514_v34 = vpack.c.bf16 %v4481_v40, %v4481_v40  ;;  %v2474_v62 = vpack.c.bf16 %v2441_v60, %v2441_v60  ;;  %v2475_v49 = vpack.c.bf16 %v2442_v24, %v2442_v24 }
 0x2d4   : > { %v9180_v18 = vunpack.c.h.bf16 %v6417_v54  ;;  %v4784_v3 = vunpack.c.l.bf16 %v4513_v58  ;;  %v2844_v19 = vmul.f32 %v8533_v12, %v10470_v44  ;;  %v2845_v37 = vmul.f32 %v9041_v25, %v10470_v44 }
 0x2d5   : > { %v3148_v53 = vmul.f32 %v9041_v25, %v10366_v33  ;;  %v4785_v10 = vunpack.c.l.bf16 %v4514_v34  ;;  %v2540_v22 = vunpack.c.l.bf16 %v2474_v62  ;;  %v9188_v8 = vunpack.c.l.bf16 %v2475_v49 }
 0x2d6   : > { %v3149_v0 = vmul.f32 %v8687_v27, %v10366_v33  ;;  %v4981_v59 = vadd.f32 %v4899_v45, %v4784_v3  ;;  %v2877_v35 = vpack.c.bf16 %v2844_v19, %v2844_v19  ;;  %v2878_v14 = vpack.c.bf16 %v2845_v37, %v2845_v37 }
 0x2d7   : > { %v3180_v17 = vpack.c.bf16 %v3148_v53, %v3148_v53  ;;  %v4982_v41 = vadd.f32 %v4901_v42, %v4785_v10  ;;  %v2624_v39 = vrot.slane %v2540_v22, 2  ;;  %v10220_v40 = vrot.slane %v9188_v8, 2 }
 0x2d8   : > { %v3181_v26 = vpack.c.bf16 %v3149_v0, %v3149_v0  ;;  %v2910_v60 = vunpack.c.l.bf16 %v2877_v35  ;;  %v2911_v24 = vunpack.c.l.bf16 %v2878_v14  ;;  %v3480_v34 = vmul.f32 %v9041_v25, %v7390_v6 }
 0x2d9   : > { %v3245_v58 = vunpack.c.l.bf16 %v3180_v17  ;;  %v5006_v62 = vpack.c.bf16 %v4982_v41, %v4981_v59  ;;  %v10625_v49 = vrot.slane %v9043_v29, 2  ;;  %v2627_v45 = vsel %vm2588_vm4, %v2624_v39, %v10220_v40 }
 0x2da   : > { %v9201_v42 = vunpack.c.l.bf16 %v3181_v26  ;;  %v2706_v19 = vadd.f32 %v2627_v45, %v2508_v61  ;;  %v2943_v37 = vmul.f32 %v2910_v60, %v10618_v7  ;;  %v2944_v53 = vmul.f32 %v2911_v24, %v10619_v4 }
 0x2db   : > { %v2625_v54 = vsel %vm2588_vm4, %v10625_v49, %v2624_v39  ;;  %v5108_v10 = vshrl.u32 %v5006_v62, 16  ;;  %v5111_v22 = vshll.u32 %v5006_v62, 16  ;;  %v3326_v25 = vrot.slane %v3245_v58, 1 }
 0x2dc   : > { %v2705_v3 = vadd.f32 %v2625_v54, %v2507_v20  ;;  %v10219_v0 = vrot.slane %v9201_v42, 1  ;;  %v2739_v59 = vpack.c.bf16 %v2706_v19, %v2706_v19  ;;  %v2976_v35 = vpack.c.bf16 %v2943_v37, %v2943_v37 }
 0x2dd   : > { %v2977_v14 = vpack.c.bf16 %v2944_v53, %v2944_v53  ;;  %v5110_v17 = vrot.slane %v5108_v10, 3  ;;  %v5113_v41 = vrot.slane %v5111_v22, 4  ;;  %v10626_v39 = vrot.slane %v9068_v48, 1 }
 0x2de   : > { %v2738_v29 = vpack.c.bf16 %v2705_v3, %v2705_v3  ;;  %v3329_v61 = vsel %vm1277_vm2, %v3326_v25, %v10219_v0  ;;  %v3010_v60 = vunpack.c.l.bf16 %v2739_v59  ;;  %v3042_v24 = vunpack.c.l.bf16 %v2976_v35 }
 0x2df   : > { %v3327_v20 = vsel %vm1277_vm2, %v10626_v39, %v3326_v25  ;;  %v3043_v58 = vunpack.c.l.bf16 %v2977_v14  ;;  %v9212_v62 = vor.u32 %v5113_v41, %v5110_v17  ;;  %v3481_v49 = vmul.f32 %v8687_v27, %v7390_v6 }
 0x2e0   : > { %v3009_v26 = vunpack.c.l.bf16 %v2738_v29  ;;  %v3513_v54 = vpack.c.bf16 %v3480_v34, %v3480_v34  ;;  %v3921_v45 = vmul.f32 %v8687_v27, %v10491_v38  ;;  %v3922_v19 = vmul.f32 %v9180_v18, %v10491_v38 }
 0x2e1   : > { %v3076_v3 = vadd.f32 %v3043_v58, %v3010_v60  ;;  %v4225_v37 = vmul.f32 %v9180_v18, %v10519_v16  ;;  %v5115_v53 = vsel %vm5035_vm5, %v9054_v56, %v9212_v62  ;;  %v3514_v10 = vpack.c.bf16 %v3481_v49, %v3481_v49 }
 0x2e2   : > { %v3075_v48 = vadd.f32 %v3042_v24, %v3009_v26  ;;  %v3546_v22 = vunpack.c.l.bf16 %v3513_v54  ;;  %v3954_v25 = vpack.c.bf16 %v3921_v45, %v3921_v45  ;;  %5295 = vmatmul.bf16.gmra.mxu1 %v5115_v53  ;;  %v3955_v59 = vpack.c.bf16 %v3922_v19, %v3922_v19 }
 0x2e3   : > { %v3109_v29 = vpack.c.bf16 %v3076_v3, %v3076_v3  ;;  %v4226_v35 = vmul.f32 %v8827_v63, %v10519_v16  ;;  %v3547_v14 = vunpack.c.l.bf16 %v3514_v10  ;;  %v4257_v39 = vpack.c.bf16 %v4225_v37, %v4225_v37 }
 0x2e4   : > { %v3108_v34 = vpack.c.bf16 %v3075_v48, %v3075_v48  ;;  %v3579_v17 = vmul.f32 %v3546_v22, %v10623_v9  ;;  %v3987_v41 = vunpack.c.l.bf16 %v3954_v25  ;;  %v3988_v24 = vunpack.c.l.bf16 %v3955_v59 }
 0x2e5   : > { %v3213_v60 = vunpack.c.l.bf16 %v3109_v29  ;;  %v4258_v58 = vpack.c.bf16 %v4226_v35, %v4226_v35  ;;  %v3580_v56 = vmul.f32 %v3547_v14, %v10624_v28  ;;  %v9230_v45 = vunpack.c.l.bf16 %v4257_v39  ;;  %v9239_v35 = vld [vmem:[#allocation2 + $0x60] sm:$0xff]  }
 0x2e6   : > { %v3212_v26 = vunpack.c.l.bf16 %v3108_v34  ;;  %v3612_v49 = vpack.c.bf16 %v3579_v17, %v3579_v17  ;;  %v4020_v54 = vmul.f32 %v3987_v41, %v10618_v7  ;;  %v4021_v19 = vmul.f32 %v3988_v24, %v10619_v4 }
 0x2e7   : > { %v3406_v3 = vadd.f32 %v3329_v61, %v3213_v60  ;;  %v9233_v53 = vunpack.c.l.bf16 %v4258_v58  ;;  %v3613_v10 = vpack.c.bf16 %v3580_v56, %v3580_v56  ;;  %v4403_v25 = vrot.slane %v9230_v45, 1  ;;  %v5888_v56 = vld [vmem:[%s9988_s8 + $0x10] sm:$0xff] }
 0x2e8   : > { %v3405_v48 = vadd.f32 %v3327_v20, %v3212_v26  ;;  %v3678_v22 = vunpack.c.l.bf16 %v3612_v49  ;;  %v4053_v37 = vpack.c.bf16 %v4020_v54, %v4020_v54  ;;  %v5341_v29 = vmax.f32 %v9142_v23, 0.0  ;;  %v5263_v49 = vpop.f32.mrf.mxu1  ;;  %5462 = vmatpush.bf16.msra.mxu2 %v5888_v56  ;;  %6393 = vmatpush.bf16.msra.mxu3 %v5888_v56 }
 0x2e9   : > { %v3439_v7 = vpack.c.bf16 %v3406_v3, %v3406_v3  ;;  %v9241_v20 = vunpack.c.l.bf16 %v3613_v10  ;;  %v4054_v4 = vpack.c.bf16 %v4021_v19, %v4021_v19  ;;  %v4405_v14 = vrot.slane %v9233_v53, 1  ;;  %v5887_v19 = vld [vmem:[%s9988_s8 + $0x8] sm:$0xff]  ;;  %v10628_v10 = vld [vmem:[#allocation55_spill] sm:$0xff] }
 0x2ea   : > { %v3438_v59 = vpack.c.bf16 %v3405_v48, %v3405_v48  ;;  %v3761_v61 = vrot.slane %v3678_v22, 2  ;;  %v4119_v39 = vunpack.c.l.bf16 %v4053_v37  ;;  %v9249_v26 = vsel %vm1277_vm2, %v4401_v15, %v4403_v25 }
 0x2eb   : > { %v3646_v41 = vunpack.c.l.bf16 %v3439_v7  ;;  %v10218_v60 = vrot.slane %v9241_v20, 2  ;;  %v6184_v24 = vunpack.c.h.bf16 %v9103_v30  ;;  %v6187_v58 = vunpack.c.l.bf16 %v9239_v35 }
 0x2ec   : > { %v3645_v17 = vunpack.c.l.bf16 %v3438_v59  ;;  %v3762_v23 = vsel %vm2588_vm4, %v3759_v51, %v3761_v61  ;;  %v5264_v46 = vadd.f32 %v9131_v5, %v5263_v49  ;;  %v814_v15 = vmul.f32 %v8533_v12, %v10335_v2  ;;  %v10629_v49 = vld [vmem:[#allocation13_spill] sm:$0xff]  ;;  %5463 = vmatpush.bf16.msra.mxu2 %v5887_v19  ;;  %6394 = vmatpush.bf16.msra.mxu3 %v5887_v19 }
 0x2ed   : > { %v815_v51 = vmul.f32 %v10627_v11, %v10335_v2  ;;  %v3764_v30 = vsel %vm2588_vm4, %v3761_v61, %v10218_v60  ;;  %v4621_v48 = vmul.f32 %v6184_v24, %v6928_v36  ;;  %v4622_v3 = vmul.f32 %v6187_v58, %v6928_v36 }
 0x2ee   : > { %v3842_v54 = vadd.f32 %v3762_v23, %v3645_v17  ;;  %v1499_v22 = vpack.c.bf16 %v10628_v10, %v10628_v10  ;;  %v3843_v12 = vadd.f32 %v3764_v30, %v3646_v41  ;;  %v4120_v59 = vunpack.c.l.bf16 %v4054_v4  ;;  %v5886_v41 = vld [vmem:[%s9988_s8] sm:$0xff]  ;;  %v10630_v30 = vld [vmem:[#allocation111_spill] sm:$0xff] }
 0x2ef   : > { %v847_v7 = vpack.c.bf16 %v814_v15, %v814_v15  ;;  %v4654_v17 = vpack.c.bf16 %v4621_v48, %v4621_v48  ;;  %v4655_v23 = vpack.c.bf16 %v4622_v3, %v4622_v3  ;;  %v848_v61 = vpack.c.bf16 %v815_v51, %v815_v51  ;;  %v10631_v10 = vld [vmem:[#allocation112_spill] sm:$0xff] }
 0x2f0   : > { %v3875_v37 = vpack.c.bf16 %v3842_v54, %v3842_v54  ;;  %v1500_v24 = vpack.c.bf16 %v10629_v49, %v10629_v49  ;;  %v3876_v58 = vpack.c.bf16 %v3843_v12, %v3843_v12  ;;  %v5342_v34 = vmax.f32 %v5264_v46, 0.0  ;;  %5464 = vmatpush.bf16.msra.mxu2 %v5886_v41  ;;  %6395 = vmatpush.bf16.msra.mxu3 %v5886_v41  ;;  %v10633_v41 = vld [vmem:[#allocation16_spill] sm:$0xff] }
 0x2f1   : > { %v1200_v60 = vunpack.c.l.bf16 %v847_v7  ;;  %v4687_v0 = vunpack.c.l.bf16 %v4654_v17  ;;  %v4688_v40 = vunpack.c.l.bf16 %v4655_v23  ;;  %v1201_v4 = vunpack.c.l.bf16 %v848_v61 }
 0x2f2   : > { %v4086_v11 = vunpack.c.l.bf16 %v3875_v37  ;;  %v1564_v54 = vunpack.c.l.bf16 %v1499_v22  ;;  %v4087_v56 = vunpack.c.l.bf16 %v3876_v58  ;;  %v9281_v48 = vunpack.c.l.bf16 %v1500_v24  ;;  %v5266_v24 = vpop.f32.mrf.mxu1 }
 0x2f3   : > { %v1394_v51 = vmul.f32 %v10630_v30, %v1200_v60  ;;  %v4720_v3 = vmul.f32 %v4687_v0, %v10623_v9  ;;  %v4721_v46 = vmul.f32 %v4688_v40, %v10624_v28  ;;  %v1395_v12 = vmul.f32 %v10631_v10, %v1201_v4 }
 0x2f4   : > { %v4152_v15 = vadd.f32 %v4119_v39, %v4086_v11  ;;  %v1647_v37 = vrot.slane %v1564_v54, 1  ;;  %v4153_v7 = vadd.f32 %v4120_v59, %v4087_v56  ;;  %v5373_v23 = vpack.c.bf16 %v5342_v34, %v5341_v29  ;;  %v10632_v11 = vld [vmem:[#allocation29_spill] sm:$0xff] }
 0x2f5   : > { %v1427_v49 = vpack.c.bf16 %v1394_v51, %v1394_v51  ;;  %v4406_v39 = vsel %vm1277_vm2, %v4403_v25, %v4405_v14  ;;  %v4753_v60 = vpack.c.bf16 %v4720_v3, %v4720_v3  ;;  %v4754_v22 = vpack.c.bf16 %v4721_v46, %v4721_v46 }
 0x2f6   : > { %v4185_v17 = vpack.c.bf16 %v4152_v15, %v4152_v15  ;;  %v1428_v19 = vpack.c.bf16 %v1395_v12, %v1395_v12  ;;  %v4186_v9 = vpack.c.bf16 %v4153_v7, %v4153_v7  ;;  %v1648_v40 = vsel %vm1277_vm2, %v1645_v52, %v1647_v37  ;;  %5465 = vmatmul.bf16.vlgmr.msra.gmra.mxu2 %v5373_v23 }
 0x2f7   : > { %v1531_v28 = vunpack.c.l.bf16 %v1427_v49  ;;  %v4819_v34 = vunpack.c.l.bf16 %v4753_v60  ;;  %v9294_v29 = vunpack.c.l.bf16 %v4754_v22  ;;  %v1649_v45 = vrot.slane %v9281_v48, 1 }
 0x2f8   : > { %v4289_v0 = vunpack.c.l.bf16 %v4185_v17  ;;  %v1532_v59 = vunpack.c.l.bf16 %v1428_v19  ;;  %v4290_v61 = vunpack.c.l.bf16 %v4186_v9  ;;  %v1896_v4 = vpack.c.bf16 %v10632_v11, %v10632_v11  ;;  %v10635_v19 = vld [vmem:[#allocation117_spill] sm:$0xff] }
 0x2f9   : > { %v1724_v58 = vadd.f32 %v1648_v40, %v1531_v28  ;;  %v4902_v54 = vrot.slane %v4819_v34, 2  ;;  %v4904_v57 = vrot.slane %v9294_v29, 2  ;;  %v1650_v52 = vsel %vm1277_vm2, %v1647_v37, %v1649_v45  ;;  %v6419_v29 = vld [vmem:[#allocation2 + $0x68] sm:$0xff] }
 0x2fa   : > { %v4482_v25 = vadd.f32 %v9249_v26, %v4289_v0  ;;  %v1897_v56 = vpack.c.bf16 %v10633_v41, %v10633_v41  ;;  %v4483_v15 = vadd.f32 %v4406_v39, %v4290_v61  ;;  %v1725_v3 = vadd.f32 %v1650_v52, %v1532_v59  ;;  %v10634_v39 = vld [vmem:[#allocation86_spill] sm:$0xff] }
 0x2fb   : > { %v1757_v26 = vpack.c.bf16 %v1724_v58, %v1724_v58  ;;  %v4903_v46 = vsel %vm2588_vm4, %v4900_v47, %v4902_v54  ;;  %v9310_v12 = vadd.f32 %v9131_v5, %v5266_v24  ;;  %v2249_v7 = vunpack.c.l.bf16 %v1896_v4 }
 0x2fc   : > { %v4515_v51 = vpack.c.bf16 %v4482_v25, %v4482_v25  ;;  %v2250_v17 = vunpack.c.l.bf16 %v1897_v56  ;;  %v4516_v23 = vpack.c.bf16 %v4483_v15, %v4483_v15  ;;  %v4905_v37 = vsel %vm2588_vm4, %v4902_v54, %v4904_v57 }
 0x2fd   : > { %v1758_v60 = vpack.c.bf16 %v1725_v3, %v1725_v3  ;;  %v2443_v22 = vmul.f32 %v10634_v39, %v2249_v7  ;;  %v2509_v0 = vunpack.c.l.bf16 %v1757_v26  ;;  %v2846_v32 = vmul.f32 %v8687_v27, %v10470_v44 }
 0x2fe   : > { %v4786_v49 = vunpack.c.l.bf16 %v4515_v51  ;;  %v2444_v9 = vmul.f32 %v10635_v19, %v2250_v17  ;;  %v4787_v47 = vunpack.c.l.bf16 %v4516_v23  ;;  %v2847_v34 = vmul.f32 %v9180_v18, %v10470_v44 }
 0x2ff   : > { %v2510_v40 = vunpack.c.l.bf16 %v1758_v60  ;;  %v2476_v59 = vpack.c.bf16 %v2443_v22, %v2443_v22  ;;  %v2879_v25 = vpack.c.bf16 %v2846_v32, %v2846_v32  ;;  %v3150_v24 = vmul.f32 %v9180_v18, %v10366_v33 }
 0x300   : > { %v4983_v28 = vadd.f32 %v4903_v46, %v4786_v49  ;;  %v2477_v61 = vpack.c.bf16 %v2444_v9, %v2444_v9  ;;  %v4984_v58 = vadd.f32 %v4905_v37, %v4787_v47  ;;  %v2880_v11 = vpack.c.bf16 %v2847_v34, %v2847_v34 }
 0x301   : > { %v3151_v4 = vmul.f32 %v8827_v63, %v10366_v33  ;;  %v3482_v54 = vmul.f32 %v9180_v18, %v7390_v6  ;;  %v2542_v52 = vunpack.c.l.bf16 %v2476_v59  ;;  %v2912_v56 = vunpack.c.l.bf16 %v2879_v25 }
 0x302   : > { %v9327_v41 = vunpack.c.l.bf16 %v2477_v61  ;;  %v3182_v15 = vpack.c.bf16 %v3150_v24, %v3150_v24  ;;  %v5007_v51 = vpack.c.bf16 %v4984_v58, %v4983_v28  ;;  %v2913_v3 = vunpack.c.l.bf16 %v2880_v11  ;;  %v6418_v58 = vld [vmem:[#allocation2 + $0x60] sm:$0xff] }
 0x303   : > { %v3183_v26 = vpack.c.bf16 %v3151_v4, %v3151_v4  ;;  %v3483_v46 = vmul.f32 %v8827_v63, %v7390_v6  ;;  %v2628_v7 = vrot.slane %v2542_v52, 2  ;;  %v2945_v23 = vmul.f32 %v2912_v56, %v10630_v30 }
 0x304   : > { %v10223_v17 = vrot.slane %v9327_v41, 2  ;;  %v3247_v49 = vunpack.c.l.bf16 %v3182_v15  ;;  %v5117_v37 = vshrl.u32 %v5007_v51, 16  ;;  %v5120_v60 = vshll.u32 %v5007_v51, 16 }
 0x305   : > { %v2946_v18 = vmul.f32 %v2913_v3, %v10631_v10  ;;  %v9334_v22 = vunpack.c.l.bf16 %v3183_v26  ;;  %v10636_v9 = vrot.slane %v9188_v8, 2  ;;  %v2978_v28 = vpack.c.bf16 %v2945_v23, %v2945_v23 }
 0x306   : > { %v2631_v47 = vsel %vm2588_vm4, %v2628_v7, %v10223_v17  ;;  %v3330_v34 = vrot.slane %v3247_v49, 1  ;;  %v5119_v59 = vrot.slane %v5117_v37, 3  ;;  %v5122_v61 = vrot.slane %v5120_v60, 4 }
 0x307   : > { %v2629_v32 = vsel %vm2588_vm4, %v10636_v9, %v2628_v7  ;;  %v2708_v24 = vadd.f32 %v2631_v47, %v2510_v40  ;;  %v9342_v11 = vunpack.c.h.bf16 %v6418_v58  ;;  %v2979_v4 = vpack.c.bf16 %v2946_v18, %v2946_v18 }
 0x308   : > { %v2707_v25 = vadd.f32 %v2629_v32, %v2509_v0  ;;  %v3044_v52 = vunpack.c.l.bf16 %v2978_v28  ;;  %v10637_v56 = vrot.slane %v9201_v42, 1  ;;  %v9347_v15 = vor.u32 %v5122_v61, %v5119_v59 }
 0x309   : > { %v2741_v3 = vpack.c.bf16 %v2708_v24, %v2708_v24  ;;  %v3515_v26 = vpack.c.bf16 %v3482_v54, %v3482_v54  ;;  %v3045_v7 = vunpack.c.l.bf16 %v2979_v4  ;;  %v10222_v23 = vrot.slane %v9334_v22, 1 }
 0x30a   : > { %v3331_v8 = vsel %vm1277_vm2, %v10637_v56, %v3330_v34  ;;  %v2740_v51 = vpack.c.bf16 %v2707_v25, %v2707_v25  ;;  %v3516_v49 = vpack.c.bf16 %v3483_v46, %v3483_v46  ;;  %v3923_v0 = vmul.f32 %v8827_v63, %v10491_v38 }
 0x30b   : > { %v5124_v40 = vsel %vm5035_vm5, %v9212_v62, %v9347_v15  ;;  %v3012_v42 = vunpack.c.l.bf16 %v2741_v3  ;;  %v3548_v60 = vunpack.c.l.bf16 %v3515_v26  ;;  %v3924_v9 = vmul.f32 %v9342_v11, %v10491_v38 }
 0x30c   : > { %v3011_v37 = vunpack.c.l.bf16 %v2740_v51  ;;  %5300 = vmatmul.bf16.gmra.mxu1 %v5124_v40  ;;  %v3549_v18 = vunpack.c.l.bf16 %v3516_v49  ;;  %v3956_v54 = vpack.c.bf16 %v3923_v0, %v3923_v0  ;;  %v4227_v32 = vmul.f32 %v9342_v11, %v10519_v16 }
 0x30d   : > { %v3078_v47 = vadd.f32 %v3045_v7, %v3012_v42  ;;  %v3581_v28 = vmul.f32 %v3548_v60, %v10634_v39  ;;  %v4228_v59 = vmul.f32 %v8964_v43, %v10519_v16  ;;  %v3957_v61 = vpack.c.bf16 %v3924_v9, %v3924_v9 }
 0x30e   : > { %v3077_v46 = vadd.f32 %v3044_v52, %v3011_v37  ;;  %v3582_v62 = vmul.f32 %v3549_v18, %v10635_v19  ;;  %v3989_v25 = vunpack.c.l.bf16 %v3956_v54  ;;  %v4259_v24 = vpack.c.bf16 %v4227_v32, %v4227_v32 }
 0x30f   : > { %v3111_v4 = vpack.c.bf16 %v3078_v47, %v3078_v47  ;;  %v3614_v56 = vpack.c.bf16 %v3581_v28, %v3581_v28  ;;  %v4260_v51 = vpack.c.bf16 %v4228_v59, %v4228_v59  ;;  %v3990_v26 = vunpack.c.l.bf16 %v3957_v61  ;;  %v9375_v47 = vld [vmem:[#allocation2 + $0x68] sm:$0xff]  }
 0x310   : > { %v3110_v58 = vpack.c.bf16 %v3077_v46, %v3077_v46  ;;  %v3615_v3 = vpack.c.bf16 %v3582_v62, %v3582_v62  ;;  %v4022_v49 = vmul.f32 %v3989_v25, %v10630_v30  ;;  %v9364_v52 = vunpack.c.l.bf16 %v4259_v24 }
 0x311   : > { %v3215_v0 = vunpack.c.l.bf16 %v3111_v4  ;;  %v3680_v40 = vunpack.c.l.bf16 %v3614_v56  ;;  %v9366_v37 = vunpack.c.l.bf16 %v4260_v51  ;;  %v3333_v42 = vsel %vm1277_vm2, %v3330_v34, %v10222_v23  ;;  %v5268_v51 = vpop.f32.mrf.mxu1 }
 0x312   : > { %v3214_v7 = vunpack.c.l.bf16 %v3110_v58  ;;  %v9371_v60 = vunpack.c.l.bf16 %v3615_v3  ;;  %v4023_v18 = vmul.f32 %v3990_v26, %v10631_v10  ;;  %v4055_v9 = vpack.c.bf16 %v4022_v49, %v4022_v49 }
 0x313   : > { %v5343_v54 = vmax.f32 %v9310_v12, 0.0  ;;  %v3408_v30 = vadd.f32 %v3333_v42, %v3215_v0  ;;  %v3765_v46 = vrot.slane %v3680_v40, 2  ;;  %v4407_v62 = vrot.slane %v9364_v52, 1  ;;  %v10639_v0 = vld [vmem:[#allocation31_spill] sm:$0xff]  ;;  %v10640_v42 = vld [vmem:[#allocation49_spill] sm:$0xff] }
 0x314   : > { %v3407_v32 = vadd.f32 %v3331_v8, %v3214_v7  ;;  %v10221_v28 = vrot.slane %v9371_v60, 2  ;;  %v4056_v59 = vpack.c.bf16 %v4023_v18, %v4023_v18  ;;  %v4409_v61 = vrot.slane %v9366_v37, 1 }
 0x315   : > { %v3441_v25 = vpack.c.bf16 %v3408_v30, %v3408_v30  ;;  %v10638_v24 = vrot.slane %v9241_v20, 2  ;;  %v4121_v58 = vunpack.c.l.bf16 %v4055_v9  ;;  %v6188_v4 = vunpack.c.h.bf16 %v9239_v35 }
 0x316   : > { %v3440_v34 = vpack.c.bf16 %v3407_v32, %v3407_v32  ;;  %v3768_v12 = vsel %vm2588_vm4, %v3765_v46, %v10221_v28  ;;  %v4122_v8 = vunpack.c.l.bf16 %v4056_v59  ;;  %v6191_v56 = vunpack.c.l.bf16 %v9375_v47 }
 0x317   : > { %v3766_v10 = vsel %vm2588_vm4, %v10638_v24, %v3765_v46  ;;  %v3648_v26 = vunpack.c.l.bf16 %v3441_v25  ;;  %v5269_v49 = vadd.f32 %v9131_v5, %v5268_v51  ;;  %v816_v20 = vmul.f32 %v8687_v27, %v10335_v2 }
 0x318   : > { %v3647_v3 = vunpack.c.l.bf16 %v3440_v34  ;;  %v4623_v52 = vmul.f32 %v6188_v4, %v6928_v36  ;;  %v4624_v7 = vmul.f32 %v6191_v56, %v6928_v36  ;;  %v817_v40 = vmul.f32 %v10639_v0, %v10335_v2 }
 0x319   : > { %v1501_v35 = vpack.c.bf16 %v10640_v42, %v10640_v42  ;;  %v3845_v9 = vadd.f32 %v3768_v12, %v3648_v26  ;;  %v5344_v32 = vmax.f32 %v5269_v49, 0.0  ;;  %v849_v30 = vpack.c.bf16 %v816_v20, %v816_v20 }
 0x31a   : > { %v3844_v18 = vadd.f32 %v3766_v10, %v3647_v3  ;;  %v4656_v46 = vpack.c.bf16 %v4623_v52, %v4623_v52  ;;  %v4657_v59 = vpack.c.bf16 %v4624_v7, %v4624_v7  ;;  %v850_v34 = vpack.c.bf16 %v817_v40, %v817_v40  ;;  %v10641_v10 = vld [vmem:[#allocation22_spill] sm:$0xff] }
 0x31b   : > { %v1502_v27 = vpack.c.bf16 %v8847_v13, %v8847_v13  ;;  %v3878_v24 = vpack.c.bf16 %v3845_v9, %v3845_v9  ;;  %v5374_v4 = vpack.c.bf16 %v5344_v32, %v5343_v54  ;;  %v1202_v56 = vunpack.c.l.bf16 %v849_v30  ;;  %v10642_v13 = vld [vmem:[#allocation23_spill] sm:$0xff] }
 0x31c   : > { %v3877_v25 = vpack.c.bf16 %v3844_v18, %v3844_v18  ;;  %v4689_v51 = vunpack.c.l.bf16 %v4656_v46  ;;  %v4690_v28 = vunpack.c.l.bf16 %v4657_v59  ;;  %v1203_v0 = vunpack.c.l.bf16 %v850_v34  ;;  %v5271_v59 = vpop.f32.mrf.mxu1  ;;  %v10643_v34 = vld [vmem:[#allocation27_spill] sm:$0xff] }
 0x31d   : > { %v1566_v23 = vunpack.c.l.bf16 %v1501_v35  ;;  %v4089_v42 = vunpack.c.l.bf16 %v3878_v24  ;;  %5470 = vmatmul.bf16.gmra.mxu2 %v5374_v4  ;;  %v1396_v12 = vmul.f32 %v10641_v10, %v1202_v56  ;;  %v9400_v3 = vunpack.c.l.bf16 %v1502_v27 }
 0x31e   : > { %v4088_v17 = vunpack.c.l.bf16 %v3877_v25  ;;  %v4722_v26 = vmul.f32 %v4689_v51, %v10634_v39  ;;  %v4723_v49 = vmul.f32 %v4690_v28, %v10635_v19  ;;  %v1397_v20 = vmul.f32 %v10642_v13, %v1203_v0 }
 0x31f   : > { %v1651_v52 = vrot.slane %v1566_v23, 1  ;;  %v4155_v7 = vadd.f32 %v4122_v8, %v4089_v42  ;;  %v4408_v40 = vsel %vm1277_vm2, %v4405_v14, %v4407_v62  ;;  %v1429_v35 = vpack.c.bf16 %v1396_v12, %v1396_v12 }
 0x320   : > { %v4154_v54 = vadd.f32 %v4121_v58, %v4088_v17  ;;  %v4410_v18 = vsel %vm1277_vm2, %v4407_v62, %v4409_v61  ;;  %v4755_v9 = vpack.c.bf16 %v4722_v26, %v4722_v26  ;;  %v4756_v32 = vpack.c.bf16 %v4723_v49, %v4723_v49 }
 0x321   : > { %v1430_v30 = vpack.c.bf16 %v1397_v20, %v1397_v20  ;;  %v4188_v46 = vpack.c.bf16 %v4155_v7, %v4155_v7  ;;  %v1533_v19 = vunpack.c.l.bf16 %v1429_v35  ;;  %v1652_v17 = vsel %vm1277_vm2, %v1649_v45, %v1651_v52  ;;  %v10644_v45 = vld [vmem:[#allocation66_spill] sm:$0xff] }
 0x322   : > { %v4187_v39 = vpack.c.bf16 %v4154_v54, %v4154_v54  ;;  %v4821_v23 = vunpack.c.l.bf16 %v4755_v9  ;;  %v9414_v28 = vunpack.c.l.bf16 %v4756_v32  ;;  %v1653_v14 = vrot.slane %v9400_v3, 1  ;;  %v10646_v9 = vld [vmem:[#allocation63_spill] sm:$0xff] }
 0x323   : > { %v1534_v53 = vunpack.c.l.bf16 %v1430_v30  ;;  %v4292_v8 = vunpack.c.l.bf16 %v4188_v46  ;;  %v1726_v62 = vadd.f32 %v1652_v17, %v1533_v19  ;;  %v1898_v27 = vpack.c.bf16 %v10643_v34, %v10643_v34 }
 0x324   : > { %v4291_v58 = vunpack.c.l.bf16 %v4187_v39  ;;  %v4906_v25 = vrot.slane %v4821_v23, 2  ;;  %v4908_v24 = vrot.slane %v9414_v28, 2  ;;  %v1654_v48 = vsel %vm1277_vm2, %v1651_v52, %v1653_v14 }
 0x325   : > { %v1899_v4 = vpack.c.bf16 %v10644_v45, %v10644_v45  ;;  %v4485_v51 = vadd.f32 %v4410_v18, %v4292_v8  ;;  %v1727_v0 = vadd.f32 %v1654_v48, %v1534_v53  ;;  %v1759_v42 = vpack.c.bf16 %v1726_v62, %v1726_v62 }
 0x326   : > { %v4484_v56 = vadd.f32 %v4408_v40, %v4291_v58  ;;  %v4907_v12 = vsel %vm2588_vm4, %v4904_v57, %v4906_v25  ;;  %v9429_v26 = vadd.f32 %v9131_v5, %v5271_v59  ;;  %v2251_v49 = vunpack.c.l.bf16 %v1898_v27  ;;  %v10645_v40 = vld [vmem:[#allocation14_spill] sm:$0xff] }
 0x327   : > { %v2252_v20 = vunpack.c.l.bf16 %v1899_v4  ;;  %v4518_v7 = vpack.c.bf16 %v4485_v51, %v4485_v51  ;;  %v4909_v52 = vsel %vm2588_vm4, %v4906_v25, %v4908_v24  ;;  %v1760_v35 = vpack.c.bf16 %v1727_v0, %v1727_v0 }
 0x328   : > { %v4517_v54 = vpack.c.bf16 %v4484_v56, %v4484_v56  ;;  %v2445_v18 = vmul.f32 %v10645_v40, %v2251_v49  ;;  %v2511_v30 = vunpack.c.l.bf16 %v1759_v42  ;;  %v9436_v39 = vunpack.c.h.bf16 %v6419_v29 }
 0x329   : > { %v2446_v32 = vmul.f32 %v10646_v9, %v2252_v20  ;;  %v4789_v5 = vunpack.c.l.bf16 %v4518_v7  ;;  %v2512_v46 = vunpack.c.l.bf16 %v1760_v35  ;;  %v2848_v19 = vmul.f32 %v8827_v63, %v10470_v44 }
 0x32a   : > { %v4788_v57 = vunpack.c.l.bf16 %v4517_v54  ;;  %v2478_v17 = vpack.c.bf16 %v2445_v18, %v2445_v18  ;;  %v2849_v53 = vmul.f32 %v9342_v11, %v10470_v44  ;;  %v3152_v58 = vmul.f32 %v9342_v11, %v10366_v33 }
 0x32b   : > { %v2479_v23 = vpack.c.bf16 %v2446_v32, %v2446_v32  ;;  %v4986_v59 = vadd.f32 %v4909_v52, %v4789_v5  ;;  %v2881_v62 = vpack.c.bf16 %v2848_v19, %v2848_v19  ;;  %v3153_v34 = vmul.f32 %v8964_v43, %v10366_v33  ;;  %v9451_v52 = vld [vmem:[#allocation2 + $0x70] sm:$0xff]  }
 0x32c   : > { %v4985_v8 = vadd.f32 %v4907_v12, %v4788_v57  ;;  %v2544_v27 = vunpack.c.l.bf16 %v2478_v17  ;;  %v2882_v48 = vpack.c.bf16 %v2849_v53, %v2849_v53  ;;  %v3184_v45 = vpack.c.bf16 %v3152_v58, %v3152_v58 }
 0x32d   : > { %v9446_v25 = vunpack.c.l.bf16 %v2479_v23  ;;  %v2914_v56 = vunpack.c.l.bf16 %v2881_v62  ;;  %v3185_v51 = vpack.c.bf16 %v3153_v34, %v3153_v34  ;;  %v3484_v0 = vmul.f32 %v9342_v11, %v7390_v6 }
 0x32e   : > { %v5008_v4 = vpack.c.bf16 %v4986_v59, %v4985_v8  ;;  %v2632_v42 = vrot.slane %v2544_v27, 2  ;;  %v2915_v12 = vunpack.c.l.bf16 %v2882_v48  ;;  %v3249_v20 = vunpack.c.l.bf16 %v3184_v45 }
 0x32f   : > { %v2634_v49 = vrot.slane %v9446_v25, 2  ;;  %v2947_v35 = vmul.f32 %v2914_v56, %v10641_v10  ;;  %v9454_v18 = vunpack.c.l.bf16 %v3185_v51  ;;  %v10647_v32 = vrot.slane %v9327_v41, 2 }
 0x330   : > { %v5126_v54 = vshrl.u32 %v5008_v4, 16  ;;  %v5129_v7 = vshll.u32 %v5008_v4, 16  ;;  %v2948_v57 = vmul.f32 %v2915_v12, %v10642_v13  ;;  %v3334_v5 = vrot.slane %v3249_v20, 1 }
 0x331   : > { %v2633_v29 = vsel %vm2588_vm4, %v10647_v32, %v2632_v42  ;;  %v2635_v11 = vsel %vm2588_vm4, %v2632_v42, %v2634_v49  ;;  %v9464_v58 = vunpack.c.l.bf16 %v9451_v52  ;;  %v2980_v8 = vpack.c.bf16 %v2947_v35, %v2947_v35 }
 0x332   : > { %v5128_v19 = vrot.slane %v5126_v54, 3  ;;  %v5131_v17 = vrot.slane %v5129_v7, 4  ;;  %v2709_v23 = vadd.f32 %v2633_v29, %v2511_v30  ;;  %v2710_v53 = vadd.f32 %v2635_v11, %v2512_v46 }
 0x333   : > { %v2981_v59 = vpack.c.bf16 %v2948_v57, %v2948_v57  ;;  %v10648_v41 = vrot.slane %v9334_v22, 1  ;;  %v3485_v45 = vmul.f32 %v8964_v43, %v7390_v6  ;;  %v3046_v4 = vunpack.c.l.bf16 %v2980_v8 }
 0x334   : > { %v9469_v34 = vor.u32 %v5131_v17, %v5128_v19  ;;  %v2742_v27 = vpack.c.bf16 %v2709_v23, %v2709_v23  ;;  %v2743_v48 = vpack.c.bf16 %v2710_v53, %v2710_v53  ;;  %v3336_v30 = vrot.slane %v9454_v18, 1 }
 0x335   : > { %v3335_v62 = vsel %vm1277_vm2, %v10648_v41, %v3334_v5  ;;  %v3047_v56 = vunpack.c.l.bf16 %v2981_v59  ;;  %v3517_v46 = vpack.c.bf16 %v3484_v0, %v3484_v0  ;;  %v3518_v12 = vpack.c.bf16 %v3485_v45, %v3485_v45 }
 0x336   : > { %v5133_v51 = vsel %vm5035_vm5, %v9347_v15, %v9469_v34  ;;  %v3013_v42 = vunpack.c.l.bf16 %v2742_v27  ;;  %v3014_v22 = vunpack.c.l.bf16 %v2743_v48  ;;  %v3925_v54 = vmul.f32 %v8964_v43, %v10491_v38 }
 0x337   : > { %5305 = vmatmul.bf16.gmra.mxu1 %v5133_v51  ;;  %v3550_v20 = vunpack.c.l.bf16 %v3517_v46  ;;  %v3926_v7 = vmul.f32 %v9436_v39, %v10491_v38  ;;  %v4229_v35 = vmul.f32 %v9436_v39, %v10519_v16  ;;  %v3551_v29 = vunpack.c.l.bf16 %v3518_v12 }
 0x338   : > { %v3079_v32 = vadd.f32 %v3046_v4, %v3013_v42  ;;  %v3080_v0 = vadd.f32 %v3047_v56, %v3014_v22  ;;  %v4230_v15 = vmul.f32 %v9464_v58, %v10519_v16  ;;  %v3958_v57 = vpack.c.bf16 %v3925_v54, %v3925_v54 }
 0x339   : > { %v3583_v11 = vmul.f32 %v3550_v20, %v10645_v40  ;;  %v3959_v19 = vpack.c.bf16 %v3926_v7, %v3926_v7  ;;  %v4261_v17 = vpack.c.bf16 %v4229_v35, %v4229_v35  ;;  %v3584_v8 = vmul.f32 %v3551_v29, %v10646_v9 }
 0x33a   : > { %v3112_v23 = vpack.c.bf16 %v3079_v32, %v3079_v32  ;;  %v3113_v53 = vpack.c.bf16 %v3080_v0, %v3080_v0  ;;  %v4262_v59 = vpack.c.bf16 %v4230_v15, %v4230_v15  ;;  %v3991_v27 = vunpack.c.l.bf16 %v3958_v57 }
 0x33b   : > { %v3616_v41 = vpack.c.bf16 %v3583_v11, %v3583_v11  ;;  %v3992_v48 = vunpack.c.l.bf16 %v3959_v19  ;;  %v9487_v45 = vunpack.c.l.bf16 %v4261_v17  ;;  %v3617_v46 = vpack.c.bf16 %v3584_v8, %v3584_v8 }
 0x33c   : > { %v3216_v4 = vunpack.c.l.bf16 %v3112_v23  ;;  %v3217_v56 = vunpack.c.l.bf16 %v3113_v53  ;;  %v9489_v51 = vunpack.c.l.bf16 %v4262_v59  ;;  %v3337_v42 = vsel %vm1277_vm2, %v3334_v5, %v3336_v30  ;;  %v5273_v53 = vpop.f32.mrf.mxu1 }
 0x33d   : > { %v3682_v22 = vunpack.c.l.bf16 %v3616_v41  ;;  %v4024_v12 = vmul.f32 %v3991_v27, %v10641_v10  ;;  %v4025_v20 = vmul.f32 %v3992_v48, %v10642_v13  ;;  %v5345_v54 = vmax.f32 %v9429_v26, 0.0 }
 0x33e   : > { %v3409_v7 = vadd.f32 %v3335_v62, %v3216_v4  ;;  %v3410_v35 = vadd.f32 %v3337_v42, %v3217_v56  ;;  %v9497_v32 = vunpack.c.l.bf16 %v3617_v46  ;;  %v4411_v11 = vrot.slane %v9487_v45, 1  ;;  %v10650_v4 = vld [vmem:[#allocation7_spill] sm:$0xff] }
 0x33f   : > { %v3769_v0 = vrot.slane %v3682_v22, 2  ;;  %v4057_v29 = vpack.c.bf16 %v4024_v12, %v4024_v12  ;;  %v4058_v15 = vpack.c.bf16 %v4025_v20, %v4025_v20  ;;  %v4413_v17 = vrot.slane %v9489_v51, 1  ;;  %v10651_v12 = vld [vmem:[#allocation18_spill] sm:$0xff] }
 0x340   : > { %v3442_v57 = vpack.c.bf16 %v3409_v7, %v3409_v7  ;;  %v3443_v19 = vpack.c.bf16 %v3410_v35, %v3410_v35  ;;  %v3771_v5 = vrot.slane %v9497_v32, 2  ;;  %v10649_v10 = vrot.slane %v9371_v60, 2  ;;  %v9515_v60 = vld [vmem:[%s9987_s7] ss:$0 sm:$0xff] }
 0x341   : > { %v4123_v26 = vunpack.c.l.bf16 %v4057_v29  ;;  %v4124_v62 = vunpack.c.l.bf16 %v4058_v15  ;;  %v6192_v23 = vunpack.c.h.bf16 %v9375_v47  ;;  %v4626_v27 = vmul.f32 %v9464_v58, %v6928_v36 }
 0x342   : > { %v3770_v13 = vsel %vm2588_vm4, %v10649_v10, %v3769_v0  ;;  %v3649_v8 = vunpack.c.l.bf16 %v3442_v57  ;;  %v3650_v59 = vunpack.c.l.bf16 %v3443_v19  ;;  %v3772_v41 = vsel %vm2588_vm4, %v3769_v0, %v3771_v5 }
 0x343   : > { %v4625_v48 = vmul.f32 %v6192_v23, %v6928_v36  ;;  %v5274_v45 = vadd.f32 %v9515_v60, %v5273_v53  ;;  %v818_v47 = vmul.f32 %v8827_v63, %v10335_v2  ;;  %v819_v56 = vmul.f32 %v10650_v4, %v10335_v2 }
 0x344   : > { %v3846_v46 = vadd.f32 %v3770_v13, %v3649_v8  ;;  %v3847_v42 = vadd.f32 %v3772_v41, %v3650_v59  ;;  %v4659_v22 = vpack.c.bf16 %v4626_v27, %v4626_v27  ;;  %v1503_v20 = vpack.c.bf16 %v10651_v12, %v10651_v12 }
 0x345   : > { %v4658_v7 = vpack.c.bf16 %v4625_v48, %v4625_v48  ;;  %v5346_v35 = vmax.f32 %v5274_v45, 0.0  ;;  %v851_v0 = vpack.c.bf16 %v818_v47, %v818_v47  ;;  %v852_v29 = vpack.c.bf16 %v819_v56, %v819_v56  ;;  %v10652_v45 = vld [vmem:[#allocation53_spill] sm:$0xff]  ;;  %v10653_v56 = vld [vmem:[#allocation52_spill] sm:$0xff] }
 0x346   : > { %v3879_v15 = vpack.c.bf16 %v3846_v46, %v3846_v46  ;;  %v3880_v57 = vpack.c.bf16 %v3847_v42, %v3847_v42  ;;  %v4692_v19 = vunpack.c.l.bf16 %v4659_v22  ;;  %v1504_v10 = vpack.c.bf16 %v8990_v50, %v8990_v50 }
 0x347   : > { %v4691_v63 = vunpack.c.l.bf16 %v4658_v7  ;;  %v5375_v23 = vpack.c.bf16 %v5346_v35, %v5345_v54  ;;  %v1204_v53 = vunpack.c.l.bf16 %v851_v0  ;;  %v1205_v4 = vunpack.c.l.bf16 %v852_v29 }
 0x348   : > { %v4090_v13 = vunpack.c.l.bf16 %v3879_v15  ;;  %v4091_v8 = vunpack.c.l.bf16 %v3880_v57  ;;  %v4725_v59 = vmul.f32 %v4692_v19, %v10646_v9  ;;  %v1568_v41 = vunpack.c.l.bf16 %v1503_v20 }
 0x349   : > { %v4412_v27 = vsel %vm1277_vm2, %v4409_v61, %v4411_v11  ;;  %v4724_v48 = vmul.f32 %v4691_v63, %v10645_v40  ;;  %5475 = vmatmul.bf16.gmra.mxu2 %v5375_v23  ;;  %v1398_v47 = vmul.f32 %v10652_v45, %v1204_v53  ;;  %v1399_v50 = vmul.f32 %v10653_v56, %v1205_v4  ;;  %v10654_v53 = vld [vmem:[#allocation9_spill] sm:$0xff] }
 0x34a   : > { %v4156_v46 = vadd.f32 %v4123_v26, %v4090_v13  ;;  %v4157_v54 = vadd.f32 %v4124_v62, %v4091_v8  ;;  %v4758_v42 = vpack.c.bf16 %v4725_v59, %v4725_v59  ;;  %v9533_v22 = vunpack.c.l.bf16 %v1504_v10 }
 0x34b   : > { %v4757_v12 = vpack.c.bf16 %v4724_v48, %v4724_v48  ;;  %v1431_v7 = vpack.c.bf16 %v1398_v47, %v1398_v47  ;;  %v1432_v9 = vpack.c.bf16 %v1399_v50, %v1399_v50  ;;  %v1655_v20 = vrot.slane %v1568_v41, 1 }
 0x34c   : > { %v4189_v35 = vpack.c.bf16 %v4156_v46, %v4156_v46  ;;  %v4190_v37 = vpack.c.bf16 %v4157_v54, %v4157_v54  ;;  %v4414_v61 = vsel %vm1277_vm2, %v4411_v11, %v4413_v17  ;;  %v9538_v40 = vunpack.c.l.bf16 %v4758_v42 }
 0x34d   : > { %v4823_v0 = vunpack.c.l.bf16 %v4757_v12  ;;  %v1535_v29 = vunpack.c.l.bf16 %v1431_v7  ;;  %v1536_v15 = vunpack.c.l.bf16 %v1432_v9  ;;  %v1656_v26 = vsel %vm1277_vm2, %v1653_v14, %v1655_v20 }
 0x34e   : > { %v4293_v62 = vunpack.c.l.bf16 %v4189_v35  ;;  %v4294_v57 = vunpack.c.l.bf16 %v4190_v37  ;;  %v4912_v19 = vrot.slane %v9538_v40, 2  ;;  %v1657_v10 = vrot.slane %v9533_v22, 1  ;;  %v10656_v35 = vld [vmem:[#allocation64_spill] sm:$0xff]  ;;  %v10657_v37 = vld [vmem:[#allocation62_spill] sm:$0xff] }
 0x34f   : > { %v4910_v63 = vrot.slane %v4823_v0, 2  ;;  %v1728_v23 = vadd.f32 %v1656_v26, %v1535_v29  ;;  %v1900_v11 = vpack.c.bf16 %v10654_v53, %v10654_v53  ;;  %v1901_v4 = vpack.c.bf16 %v9024_v31, %v9024_v31 }
 0x350   : > { %v10655_v13 = vpack.c.bf16 %v9035_v1, %v9035_v1  ;;  %v4486_v14 = vadd.f32 %v4412_v27, %v4293_v62  ;;  %v4487_v8 = vadd.f32 %v4414_v61, %v4294_v57  ;;  %v1658_v59 = vsel %vm1277_vm2, %v1655_v20, %v1657_v10 }
 0x351   : > { %v4913_v41 = vsel %vm2588_vm4, %v4910_v63, %v4912_v19  ;;  %v1729_v48 = vadd.f32 %v1658_v59, %v1536_v15  ;;  %v1761_v47 = vpack.c.bf16 %v1728_v23, %v1728_v23  ;;  %v9561_v50 = vunpack.c.h.bf16 %v9451_v52 }
 0x352   : > { %v9552_v3 = vunpack.c.l.bf16 %v10655_v13  ;;  %v4519_v31 = vpack.c.bf16 %v4486_v14, %v4486_v14  ;;  %v4520_v46 = vpack.c.bf16 %v4487_v8, %v4487_v8  ;;  %v2253_v1 = vunpack.c.l.bf16 %v1900_v11 }
 0x353   : > { %v2254_v54 = vunpack.c.l.bf16 %v1901_v4  ;;  %v4911_v27 = vsel %vm2588_vm4, %v4908_v24, %v4910_v63  ;;  %v1762_v42 = vpack.c.bf16 %v1729_v48, %v1729_v48  ;;  %v2850_v12 = vmul.f32 %v8964_v43, %v10470_v44 }
 0x354   : > { %v2851_v7 = vmul.f32 %v9436_v39, %v10470_v44  ;;  %v4790_v9 = vunpack.c.l.bf16 %v4519_v31  ;;  %v4791_v20 = vunpack.c.l.bf16 %v4520_v46  ;;  %v2447_v52 = vmul.f32 %v10656_v35, %v2253_v1 }
 0x355   : > { %v2448_v61 = vmul.f32 %v10657_v37, %v2254_v54  ;;  %v2513_v0 = vunpack.c.l.bf16 %v1761_v47  ;;  %v2883_v29 = vpack.c.bf16 %v2850_v12, %v2850_v12  ;;  %v3154_v28 = vmul.f32 %v9436_v39, %v10366_v33 }
 0x356   : > { %v2884_v15 = vpack.c.bf16 %v2851_v7, %v2851_v7  ;;  %v4987_v24 = vadd.f32 %v4911_v27, %v4790_v9  ;;  %v4988_v26 = vadd.f32 %v4913_v41, %v4791_v20  ;;  %v2480_v62 = vpack.c.bf16 %v2447_v52, %v2447_v52 }
 0x357   : > { %v2481_v57 = vpack.c.bf16 %v2448_v61, %v2448_v61  ;;  %v2916_v43 = vunpack.c.l.bf16 %v2883_v29  ;;  %v3155_v23 = vmul.f32 %v9464_v58, %v10366_v33  ;;  %v3186_v53 = vpack.c.bf16 %v3154_v28, %v3154_v28 }
 0x358   : > { %v2917_v63 = vunpack.c.l.bf16 %v2884_v15  ;;  %v5009_v11 = vpack.c.bf16 %v4988_v26, %v4987_v24  ;;  %v2514_v4 = vunpack.c.l.bf16 %v1762_v42  ;;  %v2546_v13 = vunpack.c.l.bf16 %v2480_v62 }
 0x359   : > { %v9576_v14 = vunpack.c.l.bf16 %v2481_v57  ;;  %v2949_v8 = vmul.f32 %v2916_v43, %v10652_v45  ;;  %v3187_v48 = vpack.c.bf16 %v3155_v23, %v3155_v23  ;;  %v3251_v47 = vunpack.c.l.bf16 %v3186_v53 }
 0x35a   : > { %v2950_v59 = vmul.f32 %v2917_v63, %v10653_v56  ;;  %v5135_v41 = vshrl.u32 %v5009_v11, 16  ;;  %v5138_v31 = vshll.u32 %v5009_v11, 16  ;;  %v2636_v46 = vrot.slane %v2546_v13, 2 }
 0x35b   : > { %v2638_v1 = vrot.slane %v9576_v14, 2  ;;  %v2982_v54 = vpack.c.bf16 %v2949_v8, %v2949_v8  ;;  %v9581_v12 = vunpack.c.l.bf16 %v3187_v48  ;;  %v3486_v42 = vmul.f32 %v9436_v39, %v7390_v6 }
 0x35c   : > { %v2983_v27 = vpack.c.bf16 %v2950_v59, %v2950_v59  ;;  %v5137_v7 = vrot.slane %v5135_v41, 3  ;;  %v5140_v9 = vrot.slane %v5138_v31, 4  ;;  %v2637_v20 = vsel %vm2588_vm4, %v2634_v49, %v2636_v46  ;;  %v10659_v41 = vld [vmem:[#allocation42_spill] sm:$0xff] }
 0x35d   : > { %v2639_v52 = vsel %vm2588_vm4, %v2636_v46, %v2638_v1  ;;  %v10658_v61 = vpack.c.bf16 %v9039_v21, %v9039_v21  ;;  %v2711_v15 = vadd.f32 %v2637_v20, %v2513_v0  ;;  %v3338_v24 = vrot.slane %v3251_v47, 1 }
 0x35e   : > { %v2712_v28 = vadd.f32 %v2639_v52, %v2514_v4  ;;  %v9596_v26 = vor.u32 %v5140_v9, %v5137_v7  ;;  %v3048_v39 = vunpack.c.l.bf16 %v2982_v54  ;;  %v3049_v62 = vunpack.c.l.bf16 %v2983_v27 }
 0x35f   : > { %v9594_v29 = vunpack.c.l.bf16 %v10658_v61  ;;  %v3487_v25 = vmul.f32 %v9464_v58, %v7390_v6  ;;  %v2744_v49 = vpack.c.bf16 %v2711_v15, %v2711_v15  ;;  %v3519_v43 = vpack.c.bf16 %v3486_v42, %v3486_v42 }
 0x360   : > { %v2745_v57 = vpack.c.bf16 %v2712_v28, %v2712_v28  ;;  %v3927_v63 = vmul.f32 %v9464_v58, %v10491_v38  ;;  %v5142_v21 = vsel %vm5035_vm5, %v9469_v34, %v9596_v26  ;;  %v3340_v0 = vrot.slane %v9581_v12, 1 }
 0x361   : > { %v3520_v23 = vpack.c.bf16 %v3487_v25, %v3487_v25  ;;  %v3928_v53 = vmul.f32 %v9561_v50, %v10491_v38  ;;  %5310 = vmatmul.bf16.gmra.mxu1 %v5142_v21  ;;  %v3015_v11 = vunpack.c.l.bf16 %v2744_v49  ;;  %v3552_v13 = vunpack.c.l.bf16 %v3519_v43 }
 0x362   : > { %v3016_v4 = vunpack.c.l.bf16 %v2745_v57  ;;  %v3960_v8 = vpack.c.bf16 %v3927_v63, %v3927_v63  ;;  %v4231_v47 = vmul.f32 %v9561_v50, %v10519_v16  ;;  %v4232_v31 = vmul.f32 %v10659_v41, %v10519_v16 }
 0x363   : > { %v3553_v59 = vunpack.c.l.bf16 %v3520_v23  ;;  %v3961_v48 = vpack.c.bf16 %v3928_v53, %v3928_v53  ;;  %v3081_v34 = vadd.f32 %v3048_v39, %v3015_v11  ;;  %v3585_v54 = vmul.f32 %v3552_v13, %v10656_v35 }
 0x364   : > { %v3082_v46 = vadd.f32 %v3049_v62, %v3016_v4  ;;  %v3993_v27 = vunpack.c.l.bf16 %v3960_v8  ;;  %v4263_v7 = vpack.c.bf16 %v4231_v47, %v4231_v47  ;;  %v4264_v9 = vpack.c.bf16 %v4232_v31, %v4232_v31 }
 0x365   : > { %v3586_v38 = vmul.f32 %v3553_v59, %v10657_v37  ;;  %v3994_v42 = vunpack.c.l.bf16 %v3961_v48  ;;  %v3114_v20 = vpack.c.bf16 %v3081_v34, %v3081_v34  ;;  %v3618_v61 = vpack.c.bf16 %v3585_v54, %v3585_v54  ;;  %v10661_v54 = vld [vmem:[#allocation69_spill] sm:$0xff] }
 0x366   : > { %v3115_v52 = vpack.c.bf16 %v3082_v46, %v3082_v46  ;;  %v4026_v15 = vmul.f32 %v3993_v27, %v10652_v45  ;;  %v4328_v49 = vunpack.c.l.bf16 %v4263_v7  ;;  %v9616_v57 = vunpack.c.l.bf16 %v4264_v9 }
 0x367   : > { %v3619_v28 = vpack.c.bf16 %v3586_v38, %v3586_v38  ;;  %v4027_v25 = vmul.f32 %v3994_v42, %v10653_v56  ;;  %v3218_v39 = vunpack.c.l.bf16 %v3114_v20  ;;  %v3684_v43 = vunpack.c.l.bf16 %v3618_v61  ;;  %v10663_v42 = vld [vmem:[#allocation50_spill] sm:$0xff]  ;;  %v10665_v61 = vld [vmem:[#allocation59_spill] sm:$0xff] }
 0x368   : > { %v3219_v62 = vunpack.c.l.bf16 %v3115_v52  ;;  %v4059_v63 = vpack.c.bf16 %v4026_v15, %v4026_v15  ;;  %v3339_v37 = vsel %vm1277_vm2, %v3336_v30, %v3338_v24  ;;  %v3341_v21 = vsel %vm1277_vm2, %v3338_v24, %v3340_v0  ;;  %v10664_v52 = vld [vmem:[#allocation58_spill] sm:$0xff] }
 0x369   : > { %v9624_v23 = vunpack.c.l.bf16 %v3619_v28  ;;  %v4060_v45 = vpack.c.bf16 %v4027_v25, %v4027_v25  ;;  %v3411_v53 = vadd.f32 %v3339_v37, %v3218_v39  ;;  %v3773_v11 = vrot.slane %v3684_v43, 2  ;;  %v10667_v37 = vld [vmem:[#allocation71_spill] sm:$0xff] }
 0x36a   : > { %v3412_v56 = vadd.f32 %v3341_v21, %v3219_v62  ;;  %v4415_v4 = vrot.slane %v4328_v49, 1  ;;  %v4125_v8 = vunpack.c.l.bf16 %v4059_v63  ;;  %v4417_v48 = vrot.slane %v9616_v57, 1  ;;  %v10666_v63 = vld [vmem:[#allocation11_spill] sm:$0xff] }
 0x36b   : > { %v3775_v13 = vrot.slane %v9624_v23, 2  ;;  %v4126_v59 = vunpack.c.l.bf16 %v4060_v45  ;;  %v3444_v18 = vpack.c.bf16 %v3411_v53, %v3411_v53  ;;  %v3774_v30 = vsel %vm2588_vm4, %v3771_v5, %v3773_v11  ;;  %v9660_v45 = vpop.f32.mrf.mxu1 }
 0x36c   : > { %v3445_v47 = vpack.c.bf16 %v3412_v56, %v3412_v56  ;;  %v4627_v24 = vmul.f32 %v9561_v50, %v6928_v36  ;;  %v10660_v34 = vpack.c.bf16 %v8979_v55, %v8979_v55  ;;  %v10662_v27 = vpack.c.bf16 %v10661_v54, %v10661_v54 }
 0x36d   : > { %v3776_v31 = vsel %vm2588_vm4, %v3773_v11, %v3775_v13  ;;  %v1659_v7 = vrot.slane %v10663_v42, 1  ;;  %v3651_v32 = vunpack.c.l.bf16 %v3444_v18  ;;  %v4416_v36 = vsel %vm1277_vm2, %v4413_v17, %v4415_v4 }
 0x36e   : > { %v1206_v46 = vunpack.c.l.bf16 %v10660_v34  ;;  %v1207_v38 = vunpack.c.l.bf16 %v10662_v27  ;;  %v3652_v9 = vunpack.c.l.bf16 %v3445_v47  ;;  %v4660_v5 = vpack.c.bf16 %v4627_v24, %v4627_v24 }
 0x36f   : > { %v4418_v20 = vsel %vm1277_vm2, %v4415_v4, %v4417_v48  ;;  %v1661_v28 = vrot.slane %v9552_v3, 1  ;;  %v3848_v25 = vadd.f32 %v3774_v30, %v3651_v32  ;;  %v1660_v51 = vsel %vm1277_vm2, %v1657_v10, %v1659_v7  ;;  %v10668_v4 = vld [vmem:[#allocation72_spill] sm:$0xff] }
 0x370   : > { %v1400_v55 = vmul.f32 %v10664_v52, %v1206_v46  ;;  %v1401_v15 = vmul.f32 %v10665_v61, %v1207_v38  ;;  %v3849_v49 = vadd.f32 %v3776_v31, %v3652_v9  ;;  %v4693_v39 = vunpack.c.l.bf16 %v4660_v5 }
 0x371   : > { %v1662_v43 = vsel %vm1277_vm2, %v1659_v7, %v1661_v28  ;;  %v2449_v21 = vmul.f32 %v10667_v37, %v10666_v63  ;;  %v3881_v53 = vpack.c.bf16 %v3848_v25, %v3848_v25  ;;  %v2450_v22 = vmul.f32 %v10668_v4, %v9594_v29  ;;  %v10669_v63 = vld [vmem:[#allocation32_spill] sm:$0xff] }
 0x372   : > { %v1433_v62 = vpack.c.bf16 %v1400_v55, %v1400_v55  ;;  %v1434_v17 = vpack.c.bf16 %v1401_v15, %v1401_v15  ;;  %v3882_v56 = vpack.c.bf16 %v3849_v49, %v3849_v49  ;;  %v4726_v11 = vmul.f32 %v4693_v39, %v10656_v35 }
 0x373   : > { %v2482_v47 = vpack.c.bf16 %v2449_v21, %v2449_v21  ;;  %v2852_v30 = vmul.f32 %v9464_v58, %v10470_v44  ;;  %v4092_v24 = vunpack.c.l.bf16 %v3881_v53  ;;  %v2483_v46 = vpack.c.bf16 %v2450_v22, %v2450_v22 }
 0x374   : > { %v1537_v18 = vunpack.c.l.bf16 %v1433_v62  ;;  %v1538_v10 = vunpack.c.l.bf16 %v1434_v17  ;;  %v4093_v31 = vunpack.c.l.bf16 %v3882_v56  ;;  %v4759_v34 = vpack.c.bf16 %v4726_v11, %v4726_v11 }
 0x375   : > { %v2548_v38 = vunpack.c.l.bf16 %v2482_v47  ;;  %v2853_v42 = vmul.f32 %v9561_v50, %v10470_v44  ;;  %v4158_v35 = vadd.f32 %v4125_v8, %v4092_v24  ;;  %v9669_v29 = vunpack.c.l.bf16 %v2483_v46 }
 0x376   : > { %v1730_v54 = vadd.f32 %v1660_v51, %v1537_v18  ;;  %v1731_v27 = vadd.f32 %v1662_v43, %v1538_v10  ;;  %v4159_v7 = vadd.f32 %v4126_v59, %v4093_v31  ;;  %v4825_v32 = vunpack.c.l.bf16 %v4759_v34  ;;  %v5278_v18 = vpop.f32.mrf.mxu1 }
 0x377   : > { %v2640_v55 = vrot.slane %v2548_v38, 2  ;;  %v2885_v15 = vpack.c.bf16 %v2852_v30, %v2852_v30  ;;  %v4191_v58 = vpack.c.bf16 %v4158_v35, %v4158_v35  ;;  %v2642_v39 = vrot.slane %v9669_v29, 2 }
 0x378   : > { %v1763_v9 = vpack.c.bf16 %v1730_v54, %v1730_v54  ;;  %v1764_v5 = vpack.c.bf16 %v1731_v27, %v1731_v27  ;;  %v4192_v25 = vpack.c.bf16 %v4159_v7, %v4159_v7  ;;  %v4914_v49 = vrot.slane %v4825_v32, 2 }
 0x379   : > { %v2641_v44 = vsel %vm2588_vm4, %v2638_v1, %v2640_v55  ;;  %v2886_v8 = vpack.c.bf16 %v2853_v42, %v2853_v42  ;;  %v4295_v59 = vunpack.c.l.bf16 %v4191_v58  ;;  %v10670_v21 = vrot.slane %v10669_v63, 2 }
 0x37a   : > { %v2515_v51 = vunpack.c.l.bf16 %v1763_v9  ;;  %v2516_v62 = vunpack.c.l.bf16 %v1764_v5  ;;  %v4296_v17 = vunpack.c.l.bf16 %v4192_v25  ;;  %v4915_v43 = vsel %vm2588_vm4, %v4912_v19, %v4914_v49  ;;  %v10671_v25 = vld [vmem:[#allocation76_spill] sm:$0xff] }
 0x37b   : > { %v4917_v53 = vsel %vm2588_vm4, %v4914_v49, %v10670_v21  ;;  %v2643_v56 = vsel %vm2588_vm4, %v2640_v55, %v2642_v39  ;;  %v2918_v4 = vunpack.c.l.bf16 %v2885_v15  ;;  %v2919_v14 = vunpack.c.l.bf16 %v2886_v8  ;;  %v10672_v49 = vld [vmem:[#allocation40_spill] sm:$0xff]  ;;  %v10675_v21 = vld [vmem:[#allocation77_spill] sm:$0xff] }
 0x37c   : > { %v2713_v11 = vadd.f32 %v2641_v44, %v2515_v51  ;;  %v4488_v22 = vadd.f32 %v4416_v36, %v4295_v59  ;;  %v4489_v1 = vadd.f32 %v4418_v20, %v4296_v17  ;;  %v2714_v10 = vadd.f32 %v2643_v56, %v2516_v62  ;;  %v10674_v17 = vld [vmem:[#allocation5_spill] sm:$0xff] }
 0x37d   : > { %v3156_v40 = vmul.f32 %v9561_v50, %v10366_v33  ;;  %v2951_v19 = vmul.f32 %v2918_v4, %v10664_v52  ;;  %v2952_v30 = vmul.f32 %v2919_v14, %v10665_v61  ;;  %v3157_v24 = vmul.f32 %v10659_v41, %v10366_v33  ;;  %v10676_v14 = vld [vmem:[#allocation43_spill] sm:$0xff] }
 0x37e   : > { %v2746_v47 = vpack.c.bf16 %v2713_v11, %v2713_v11  ;;  %v4521_v31 = vpack.c.bf16 %v4488_v22, %v4488_v22  ;;  %v4522_v34 = vpack.c.bf16 %v4489_v1, %v4489_v1  ;;  %v2747_v46 = vpack.c.bf16 %v2714_v10, %v2714_v10 }
 0x37f   : > { %v3188_v54 = vpack.c.bf16 %v3156_v40, %v3156_v40  ;;  %v5279_v36 = vadd.f32 %v9515_v60, %v5278_v18  ;;  %v2984_v20 = vpack.c.bf16 %v2951_v19, %v2951_v19  ;;  %v2985_v27 = vpack.c.bf16 %v2952_v30, %v2952_v30  ;;  %v10677_v30 = vld [vmem:[#allocation87_spill] sm:$0xff] }
 0x380   : > { %v3189_v38 = vpack.c.bf16 %v3157_v24, %v3157_v24  ;;  %v4792_v42 = vunpack.c.l.bf16 %v4521_v31  ;;  %v4793_v35 = vunpack.c.l.bf16 %v4522_v34  ;;  %v3018_v7 = vunpack.c.l.bf16 %v2747_v46 }
 0x381   : > { %v3253_v32 = vunpack.c.l.bf16 %v3188_v54  ;;  %v3017_v9 = vunpack.c.l.bf16 %v2746_v47  ;;  %v3050_v52 = vunpack.c.l.bf16 %v2984_v20  ;;  %v3051_v5 = vunpack.c.l.bf16 %v2985_v27 }
 0x382   : > { %v3488_v61 = vmul.f32 %v9561_v50, %v7390_v6  ;;  %v4989_v41 = vadd.f32 %v4915_v43, %v4792_v42  ;;  %v4990_v55 = vadd.f32 %v4917_v53, %v4793_v35  ;;  %v9693_v15 = vunpack.c.l.bf16 %v3189_v38 }
 0x383   : > { %v3342_v58 = vrot.slane %v3253_v32, 1  ;;  %v10673_v51 = vrot.slane %v10672_v49, 1  ;;  %v3083_v44 = vadd.f32 %v3050_v52, %v3017_v9  ;;  %v3084_v8 = vadd.f32 %v3051_v5, %v3018_v7  ;;  %v10684_v7 = vld [vmem:[#allocation4_spill] sm:$0xff]  ;;  %v10685_v5 = vld [vmem:[#allocation57_spill] sm:$0xff] }
 0x384   : > { %v3521_v59 = vpack.c.bf16 %v3488_v61, %v3488_v61  ;;  %v1475_v56 = vmul.f32 %v10675_v21, %v10674_v17  ;;  %v5277_v11 = vadd.f32 %v9515_v60, %v9660_v45  ;;  %v5010_v6 = vpack.c.bf16 %v4990_v55, %v4989_v41  ;;  %v10691_v17 = vld [vmem:[#allocation97_spill] sm:$0xff] }
 0x385   : > { %v9698_v62 = vadd.f32 %v10673_v51, %v10671_v25  ;;  %v5348_v50 = vmax.f32 %v5279_v36, 0.0  ;;  %v3116_v43 = vpack.c.bf16 %v3083_v44, %v3083_v44  ;;  %v3117_v53 = vpack.c.bf16 %v3084_v8, %v3084_v8  ;;  %v10688_v51 = vld [vmem:[#allocation113_spill] sm:$0xff] }
 0x386   : > { %v3554_v4 = vunpack.c.l.bf16 %v3521_v59  ;;  %v4233_v22 = vmul.f32 %v10676_v14, %v10519_v16  ;;  %v5144_v1 = vshrl.u32 %v5010_v6, 16  ;;  %v5147_v18 = vshll.u32 %v5010_v6, 16 }
 0x387   : > { %v3343_v10 = vsel %vm1277_vm2, %v3340_v0, %v3342_v58  ;;  %v3344_v40 = vrot.slane %v9693_v15, 1  ;;  %v3220_v47 = vunpack.c.l.bf16 %v3116_v43  ;;  %v3221_v19 = vunpack.c.l.bf16 %v3117_v53  ;;  %v10680_v0 = vld [vmem:[#allocation99_spill] sm:$0xff]  ;;  %v10730_v15 = vld [vmem:[#allocation109_spill] sm:$0xff] }
 0x388   : > { %v3587_v45 = vmul.f32 %v3554_v4, %v10667_v37  ;;  %v10678_v24 = vrot.slane %v10677_v30, 2  ;;  %v10679_v31 = vrot.slane %v10669_v63, 2  ;;  %v5146_v46 = vrot.slane %v5144_v1, 3  ;;  %v10681_v37 = vld [vmem:[#allocation88_spill] sm:$0xff] }
 0x389   : > { %v5149_v54 = vrot.slane %v5147_v18, 4  ;;  %v3345_v12 = vsel %vm1277_vm2, %v3342_v58, %v3344_v40  ;;  %v4234_v36 = vmul.f32 %v10680_v0, %v10519_v16  ;;  %v3413_v20 = vadd.f32 %v3343_v10, %v3220_v47  ;;  %v10692_v47 = vld [vmem:[#allocation48_spill] sm:$0xff] }
 0x38a   : > { %v9716_v34 = vsel %vm2588_vm4, %v10679_v31, %v10678_v24  ;;  %v3414_v27 = vadd.f32 %v3345_v12, %v3221_v19  ;;  %v3620_v38 = vpack.c.bf16 %v3587_v45, %v3587_v45  ;;  %v10682_v42 = vrot.slane %v10681_v37, 2  ;;  %v10693_v45 = vld [vmem:[#allocation70_spill] sm:$0xff] }
 0x38b   : > { %v10683_v35 = vmov %v10678_v24  ;;  %v1871_v32 = vmul.f32 %v10675_v21, %v10684_v7  ;;  %v5347_v9 = vmax.f32 %v5277_v11, 0.0  ;;  %v9732_v52 = vor.u32 %v5149_v54, %v5146_v46  ;;  %v10694_v46 = vld [vmem:[#allocation36_spill] sm:$0xff] }
 0x38c   : > { %v9728_v63 = vsel %vm2588_vm4, %v10683_v35, %v10682_v42  ;;  %v10686_v61 = vrot.slane %v10685_v5, 2  ;;  %v10687_v41 = vmov %v10682_v42  ;;  %v3446_v58 = vpack.c.bf16 %v3413_v20, %v3413_v20 }
 0x38d   : > { %v3447_v25 = vpack.c.bf16 %v3414_v27, %v3414_v27  ;;  %v3686_v49 = vunpack.c.l.bf16 %v3620_v38  ;;  %v10689_v44 = vrot.slane %v10688_v51, 2  ;;  %v4926_v11 = vrot.slane %v10691_v17, 2  ;;  %v10700_v51 = vld [vmem:[#allocation98_spill] sm:$0xff] }
 0x38e   : > { %v9739_v55 = vsel %vm2588_vm4, %v10687_v41, %v10686_v61  ;;  %v10690_v8 = vmov %v10686_v61  ;;  %v5151_v6 = vsel %vm5035_vm5, %v9596_v26, %v9732_v52  ;;  %v4265_v43 = vpack.c.bf16 %v4233_v22, %v4233_v22 }
 0x38f   : > { %v9746_v59 = vsel %vm2588_vm4, %v10690_v8, %v10689_v44  ;;  %v4266_v53 = vpack.c.bf16 %v4234_v36, %v4234_v36  ;;  %5315 = vmatmul.bf16.gmra.mxu1 %v5151_v6  ;;  %v3653_v4 = vunpack.c.l.bf16 %v3446_v58  ;;  %v3654_v1 = vunpack.c.l.bf16 %v3447_v25  ;;  %v10698_v25 = vld [vmem:[#allocation56_spill] sm:$0xff]  ;;  %v10699_v8 = vld [vmem:[#allocation90_spill] sm:$0xff] }
 0x390   : > { %v3777_v18 = vrot.slane %v3686_v49, 2  ;;  %v5376_v10 = vpack.c.bf16 %v5348_v50, %v5347_v9  ;;  %v3968_v19 = vpack.c.bf16 %v10692_v47, %v10692_v47  ;;  %v822_v30 = vmul.f32 %v10693_v45, %v10335_v2  ;;  %v10697_v9 = vld [vmem:[#allocation68_spill] sm:$0xff]  ;;  %v10704_v47 = vld [vmem:[#allocation30_spill] sm:$0xff]  ;;  %v10705_v45 = vld [vmem:[#allocation21_spill] sm:$0xff] }
 0x391   : > { %v823_v24 = vmul.f32 %v10675_v21, %v10335_v2  ;;  %v1507_v31 = vpack.c.bf16 %v1475_v56, %v1475_v56  ;;  %v3452_v26 = vpack.c.bf16 %v9698_v62, %v9698_v62  ;;  %v10695_v54 = vrot.slane %v10694_v46, 2 }
 0x392   : > { %v3778_v22 = vsel %vm2588_vm4, %v3775_v13, %v3777_v18  ;;  %5480 = vmatmul.bf16.gmra.mxu2 %v5376_v10  ;;  %v1904_v12 = vpack.c.bf16 %v1871_v32, %v1871_v32  ;;  %v4330_v20 = vunpack.c.l.bf16 %v4265_v43  ;;  %v855_v27 = vpack.c.bf16 %v822_v30, %v822_v30 }
 0x393   : > { %v3780_v50 = vsel %vm2588_vm4, %v3777_v18, %v10695_v54  ;;  %v3850_v0 = vadd.f32 %v3778_v22, %v3653_v4  ;;  %v9766_v38 = vunpack.c.l.bf16 %v4266_v53  ;;  %v856_v2 = vpack.c.bf16 %v823_v24, %v823_v24 }
 0x394   : > { %v3851_v36 = vadd.f32 %v3780_v50, %v3654_v1  ;;  %v1572_v21 = vunpack.c.l.bf16 %v1507_v31  ;;  %v2257_v56 = vunpack.c.l.bf16 %v1904_v12  ;;  %v1208_v23 = vunpack.c.l.bf16 %v855_v27  ;;  %v10702_v1 = vld [vmem:[#allocation83_spill] sm:$0xff]  ;;  %v9793_v27 = vpop.f32.mrf.mxu1 }
 0x395   : > { %v3883_v62 = vpack.c.bf16 %v3850_v0, %v3850_v0  ;;  %v10696_v13 = vmov %v10689_v44  ;;  %v3659_v35 = vunpack.c.l.bf16 %v3452_v26  ;;  %v4001_v7 = vunpack.c.l.bf16 %v3968_v19  ;;  %v10706_v26 = vld [vmem:[#allocation6_spill] sm:$0xff] }
 0x396   : > { %v3884_v37 = vpack.c.bf16 %v3851_v36, %v3851_v36  ;;  %v9773_v42 = vsel %vm2588_vm4, %v10696_v13, %v4926_v11  ;;  %v1209_v32 = vunpack.c.l.bf16 %v856_v2  ;;  %v2451_v5 = vmul.f32 %v10697_v9, %v2257_v56 }
 0x397   : > { %v4094_v61 = vunpack.c.l.bf16 %v3883_v62  ;;  %v4419_v58 = vrot.slane %v4330_v20, 1  ;;  %v1402_v49 = vmul.f32 %v10698_v25, %v1208_v23  ;;  %v4421_v44 = vrot.slane %v9766_v38, 1  ;;  %v10707_v23 = vld [vmem:[#allocation103_spill] sm:$0xff] }
 0x398   : > { %v4095_v41 = vunpack.c.l.bf16 %v3884_v37  ;;  %v1403_v6 = vmul.f32 %v10699_v8, %v1209_v32  ;;  %v1663_v43 = vrot.slane %v1572_v21, 1  ;;  %v2484_v53 = vpack.c.bf16 %v2451_v5, %v2451_v5  ;;  %v10709_v32 = vld [vmem:[#allocation110_spill] sm:$0xff] }
 0x399   : > { %v10701_v4 = vrot.slane %v10700_v51, 2  ;;  %v10703_v18 = vrot.slane %v10702_v1, 2  ;;  %v4160_v19 = vadd.f32 %v10704_v47, %v4094_v61  ;;  %v1435_v24 = vpack.c.bf16 %v1402_v49, %v1402_v49 }
 0x39a   : > { %v4161_v30 = vadd.f32 %v10705_v45, %v4095_v41  ;;  %v4034_v22 = vmul.f32 %v4001_v7, %v10706_v26  ;;  %v1436_v46 = vpack.c.bf16 %v1403_v6, %v1403_v6  ;;  %v2550_v54 = vunpack.c.l.bf16 %v2484_v53  ;;  %v10712_v6 = vld [vmem:[#allocation116_spill] sm:$0xff]  ;;  %v10718_v45 = vld [vmem:[#allocation54_spill] sm:$0xff] }
 0x39b   : > { %v3790_v10 = vsel %vm2588_vm4, %v10703_v18, %v10701_v4  ;;  %v4193_v50 = vpack.c.bf16 %v4160_v19, %v4160_v19  ;;  %v4420_v0 = vsel %vm1277_vm2, %v4417_v48, %v4419_v58  ;;  %v1539_v36 = vunpack.c.l.bf16 %v1435_v24  ;;  %v10716_v18 = vld [vmem:[#allocation95_spill] sm:$0xff] }
 0x39c   : > { %v3856_v31 = vadd.f32 %v3790_v10, %v3659_v35  ;;  %v4194_v12 = vpack.c.bf16 %v4161_v30, %v4161_v30  ;;  %v4422_v20 = vsel %vm1277_vm2, %v4419_v58, %v4421_v44  ;;  %v1540_v2 = vunpack.c.l.bf16 %v1436_v46 }
 0x39d   : > { %v1664_v21 = vsel %vm1277_vm2, %v1661_v28, %v1663_v43  ;;  %v2644_v56 = vrot.slane %v2550_v54, 2  ;;  %v4297_v62 = vunpack.c.l.bf16 %v4193_v50  ;;  %v10708_v13 = vrot.slane %v10707_v23, 1  ;;  %v10711_v28 = vld [vmem:[#allocation108_spill] sm:$0xff] }
 0x39e   : > { %v4298_v37 = vunpack.c.l.bf16 %v4194_v12  ;;  %v1732_v48 = vadd.f32 %v1664_v21, %v1539_v36  ;;  %v10710_v9 = vrot.slane %v10709_v32, 2  ;;  %v3158_v3 = vmul.f32 %v10676_v14, %v10366_v33  ;;  %v10720_v12 = vld [vmem:[#allocation100_spill] sm:$0xff]  ;;  %v10721_v36 = vld [vmem:[#allocation114_spill] sm:$0xff] }
 0x39f   : > { %v1666_v57 = vsel %vm1277_vm2, %v1663_v43, %v10708_v13  ;;  %v2645_v7 = vsel %vm2588_vm4, %v2642_v39, %v2644_v56  ;;  %v9811_v61 = vmul.f32 %v10711_v28, %v10698_v25  ;;  %v4490_v41 = vadd.f32 %v4420_v0, %v4297_v62  ;;  %v10714_v39 = vld [vmem:[#allocation41_spill] sm:$0xff]  ;;  %v10722_v62 = vld [vmem:[#allocation104_spill] sm:$0xff] }
 0x3a0   : > { %v1733_v35 = vadd.f32 %v1666_v57, %v1540_v2  ;;  %v2647_v5 = vsel %vm2588_vm4, %v2644_v56, %v10710_v9  ;;  %v4491_v58 = vadd.f32 %v4422_v20, %v4298_v37  ;;  %v1765_v49 = vpack.c.bf16 %v1732_v48, %v1732_v48  ;;  %v10723_v9 = vld [vmem:[#allocation96_spill] sm:$0xff] }
 0x3a1   : > { %v10713_v43 = vpack.c.bf16 %v10712_v6, %v10712_v6  ;;  %v3889_v53 = vpack.c.bf16 %v3856_v31, %v3856_v31  ;;  %v10715_v51 = vunpack.c.l.bf16 %v10714_v39  ;;  %v10717_v33 = vpack.c.bf16 %v10716_v18, %v10716_v18 }
 0x3a2   : > { %v1766_v1 = vpack.c.bf16 %v1733_v35, %v1733_v35  ;;  %v4523_v10 = vpack.c.bf16 %v4490_v41, %v4490_v41  ;;  %v4524_v25 = vpack.c.bf16 %v4491_v58, %v4491_v58  ;;  %v2517_v47 = vunpack.c.l.bf16 %v1765_v49  ;;  %v5283_v35 = vpop.f32.mrf.mxu1 }
 0x3a3   : > { %v4700_v29 = vunpack.c.l.bf16 %v10713_v43  ;;  %v4238_v4 = vmul.f32 %v10519_v16, %v10715_v51  ;;  %v3052_v14 = vunpack.c.l.bf16 %v10717_v33  ;;  %v4067_v19 = vpack.c.bf16 %v4034_v22, %v4034_v22 }
 0x3a4   : > { %v10719_v30 = vunpack.c.l.bf16 %v10718_v45  ;;  %v2518_v26 = vunpack.c.l.bf16 %v1766_v1  ;;  %v3190_v46 = vpack.c.bf16 %v3158_v3, %v3158_v3  ;;  %v4794_v31 = vunpack.c.l.bf16 %v4523_v10 }
 0x3a5   : > { %v4795_v54 = vunpack.c.l.bf16 %v4524_v25  ;;  %v2715_v50 = vadd.f32 %v2645_v7, %v2517_v47  ;;  %v4236_v0 = vmul.f32 %v10519_v16, %v10720_v12  ;;  %v4733_v20 = vmul.f32 %v4700_v29, %v10721_v36 }
 0x3a6   : > { %v4237_v24 = vmul.f32 %v10519_v16, %v10719_v30  ;;  %v4100_v2 = vunpack.c.l.bf16 %v3889_v53  ;;  %v4270_v21 = vpack.c.bf16 %v4238_v4, %v4238_v4  ;;  %v2716_v56 = vadd.f32 %v2647_v5, %v2518_v26 }
 0x3a7   : > { %v3887_v22 = vpack.c.bf16 %v10722_v62, %v10722_v62  ;;  %v4991_v37 = vadd.f32 %v9716_v34, %v4794_v31  ;;  %v4992_v23 = vadd.f32 %v9728_v63, %v4795_v54  ;;  %v2748_v13 = vpack.c.bf16 %v2715_v50, %v2715_v50 }
 0x3a8   : > { %v4133_v57 = vunpack.c.l.bf16 %v4067_v19  ;;  %v4269_v48 = vpack.c.bf16 %v4237_v24, %v4237_v24  ;;  %v2749_v7 = vpack.c.bf16 %v2716_v56, %v2716_v56  ;;  %v3255_v32 = vunpack.c.l.bf16 %v3190_v46  ;;  %v10725_v19 = vld [vmem:[#allocation8_spill] sm:$0xff]  ;;  %v10728_v56 = vld [vmem:[#allocation115_spill] sm:$0xff] }
 0x3a9   : > { %v10724_v3 = vpack.c.bf16 %v10723_v9, %v10723_v9  ;;  %v5011_v41 = vpack.c.bf16 %v4992_v23, %v4991_v37  ;;  %v3019_v58 = vunpack.c.l.bf16 %v2748_v13  ;;  %v4268_v5 = vpack.c.bf16 %v4236_v0, %v4236_v0  ;;  %v10726_v0 = vld [vmem:[#allocation47_spill] sm:$0xff] }
 0x3aa   : > { %v4766_v49 = vpack.c.bf16 %v4733_v20, %v4733_v20  ;;  %v4166_v6 = vadd.f32 %v4133_v57, %v4100_v2  ;;  %v9835_v43 = vunpack.c.l.bf16 %v4270_v21  ;;  %v3020_v34 = vunpack.c.l.bf16 %v2749_v7  ;;  %v10727_v20 = vld [vmem:[#allocation61_spill] sm:$0xff] }
 0x3ab   : > { %v3053_v28 = vunpack.c.l.bf16 %v10724_v3  ;;  %v5153_v29 = vshrl.u32 %v5011_v41, 16  ;;  %v5156_v63 = vshll.u32 %v5011_v41, 16  ;;  %v5284_v53 = vadd.f32 %v9515_v60, %v5283_v35 }
 0x3ac   : > { %v3085_v39 = vadd.f32 %v3052_v14, %v3019_v58  ;;  %v4098_v51 = vunpack.c.l.bf16 %v3887_v22  ;;  %v4334_v4 = vunpack.c.l.bf16 %v4269_v48  ;;  %v3346_v18 = vrot.slane %v3255_v32, 1  ;;  %v5286_v58 = vpop.f32.mrf.mxu1 }
 0x3ad   : > { %v3086_v1 = vadd.f32 %v3053_v28, %v3020_v34  ;;  %v5155_v33 = vrot.slane %v5153_v29, 3  ;;  %v5158_v10 = vrot.slane %v5156_v63, 4  ;;  %v9838_v47 = vunpack.c.l.bf16 %v4268_v5 }
 0x3ae   : > { %v3118_v25 = vpack.c.bf16 %v3085_v39, %v3085_v39  ;;  %v4198_v45 = vpack.c.bf16 %v10725_v19, %v10725_v19  ;;  %v4199_v30 = vpack.c.bf16 %v4166_v6, %v4166_v6  ;;  %v4429_v24 = vrot.slane %v9835_v43, 1  ;;  %v10731_v6 = vld [vmem:[#allocation107_spill] sm:$0xff] }
 0x3af   : > { %v3119_v26 = vpack.c.bf16 %v3086_v1, %v3086_v1  ;;  %v9843_v46 = vor.u32 %v5158_v10, %v5155_v33  ;;  %v5282_v14 = vadd.f32 %v9515_v60, %v9793_v27  ;;  %v5350_v31 = vmax.f32 %v5284_v53, 0.0 }
 0x3b0   : > { %v3222_v54 = vunpack.c.l.bf16 %v3118_v25  ;;  %v3347_v12 = vsel %vm1277_vm2, %v3344_v40, %v3346_v18  ;;  %v4235_v36 = vmul.f32 %v10726_v0, %v10519_v16  ;;  %v4164_v2 = vadd.f32 %v10727_v20, %v4098_v51  ;;  %v10733_v51 = vld [vmem:[#allocation60_spill] sm:$0xff] }
 0x3b1   : > { %v3223_v50 = vunpack.c.l.bf16 %v3119_v26  ;;  %v5160_v21 = vsel %vm5035_vm5, %v9732_v52, %v9843_v46  ;;  %v10729_v62 = vrot.slane %v10728_v56, 1  ;;  %v4425_v37 = vrot.slane %v9838_v47, 1 }
 0x3b2   : > { %v3415_v22 = vadd.f32 %v3347_v12, %v3222_v54  ;;  %v4031_v23 = vmul.f32 %v10730_v15, %v10699_v8  ;;  %v4302_v40 = vunpack.c.l.bf16 %v4198_v45  ;;  %5320 = vmatmul.bf16.vlgmr.msrb.gmra.mxu3 %v5160_v21  ;;  %v4197_v16 = vpack.c.bf16 %v4164_v2, %v4164_v2 }
 0x3b3   : > { %v3349_v27 = vsel %vm1277_vm2, %v3346_v18, %v10729_v62  ;;  %v4832_v57 = vunpack.c.l.bf16 %v4766_v49  ;;  %v5349_v48 = vmax.f32 %v5282_v14, 0.0  ;;  %v4427_v7 = vrot.slane %v4334_v4, 1  ;;  %v10734_v18 = vld [vmem:[#allocation33_spill] sm:$0xff] }
 0x3b4   : > { %v3416_v13 = vadd.f32 %v3349_v27, %v3223_v50  ;;  %v3448_v35 = vpack.c.bf16 %v3415_v22, %v3415_v22  ;;  %v4303_v32 = vunpack.c.l.bf16 %v4199_v30  ;;  %v4267_v9 = vpack.c.bf16 %v4235_v36, %v4235_v36  ;;  %v5288_v27 = vpop.f32.mrf.mxu1 }
 0x3b5   : > { %v4301_v3 = vunpack.c.l.bf16 %v4197_v16  ;;  %v5377_v41 = vpack.c.bf16 %v5350_v31, %v5349_v48  ;;  %v4428_v5 = vsel %vm1277_vm2, %v4425_v37, %v4427_v7  ;;  %v4430_v8 = vsel %vm1277_vm2, %v4427_v7, %v4429_v24 }
 0x3b6   : > { %v3449_v52 = vpack.c.bf16 %v3416_v13, %v3416_v13  ;;  %v3655_v28 = vunpack.c.l.bf16 %v3448_v35  ;;  %v10732_v43 = vpack.c.bf16 %v10731_v6, %v10731_v6  ;;  %v4495_v63 = vadd.f32 %v4430_v8, %v4302_v40 }
 0x3b7   : > { %v4494_v29 = vadd.f32 %v4428_v5, %v4301_v3  ;;  %v4063_v53 = vpack.c.bf16 %v9811_v61, %v9811_v61  ;;  %v4928_v39 = vrot.slane %v4832_v57, 2  ;;  %5485 = vmatmul.bf16.gmra.mxu2 %v5377_v41  ;;  %v4064_v1 = vpack.c.bf16 %v4031_v23, %v4031_v23 }
 0x3b8   : > { %v4833_v49 = vunpack.c.l.bf16 %v10732_v43  ;;  %v3656_v34 = vunpack.c.l.bf16 %v3449_v52  ;;  %v3852_v4 = vadd.f32 %v10733_v51, %v3655_v28  ;;  %v4528_v25 = vpack.c.bf16 %v4495_v63, %v4495_v63 }
 0x3b9   : > { %v4527_v10 = vpack.c.bf16 %v4494_v29, %v4494_v29  ;;  %v4332_v45 = vunpack.c.l.bf16 %v4267_v9  ;;  %v4496_v30 = vadd.f32 %v4429_v24, %v4303_v32  ;;  %v4129_v50 = vunpack.c.l.bf16 %v4063_v53 }
 0x3ba   : > { %v3853_v33 = vadd.f32 %v10734_v18, %v3656_v34  ;;  %v3885_v19 = vpack.c.bf16 %v3852_v4, %v3852_v4  ;;  %v4930_v26 = vrot.slane %v4833_v49, 2  ;;  %v4799_v54 = vunpack.c.l.bf16 %v4528_v25 }
 0x3bb   : > { %v4798_v31 = vunpack.c.l.bf16 %v4527_v10  ;;  %v4929_v61 = vsel %vm2588_vm4, %v4926_v11, %v4928_v39  ;;  %v4529_v0 = vpack.c.bf16 %v4496_v30, %v4496_v30  ;;  %v4130_v36 = vunpack.c.l.bf16 %v4064_v1  ;;  %v9892_v10 = vld [vmem:[%s9987_s7] ss:$0 sm:$0xff] }
 0x3bc   : > { %v3886_v14 = vpack.c.bf16 %v3853_v33, %v3853_v33  ;;  %v4096_v12 = vunpack.c.l.bf16 %v3885_v19  ;;  %v4996_v21 = vadd.f32 %v4929_v61, %v4799_v54  ;;  %v4423_v62 = vrot.slane %v4332_v45, 1  ;;  %v5291_v38 = vpop.f32.mrf.mxu1  ;;  %v9902_v61 = vld [vmem:[%s9989_s9] ss:$0 sm:$0xff] }
 0x3bd   : > { %v4995_v2 = vadd.f32 %v9773_v42, %v4798_v31  ;;  %v4800_v24 = vunpack.c.l.bf16 %v4529_v0  ;;  %v5289_v15 = vadd.f32 %v9515_v60, %v5288_v27  ;;  %v4931_v40 = vsel %vm2588_vm4, %v4928_v39, %v4930_v26 }
 0x3be   : > { %v4097_v20 = vunpack.c.l.bf16 %v3886_v14  ;;  %v4162_v56 = vadd.f32 %v4129_v50, %v4096_v12  ;;  %v5287_v17 = vadd.f32 %v9515_v60, %v5286_v58  ;;  %v4424_v42 = vsel %vm1277_vm2, %v4421_v44, %v4423_v62  ;;  %v5466_v12 = vpop.f32.mrf.mxu2 }
 0x3bf   : > { %v5013_v23 = vpack.c.bf16 %v4996_v21, %v4995_v2  ;;  %v4997_v11 = vadd.f32 %v4931_v40, %v4800_v24  ;;  %v5352_v7 = vmax.f32 %v5289_v15, 0.0  ;;  %v4426_v9 = vsel %vm1277_vm2, %v4423_v62, %v4425_v37 }
 0x3c0   : > { %v4163_v22 = vadd.f32 %v4130_v36, %v4097_v20  ;;  %v4195_v13 = vpack.c.bf16 %v4162_v56, %v4162_v56  ;;  %v5351_v60 = vmax.f32 %v5287_v17, 0.0  ;;  %v5292_v19 = vadd.f32 %v9892_v10, %v5291_v38 }
 0x3c1   : > { %v5171_v57 = vshrl.u32 %v5013_v23, 16  ;;  %v5174_v48 = vshll.u32 %v5013_v23, 16  ;;  %v5014_v32 = vpack.c.bf16 %v4997_v11, %v4997_v11 }
 0x3c2   : > { %v4196_v16 = vpack.c.bf16 %v4163_v22, %v4163_v22  ;;  %v4299_v35 = vunpack.c.l.bf16 %v4195_v13  ;;  %v5378_v49 = vpack.c.bf16 %v5352_v7, %v5351_v60  ;;  %v5353_v14 = vmax.f32 %v5292_v19, 0.0 }
 0x3c3   : > { %v5173_v3 = vrot.slane %v5171_v57, 3  ;;  %v5176_v28 = vrot.slane %v5174_v48, 4  ;;  %v5180_v58 = vshrl.u32 %v5014_v32, 16  ;;  %v5183_v5 = vshll.u32 %v5014_v32, 16 }
 0x3c4   : > { %v4300_v52 = vunpack.c.l.bf16 %v4196_v16  ;;  %v4492_v41 = vadd.f32 %v4424_v42, %v4299_v35  ;;  %v5293_v1 = vpop.f32.mrf.mxu1 }
 0x3c5   : > { %v5177_v6 = vor.u32 %v5176_v28, %v5173_v3  ;;  %v5182_v34 = vrot.slane %v5180_v58, 3  ;;  %v5185_v44 = vrot.slane %v5183_v5, 4  ;;  %v5294_v25 = vadd.f32 %v9892_v10, %v5293_v1 }
 0x3c6   : > { %v4493_v8 = vadd.f32 %v4426_v9, %v4300_v52  ;;  %v4525_v43 = vpack.c.bf16 %v4492_v41, %v4492_v41  ;;  %v5468_v21 = vpop.f32.mrf.mxu2 }
 0x3c7   : > { %5490 = vmatmul.bf16.gmra.mxu2 %v5378_v49  ;;  %v5186_v53 = vor.u32 %v5185_v44, %v5182_v34  ;;  %v5469_v62 = vadd.f32 %v9902_v61, %v5468_v21 }
 0x3c8   : > { %v4526_v29 = vpack.c.bf16 %v4493_v8, %v4493_v8  ;;  %v4796_v63 = vunpack.c.l.bf16 %v4525_v43 }
 0x3c9   : > { %v5187_v39 = vsel %vm5035_vm5, %v5177_v6, %v5186_v53  ;;  %v5547_v22 = vmax.f32 %v5469_v62, 0.0 }
 0x3ca   : > { %v4797_v47 = vunpack.c.l.bf16 %v4526_v29  ;;  %v4993_v37 = vadd.f32 %v9739_v55, %v4796_v63  ;;  %v5354_v55 = vmax.f32 %v5294_v25, 0.0 }
 0x3cc   : > { %v4994_v51 = vadd.f32 %v9746_v59, %v4797_v47  ;;  %v5379_v54 = vpack.c.bf16 %v5354_v55, %v5353_v14  ;;  %v5296_v50 = vpop.f32.mrf.mxu1 }
 0x3cd   : > { %v5297_v0 = vadd.f32 %v9892_v10, %v5296_v50 }
 0x3ce   : > { %v5012_v4 = vpack.c.bf16 %v4994_v51, %v4993_v37  ;;  %v5471_v40 = vpop.f32.mrf.mxu2 }
 0x3cf   : > { %v5355_v56 = vmax.f32 %v5297_v0, 0.0  ;;  %v5472_v16 = vadd.f32 %v9902_v61, %v5471_v40 }
 0x3d0   : > { %v5162_v18 = vshrl.u32 %v5012_v4, 16  ;;  %v5165_v33 = vshll.u32 %v5012_v4, 16 }
 0x3d1   : > { %v5548_v32 = vmax.f32 %v5472_v16, 0.0 }
 0x3d2   : > { %v5164_v45 = vrot.slane %v5162_v18, 3  ;;  %v5167_v30 = vrot.slane %v5165_v33, 4 }
 0x3d4   : > { %v5168_v26 = vor.u32 %v5167_v30, %v5164_v45  ;;  %v5298_v36 = vpop.f32.mrf.mxu1 }
 0x3d5   : > { %v5299_v20 = vadd.f32 %v9892_v10, %v5298_v36 }
 0x3d6   : > { %v5169_v59 = vsel %vm5035_vm5, %v9843_v46, %v5168_v26  ;;  %v5178_v31 = vsel %vm5035_vm5, %v5168_v26, %v5177_v6  ;;  %v5467_v46 = vadd.f32 %v9902_v61, %v5466_v12  ;;  %v5473_v48 = vpop.f32.mrf.mxu2 }
 0x3d7   : > { %5325 = vmatmul.bf16.gmra.mxu3 %v5169_v59  ;;  %5495 = vmatmul.bf16.gmra.mxu2 %v5379_v54  ;;  %v5356_v2 = vmax.f32 %v5299_v20, 0.0  ;;  %v5474_v42 = vadd.f32 %v9902_v61, %v5473_v48 }
 0x3d8   : > { %v5546_v24 = vmax.f32 %v5467_v46, 0.0 }
 0x3d9   : > { %v5380_v27 = vpack.c.bf16 %v5356_v2, %v5355_v56  ;;  %v5549_v52 = vmax.f32 %v5474_v42, 0.0 }
 0x3da   : > { %v6212_v23 = vpack.c.bf16 %v5547_v22, %v5546_v24 }
 0x3db   : > { %v6217_v3 = vpack.c.bf16 %v5549_v52, %v5548_v32 }
 0x3dc   : > { %v5301_v15 = vpop.f32.mrf.mxu1  ;;  %6213 = vst [vmem:[%s9913_s20] sm:$0xff] %v6212_v23  }
 0x3dd   : > { %v5302_v13 = vadd.f32 %v9892_v10, %v5301_v15  ;;  %6364 = vst [vmem:[%s9913_s20 + $0x8] sm:$0xff] %v6217_v3  }
 0x3de   : > { %v5476_v28 = vpop.f32.mrf.mxu2 }
 0x3df   : > { %v5357_v35 = vmax.f32 %v5302_v13, 0.0  ;;  %v5477_v5 = vadd.f32 %v9902_v61, %v5476_v28 }
 0x3e1   : > { %v5550_v34 = vmax.f32 %v5477_v5, 0.0 }
 0x3e4   : > { %v5303_v17 = vpop.f32.mrf.mxu1 }
 0x3e5   : > { %v5304_v11 = vadd.f32 %v9892_v10, %v5303_v17 }
 0x3e6   : > { %v5478_v6 = vpop.f32.mrf.mxu2 }
 0x3e7   : > { %5330 = vmatmul.bf16.gmra.mxu3 %v5178_v31  ;;  %5500 = vmatmul.bf16.gmra.mxu2 %v5380_v27  ;;  %v5358_v57 = vmax.f32 %v5304_v11, 0.0  ;;  %v5479_v49 = vadd.f32 %v9902_v61, %v5478_v6 }
 0x3e9   : > { %v5381_v7 = vpack.c.bf16 %v5358_v57, %v5357_v35  ;;  %v5551_v44 = vmax.f32 %v5479_v49, 0.0 }
 0x3eb   : > { %v6222_v63 = vpack.c.bf16 %v5551_v44, %v5550_v34 }
 0x3ec   : > { %v5306_v9 = vpop.f32.mrf.mxu1 }
 0x3ed   : > { %v5307_v41 = vadd.f32 %v9892_v10, %v5306_v9  ;;  %6365 = vst [vmem:[%s9913_s20 + $0x10] sm:$0xff] %v6222_v63  }
 0x3ef   : > { %v5359_v43 = vmax.f32 %v5307_v41, 0.0 }
 0x3f4   : > { %v5308_v60 = vpop.f32.mrf.mxu1 }
 0x3f5   : > { %v5309_v58 = vadd.f32 %v9892_v10, %v5308_v60 }
 0x3f7   : > { %5335 = vmatmul.bf16.gmra.mxu3 %v5187_v39  ;;  %5505 = vmatmul.bf16.gmra.mxu2 %v5381_v7  ;;  %v5360_v8 = vmax.f32 %v5309_v58, 0.0 }
 0x3f9   : > { %v5382_v38 = vpack.c.bf16 %v5360_v8, %v5359_v43 }
 0x3fc   : > { %v5311_v29 = vpop.f32.mrf.mxu1 }
 0x3fd   : > { %v5312_v53 = vadd.f32 %v9892_v10, %v5311_v29 }
 0x3ff   : > { %v5361_v51 = vmax.f32 %v5312_v53, 0.0 }
 0x404   : > { %v5313_v47 = vpop.f32.mrf.mxu1 }
 0x405   : > { %v5314_v37 = vadd.f32 %v9892_v10, %v5313_v47 }
 0x407   : > { %5510 = vmatmul.bf16.gmra.mxu2 %v5382_v38  ;;  %v5362_v39 = vmax.f32 %v5314_v37, 0.0 }
 0x409   : > { %v5383_v4 = vpack.c.bf16 %v5362_v39, %v5361_v51 }
 0x40c   : > { %v5316_v1 = vpop.f32.mrf.mxu1 }
 0x40d   : > { %v5317_v33 = vadd.f32 %v9892_v10, %v5316_v1 }
 0x40f   : > { %v5363_v30 = vmax.f32 %v5317_v33, 0.0 }
 0x414   : > { %v5318_v25 = vpop.f32.mrf.mxu1 }
 0x415   : > { %v5481_v18 = vpop.f32.mrf.mxu2  ;;  %v5319_v19 = vadd.f32 %v9892_v10, %v5318_v25 }
 0x416   : > { %v5482_v55 = vadd.f32 %v9902_v61, %v5481_v18 }
 0x417   : > { %5515 = vmatmul.bf16.gmra.mxu2 %v5383_v4  ;;  %v5364_v45 = vmax.f32 %v5319_v19, 0.0 }
 0x418   : > { %v5552_v31 = vmax.f32 %v5482_v55, 0.0 }
 0x419   : > { %v5384_v14 = vpack.c.bf16 %v5364_v45, %v5363_v30 }
 0x41d   : > { %v5483_v26 = vpop.f32.mrf.mxu2 }
 0x41e   : > { %v5484_v59 = vadd.f32 %v9902_v61, %v5483_v26 }
 0x420   : > { %v5553_v54 = vmax.f32 %v5484_v59, 0.0 }
 0x422   : > { %v6227_v50 = vpack.c.bf16 %v5553_v54, %v5552_v31 }
 0x424   : > { %6366 = vst [vmem:[%s9913_s20 + $0x18] sm:$0xff] %v6227_v50  }
 0x427   : > { %5520 = vmatmul.bf16.gmra.mxu2 %v5384_v14 }
 0x435   : > { %v5321_v12 = vpop.f32.mrf.mxu3 }
 0x436   : > { %v5322_v36 = vadd.f32 %v9892_v10, %v5321_v12 }
 0x438   : > { %v5365_v2 = vmax.f32 %v5322_v36, 0.0 }
 0x43a   : > { %v5486_v0 = vpop.f32.mrf.mxu2 }
 0x43b   : > { %v5487_v62 = vadd.f32 %v9902_v61, %v5486_v0 }
 0x43d   : > { %v5323_v20 = vpop.f32.mrf.mxu3  ;;  %v5554_v22 = vmax.f32 %v5487_v62, 0.0 }
 0x43e   : > { %v5324_v46 = vadd.f32 %v9892_v10, %v5323_v20 }
 0x440   : > { %v5366_v21 = vmax.f32 %v5324_v46, 0.0 }
 0x442   : > { %v5385_v56 = vpack.c.bf16 %v5366_v21, %v5365_v2  ;;  %v5488_v27 = vpop.f32.mrf.mxu2 }
 0x443   : > { %v5489_v24 = vadd.f32 %v9902_v61, %v5488_v27 }
 0x444   : > { %5525 = vmatmul.bf16.vlgmr.msra.gmra.mxu3 %v5385_v56 }
 0x445   : > { %v5555_v15 = vmax.f32 %v5489_v24, 0.0 }
 0x447   : > { %v6232_v23 = vpack.c.bf16 %v5555_v15, %v5554_v22 }
 0x449   : > { %6367 = vst [vmem:[%s9913_s20 + $0x20] sm:$0xff] %v6232_v23  }
 0x44a   : > { %v5491_v40 = vpop.f32.mrf.mxu2 }
 0x44b   : > { %v5492_v13 = vadd.f32 %v9902_v61, %v5491_v40 }
 0x44d   : > { %v5556_v16 = vmax.f32 %v5492_v13, 0.0 }
 0x452   : > { %v5493_v17 = vpop.f32.mrf.mxu2 }
 0x453   : > { %v5494_v11 = vadd.f32 %v9902_v61, %v5493_v17 }
 0x455   : > { %v5557_v57 = vmax.f32 %v5494_v11, 0.0 }
 0x457   : > { %v6237_v35 = vpack.c.bf16 %v5557_v57, %v5556_v16 }
 0x459   : > { %6368 = vst [vmem:[%s9913_s20 + $0x28] sm:$0xff] %v6237_v35  }
 0x45a   : > { %v5326_v48 = vpop.f32.mrf.mxu3  ;;  %v5496_v42 = vpop.f32.mrf.mxu2 }
 0x45b   : > { %v5327_v7 = vadd.f32 %v9892_v10, %v5326_v48  ;;  %v5497_v9 = vadd.f32 %v9902_v61, %v5496_v42 }
 0x45d   : > { %v5367_v3 = vmax.f32 %v5327_v7, 0.0  ;;  %v5558_v5 = vmax.f32 %v5497_v9, 0.0 }
 0x462   : > { %v5328_v32 = vpop.f32.mrf.mxu3  ;;  %v5498_v41 = vpop.f32.mrf.mxu2 }
 0x463   : > { %v5329_v52 = vadd.f32 %v9892_v10, %v5328_v32  ;;  %v5499_v60 = vadd.f32 %v9902_v61, %v5498_v41 }
 0x465   : > { %v5368_v28 = vmax.f32 %v5329_v52, 0.0  ;;  %v5559_v8 = vmax.f32 %v5499_v60, 0.0 }
 0x467   : > { %v5386_v58 = vpack.c.bf16 %v5368_v28, %v5367_v3  ;;  %v6242_v43 = vpack.c.bf16 %v5559_v8, %v5558_v5 }
 0x469   : > { %5530 = vmatmul.bf16.gmra.mxu3 %v5386_v58  ;;  %6369 = vst [vmem:[%s9913_s20 + $0x30] sm:$0xff] %v6242_v43  }
 0x46a   : > { %v5331_v6 = vpop.f32.mrf.mxu3  ;;  %v5501_v49 = vpop.f32.mrf.mxu2 }
 0x46b   : > { %v5332_v38 = vadd.f32 %v9892_v10, %v5331_v6  ;;  %v5502_v29 = vadd.f32 %v9902_v61, %v5501_v49 }
 0x46d   : > { %v5369_v63 = vmax.f32 %v5332_v38, 0.0  ;;  %v5560_v51 = vmax.f32 %v5502_v29, 0.0 }
 0x472   : > { %v5333_v34 = vpop.f32.mrf.mxu3  ;;  %v5503_v47 = vpop.f32.mrf.mxu2 }
 0x473   : > { %v5334_v44 = vadd.f32 %v9892_v10, %v5333_v34  ;;  %v5504_v37 = vadd.f32 %v9902_v61, %v5503_v47 }
 0x475   : > { %v5370_v53 = vmax.f32 %v5334_v44, 0.0  ;;  %v5561_v4 = vmax.f32 %v5504_v37, 0.0 }
 0x477   : > { %v5387_v39 = vpack.c.bf16 %v5370_v53, %v5369_v63  ;;  %v6247_v18 = vpack.c.bf16 %v5561_v4, %v5560_v51 }
 0x479   : > { %5535 = vmatmul.bf16.gmra.mxu3 %v5387_v39  ;;  %6370 = vst [vmem:[%s9913_s20 + $0x38] sm:$0xff] %v6247_v18  }
 0x47a   : > { %v5336_v1 = vpop.f32.mrf.mxu3  ;;  %v5506_v33 = vpop.f32.mrf.mxu2 }
 0x47b   : > { %v5337_v25 = vadd.f32 %v9892_v10, %v5336_v1  ;;  %v5507_v30 = vadd.f32 %v9902_v61, %v5506_v33 }
 0x47d   : > { %v5371_v55 = vmax.f32 %v5337_v25, 0.0  ;;  %v5562_v54 = vmax.f32 %v5507_v30, 0.0 }
 0x482   : > { %v5338_v19 = vpop.f32.mrf.mxu3  ;;  %v5508_v14 = vpop.f32.mrf.mxu2 }
 0x483   : > { %v5339_v45 = vadd.f32 %v9892_v10, %v5338_v19  ;;  %v5509_v59 = vadd.f32 %v9902_v61, %v5508_v14 }
 0x485   : > { %v5372_v26 = vmax.f32 %v5339_v45, 0.0  ;;  %v5563_v50 = vmax.f32 %v5509_v59, 0.0 }
 0x487   : > { %v5388_v31 = vpack.c.bf16 %v5372_v26, %v5371_v55  ;;  %v6252_v12 = vpack.c.bf16 %v5563_v50, %v5562_v54 }
 0x489   : > { %5540 = vmatmul.bf16.gmra.mxu3 %v5388_v31  ;;  %6371 = vst [vmem:[%s9913_s20 + $0x40] sm:$0xff] %v6252_v12  }
 0x48a   : > { %v5511_v0 = vpop.f32.mrf.mxu2 }
 0x48b   : > { %v5512_v36 = vadd.f32 %v9902_v61, %v5511_v0 }
 0x48d   : > { %v5564_v46 = vmax.f32 %v5512_v36, 0.0 }
 0x492   : > { %v5513_v20 = vpop.f32.mrf.mxu2 }
 0x493   : > { %v5514_v10 = vadd.f32 %v9902_v61, %v5513_v20 }
 0x495   : > { %v5565_v2 = vmax.f32 %v5514_v10, 0.0 }
 0x497   : > { %v6257_v21 = vpack.c.bf16 %v5565_v2, %v5564_v46 }
 0x499   : > { %6372 = vst [vmem:[%s9913_s20 + $0x48] sm:$0xff] %v6257_v21  }
 0x49a   : > { %v5516_v56 = vpop.f32.mrf.mxu2 }
 0x49b   : > { %v5517_v62 = vadd.f32 %v9902_v61, %v5516_v56 }
 0x49d   : > { %v5566_v22 = vmax.f32 %v5517_v62, 0.0 }
 0x4a2   : > { %v5518_v27 = vpop.f32.mrf.mxu2 }
 0x4a3   : > { %v5519_v24 = vadd.f32 %v9902_v61, %v5518_v27 }
 0x4a5   : > { %v5567_v15 = vmax.f32 %v5519_v24, 0.0 }
 0x4a7   : > { %v6262_v23 = vpack.c.bf16 %v5567_v15, %v5566_v22 }
 0x4a9   : > { %6373 = vst [vmem:[%s9913_s20 + $0x50] sm:$0xff] %v6262_v23  }
 0x4aa   : > { %v5521_v40 = vpop.f32.mrf.mxu2 }
 0x4ab   : > { %v5522_v13 = vadd.f32 %v9902_v61, %v5521_v40 }
 0x4ad   : > { %v5568_v16 = vmax.f32 %v5522_v13, 0.0 }
 0x4b2   : > { %v5523_v17 = vpop.f32.mrf.mxu2 }
 0x4b3   : > { %v5524_v11 = vadd.f32 %v9902_v61, %v5523_v17 }
 0x4b5   : > { %v5569_v57 = vmax.f32 %v5524_v11, 0.0 }
 0x4b7   : > { %v6267_v48 = vpack.c.bf16 %v5569_v57, %v5568_v16 }
 0x4b9   : > { %6374 = vst [vmem:[%s9913_s20 + $0x58] sm:$0xff] %v6267_v48  }
 0x4c7   : > { %v5526_v35 = vpop.f32.mrf.mxu3 }
 0x4c8   : > { %v5527_v42 = vadd.f32 %v9902_v61, %v5526_v35 }
 0x4ca   : > { %v5570_v52 = vmax.f32 %v5527_v42, 0.0 }
 0x4cf   : > { %v5528_v7 = vpop.f32.mrf.mxu3 }
 0x4d0   : > { %v5529_v32 = vadd.f32 %v9902_v61, %v5528_v7 }
 0x4d2   : > { %v5571_v9 = vmax.f32 %v5529_v32, 0.0 }
 0x4d4   : > { %v6272_v3 = vpack.c.bf16 %v5571_v9, %v5570_v52 }
 0x4d6   : > { %6375 = vst [vmem:[%s9913_s20 + $0x60] sm:$0xff] %v6272_v3  }
 0x4ec   : > { %v5531_v28 = vpop.f32.mrf.mxu3 }
 0x4ed   : > { %v5532_v41 = vadd.f32 %v9902_v61, %v5531_v28 }
 0x4ef   : > { %v5572_v5 = vmax.f32 %v5532_v41, 0.0 }
 0x4f4   : > { %v5533_v60 = vpop.f32.mrf.mxu3 }
 0x4f5   : > { %v5534_v58 = vadd.f32 %v9902_v61, %v5533_v60 }
 0x4f7   : > { %v5573_v8 = vmax.f32 %v5534_v58, 0.0 }
 0x4f9   : > { %v6277_v6 = vpack.c.bf16 %v5573_v8, %v5572_v5 }
 0x4fb   : > { %6376 = vst [vmem:[%s9913_s20 + $0x68] sm:$0xff] %v6277_v6  }
 0x4fc   : > { %v5536_v43 = vpop.f32.mrf.mxu3 }
 0x4fd   : > { %v5537_v49 = vadd.f32 %v9902_v61, %v5536_v43 }
 0x4ff   : > { %v5574_v44 = vmax.f32 %v5537_v49, 0.0 }
 0x504   : > { %v5538_v38 = vpop.f32.mrf.mxu3 }
 0x505   : > { %v5539_v34 = vadd.f32 %v9902_v61, %v5538_v38 }
 0x507   : > { %v5575_v29 = vmax.f32 %v5539_v34, 0.0 }
 0x509   : > { %v6282_v63 = vpack.c.bf16 %v5575_v29, %v5574_v44 }
 0x50b   : > { %6377 = vst [vmem:[%s9913_s20 + $0x70] sm:$0xff] %v6282_v63  }
 0x50c   : > { %v5541_v53 = vpop.f32.mrf.mxu3 }
 0x50d   : > { %v5542_v47 = vadd.f32 %v9902_v61, %v5541_v53 }
 0x50f   : > { %v5576_v51 = vmax.f32 %v5542_v47, 0.0 }
 0x514   : > { %v5543_v37 = vpop.f32.mrf.mxu3 }
 0x515   : > { %v5544_v39 = vadd.f32 %v9902_v61, %v5543_v37 }
 0x517   : > { %v5577_v4 = vmax.f32 %v5544_v39, 0.0 }
 0x519   : > { %v6287_v1 = vpack.c.bf16 %v5577_v4, %v5576_v51 }
 0x51b   : > { %6378 = vst [vmem:[%s9913_s20 + $0x78] sm:$0xff] %v6287_v1  }
 0x51c PF: > { %s20_s13 = sadd.s32 1, %s6428_s13  }
 0x51d   : > { %p17_p4 = scmp.ge.s32.totalorder %s20_s13, 4  }
 0x51f   :  { %19 = sbr.rel (!%p17_p4) target bundleno = 1 (0x1), region = 98 }

</bundles_post_ra>
